<compile_context>
chip_gen: v7x
topology: tpu7x:2x2x1
jax: 0.10.0
libtpu: 0.0.40
codegen_flags: <defaults>
</compile_context>

<pallas_src>
import functools

import jax
import jax.numpy as jnp
from jax.experimental import pallas as pl
from jax.experimental.pallas import tpu as pltpu

CHANNEL = 64
EPS = 1e-5  # nn.BatchNorm2d default eps


def _make_kernel(*, H, W, Cin, Cout, act, inv_count, prebuilt_slab, emit_bf16):
    """Build the (phase, image-tile) kernel for Conv3x3 -> BN(batch) -> act."""
    M = H * W

    def kernel(x_ref, w_ref, gamma_ref, beta_ref, alpha_ref, *rest):
        if emit_bf16:
            o_ref, obf_ref, acc_ref, sum_ref, sq_ref = rest
        else:
            o_ref, acc_ref, sum_ref, sq_ref = rest
            obf_ref = None

        phase = pl.program_id(0)
        n = pl.program_id(1)

        @pl.when(jnp.logical_and(phase == 0, n == 0))
        def _zero_stats():
            sum_ref[...] = jnp.zeros_like(sum_ref)
            sq_ref[...] = jnp.zeros_like(sq_ref)

        @pl.when(phase == 0)
        def _conv_and_stats():
            if prebuilt_slab:
                # cov1: wrapper already built the [M, K] im2col slab (Cin == 1).
                slab = x_ref[...]
            else:
                # Build the K-stacked patch slab ONCE per tile from the
                # halo-padded input: 9 taps concatenated along the lane axis,
                # then a single deep matmul (K = 9*Cin) instead of 9 shallow ones.
                taps = []
                for dy in range(3):
                    for dx in range(3):
                        taps.append(
                            x_ref[dy:dy + H, dx:dx + W, :].reshape(M, Cin))
                slab = jnp.concatenate(taps, axis=-1)          # [M, 9*Cin] bf16
            acc = jnp.dot(slab, w_ref[...],
                          preferred_element_type=jnp.float32)  # [M, Cout] f32
            # Cache the conv result so phase 1 does not recompute it.
            acc_ref[n] = acc
            # Single-pass statistics (E[y], E[y^2]) accumulated over all tiles.
            # TODO(synk): shift by a first-tile mean / Kahan sumsq if N*H*W is
            # ever large enough for f32 cancellation to matter.
            sum_ref[...] += jnp.sum(acc, axis=0, keepdims=True)
            sq_ref[...] += jnp.sum(acc * acc, axis=0, keepdims=True)

        @pl.when(phase == 1)
        def _normalize_activate_store():
            acc = acc_ref[n]                                   # cached conv
            mean = sum_ref[...] * inv_count                    # [1, Cout]
            var = sq_ref[...] * inv_count - mean * mean        # biased (BN train)
            scale = gamma_ref[...] * jax.lax.rsqrt(var + EPS)  # EUP rsqrt
            shift = beta_ref[...] - mean * scale
            y = acc * scale + shift
            if act == "prelu":
                a = alpha_ref[0]                               # scalar from SMEM
                y = jnp.where(y >= 0.0, y, a * y)
            else:  # "tanh"
                y = jnp.tanh(y)
            o_ref[...] = y
            if emit_bf16:
                obf_ref[...] = y.astype(jnp.bfloat16)

    return kernel


def _run_block(patches, w_mat, gamma, beta, alpha, *, N, H, W, Cin, act,
               prebuilt_slab, emit_bf16):
    """One block: Conv3x3(no bias) -> BatchNorm(batch stats) -> activation.

    patches: either a pre-built im2col slab [N, M, Kdim] (prebuilt_slab=True,
             used for Cin == 1) or a halo-padded tile [N, H+2, W+2, Cin]
             (prebuilt_slab=False). bf16 in both cases.
    w_mat:   [Kdim, Cout] bf16 (tap-major: row = ky*3*Cin + kx*Cin + cin).
    Returns the f32 output [N, H, W, Cout] (plus a bf16 copy if emit_bf16).
    """
    M = H * W
    Kdim, Cout = w_mat.shape
    g2 = gamma.reshape(1, Cout).astype(jnp.float32)
    b2 = beta.reshape(1, Cout).astype(jnp.float32)
    a1 = jnp.asarray(alpha, jnp.float32).reshape(1)

    kernel = _make_kernel(H=H, W=W, Cin=Cin, Cout=Cout, act=act,
                          inv_count=1.0 / float(N * M),
                          prebuilt_slab=prebuilt_slab, emit_bf16=emit_bf16)

    # Phase 0 streams image n; phase 1 never reads the input, so its block
    # index is pinned to the last phase-0 block -> zero extra input DMA.
    if prebuilt_slab:
        in_spec_x = pl.BlockSpec(
            (None, M, Kdim),
            lambda p, n: (n * (1 - p) + (N - 1) * p, 0, 0))
    else:
        in_spec_x = pl.BlockSpec(
            (None, H + 2, W + 2, Cin),
            lambda p, n: (n * (1 - p) + (N - 1) * p, 0, 0, 0))

    # Phase 0 never writes the output; mapping every phase-0 step to block 0
    # keeps that (never-written) buffer resident, and the phase-0 -> phase-1
    # boundary keeps the same block index, so no garbage writeback occurs.
    out_idx = lambda p, n: (n * p, 0, 0)
    out_spec_f32 = pl.BlockSpec((None, M, Cout), out_idx)
    if emit_bf16:
        out_shape = (jax.ShapeDtypeStruct((N, M, Cout), jnp.float32),
                     jax.ShapeDtypeStruct((N, M, Cout), jnp.bfloat16))
        out_specs = [out_spec_f32, pl.BlockSpec((None, M, Cout), out_idx)]
    else:
        out_shape = jax.ShapeDtypeStruct((N, M, Cout), jnp.float32)
        out_specs = out_spec_f32

    res = pl.pallas_call(
        kernel,
        out_shape=out_shape,
        grid_spec=pltpu.PrefetchScalarGridSpec(
            num_scalar_prefetch=0,
            # grid = (BN phase, image tile). Both sequential: the stats and the
            # cached-acc scratch are shared by every tile (see v7x TODO above).
            grid=(2, N),
            in_specs=[
                in_spec_x,
                pl.BlockSpec((Kdim, Cout), lambda p, n: (0, 0)),   # weights (resident)
                pl.BlockSpec((1, Cout), lambda p, n: (0, 0)),      # BN gamma
                pl.BlockSpec((1, Cout), lambda p, n: (0, 0)),      # BN beta
                pl.BlockSpec(memory_space=pltpu.MemorySpace.SMEM), # PReLU alpha
            ],
            out_specs=out_specs,
            scratch_shapes=[
                pltpu.VMEM((N, M, Cout), jnp.float32),  # cached conv acc per image
                pltpu.VMEM((1, Cout), jnp.float32),     # global sum
                pltpu.VMEM((1, Cout), jnp.float32),     # global sum of squares
            ],
        ),
        compiler_params=pltpu.CompilerParams(
            dimension_semantics=("arbitrary", "arbitrary")),
    )(patches, w_mat, g2, b2, a1)

    if emit_bf16:
        o, obf = res
        return o.reshape(N, H, W, Cout), obf.reshape(N, H, W, Cout)
    return res.reshape(N, H, W, Cout)


def _cov1(x_nhwc, w, gamma, beta, alpha):
    """cov1: ReflectionPad2d(1) + Conv2d(1, 64, 3) + BN + PReLU.

    Cin == 1, so the wrapper builds a tiny [N, M, 16] im2col slab (9 taps
    zero-padded to 16) instead of shipping a [.., .., 1] tensor to the kernel.
    """
    N, H, W, _ = x_nhwc.shape
    M = H * W
    Kdim = 16
    xp = jnp.pad(x_nhwc[..., 0], ((0, 0), (1, 1), (1, 1)), mode="reflect")
    taps = [xp[:, dy:dy + H, dx:dx + W].reshape(N, M, 1)
            for dy in range(3) for dx in range(3)]
    slab = jnp.concatenate(taps, axis=-1)                           # [N, M, 9]
    slab = jnp.pad(slab, ((0, 0), (0, 0), (0, Kdim - 9))).astype(jnp.bfloat16)
    w_mat = jnp.pad(w.reshape(9, CHANNEL),
                    ((0, Kdim - 9), (0, 0))).astype(jnp.bfloat16)   # [16, 64]
    return _run_block(slab, w_mat, gamma, beta, alpha, N=N, H=H, W=W, Cin=1,
                      act="prelu", prebuilt_slab=True, emit_bf16=True)


def _cov_mid(x_bf16_nhwc, w, gamma, beta, alpha, *, act, emit_bf16):
    """cov2 / fused cov3+cov4: Conv2d(64, Cout, 3, padding=1) + BN + act."""
    N, H, W, Cin = x_bf16_nhwc.shape
    Cout = w.shape[-1]
    xp = jnp.pad(x_bf16_nhwc, ((0, 0), (1, 1), (1, 1), (0, 0)))  # zero halo, bf16
    w_mat = w.reshape(9 * Cin, Cout).astype(jnp.bfloat16)        # [576, Cout]
    return _run_block(xp, w_mat, gamma, beta, alpha, N=N, H=H, W=W, Cin=Cin,
                      act=act, prebuilt_slab=False, emit_bf16=emit_bf16)


def init_params(key):
    """Deterministic synthetic parameters (shapes implied by AE_Encoder.__init__).

    Conv biases are omitted on purpose: with train-mode BatchNorm directly after
    each conv they cancel exactly in every returned tensor."""
    ks = jax.random.split(key, 12)

    def conv_w(k, cin, cout):
        return jax.random.normal(k, (3, 3, cin, cout), jnp.float32) * 0.1

    def bn(kg, kb):
        g = 1.0 + 0.1 * jax.random.normal(kg, (CHANNEL,), jnp.float32)
        b = 0.1 * jax.random.normal(kb, (CHANNEL,), jnp.float32)
        return g, b

    g1, be1 = bn(ks[1], ks[2])
    g2, be2 = bn(ks[4], ks[5])
    g3, be3 = bn(ks[7], ks[8])
    g4, be4 = bn(ks[10], ks[11])
    return {
        "w1": conv_w(ks[0], 1, CHANNEL), "g1": g1, "beta1": be1, "alpha1": jnp.float32(0.25),
        "w2": conv_w(ks[3], CHANNEL, CHANNEL), "g2": g2, "beta2": be2, "alpha2": jnp.float32(0.25),
        "w3": conv_w(ks[6], CHANNEL, CHANNEL), "g3": g3, "beta3": be3,
        "w4": conv_w(ks[9], CHANNEL, CHANNEL), "g4": g4, "beta4": be4,
    }


def ae_encoder_forward(x_nchw, p):
    """Matches AE_Encoder.forward: (feature_1, feature_2, feature_B, feature_D), NCHW.

    TODO(synk): BatchNorm running_mean/running_var training-time buffer updates
    are not modeled (they do not affect the returned tensors)."""
    x = jnp.transpose(x_nchw, (0, 2, 3, 1))  # NCHW -> NHWC

    # cov1: ReflectionPad2d(1) + Conv2d(1, 64, 3) + BN + PReLU
    f1_f32, f1_bf16 = _cov1(x, p["w1"], p["g1"], p["beta1"], p["alpha1"])
    # cov2: Conv2d(64, 64, 3, padding=1) + BN + PReLU (consumes the kernel's
    # own bf16 copy of f1 -> no XLA astype pass, half the inter-layer bytes).
    f2_f32, f2_bf16 = _cov_mid(f1_bf16, p["w2"], p["g2"], p["beta2"],
                               p["alpha2"], act="prelu", emit_bf16=True)
    # cov3 + cov4 fused: both read identical f2 patches -> one kernel with a
    # concatenated [576, 128] weight and lane-dense 128-wide output stores.
    w34 = jnp.concatenate([p["w3"], p["w4"]], axis=-1)
    g34 = jnp.concatenate([p["g3"], p["g4"]], axis=0)
    be34 = jnp.concatenate([p["beta3"], p["beta4"]], axis=0)
    fBD = _cov_mid(f2_bf16, w34, g34, be34, jnp.float32(0.0),
                   act="tanh", emit_bf16=False)
    fB, fD = fBD[..., :CHANNEL], fBD[..., CHANNEL:]

    to_nchw = lambda t: jnp.transpose(t, (0, 3, 1, 2))
    return to_nchw(f1_f32), to_nchw(f2_f32), to_nchw(fB), to_nchw(fD)


# ------------------------- pure-JAX f32 reference -------------------------

def _ref_block(x_nhwc, w, gamma, beta, alpha, *, act, pad_mode):
    xp = jnp.pad(x_nhwc, ((0, 0), (1, 1), (1, 1), (0, 0)), mode=pad_mode)
    y = jax.lax.conv_general_dilated(xp, w, (1, 1), "VALID",
                                     dimension_numbers=("NHWC", "HWIO", "NHWC"))
    mean = jnp.mean(y, axis=(0, 1, 2), keepdims=True)
    var = jnp.mean(jnp.square(y - mean), axis=(0, 1, 2), keepdims=True)
    y = (y - mean) * jax.lax.rsqrt(var + EPS) * gamma + beta
    return jnp.where(y >= 0.0, y, alpha * y) if act == "prelu" else jnp.tanh(y)


def _ref_forward(x_nchw, p):
    x = jnp.transpose(x_nchw, (0, 2, 3, 1))
    f1 = _ref_block(x, p["w1"], p["g1"], p["beta1"], p["alpha1"],
                    act="prelu", pad_mode="reflect")
    f2 = _ref_block(f1, p["w2"], p["g2"], p["beta2"], p["alpha2"],
                    act="prelu", pad_mode="constant")
    fB = _ref_block(f2, p["w3"], p["g3"], p["beta3"], 1.0,
                    act="tanh", pad_mode="constant")
    fD = _ref_block(f2, p["w4"], p["g4"], p["beta4"], 1.0,
                    act="tanh", pad_mode="constant")
    to_nchw = lambda t: jnp.transpose(t, (0, 3, 1, 2))
    return to_nchw(f1), to_nchw(f2), to_nchw(fB), to_nchw(fD)


if __name__ == "__main__":
    key = jax.random.PRNGKey(0)
    kx, kp = jax.random.split(key)
    # PyTorch input is NCHW with 1 channel (Conv2d(1, 64, ...)).
    x = jax.random.normal(kx, (2, 1, 16, 16), jnp.float32)
    params = init_params(kp)

    feats = jax.block_until_ready(jax.jit(ae_encoder_forward)(x, params))
    f1, f2, fB, fD = feats
    assert f1.shape == (2, CHANNEL, 16, 16)
    assert f2.shape == (2, CHANNEL, 16, 16)
    assert fB.shape == (2, CHANNEL, 16, 16)
    assert fD.shape == (2, CHANNEL, 16, 16)
    assert all(bool(jnp.all(jnp.isfinite(t))) for t in feats)

    # Tolerance check vs the pure-JAX f32 reference (bf16 MXU operands and the
    # single-pass variance introduce small numerical differences).
    ref = jax.block_until_ready(jax.jit(_ref_forward)(x, params))
    for name, a, b in zip(("feature_1", "feature_2", "feature_B", "feature_D"),
                          feats, ref):
        err = float(jnp.max(jnp.abs(a - b)))
        assert err < 0.15, f"{name}: max abs diff {err}"

    print("KERNEL_OK")
</pallas_src>

<mosaic_0001>
module attributes {stable_mosaic.version = 11 : i64} {
  func.func @kernel(%arg0: i32, %arg1: i32, %arg2: memref<1x256x16xbf16, #tpu.memory_space<vmem>>, %arg3: memref<16x64xbf16, #tpu.memory_space<vmem>>, %arg4: memref<1x64xf32, #tpu.memory_space<vmem>>, %arg5: memref<1x64xf32, #tpu.memory_space<vmem>>, %arg6: memref<1xf32, #tpu.memory_space<smem>>, %arg7: memref<1x256x64xf32, #tpu.memory_space<vmem>>, %arg8: memref<1x256x64xbf16, #tpu.memory_space<vmem>>, %arg9: memref<2x256x64xf32, #tpu.memory_space<vmem>>, %arg10: memref<1x64xf32, #tpu.memory_space<vmem>>, %arg11: memref<1x64xf32, #tpu.memory_space<vmem>>) attributes {dimension_semantics = [#tpu.dimension_semantics<arbitrary>, #tpu.dimension_semantics<arbitrary>], iteration_bounds = array<i64: 2, 2>, scalar_prefetch = 0 : i64, scratch_operands = 3 : i64, tpu.core_type = #tpu.core_type<tc>, window_params = [{transform_indices = @transform_0, window_bounds = array<i64: 1, 256, 16>}, {pipeline_mode = #tpu.pipeline_mode<synchronous>, transform_indices = @transform_1, window_bounds = array<i64: 16, 64>}, {pipeline_mode = #tpu.pipeline_mode<synchronous>, transform_indices = @transform_2, window_bounds = array<i64: 1, 64>}, {pipeline_mode = #tpu.pipeline_mode<synchronous>, transform_indices = @transform_3, window_bounds = array<i64: 1, 64>}, {transform_indices = @transform_4, window_bounds = array<i64: 1>}, {transform_indices = @transform_5, window_bounds = array<i64: 1, 256, 64>}, {transform_indices = @transform_6, window_bounds = array<i64: 1, 256, 64>}]} {
    %c0_i32 = arith.constant 0 : i32
    %0 = arith.cmpi eq, %arg0, %c0_i32 : i32
    %c0_i32_0 = arith.constant 0 : i32
    %1 = arith.cmpi eq, %arg1, %c0_i32_0 : i32
    %2 = arith.andi %0, %1 : i1
    %3 = arith.extui %2 : i1 to i32
    %c0_i32_1 = arith.constant 0 : i32
    %4 = arith.cmpi ne, %3, %c0_i32_1 : i32
    scf.if %4 {
      %cst = arith.constant 0.000000e+00 : f32
      %11 = vector.broadcast %cst : f32 to vector<1x64xf32>
      %c0 = arith.constant 0 : index
      %c0_5 = arith.constant 0 : index
      %12 = vector.load %arg10[%c0, %c0_5] : memref<1x64xf32, #tpu.memory_space<vmem>>, vector<1x64xf32>
      tpu.vector_store %arg10[%c0, %c0_5], %11 {strides = array<i32>} : memref<1x64xf32, #tpu.memory_space<vmem>>, vector<1x64xf32>,
      %cst_6 = arith.constant 0.000000e+00 : f32
      %13 = vector.broadcast %cst_6 : f32 to vector<1x64xf32>
      %c0_7 = arith.constant 0 : index
      %c0_8 = arith.constant 0 : index
      %14 = vector.load %arg11[%c0_7, %c0_8] : memref<1x64xf32, #tpu.memory_space<vmem>>, vector<1x64xf32>
      tpu.vector_store %arg11[%c0_7, %c0_8], %13 {strides = array<i32>} : memref<1x64xf32, #tpu.memory_space<vmem>>, vector<1x64xf32>,
    } else {
    }
    %c0_i32_2 = arith.constant 0 : i32
    %5 = arith.cmpi eq, %arg0, %c0_i32_2 : i32
    %6 = arith.extui %5 : i1 to i32
    %c0_i32_3 = arith.constant 0 : i32
    %7 = arith.cmpi ne, %6, %c0_i32_3 : i32
    scf.if %7 {
      %c0 = arith.constant 0 : index
      %c0_5 = arith.constant 0 : index
      %c0_6 = arith.constant 0 : index
      %11 = vector.load %arg2[%c0, %c0_5, %c0_6] : memref<1x256x16xbf16, #tpu.memory_space<vmem>>, vector<1x256x16xbf16>
      %12 = vector.shape_cast %11 : vector<1x256x16xbf16> to vector<256x16xbf16>
      %c0_7 = arith.constant 0 : index
      %c0_8 = arith.constant 0 : index
      %13 = vector.load %arg3[%c0_7, %c0_8] : memref<16x64xbf16, #tpu.memory_space<vmem>>, vector<16x64xbf16>
      %cst = arith.constant dense<0.000000e+00> : vector<256x64xf32>
      %14 = tpu.matmul %12, %13, %cst {dimension_numbers = #tpu.dot_dimension_numbers<[1], [0], [0], [1], [0, 0, 1, 1], [], []>} : vector<256x16xbf16>, vector<16x64xbf16>, vector<256x64xf32> -> vector<256x64xf32>
      %15 = arith.index_cast %arg1 : i32 to index
      %c0_9 = arith.constant 0 : index
      %c0_10 = arith.constant 0 : index
      %16 = vector.load %arg9[%15, %c0_9, %c0_10] : memref<2x256x64xf32, #tpu.memory_space<vmem>>, vector<1x256x64xf32>
      %17 = vector.shape_cast %16 : vector<1x256x64xf32> to vector<256x64xf32>
      %18 = vector.shape_cast %14 : vector<256x64xf32> to vector<1x256x64xf32>
      tpu.vector_store %arg9[%15, %c0_9, %c0_10], %18 {strides = array<i32>} : memref<2x256x64xf32, #tpu.memory_space<vmem>>, vector<1x256x64xf32>,
      %c0_11 = arith.constant 0 : index
      %c0_12 = arith.constant 0 : index
      %19 = vector.load %arg10[%c0_11, %c0_12] : memref<1x64xf32, #tpu.memory_space<vmem>>, vector<1x64xf32>
      %cst_13 = arith.constant dense<0.000000e+00> : vector<64xf32>
      %20 = vector.multi_reduction <add>, %14, %cst_13 [0] : vector<256x64xf32> to vector<64xf32>
      %21 = vector.shape_cast %20 : vector<64xf32> to vector<1x64xf32>
      %22 = arith.addf %19, %21 : vector<1x64xf32>
      %c0_14 = arith.constant 0 : index
      %c0_15 = arith.constant 0 : index
      %23 = vector.load %arg10[%c0_14, %c0_15] : memref<1x64xf32, #tpu.memory_space<vmem>>, vector<1x64xf32>
      tpu.vector_store %arg10[%c0_14, %c0_15], %22 {strides = array<i32>} : memref<1x64xf32, #tpu.memory_space<vmem>>, vector<1x64xf32>,
      %c0_16 = arith.constant 0 : index
      %c0_17 = arith.constant 0 : index
      %24 = vector.load %arg11[%c0_16, %c0_17] : memref<1x64xf32, #tpu.memory_space<vmem>>, vector<1x64xf32>
      %25 = arith.mulf %14, %14 : vector<256x64xf32>
      %cst_18 = arith.constant dense<0.000000e+00> : vector<64xf32>
      %26 = vector.multi_reduction <add>, %25, %cst_18 [0] : vector<256x64xf32> to vector<64xf32>
      %27 = vector.shape_cast %26 : vector<64xf32> to vector<1x64xf32>
      %28 = arith.addf %24, %27 : vector<1x64xf32>
      %c0_19 = arith.constant 0 : index
      %c0_20 = arith.constant 0 : index
      %29 = vector.load %arg11[%c0_19, %c0_20] : memref<1x64xf32, #tpu.memory_space<vmem>>, vector<1x64xf32>
      tpu.vector_store %arg11[%c0_19, %c0_20], %28 {strides = array<i32>} : memref<1x64xf32, #tpu.memory_space<vmem>>, vector<1x64xf32>,
    } else {
    }
    %c1_i32 = arith.constant 1 : i32
    %8 = arith.cmpi eq, %arg0, %c1_i32 : i32
    %9 = arith.extui %8 : i1 to i32
    %c0_i32_4 = arith.constant 0 : i32
    %10 = arith.cmpi ne, %9, %c0_i32_4 : i32
    scf.if %10 {
      %11 = arith.index_cast %arg1 : i32 to index
      %c0 = arith.constant 0 : index
      %c0_5 = arith.constant 0 : index
      %12 = vector.load %arg9[%11, %c0, %c0_5] : memref<2x256x64xf32, #tpu.memory_space<vmem>>, vector<1x256x64xf32>
      %13 = vector.shape_cast %12 : vector<1x256x64xf32> to vector<256x64xf32>
      %c0_6 = arith.constant 0 : index
      %c0_7 = arith.constant 0 : index
      %14 = vector.load %arg10[%c0_6, %c0_7] : memref<1x64xf32, #tpu.memory_space<vmem>>, vector<1x64xf32>
      %cst = arith.constant 0.001953125 : f32
      %15 = vector.broadcast %cst : f32 to vector<1x64xf32>
      %16 = arith.mulf %14, %15 : vector<1x64xf32>
      %c0_8 = arith.constant 0 : index
      %c0_9 = arith.constant 0 : index
      %17 = vector.load %arg11[%c0_8, %c0_9] : memref<1x64xf32, #tpu.memory_space<vmem>>, vector<1x64xf32>
      %cst_10 = arith.constant 0.001953125 : f32
      %18 = vector.broadcast %cst_10 : f32 to vector<1x64xf32>
      %19 = arith.mulf %17, %18 : vector<1x64xf32>
      %20 = arith.mulf %16, %16 : vector<1x64xf32>
      %21 = arith.subf %19, %20 : vector<1x64xf32>
      %c0_11 = arith.constant 0 : index
      %c0_12 = arith.constant 0 : index
      %22 = vector.load %arg4[%c0_11, %c0_12] : memref<1x64xf32, #tpu.memory_space<vmem>>, vector<1x64xf32>
      %cst_13 = arith.constant 9.99999974E-6 : f32
      %23 = vector.broadcast %cst_13 : f32 to vector<1x64xf32>
      %24 = arith.addf %21, %23 : vector<1x64xf32>
      %25 = math.rsqrt %24 : vector<1x64xf32>
      %26 = arith.mulf %22, %25 : vector<1x64xf32>
      %c0_14 = arith.constant 0 : index
      %c0_15 = arith.constant 0 : index
      %27 = vector.load %arg5[%c0_14, %c0_15] : memref<1x64xf32, #tpu.memory_space<vmem>>, vector<1x64xf32>
      %28 = arith.mulf %16, %26 : vector<1x64xf32>
      %29 = arith.subf %27, %28 : vector<1x64xf32>
      %30 = vector.broadcast %26 : vector<1x64xf32> to vector<256x64xf32>
      %31 = arith.mulf %13, %30 : vector<256x64xf32>
      %32 = vector.broadcast %29 : vector<1x64xf32> to vector<256x64xf32>
      %33 = arith.addf %31, %32 : vector<256x64xf32>
      %c0_16 = arith.constant 0 : index
      %34 = memref.load %arg6[%c0_16] : memref<1xf32, #tpu.memory_space<smem>>
      %cst_17 = arith.constant 0.000000e+00 : f32
      %35 = vector.broadcast %cst_17 : f32 to vector<256x64xf32>
      %36 = arith.cmpf oge, %33, %35 : vector<256x64xf32>
      %37 = vector.broadcast %34 : f32 to vector<256x64xf32>
      %38 = arith.mulf %37, %33 : vector<256x64xf32>
      %39 = arith.select %36, %33, %38 : vector<256x64xi1>, vector<256x64xf32>
      %c0_18 = arith.constant 0 : index
      %c0_19 = arith.constant 0 : index
      %c0_20 = arith.constant 0 : index
      %40 = vector.load %arg7[%c0_18, %c0_19, %c0_20] : memref<1x256x64xf32, #tpu.memory_space<vmem>>, vector<1x256x64xf32>
      %41 = vector.shape_cast %40 : vector<1x256x64xf32> to vector<256x64xf32>
      %42 = vector.shape_cast %39 : vector<256x64xf32> to vector<1x256x64xf32>
      tpu.vector_store %arg7[%c0_18, %c0_19, %c0_20], %42 {strides = array<i32>} : memref<1x256x64xf32, #tpu.memory_space<vmem>>, vector<1x256x64xf32>,
      %43 = arith.truncf %39 : vector<256x64xf32> to vector<256x64xbf16>
      %c0_21 = arith.constant 0 : index
      %c0_22 = arith.constant 0 : index
      %c0_23 = arith.constant 0 : index
      %44 = vector.load %arg8[%c0_21, %c0_22, %c0_23] : memref<1x256x64xbf16, #tpu.memory_space<vmem>>, vector<1x256x64xbf16>
      %45 = vector.shape_cast %44 : vector<1x256x64xbf16> to vector<256x64xbf16>
      %46 = vector.shape_cast %43 : vector<256x64xbf16> to vector<1x256x64xbf16>
      tpu.vector_store %arg8[%c0_21, %c0_22, %c0_23], %46 {strides = array<i32>} : memref<1x256x64xbf16, #tpu.memory_space<vmem>>, vector<1x256x64xbf16>,
    } else {
    }
    return
  }
  func.func @transform_0(%arg0: i32, %arg1: i32) -> (i32, i32, i32) {
    %c1_i32 = arith.constant 1 : i32
    %0 = arith.subi %c1_i32, %arg0 : i32
    %1 = arith.muli %arg1, %0 : i32
    %c1_i32_0 = arith.constant 1 : i32
    %2 = arith.muli %c1_i32_0, %arg0 : i32
    %3 = arith.addi %1, %2 : i32
    %c0_i32 = arith.constant 0 : i32
    %c0_i32_1 = arith.constant 0 : i32
    %c0_i32_2 = arith.constant 0 : i32
    return %3, %c0_i32, %c0_i32_1 : i32, i32, i32
  }
  func.func @transform_1(%arg0: i32, %arg1: i32) -> (i32, i32) {
    %c0_i32 = arith.constant 0 : i32
    %c0_i32_0 = arith.constant 0 : i32
    %c0_i32_1 = arith.constant 0 : i32
    return %c0_i32, %c0_i32_0 : i32, i32
  }
  func.func @transform_2(%arg0: i32, %arg1: i32) -> (i32, i32) {
    %c0_i32 = arith.constant 0 : i32
    %c0_i32_0 = arith.constant 0 : i32
    %c0_i32_1 = arith.constant 0 : i32
    return %c0_i32, %c0_i32_0 : i32, i32
  }
  func.func @transform_3(%arg0: i32, %arg1: i32) -> (i32, i32) {
    %c0_i32 = arith.constant 0 : i32
    %c0_i32_0 = arith.constant 0 : i32
    %c0_i32_1 = arith.constant 0 : i32
    return %c0_i32, %c0_i32_0 : i32, i32
  }
  func.func @transform_4(%arg0: i32, %arg1: i32) -> i32 {
    %c0_i32 = arith.constant 0 : i32
    %c0_i32_0 = arith.constant 0 : i32
    return %c0_i32 : i32
  }
  func.func @transform_5(%arg0: i32, %arg1: i32) -> (i32, i32, i32) {
    %0 = arith.muli %arg1, %arg0 : i32
    %c0_i32 = arith.constant 0 : i32
    %c0_i32_0 = arith.constant 0 : i32
    %c0_i32_1 = arith.constant 0 : i32
    return %0, %c0_i32, %c0_i32_0 : i32, i32, i32
  }
  func.func @transform_6(%arg0: i32, %arg1: i32) -> (i32, i32, i32) {
    %0 = arith.muli %arg1, %arg0 : i32
    %c0_i32 = arith.constant 0 : i32
    %c0_i32_0 = arith.constant 0 : i32
    %c0_i32_1 = arith.constant 0 : i32
    return %0, %c0_i32, %c0_i32_0 : i32, i32, i32
  }
}

module attributes {stable_mosaic.version = 11 : i64} {
  func.func @kernel(%arg0: i32, %arg1: i32, %arg2: memref<1x18x18x64xbf16, #tpu.memory_space<vmem>>, %arg3: memref<576x64xbf16, #tpu.memory_space<vmem>>, %arg4: memref<1x64xf32, #tpu.memory_space<vmem>>, %arg5: memref<1x64xf32, #tpu.memory_space<vmem>>, %arg6: memref<1xf32, #tpu.memory_space<smem>>, %arg7: memref<1x256x64xf32, #tpu.memory_space<vmem>>, %arg8: memref<1x256x64xbf16, #tpu.memory_space<vmem>>, %arg9: memref<2x256x64xf32, #tpu.memory_space<vmem>>, %arg10: memref<1x64xf32, #tpu.memory_space<vmem>>, %arg11: memref<1x64xf32, #tpu.memory_space<vmem>>) attributes {dimension_semantics = [#tpu.dimension_semantics<arbitrary>, #tpu.dimension_semantics<arbitrary>], iteration_bounds = array<i64: 2, 2>, scalar_prefetch = 0 : i64, scratch_operands = 3 : i64, tpu.core_type = #tpu.core_type<tc>, window_params = [{transform_indices = @transform_0, window_bounds = array<i64: 1, 18, 18, 64>}, {pipeline_mode = #tpu.pipeline_mode<synchronous>, transform_indices = @transform_1, window_bounds = array<i64: 576, 64>}, {pipeline_mode = #tpu.pipeline_mode<synchronous>, transform_indices = @transform_2, window_bounds = array<i64: 1, 64>}, {pipeline_mode = #tpu.pipeline_mode<synchronous>, transform_indices = @transform_3, window_bounds = array<i64: 1, 64>}, {transform_indices = @transform_4, window_bounds = array<i64: 1>}, {transform_indices = @transform_5, window_bounds = array<i64: 1, 256, 64>}, {transform_indices = @transform_6, window_bounds = array<i64: 1, 256, 64>}]} {
    %c0_i32 = arith.constant 0 : i32
    %0 = arith.cmpi eq, %arg0, %c0_i32 : i32
    %c0_i32_0 = arith.constant 0 : i32
    %1 = arith.cmpi eq, %arg1, %c0_i32_0 : i32
    %2 = arith.andi %0, %1 : i1
    %3 = arith.extui %2 : i1 to i32
    %c0_i32_1 = arith.constant 0 : i32
    %4 = arith.cmpi ne, %3, %c0_i32_1 : i32
    scf.if %4 {
      %cst = arith.constant 0.000000e+00 : f32
      %11 = vector.broadcast %cst : f32 to vector<1x64xf32>
      %c0 = arith.constant 0 : index
      %c0_5 = arith.constant 0 : index
      %12 = vector.load %arg10[%c0, %c0_5] : memref<1x64xf32, #tpu.memory_space<vmem>>, vector<1x64xf32>
      tpu.vector_store %arg10[%c0, %c0_5], %11 {strides = array<i32>} : memref<1x64xf32, #tpu.memory_space<vmem>>, vector<1x64xf32>,
      %cst_6 = arith.constant 0.000000e+00 : f32
      %13 = vector.broadcast %cst_6 : f32 to vector<1x64xf32>
      %c0_7 = arith.constant 0 : index
      %c0_8 = arith.constant 0 : index
      %14 = vector.load %arg11[%c0_7, %c0_8] : memref<1x64xf32, #tpu.memory_space<vmem>>, vector<1x64xf32>
      tpu.vector_store %arg11[%c0_7, %c0_8], %13 {strides = array<i32>} : memref<1x64xf32, #tpu.memory_space<vmem>>, vector<1x64xf32>,
    } else {
    }
    %c0_i32_2 = arith.constant 0 : i32
    %5 = arith.cmpi eq, %arg0, %c0_i32_2 : i32
    %6 = arith.extui %5 : i1 to i32
    %c0_i32_3 = arith.constant 0 : i32
    %7 = arith.cmpi ne, %6, %c0_i32_3 : i32
    scf.if %7 {
      %c0 = arith.constant 0 : index
      %c0_5 = arith.constant 0 : index
      %c0_6 = arith.constant 0 : index
      %c0_7 = arith.constant 0 : index
      %11 = vector.load %arg2[%c0, %c0_5, %c0_6, %c0_7] : memref<1x18x18x64xbf16, #tpu.memory_space<vmem>>, vector<1x16x16x64xbf16>
      %12 = vector.shape_cast %11 : vector<1x16x16x64xbf16> to vector<16x16x64xbf16>
      %13 = vector.shape_cast %12 : vector<16x16x64xbf16> to vector<256x64xbf16>
      %c0_8 = arith.constant 0 : index
      %c0_9 = arith.constant 0 : index
      %c1 = arith.constant 1 : index
      %c0_10 = arith.constant 0 : index
      %14 = vector.load %arg2[%c0_8, %c0_9, %c1, %c0_10] : memref<1x18x18x64xbf16, #tpu.memory_space<vmem>>, vector<1x16x16x64xbf16>
      %15 = vector.shape_cast %14 : vector<1x16x16x64xbf16> to vector<16x16x64xbf16>
      %16 = vector.shape_cast %15 : vector<16x16x64xbf16> to vector<256x64xbf16>
      %c0_11 = arith.constant 0 : index
      %c0_12 = arith.constant 0 : index
      %c2 = arith.constant 2 : index
      %c0_13 = arith.constant 0 : index
      %17 = vector.load %arg2[%c0_11, %c0_12, %c2, %c0_13] : memref<1x18x18x64xbf16, #tpu.memory_space<vmem>>, vector<1x16x16x64xbf16>
      %18 = vector.shape_cast %17 : vector<1x16x16x64xbf16> to vector<16x16x64xbf16>
      %19 = vector.shape_cast %18 : vector<16x16x64xbf16> to vector<256x64xbf16>
      %c0_14 = arith.constant 0 : index
      %c1_15 = arith.constant 1 : index
      %c0_16 = arith.constant 0 : index
      %c0_17 = arith.constant 0 : index
      %20 = vector.load %arg2[%c0_14, %c1_15, %c0_16, %c0_17] : memref<1x18x18x64xbf16, #tpu.memory_space<vmem>>, vector<1x16x16x64xbf16>
      %21 = vector.shape_cast %20 : vector<1x16x16x64xbf16> to vector<16x16x64xbf16>
      %22 = vector.shape_cast %21 : vector<16x16x64xbf16> to vector<256x64xbf16>
      %c0_18 = arith.constant 0 : index
      %c1_19 = arith.constant 1 : index
      %c1_20 = arith.constant 1 : index
      %c0_21 = arith.constant 0 : index
      %23 = vector.load %arg2[%c0_18, %c1_19, %c1_20, %c0_21] : memref<1x18x18x64xbf16, #tpu.memory_space<vmem>>, vector<1x16x16x64xbf16>
      %24 = vector.shape_cast %23 : vector<1x16x16x64xbf16> to vector<16x16x64xbf16>
      %25 = vector.shape_cast %24 : vector<16x16x64xbf16> to vector<256x64xbf16>
      %c0_22 = arith.constant 0 : index
      %c1_23 = arith.constant 1 : index
      %c2_24 = arith.constant 2 : index
      %c0_25 = arith.constant 0 : index
      %26 = vector.load %arg2[%c0_22, %c1_23, %c2_24, %c0_25] : memref<1x18x18x64xbf16, #tpu.memory_space<vmem>>, vector<1x16x16x64xbf16>
      %27 = vector.shape_cast %26 : vector<1x16x16x64xbf16> to vector<16x16x64xbf16>
      %28 = vector.shape_cast %27 : vector<16x16x64xbf16> to vector<256x64xbf16>
      %c0_26 = arith.constant 0 : index
      %c2_27 = arith.constant 2 : index
      %c0_28 = arith.constant 0 : index
      %c0_29 = arith.constant 0 : index
      %29 = vector.load %arg2[%c0_26, %c2_27, %c0_28, %c0_29] : memref<1x18x18x64xbf16, #tpu.memory_space<vmem>>, vector<1x16x16x64xbf16>
      %30 = vector.shape_cast %29 : vector<1x16x16x64xbf16> to vector<16x16x64xbf16>
      %31 = vector.shape_cast %30 : vector<16x16x64xbf16> to vector<256x64xbf16>
      %c0_30 = arith.constant 0 : index
      %c2_31 = arith.constant 2 : index
      %c1_32 = arith.constant 1 : index
      %c0_33 = arith.constant 0 : index
      %32 = vector.load %arg2[%c0_30, %c2_31, %c1_32, %c0_33] : memref<1x18x18x64xbf16, #tpu.memory_space<vmem>>, vector<1x16x16x64xbf16>
      %33 = vector.shape_cast %32 : vector<1x16x16x64xbf16> to vector<16x16x64xbf16>
      %34 = vector.shape_cast %33 : vector<16x16x64xbf16> to vector<256x64xbf16>
      %c0_34 = arith.constant 0 : index
      %c2_35 = arith.constant 2 : index
      %c2_36 = arith.constant 2 : index
      %c0_37 = arith.constant 0 : index
      %35 = vector.load %arg2[%c0_34, %c2_35, %c2_36, %c0_37] : memref<1x18x18x64xbf16, #tpu.memory_space<vmem>>, vector<1x16x16x64xbf16>
      %36 = vector.shape_cast %35 : vector<1x16x16x64xbf16> to vector<16x16x64xbf16>
      %37 = vector.shape_cast %36 : vector<16x16x64xbf16> to vector<256x64xbf16>
      %38 = tpu.concatenate %13, %16, %19, %22, %25, %28, %31, %34, %37 in 1 : vector<256x64xbf16>, vector<256x64xbf16>, vector<256x64xbf16>, vector<256x64xbf16>, vector<256x64xbf16>, vector<256x64xbf16>, vector<256x64xbf16>, vector<256x64xbf16>, vector<256x64xbf16> -> vector<256x576xbf16>
      %c0_38 = arith.constant 0 : index
      %c0_39 = arith.constant 0 : index
      %39 = vector.load %arg3[%c0_38, %c0_39] : memref<576x64xbf16, #tpu.memory_space<vmem>>, vector<576x64xbf16>
      %cst = arith.constant dense<0.000000e+00> : vector<256x64xf32>
      %40 = tpu.matmul %38, %39, %cst {dimension_numbers = #tpu.dot_dimension_numbers<[1], [0], [0], [1], [0, 0, 1, 1], [], []>} : vector<256x576xbf16>, vector<576x64xbf16>, vector<256x64xf32> -> vector<256x64xf32>
      %41 = arith.index_cast %arg1 : i32 to index
      %c0_40 = arith.constant 0 : index
      %c0_41 = arith.constant 0 : index
      %42 = vector.load %arg9[%41, %c0_40, %c0_41] : memref<2x256x64xf32, #tpu.memory_space<vmem>>, vector<1x256x64xf32>
      %43 = vector.shape_cast %42 : vector<1x256x64xf32> to vector<256x64xf32>
      %44 = vector.shape_cast %40 : vector<256x64xf32> to vector<1x256x64xf32>
      tpu.vector_store %arg9[%41, %c0_40, %c0_41], %44 {strides = array<i32>} : memref<2x256x64xf32, #tpu.memory_space<vmem>>, vector<1x256x64xf32>,
      %c0_42 = arith.constant 0 : index
      %c0_43 = arith.constant 0 : index
      %45 = vector.load %arg10[%c0_42, %c0_43] : memref<1x64xf32, #tpu.memory_space<vmem>>, vector<1x64xf32>
      %cst_44 = arith.constant dense<0.000000e+00> : vector<64xf32>
      %46 = vector.multi_reduction <add>, %40, %cst_44 [0] : vector<256x64xf32> to vector<64xf32>
      %47 = vector.shape_cast %46 : vector<64xf32> to vector<1x64xf32>
      %48 = arith.addf %45, %47 : vector<1x64xf32>
      %c0_45 = arith.constant 0 : index
      %c0_46 = arith.constant 0 : index
      %49 = vector.load %arg10[%c0_45, %c0_46] : memref<1x64xf32, #tpu.memory_space<vmem>>, vector<1x64xf32>
      tpu.vector_store %arg10[%c0_45, %c0_46], %48 {strides = array<i32>} : memref<1x64xf32, #tpu.memory_space<vmem>>, vector<1x64xf32>,
      %c0_47 = arith.constant 0 : index
      %c0_48 = arith.constant 0 : index
      %50 = vector.load %arg11[%c0_47, %c0_48] : memref<1x64xf32, #tpu.memory_space<vmem>>, vector<1x64xf32>
      %51 = arith.mulf %40, %40 : vector<256x64xf32>
      %cst_49 = arith.constant dense<0.000000e+00> : vector<64xf32>
      %52 = vector.multi_reduction <add>, %51, %cst_49 [0] : vector<256x64xf32> to vector<64xf32>
      %53 = vector.shape_cast %52 : vector<64xf32> to vector<1x64xf32>
      %54 = arith.addf %50, %53 : vector<1x64xf32>
      %c0_50 = arith.constant 0 : index
      %c0_51 = arith.constant 0 : index
      %55 = vector.load %arg11[%c0_50, %c0_51] : memref<1x64xf32, #tpu.memory_space<vmem>>, vector<1x64xf32>
      tpu.vector_store %arg11[%c0_50, %c0_51], %54 {strides = array<i32>} : memref<1x64xf32, #tpu.memory_space<vmem>>, vector<1x64xf32>,
    } else {
    }
    %c1_i32 = arith.constant 1 : i32
    %8 = arith.cmpi eq, %arg0, %c1_i32 : i32
    %9 = arith.extui %8 : i1 to i32
    %c0_i32_4 = arith.constant 0 : i32
    %10 = arith.cmpi ne, %9, %c0_i32_4 : i32
    scf.if %10 {
      %11 = arith.index_cast %arg1 : i32 to index
      %c0 = arith.constant 0 : index
      %c0_5 = arith.constant 0 : index
      %12 = vector.load %arg9[%11, %c0, %c0_5] : memref<2x256x64xf32, #tpu.memory_space<vmem>>, vector<1x256x64xf32>
      %13 = vector.shape_cast %12 : vector<1x256x64xf32> to vector<256x64xf32>
      %c0_6 = arith.constant 0 : index
      %c0_7 = arith.constant 0 : index
      %14 = vector.load %arg10[%c0_6, %c0_7] : memref<1x64xf32, #tpu.memory_space<vmem>>, vector<1x64xf32>
      %cst = arith.constant 0.001953125 : f32
      %15 = vector.broadcast %cst : f32 to vector<1x64xf32>
      %16 = arith.mulf %14, %15 : vector<1x64xf32>
      %c0_8 = arith.constant 0 : index
      %c0_9 = arith.constant 0 : index
      %17 = vector.load %arg11[%c0_8, %c0_9] : memref<1x64xf32, #tpu.memory_space<vmem>>, vector<1x64xf32>
      %cst_10 = arith.constant 0.001953125 : f32
      %18 = vector.broadcast %cst_10 : f32 to vector<1x64xf32>
      %19 = arith.mulf %17, %18 : vector<1x64xf32>
      %20 = arith.mulf %16, %16 : vector<1x64xf32>
      %21 = arith.subf %19, %20 : vector<1x64xf32>
      %c0_11 = arith.constant 0 : index
      %c0_12 = arith.constant 0 : index
      %22 = vector.load %arg4[%c0_11, %c0_12] : memref<1x64xf32, #tpu.memory_space<vmem>>, vector<1x64xf32>
      %cst_13 = arith.constant 9.99999974E-6 : f32
      %23 = vector.broadcast %cst_13 : f32 to vector<1x64xf32>
      %24 = arith.addf %21, %23 : vector<1x64xf32>
      %25 = math.rsqrt %24 : vector<1x64xf32>
      %26 = arith.mulf %22, %25 : vector<1x64xf32>
      %c0_14 = arith.constant 0 : index
      %c0_15 = arith.constant 0 : index
      %27 = vector.load %arg5[%c0_14, %c0_15] : memref<1x64xf32, #tpu.memory_space<vmem>>, vector<1x64xf32>
      %28 = arith.mulf %16, %26 : vector<1x64xf32>
      %29 = arith.subf %27, %28 : vector<1x64xf32>
      %30 = vector.broadcast %26 : vector<1x64xf32> to vector<256x64xf32>
      %31 = arith.mulf %13, %30 : vector<256x64xf32>
      %32 = vector.broadcast %29 : vector<1x64xf32> to vector<256x64xf32>
      %33 = arith.addf %31, %32 : vector<256x64xf32>
      %c0_16 = arith.constant 0 : index
      %34 = memref.load %arg6[%c0_16] : memref<1xf32, #tpu.memory_space<smem>>
      %cst_17 = arith.constant 0.000000e+00 : f32
      %35 = vector.broadcast %cst_17 : f32 to vector<256x64xf32>
      %36 = arith.cmpf oge, %33, %35 : vector<256x64xf32>
      %37 = vector.broadcast %34 : f32 to vector<256x64xf32>
      %38 = arith.mulf %37, %33 : vector<256x64xf32>
      %39 = arith.select %36, %33, %38 : vector<256x64xi1>, vector<256x64xf32>
      %c0_18 = arith.constant 0 : index
      %c0_19 = arith.constant 0 : index
      %c0_20 = arith.constant 0 : index
      %40 = vector.load %arg7[%c0_18, %c0_19, %c0_20] : memref<1x256x64xf32, #tpu.memory_space<vmem>>, vector<1x256x64xf32>
      %41 = vector.shape_cast %40 : vector<1x256x64xf32> to vector<256x64xf32>
      %42 = vector.shape_cast %39 : vector<256x64xf32> to vector<1x256x64xf32>
      tpu.vector_store %arg7[%c0_18, %c0_19, %c0_20], %42 {strides = array<i32>} : memref<1x256x64xf32, #tpu.memory_space<vmem>>, vector<1x256x64xf32>,
      %43 = arith.truncf %39 : vector<256x64xf32> to vector<256x64xbf16>
      %c0_21 = arith.constant 0 : index
      %c0_22 = arith.constant 0 : index
      %c0_23 = arith.constant 0 : index
      %44 = vector.load %arg8[%c0_21, %c0_22, %c0_23] : memref<1x256x64xbf16, #tpu.memory_space<vmem>>, vector<1x256x64xbf16>
      %45 = vector.shape_cast %44 : vector<1x256x64xbf16> to vector<256x64xbf16>
      %46 = vector.shape_cast %43 : vector<256x64xbf16> to vector<1x256x64xbf16>
      tpu.vector_store %arg8[%c0_21, %c0_22, %c0_23], %46 {strides = array<i32>} : memref<1x256x64xbf16, #tpu.memory_space<vmem>>, vector<1x256x64xbf16>,
    } else {
    }
    return
  }
  func.func @transform_0(%arg0: i32, %arg1: i32) -> (i32, i32, i32, i32) {
    %c1_i32 = arith.constant 1 : i32
    %0 = arith.subi %c1_i32, %arg0 : i32
    %1 = arith.muli %arg1, %0 : i32
    %c1_i32_0 = arith.constant 1 : i32
    %2 = arith.muli %c1_i32_0, %arg0 : i32
    %3 = arith.addi %1, %2 : i32
    %c0_i32 = arith.constant 0 : i32
    %c0_i32_1 = arith.constant 0 : i32
    %c0_i32_2 = arith.constant 0 : i32
    %c0_i32_3 = arith.constant 0 : i32
    return %3, %c0_i32, %c0_i32_1, %c0_i32_2 : i32, i32, i32, i32
  }
  func.func @transform_1(%arg0: i32, %arg1: i32) -> (i32, i32) {
    %c0_i32 = arith.constant 0 : i32
    %c0_i32_0 = arith.constant 0 : i32
    %c0_i32_1 = arith.constant 0 : i32
    return %c0_i32, %c0_i32_0 : i32, i32
  }
  func.func @transform_2(%arg0: i32, %arg1: i32) -> (i32, i32) {
    %c0_i32 = arith.constant 0 : i32
    %c0_i32_0 = arith.constant 0 : i32
    %c0_i32_1 = arith.constant 0 : i32
    return %c0_i32, %c0_i32_0 : i32, i32
  }
  func.func @transform_3(%arg0: i32, %arg1: i32) -> (i32, i32) {
    %c0_i32 = arith.constant 0 : i32
    %c0_i32_0 = arith.constant 0 : i32
    %c0_i32_1 = arith.constant 0 : i32
    return %c0_i32, %c0_i32_0 : i32, i32
  }
  func.func @transform_4(%arg0: i32, %arg1: i32) -> i32 {
    %c0_i32 = arith.constant 0 : i32
    %c0_i32_0 = arith.constant 0 : i32
    return %c0_i32 : i32
  }
  func.func @transform_5(%arg0: i32, %arg1: i32) -> (i32, i32, i32) {
    %0 = arith.muli %arg1, %arg0 : i32
    %c0_i32 = arith.constant 0 : i32
    %c0_i32_0 = arith.constant 0 : i32
    %c0_i32_1 = arith.constant 0 : i32
    return %0, %c0_i32, %c0_i32_0 : i32, i32, i32
  }
  func.func @transform_6(%arg0: i32, %arg1: i32) -> (i32, i32, i32) {
    %0 = arith.muli %arg1, %arg0 : i32
    %c0_i32 = arith.constant 0 : i32
    %c0_i32_0 = arith.constant 0 : i32
    %c0_i32_1 = arith.constant 0 : i32
    return %0, %c0_i32, %c0_i32_0 : i32, i32, i32
  }
}

module attributes {stable_mosaic.version = 11 : i64} {
  func.func @kernel(%arg0: i32, %arg1: i32, %arg2: memref<1x18x18x64xbf16, #tpu.memory_space<vmem>>, %arg3: memref<576x128xbf16, #tpu.memory_space<vmem>>, %arg4: memref<1x128xf32, #tpu.memory_space<vmem>>, %arg5: memref<1x128xf32, #tpu.memory_space<vmem>>, %arg6: memref<1xf32, #tpu.memory_space<smem>>, %arg7: memref<1x256x128xf32, #tpu.memory_space<vmem>>, %arg8: memref<2x256x128xf32, #tpu.memory_space<vmem>>, %arg9: memref<1x128xf32, #tpu.memory_space<vmem>>, %arg10: memref<1x128xf32, #tpu.memory_space<vmem>>) attributes {dimension_semantics = [#tpu.dimension_semantics<arbitrary>, #tpu.dimension_semantics<arbitrary>], iteration_bounds = array<i64: 2, 2>, scalar_prefetch = 0 : i64, scratch_operands = 3 : i64, tpu.core_type = #tpu.core_type<tc>, window_params = [{transform_indices = @transform_0, window_bounds = array<i64: 1, 18, 18, 64>}, {pipeline_mode = #tpu.pipeline_mode<synchronous>, transform_indices = @transform_1, window_bounds = array<i64: 576, 128>}, {pipeline_mode = #tpu.pipeline_mode<synchronous>, transform_indices = @transform_2, window_bounds = array<i64: 1, 128>}, {pipeline_mode = #tpu.pipeline_mode<synchronous>, transform_indices = @transform_3, window_bounds = array<i64: 1, 128>}, {transform_indices = @transform_4, window_bounds = array<i64: 1>}, {transform_indices = @transform_5, window_bounds = array<i64: 1, 256, 128>}]} {
    %c0_i32 = arith.constant 0 : i32
    %0 = arith.cmpi eq, %arg0, %c0_i32 : i32
    %c0_i32_0 = arith.constant 0 : i32
    %1 = arith.cmpi eq, %arg1, %c0_i32_0 : i32
    %2 = arith.andi %0, %1 : i1
    %3 = arith.extui %2 : i1 to i32
    %c0_i32_1 = arith.constant 0 : i32
    %4 = arith.cmpi ne, %3, %c0_i32_1 : i32
    scf.if %4 {
      %cst = arith.constant 0.000000e+00 : f32
      %11 = vector.broadcast %cst : f32 to vector<1x128xf32>
      %c0 = arith.constant 0 : index
      %c0_5 = arith.constant 0 : index
      %12 = vector.load %arg9[%c0, %c0_5] : memref<1x128xf32, #tpu.memory_space<vmem>>, vector<1x128xf32>
      tpu.vector_store %arg9[%c0, %c0_5], %11 {strides = array<i32>} : memref<1x128xf32, #tpu.memory_space<vmem>>, vector<1x128xf32>,
      %cst_6 = arith.constant 0.000000e+00 : f32
      %13 = vector.broadcast %cst_6 : f32 to vector<1x128xf32>
      %c0_7 = arith.constant 0 : index
      %c0_8 = arith.constant 0 : index
      %14 = vector.load %arg10[%c0_7, %c0_8] : memref<1x128xf32, #tpu.memory_space<vmem>>, vector<1x128xf32>
      tpu.vector_store %arg10[%c0_7, %c0_8], %13 {strides = array<i32>} : memref<1x128xf32, #tpu.memory_space<vmem>>, vector<1x128xf32>,
    } else {
    }
    %c0_i32_2 = arith.constant 0 : i32
    %5 = arith.cmpi eq, %arg0, %c0_i32_2 : i32
    %6 = arith.extui %5 : i1 to i32
    %c0_i32_3 = arith.constant 0 : i32
    %7 = arith.cmpi ne, %6, %c0_i32_3 : i32
    scf.if %7 {
      %c0 = arith.constant 0 : index
      %c0_5 = arith.constant 0 : index
      %c0_6 = arith.constant 0 : index
      %c0_7 = arith.constant 0 : index
      %11 = vector.load %arg2[%c0, %c0_5, %c0_6, %c0_7] : memref<1x18x18x64xbf16, #tpu.memory_space<vmem>>, vector<1x16x16x64xbf16>
      %12 = vector.shape_cast %11 : vector<1x16x16x64xbf16> to vector<16x16x64xbf16>
      %13 = vector.shape_cast %12 : vector<16x16x64xbf16> to vector<256x64xbf16>
      %c0_8 = arith.constant 0 : index
      %c0_9 = arith.constant 0 : index
      %c1 = arith.constant 1 : index
      %c0_10 = arith.constant 0 : index
      %14 = vector.load %arg2[%c0_8, %c0_9, %c1, %c0_10] : memref<1x18x18x64xbf16, #tpu.memory_space<vmem>>, vector<1x16x16x64xbf16>
      %15 = vector.shape_cast %14 : vector<1x16x16x64xbf16> to vector<16x16x64xbf16>
      %16 = vector.shape_cast %15 : vector<16x16x64xbf16> to vector<256x64xbf16>
      %c0_11 = arith.constant 0 : index
      %c0_12 = arith.constant 0 : index
      %c2 = arith.constant 2 : index
      %c0_13 = arith.constant 0 : index
      %17 = vector.load %arg2[%c0_11, %c0_12, %c2, %c0_13] : memref<1x18x18x64xbf16, #tpu.memory_space<vmem>>, vector<1x16x16x64xbf16>
      %18 = vector.shape_cast %17 : vector<1x16x16x64xbf16> to vector<16x16x64xbf16>
      %19 = vector.shape_cast %18 : vector<16x16x64xbf16> to vector<256x64xbf16>
      %c0_14 = arith.constant 0 : index
      %c1_15 = arith.constant 1 : index
      %c0_16 = arith.constant 0 : index
      %c0_17 = arith.constant 0 : index
      %20 = vector.load %arg2[%c0_14, %c1_15, %c0_16, %c0_17] : memref<1x18x18x64xbf16, #tpu.memory_space<vmem>>, vector<1x16x16x64xbf16>
      %21 = vector.shape_cast %20 : vector<1x16x16x64xbf16> to vector<16x16x64xbf16>
      %22 = vector.shape_cast %21 : vector<16x16x64xbf16> to vector<256x64xbf16>
      %c0_18 = arith.constant 0 : index
      %c1_19 = arith.constant 1 : index
      %c1_20 = arith.constant 1 : index
      %c0_21 = arith.constant 0 : index
      %23 = vector.load %arg2[%c0_18, %c1_19, %c1_20, %c0_21] : memref<1x18x18x64xbf16, #tpu.memory_space<vmem>>, vector<1x16x16x64xbf16>
      %24 = vector.shape_cast %23 : vector<1x16x16x64xbf16> to vector<16x16x64xbf16>
      %25 = vector.shape_cast %24 : vector<16x16x64xbf16> to vector<256x64xbf16>
      %c0_22 = arith.constant 0 : index
      %c1_23 = arith.constant 1 : index
      %c2_24 = arith.constant 2 : index
      %c0_25 = arith.constant 0 : index
      %26 = vector.load %arg2[%c0_22, %c1_23, %c2_24, %c0_25] : memref<1x18x18x64xbf16, #tpu.memory_space<vmem>>, vector<1x16x16x64xbf16>
      %27 = vector.shape_cast %26 : vector<1x16x16x64xbf16> to vector<16x16x64xbf16>
      %28 = vector.shape_cast %27 : vector<16x16x64xbf16> to vector<256x64xbf16>
      %c0_26 = arith.constant 0 : index
      %c2_27 = arith.constant 2 : index
      %c0_28 = arith.constant 0 : index
      %c0_29 = arith.constant 0 : index
      %29 = vector.load %arg2[%c0_26, %c2_27, %c0_28, %c0_29] : memref<1x18x18x64xbf16, #tpu.memory_space<vmem>>, vector<1x16x16x64xbf16>
      %30 = vector.shape_cast %29 : vector<1x16x16x64xbf16> to vector<16x16x64xbf16>
      %31 = vector.shape_cast %30 : vector<16x16x64xbf16> to vector<256x64xbf16>
      %c0_30 = arith.constant 0 : index
      %c2_31 = arith.constant 2 : index
      %c1_32 = arith.constant 1 : index
      %c0_33 = arith.constant 0 : index
      %32 = vector.load %arg2[%c0_30, %c2_31, %c1_32, %c0_33] : memref<1x18x18x64xbf16, #tpu.memory_space<vmem>>, vector<1x16x16x64xbf16>
      %33 = vector.shape_cast %32 : vector<1x16x16x64xbf16> to vector<16x16x64xbf16>
      %34 = vector.shape_cast %33 : vector<16x16x64xbf16> to vector<256x64xbf16>
      %c0_34 = arith.constant 0 : index
      %c2_35 = arith.constant 2 : index
      %c2_36 = arith.constant 2 : index
      %c0_37 = arith.constant 0 : index
      %35 = vector.load %arg2[%c0_34, %c2_35, %c2_36, %c0_37] : memref<1x18x18x64xbf16, #tpu.memory_space<vmem>>, vector<1x16x16x64xbf16>
      %36 = vector.shape_cast %35 : vector<1x16x16x64xbf16> to vector<16x16x64xbf16>
      %37 = vector.shape_cast %36 : vector<16x16x64xbf16> to vector<256x64xbf16>
      %38 = tpu.concatenate %13, %16, %19, %22, %25, %28, %31, %34, %37 in 1 : vector<256x64xbf16>, vector<256x64xbf16>, vector<256x64xbf16>, vector<256x64xbf16>, vector<256x64xbf16>, vector<256x64xbf16>, vector<256x64xbf16>, vector<256x64xbf16>, vector<256x64xbf16> -> vector<256x576xbf16>
      %c0_38 = arith.constant 0 : index
      %c0_39 = arith.constant 0 : index
      %39 = vector.load %arg3[%c0_38, %c0_39] : memref<576x128xbf16, #tpu.memory_space<vmem>>, vector<576x128xbf16>
      %cst = arith.constant dense<0.000000e+00> : vector<256x128xf32>
      %40 = tpu.matmul %38, %39, %cst {dimension_numbers = #tpu.dot_dimension_numbers<[1], [0], [0], [1], [0, 0, 1, 1], [], []>} : vector<256x576xbf16>, vector<576x128xbf16>, vector<256x128xf32> -> vector<256x128xf32>
      %41 = arith.index_cast %arg1 : i32 to index
      %c0_40 = arith.constant 0 : index
      %c0_41 = arith.constant 0 : index
      %42 = vector.load %arg8[%41, %c0_40, %c0_41] : memref<2x256x128xf32, #tpu.memory_space<vmem>>, vector<1x256x128xf32>
      %43 = vector.shape_cast %42 : vector<1x256x128xf32> to vector<256x128xf32>
      %44 = vector.shape_cast %40 : vector<256x128xf32> to vector<1x256x128xf32>
      tpu.vector_store %arg8[%41, %c0_40, %c0_41], %44 {strides = array<i32>} : memref<2x256x128xf32, #tpu.memory_space<vmem>>, vector<1x256x128xf32>,
      %c0_42 = arith.constant 0 : index
      %c0_43 = arith.constant 0 : index
      %45 = vector.load %arg9[%c0_42, %c0_43] : memref<1x128xf32, #tpu.memory_space<vmem>>, vector<1x128xf32>
      %cst_44 = arith.constant dense<0.000000e+00> : vector<128xf32>
      %46 = vector.multi_reduction <add>, %40, %cst_44 [0] : vector<256x128xf32> to vector<128xf32>
      %47 = vector.shape_cast %46 : vector<128xf32> to vector<1x128xf32>
      %48 = arith.addf %45, %47 : vector<1x128xf32>
      %c0_45 = arith.constant 0 : index
      %c0_46 = arith.constant 0 : index
      %49 = vector.load %arg9[%c0_45, %c0_46] : memref<1x128xf32, #tpu.memory_space<vmem>>, vector<1x128xf32>
      tpu.vector_store %arg9[%c0_45, %c0_46], %48 {strides = array<i32>} : memref<1x128xf32, #tpu.memory_space<vmem>>, vector<1x128xf32>,
      %c0_47 = arith.constant 0 : index
      %c0_48 = arith.constant 0 : index
      %50 = vector.load %arg10[%c0_47, %c0_48] : memref<1x128xf32, #tpu.memory_space<vmem>>, vector<1x128xf32>
      %51 = arith.mulf %40, %40 : vector<256x128xf32>
      %cst_49 = arith.constant dense<0.000000e+00> : vector<128xf32>
      %52 = vector.multi_reduction <add>, %51, %cst_49 [0] : vector<256x128xf32> to vector<128xf32>
      %53 = vector.shape_cast %52 : vector<128xf32> to vector<1x128xf32>
      %54 = arith.addf %50, %53 : vector<1x128xf32>
      %c0_50 = arith.constant 0 : index
      %c0_51 = arith.constant 0 : index
      %55 = vector.load %arg10[%c0_50, %c0_51] : memref<1x128xf32, #tpu.memory_space<vmem>>, vector<1x128xf32>
      tpu.vector_store %arg10[%c0_50, %c0_51], %54 {strides = array<i32>} : memref<1x128xf32, #tpu.memory_space<vmem>>, vector<1x128xf32>,
    } else {
    }
    %c1_i32 = arith.constant 1 : i32
    %8 = arith.cmpi eq, %arg0, %c1_i32 : i32
    %9 = arith.extui %8 : i1 to i32
    %c0_i32_4 = arith.constant 0 : i32
    %10 = arith.cmpi ne, %9, %c0_i32_4 : i32
    scf.if %10 {
      %11 = arith.index_cast %arg1 : i32 to index
      %c0 = arith.constant 0 : index
      %c0_5 = arith.constant 0 : index
      %12 = vector.load %arg8[%11, %c0, %c0_5] : memref<2x256x128xf32, #tpu.memory_space<vmem>>, vector<1x256x128xf32>
      %13 = vector.shape_cast %12 : vector<1x256x128xf32> to vector<256x128xf32>
      %c0_6 = arith.constant 0 : index
      %c0_7 = arith.constant 0 : index
      %14 = vector.load %arg9[%c0_6, %c0_7] : memref<1x128xf32, #tpu.memory_space<vmem>>, vector<1x128xf32>
      %cst = arith.constant 0.001953125 : f32
      %15 = vector.broadcast %cst : f32 to vector<1x128xf32>
      %16 = arith.mulf %14, %15 : vector<1x128xf32>
      %c0_8 = arith.constant 0 : index
      %c0_9 = arith.constant 0 : index
      %17 = vector.load %arg10[%c0_8, %c0_9] : memref<1x128xf32, #tpu.memory_space<vmem>>, vector<1x128xf32>
      %cst_10 = arith.constant 0.001953125 : f32
      %18 = vector.broadcast %cst_10 : f32 to vector<1x128xf32>
      %19 = arith.mulf %17, %18 : vector<1x128xf32>
      %20 = arith.mulf %16, %16 : vector<1x128xf32>
      %21 = arith.subf %19, %20 : vector<1x128xf32>
      %c0_11 = arith.constant 0 : index
      %c0_12 = arith.constant 0 : index
      %22 = vector.load %arg4[%c0_11, %c0_12] : memref<1x128xf32, #tpu.memory_space<vmem>>, vector<1x128xf32>
      %cst_13 = arith.constant 9.99999974E-6 : f32
      %23 = vector.broadcast %cst_13 : f32 to vector<1x128xf32>
      %24 = arith.addf %21, %23 : vector<1x128xf32>
      %25 = math.rsqrt %24 : vector<1x128xf32>
      %26 = arith.mulf %22, %25 : vector<1x128xf32>
      %c0_14 = arith.constant 0 : index
      %c0_15 = arith.constant 0 : index
      %27 = vector.load %arg5[%c0_14, %c0_15] : memref<1x128xf32, #tpu.memory_space<vmem>>, vector<1x128xf32>
      %28 = arith.mulf %16, %26 : vector<1x128xf32>
      %29 = arith.subf %27, %28 : vector<1x128xf32>
      %30 = vector.broadcast %26 : vector<1x128xf32> to vector<256x128xf32>
      %31 = arith.mulf %13, %30 : vector<256x128xf32>
      %32 = vector.broadcast %29 : vector<1x128xf32> to vector<256x128xf32>
      %33 = arith.addf %31, %32 : vector<256x128xf32>
      %34 = math.tanh %33 : vector<256x128xf32>
      %c0_16 = arith.constant 0 : index
      %c0_17 = arith.constant 0 : index
      %c0_18 = arith.constant 0 : index
      %35 = vector.load %arg7[%c0_16, %c0_17, %c0_18] : memref<1x256x128xf32, #tpu.memory_space<vmem>>, vector<1x256x128xf32>
      %36 = vector.shape_cast %35 : vector<1x256x128xf32> to vector<256x128xf32>
      %37 = vector.shape_cast %34 : vector<256x128xf32> to vector<1x256x128xf32>
      tpu.vector_store %arg7[%c0_16, %c0_17, %c0_18], %37 {strides = array<i32>} : memref<1x256x128xf32, #tpu.memory_space<vmem>>, vector<1x256x128xf32>,
    } else {
    }
    return
  }
  func.func @transform_0(%arg0: i32, %arg1: i32) -> (i32, i32, i32, i32) {
    %c1_i32 = arith.constant 1 : i32
    %0 = arith.subi %c1_i32, %arg0 : i32
    %1 = arith.muli %arg1, %0 : i32
    %c1_i32_0 = arith.constant 1 : i32
    %2 = arith.muli %c1_i32_0, %arg0 : i32
    %3 = arith.addi %1, %2 : i32
    %c0_i32 = arith.constant 0 : i32
    %c0_i32_1 = arith.constant 0 : i32
    %c0_i32_2 = arith.constant 0 : i32
    %c0_i32_3 = arith.constant 0 : i32
    return %3, %c0_i32, %c0_i32_1, %c0_i32_2 : i32, i32, i32, i32
  }
  func.func @transform_1(%arg0: i32, %arg1: i32) -> (i32, i32) {
    %c0_i32 = arith.constant 0 : i32
    %c0_i32_0 = arith.constant 0 : i32
    %c0_i32_1 = arith.constant 0 : i32
    return %c0_i32, %c0_i32_0 : i32, i32
  }
  func.func @transform_2(%arg0: i32, %arg1: i32) -> (i32, i32) {
    %c0_i32 = arith.constant 0 : i32
    %c0_i32_0 = arith.constant 0 : i32
    %c0_i32_1 = arith.constant 0 : i32
    return %c0_i32, %c0_i32_0 : i32, i32
  }
  func.func @transform_3(%arg0: i32, %arg1: i32) -> (i32, i32) {
    %c0_i32 = arith.constant 0 : i32
    %c0_i32_0 = arith.constant 0 : i32
    %c0_i32_1 = arith.constant 0 : i32
    return %c0_i32, %c0_i32_0 : i32, i32
  }
  func.func @transform_4(%arg0: i32, %arg1: i32) -> i32 {
    %c0_i32 = arith.constant 0 : i32
    %c0_i32_0 = arith.constant 0 : i32
    return %c0_i32 : i32
  }
  func.func @transform_5(%arg0: i32, %arg1: i32) -> (i32, i32, i32) {
    %0 = arith.muli %arg1, %arg0 : i32
    %c0_i32 = arith.constant 0 : i32
    %c0_i32_0 = arith.constant 0 : i32
    %c0_i32_1 = arith.constant 0 : i32
    return %0, %c0_i32, %c0_i32_0 : i32, i32, i32
  }
}

</mosaic_0001>

<bundles_post_ra>
// kernel: ae_encoder_forward.3
= control target key start
LH: loop header
LB: loop body
LE: loop exit
PB: predicated region body
PF: predicated region fallthrough
CT: control target
= control target key end

     0   :  { %s2662_s0 = inlined_call_operand.vmem [shape: bf16[2,256,16], index: 0, kind: input, shape index: {}]   ;;  %s2663_s1 = inlined_call_operand.vmem [shape: bf16[16,64], index: 1, kind: input, shape index: {}]   ;;  %s2664_s2 = inlined_call_operand.vmem [shape: f32[1,64], index: 2, kind: input, shape index: {}]   ;;  %s2665_s3 = inlined_call_operand.vmem [shape: f32[1,64], index: 3, kind: input, shape index: {}]   ;;  %s2666_s4 = inlined_call_operand.<no memory space> [shape: f32[1], index: 4, kind: input, shape index: {}]   ;;  %s2667_s5 = inlined_call_operand.hbm [shape: f32[2,256,64], index: 5, kind: output, shape index: {0}]   ;;  %s2668_s6 = inlined_call_operand.vmem [shape: bf16[2,256,64], index: 6, kind: output, shape index: {1}]  }
   0x1   :  { %12 = sst [smem:[#allocation5]] %s2666_s4 }
   0x2   :  { %13 = vsyncpa [#allocation7], 0 }
   0x3   :  { %15 = vsyncpa [#allocation7 + $0x1], 0  ;;  %s1810_s23 = smov 0   ;;  %s1812_s24 = smov 0  }
   0x4   :  { %s1814_s25 = smov 0   ;;  %s1816_s26 = smov 0  }
   0x5   :  { %s1818_s27 = smov 0   ;;  %s1820_s28 = smov 0  }
   0x6   :  { %s1822_s29 = smov 0   ;;  %s1824_s30 = smov 0  }
   0x7 LB: > { %s1407_s4 = sadd.s32 4294967295, %s1766_s30   ;;  %s1408_s7 = sadd.s32 4294967294, %s1766_s30   ;;  %s1766_s30 = sphi %s1824_s30, %s21_s30   ;;  %s1762_s29 = sphi %s1822_s29, %s2682_s29   ;;  %s1758_s28 = sphi %s1820_s28, %s2681_s28   ;;  %s1754_s27 = sphi %s1818_s27, %s2680_s27   ;;  %s1750_s26 = sphi %s1816_s26, %s2679_s26   ;;  %s1746_s25 = sphi %s1814_s25, %s2678_s25   ;;  %s1742_s24 = sphi %s1812_s24, %s2677_s24   ;;  %s1738_s23 = sphi %s1810_s23, %s2676_s23  }
   0x8   : > { %s30_s8 = sadd.s32 1, %s1758_s28  ;;  %s33_s9 = sadd.s32 1, %s1762_s29 }
   0x9   : > { %p31_p0 = scmp.ge.s32.totalorder %s30_s8, 2  ;;  %s153_s10 = smul.u32 %s1758_s28, %s1762_s29 }
   0xa   : > { %p168_p1 = scmp.ne.s32.totalorder %s1746_s25, %s1742_s24  ;;  %p169_p2 = scmp.eq.s32.totalorder %s1407_s4, 3 }
   0xb   : > { %s2684_s8 = smov (%p31_p0, %s30_s8), 0  ;;  %s2686_s9 = smov (!%p31_p0, %s33_s9), %s1762_s29 }
   0xc   : > { %p174_p3 = scmp.ne.s32.totalorder %s1742_s24, %s1738_s23  ;;  %p35_p4 = scmp.ge.s32.totalorder %s2686_s9, 2 }
   0xd   : > { %p175_p5 = scmp.eq.s32.totalorder %s1408_s7, 3  ;;  %p1863_p6 = por %p169_p2, %p168_p1 }
   0xe   : > { %p1411_p7 = scmp.ge.s32.totalorder %s1766_s30, 1  ;;  %s2688_s9 = smov (%p35_p4, %s2686_s9), 0 }
   0xf   : > { %2672 = sst [smem:[#allocation9_spill]] %s2688_s9  ;;  %p1870_p8 = por %p175_p5, %p174_p3 }
  0x10   : > { %p247_p9 = scmp.lt.s32.totalorder %s1766_s30, 5  ;;  %s154_s13 = smul.u32 %s2688_s9, %s2684_s8 }
  0x11   : > { %s158_s15 = sadd.s32 1, %s1746_s25 }
  0x12   : > { %p248_p10 = pnand %p1411_p7, %p247_p9  ;;  %s155_s14 = ssub.s32 %s153_s10, %s154_s13 }
  0x13   : > { %p156_p11 = scmp.eq.s32.totalorder %s155_s14, 0  ;;  %s2669_s17 = sand.u32 (!%p248_p10), 1, %s1742_s24  }
  0x14   : > { %251 = sbr.rel (%p248_p10) target bundleno = 451 (0x1c3), region = 40  ;;  %s286_s18 = ssub.s32 (!%p248_p10), 1, %s1754_s27 }
  0x15   : > { %s1879_s16 = scalar_select %p156_p11, %s1746_s25, %s158_s15  }
  0x16   : > { %s1412_s19 = sshll.u32 (!%p248_p10), %s2669_s17, 8  ;;  %s287_s20 = smul.u32 (!%p248_p10), %s1750_s26, %s286_s18 }
  0x17   : > { %s1888_s21 = smul.u32 (!%p248_p10), %s1750_s26, %s1754_s27  ;;  %p306_p12 = scmp.eq.s32.totalorder (!%p248_p10), %s1754_s27, 0 }
  0x18   : > { %s288_s22 = sadd.s32 (!%p248_p10), %s1754_s27, %s287_s20  ;;  %p307_p1 = scmp.eq.s32.totalorder (!%p248_p10), %s1750_s26, 0 }
  0x19   : > { %p289_p13 = scmp.lt.s32.totalorder (!%p248_p10), %s288_s22, 1  ;;  %p299_p0 = scmp.lt.s32.totalorder (!%p248_p10), %s1888_s21, 1 }
  0x1a   : > { %p308_p2 = pnand (!%p248_p10), %p307_p1, %p306_p12  ;;  %s1905_s20 = scalar_lea.vmem (!%p248_p10), [#allocation6], %s1412_s19 }
  0x1b   : > { %s2690_s22 = smov (!%p289_p13, %s288_s22), 1  ;;  %vm312_vm0 = vcmask (!%p308_p2), 516096   ;;  %v1768_v0 = vmov (!%p308_p2), 0.0  }
  0x1c   : > { %s300_s4 = scalar_select %p299_p0, %s1888_s21, 1 }
  0x1d   : > { %s1491_s7 = sshll.u32 %s2690_s22, 7  ;;  %311 = sbr.rel (%p308_p2) target bundleno = 36 (0x24), region = 44  ;;  %313 = vst.msk [vmem:[#allocation3] sm:$0x1] (!%p308_p2), %vm312_vm0, %v1768_v0  ;;  %314 = vst.msk [vmem:[#allocation4] sm:$0x1] (!%p308_p2), %vm312_vm0, %v1768_v0 }
  0x1e   : > { %s1898_s14 = scalar_lea.vmem %s2662_s0, %s1491_s7  ;;  %s1492_s15 = sshll.u32 %s300_s4, 7 }
  0x1f   : > { %s1903_s9 = scalar_lea.vmem %s2668_s6, %s1492_s15 }
  0x24 PF: > { %p1417_p3 = scmp.ne.s32.totalorder %s1754_s27, 0 }
  0x25   : > { %v1653_v1 = vld [vmem:[%s2663_s1] sm:$0xff] (!%p1417_p3)   ;;  %vm438_vm1 = vcmask (!%p1417_p3), 130048   ;;  %v1655_v3 = vld [vmem:[%s1898_s14 + $0x8] sm:$0xff] (!%p1417_p3)   ;;  %v1656_v4 = vld [vmem:[%s1898_s14 + $0x10] sm:$0xff] (!%p1417_p3)   ;;  %s1451_s17 = sshll.u32 (!%p1417_p3), %s1750_s26, 8  ;;  %vm650_vm2 = vcmask (!%p1417_p3), 523264  }
  0x26   : > { %317 = sbr.rel (%p1417_p3) target bundleno = 337 (0x151), region = 48  ;;  %v1654_v2 = vld [vmem:[%s1898_s14] sm:$0xff] (!%p1417_p3)   ;;  %1543 = vmatprep.subr.bf16.mxu0 (!%p1417_p3), %v1653_v1  ;;  %1577 = vmatprep.subr.bf16.mxu1 (!%p1417_p3), %v1653_v1  ;;  %v1657_v5 = vld [vmem:[%s1898_s14 + $0x18] sm:$0xff] (!%p1417_p3)   ;;  %v1663_v8 = vld [vmem:[%s1898_s14 + $0x48] sm:$0xff] (!%p1417_p3)   ;;  %s1944_s19 = scalar_lea.vmem (!%p1417_p3), [#allocation2], %s1451_s17  ;;  %vm754_vm3 = vcmask (!%p1417_p3), 516096  }
  0x27   : > { %1544 = vmatpush3.bf16.msra.mxu0 (!%p1417_p3), %v1653_v1  ;;  %1545 = vmatprep.mubr.msk.bf16.mxu0 (!%p1417_p3), %vm438_vm1, %v1654_v2  ;;  %v1658_v6 = vld [vmem:[%s1898_s14 + $0x20] sm:$0xff] (!%p1417_p3)   ;;  %v1664_v9 = vld [vmem:[%s1898_s14 + $0x50] sm:$0xff] (!%p1417_p3)   ;;  %v1665_v10 = vld [vmem:[%s1898_s14 + $0x58] sm:$0xff] (!%p1417_p3)  }
  0x28   : > { %1578 = vmatpush3.bf16.msra.mxu1 (!%p1417_p3), %v1653_v1  ;;  %v1662_v7 = vld [vmem:[%s1898_s14 + $0x40] sm:$0xff] (!%p1417_p3)   ;;  %v1659_v12 = vld [vmem:[%s1898_s14 + $0x28] sm:$0xff] (!%p1417_p3)   ;;  %v1660_v13 = vld [vmem:[%s1898_s14 + $0x30] sm:$0xff] (!%p1417_p3)  }
  0x29   : > { %1561 = vmatprep.mubr.msk.bf16.mxu1 (!%p1417_p3), %vm438_vm1, %v1662_v7  ;;  %v1666_v11 = vld [vmem:[%s1898_s14 + $0x60] sm:$0xff] (!%p1417_p3)   ;;  %v1667_v14 = vld [vmem:[%s1898_s14 + $0x68] sm:$0xff] (!%p1417_p3)   ;;  %v1668_v15 = vld [vmem:[%s1898_s14 + $0x70] sm:$0xff] (!%p1417_p3)  }
  0x2a   : > { %1546 = vmatmul.mubr.msk.bf16.vlgmr.msra.gmra.mrb[0].mxu0 (!%p1417_p3), %vm438_vm1, %v1655_v3  ;;  %v1661_v16 = vld [vmem:[%s1898_s14 + $0x38] sm:$0xff] (!%p1417_p3)  }
  0x2b   : > { %1549 = vmatprep.mubr.msk.bf16.mxu0 (!%p1417_p3), %vm438_vm1, %v1656_v4  ;;  %1562 = vmatmul.mubr.msk.bf16.vlgmr.msra.gmra.mrb[0].mxu1 (!%p1417_p3), %vm438_vm1, %v1663_v8  ;;  %v1669_v17 = vld [vmem:[%s1898_s14 + $0x78] sm:$0xff] (!%p1417_p3)  }
  0x2c   : > { %1565 = vmatprep.mubr.msk.bf16.mxu1 (!%p1417_p3), %vm438_vm1, %v1664_v9 }
  0x32   : > { %1550 = vmatmul.mubr.msk.bf16.gmra.mrb[4].mxu0 %vm438_vm1, %v1657_v5 }
  0x33   : > { %1553 = vmatprep.mubr.msk.bf16.mxu0 %vm438_vm1, %v1658_v6  ;;  %1566 = vmatmul.mubr.msk.bf16.gmra.mrb[4].mxu1 %vm438_vm1, %v1665_v10 }
  0x34   : > { %1569 = vmatprep.mubr.msk.bf16.mxu1 %vm438_vm1, %v1666_v11 }
  0x3a   : > { %1554 = vmatmul.mubr.msk.bf16.gmra.mrb[8].mxu0 %vm438_vm1, %v1659_v12 }
  0x3b   : > { %1557 = vmatprep.mubr.msk.bf16.mxu0 %vm438_vm1, %v1660_v13  ;;  %1570 = vmatmul.mubr.msk.bf16.gmra.mrb[8].mxu1 %vm438_vm1, %v1667_v14 }
  0x3c   : > { %1573 = vmatprep.mubr.msk.bf16.mxu1 %vm438_vm1, %v1668_v15 }
  0x42   : > { %1558 = vmatmul.mubr.msk.bf16.gmra.mrb[12].mxu0 %vm438_vm1, %v1661_v16 }
  0x43   : > { %1574 = vmatmul.mubr.msk.bf16.gmra.mrb[12].mxu1 %vm438_vm1, %v1669_v17 }
  0xfd   : > { %v1547_v18 = vpop.f32.mrb[0].mxu0 }
  0xfe   : > { %653 = vst.msk [vmem:[%s1944_s19 + $0x10] sm:$0xff] %vm650_vm2, %v1547_v18  ;;  %v521_v19 = vpop.f32.mrb[1].mxu0  ;;  %v759_v23 = vmul.f32 %v1547_v18, %v1547_v18  ;;  %v687_v28 = vsel %vm650_vm2, %v1547_v18, 0.0  ;;  %v1959_v32 = vpop.f32.mrb[0].mxu1 }
  0xff   : > { %651 = vst.msk [vmem:[%s1944_s19] sm:$0xff] %vm650_vm2, %v521_v19  ;;  %v757_v20 = vmul.f32 %v521_v19, %v521_v19  ;;  %v1548_v21 = vpop.f32.mrb[2].mxu0  ;;  %v684_v24 = vsel %vm650_vm2, %v521_v19, 0.0  ;;  %669 = vst.msk [vmem:[%s1944_s19 + $0x90] sm:$0xff] %vm650_vm2, %v1959_v32  ;;  %v1964_v35 = vpop.f32.mrb[1].mxu1 }
 0x100   : > { %654 = vst.msk [vmem:[%s1944_s19 + $0x18] sm:$0xff] %vm650_vm2, %v1548_v21  ;;  %v524_v22 = vpop.f32.mrb[3].mxu0  ;;  %v760_v30 = vmul.f32 %v1548_v21, %v1548_v21  ;;  %v792_v36 = vsel %vm650_vm2, %v759_v23, 0.0  ;;  %v689_v37 = vsel %vm650_vm2, %v1548_v21, 0.0  ;;  %667 = vst.msk [vmem:[%s1944_s19 + $0x80] sm:$0xff] %vm650_vm2, %v1964_v35  ;;  %v1971_v39 = vpop.f32.mrb[2].mxu1 }
 0x101   : > { %652 = vst.msk [vmem:[%s1944_s19 + $0x8] sm:$0xff] %vm650_vm2, %v524_v22  ;;  %v685_v25 = vsel %vm650_vm2, %v524_v22, 0.0  ;;  %v758_v26 = vmul.f32 %v524_v22, %v524_v22  ;;  %v789_v29 = vsel %vm650_vm2, %v757_v20, 0.0  ;;  %670 = vst.msk [vmem:[%s1944_s19 + $0x98] sm:$0xff] %vm650_vm2, %v1971_v39  ;;  %v1978_v43 = vpop.f32.mrb[3].mxu1 }
 0x102   : > { %v686_v27 = vadd.f32 %v685_v25, %v684_v24  ;;  %v794_v44 = vsel %vm650_vm2, %v760_v30, 0.0  ;;  %668 = vst.msk [vmem:[%s1944_s19 + $0x88] sm:$0xff] %vm650_vm2, %v1978_v43 }
 0x103   : > { %v790_v31 = vsel %vm650_vm2, %v758_v26, 0.0 }
 0x104   : > { %v688_v33 = vadd.f32 %v687_v28, %v686_v27  ;;  %v791_v34 = vadd.f32 %v790_v31, %v789_v29 }
 0x105   : > { %v1551_v38 = vpop.f32.mrb[4].mxu0 }
 0x106   : > { %v793_v40 = vadd.f32 %v792_v36, %v791_v34  ;;  %657 = vst.msk [vmem:[%s1944_s19 + $0x30] sm:$0xff] %vm650_vm2, %v1551_v38  ;;  %v537_v41 = vpop.f32.mrb[5].mxu0  ;;  %v690_v42 = vadd.f32 %v689_v37, %v688_v33  ;;  %v763_v51 = vmul.f32 %v1551_v38, %v1551_v38  ;;  %v695_v57 = vsel %vm650_vm2, %v1551_v38, 0.0  ;;  %v1995_v60 = vpop.f32.mrb[4].mxu1 }
 0x107   : > { %655 = vst.msk [vmem:[%s1944_s19 + $0x20] sm:$0xff] %vm650_vm2, %v537_v41  ;;  %v691_v45 = vsel %vm650_vm2, %v537_v41, 0.0  ;;  %v761_v46 = vmul.f32 %v537_v41, %v537_v41  ;;  %v1552_v47 = vpop.f32.mrb[6].mxu0  ;;  %673 = vst.msk [vmem:[%s1944_s19 + $0xb0] sm:$0xff] %vm650_vm2, %v1995_v60  ;;  %v2000_v63 = vpop.f32.mrb[5].mxu1 }
 0x108   : > { %v692_v48 = vadd.f32 %v691_v45, %v690_v42  ;;  %v795_v49 = vadd.f32 %v794_v44, %v793_v40  ;;  %658 = vst.msk [vmem:[%s1944_s19 + $0x38] sm:$0xff] %vm650_vm2, %v1552_v47  ;;  %v540_v50 = vpop.f32.mrb[7].mxu0  ;;  %v764_v58 = vmul.f32 %v1552_v47, %v1552_v47  ;;  %v800_v0 = vsel %vm650_vm2, %v763_v51, 0.0  ;;  %671 = vst.msk [vmem:[%s1944_s19 + $0xa0] sm:$0xff] %vm650_vm2, %v2000_v63  ;;  %v2007_v3 = vpop.f32.mrb[6].mxu1 }
 0x109   : > { %v796_v52 = vsel %vm650_vm2, %v761_v46, 0.0  ;;  %656 = vst.msk [vmem:[%s1944_s19 + $0x28] sm:$0xff] %vm650_vm2, %v540_v50  ;;  %v693_v53 = vsel %vm650_vm2, %v540_v50, 0.0  ;;  %v762_v54 = vmul.f32 %v540_v50, %v540_v50  ;;  %v697_v1 = vsel %vm650_vm2, %v1552_v47, 0.0  ;;  %674 = vst.msk [vmem:[%s1944_s19 + $0xb8] sm:$0xff] %vm650_vm2, %v2007_v3  ;;  %v2014_v7 = vpop.f32.mrb[7].mxu1 }
 0x10a   : > { %v797_v55 = vadd.f32 %v796_v52, %v795_v49  ;;  %v694_v56 = vadd.f32 %v693_v53, %v692_v48  ;;  %v802_v8 = vsel %vm650_vm2, %v764_v58, 0.0  ;;  %672 = vst.msk [vmem:[%s1944_s19 + $0xa8] sm:$0xff] %vm650_vm2, %v2014_v7 }
 0x10b   : > { %v798_v59 = vsel %vm650_vm2, %v762_v54, 0.0 }
 0x10c   : > { %v696_v61 = vadd.f32 %v695_v57, %v694_v56  ;;  %v799_v62 = vadd.f32 %v798_v59, %v797_v55  ;;  %v773_v56 = vmul.f32 %v1964_v35, %v1964_v35 }
 0x10d   : > { %v1555_v2 = vpop.f32.mrb[8].mxu0 }
 0x10e   : > { %v801_v4 = vadd.f32 %v800_v0, %v799_v62  ;;  %661 = vst.msk [vmem:[%s1944_s19 + $0x50] sm:$0xff] %vm650_vm2, %v1555_v2  ;;  %v553_v5 = vpop.f32.mrb[9].mxu0  ;;  %v698_v6 = vadd.f32 %v697_v1, %v696_v61  ;;  %v767_v15 = vmul.f32 %v1555_v2, %v1555_v2  ;;  %v703_v21 = vsel %vm650_vm2, %v1555_v2, 0.0  ;;  %v2031_v24 = vpop.f32.mrb[8].mxu1 }
 0x10f   : > { %659 = vst.msk [vmem:[%s1944_s19 + $0x40] sm:$0xff] %vm650_vm2, %v553_v5  ;;  %v699_v9 = vsel %vm650_vm2, %v553_v5, 0.0  ;;  %v765_v10 = vmul.f32 %v553_v5, %v553_v5  ;;  %v1556_v11 = vpop.f32.mrb[10].mxu0  ;;  %677 = vst.msk [vmem:[%s1944_s19 + $0xd0] sm:$0xff] %vm650_vm2, %v2031_v24  ;;  %v2036_v27 = vpop.f32.mrb[9].mxu1  ;;  %v715_v1 = vsel %vm650_vm2, %v1964_v35, 0.0  ;;  %v774_v35 = vmul.f32 %v1978_v43, %v1978_v43 }
 0x110   : > { %v700_v12 = vadd.f32 %v699_v9, %v698_v6  ;;  %v803_v13 = vadd.f32 %v802_v8, %v801_v4  ;;  %662 = vst.msk [vmem:[%s1944_s19 + $0x58] sm:$0xff] %vm650_vm2, %v1556_v11  ;;  %v556_v14 = vpop.f32.mrb[11].mxu0  ;;  %v768_v22 = vmul.f32 %v1556_v11, %v1556_v11  ;;  %v808_v28 = vsel %vm650_vm2, %v767_v15, 0.0  ;;  %675 = vst.msk [vmem:[%s1944_s19 + $0xc0] sm:$0xff] %vm650_vm2, %v2036_v27  ;;  %v2043_v31 = vpop.f32.mrb[10].mxu1 }
 0x111   : > { %v804_v16 = vsel %vm650_vm2, %v765_v10, 0.0  ;;  %660 = vst.msk [vmem:[%s1944_s19 + $0x48] sm:$0xff] %vm650_vm2, %v556_v14  ;;  %v701_v17 = vsel %vm650_vm2, %v556_v14, 0.0  ;;  %v766_v18 = vmul.f32 %v556_v14, %v556_v14  ;;  %v705_v29 = vsel %vm650_vm2, %v1556_v11, 0.0  ;;  %678 = vst.msk [vmem:[%s1944_s19 + $0xd8] sm:$0xff] %vm650_vm2, %v2043_v31  ;;  %v2050_v37 = vpop.f32.mrb[11].mxu1 }
 0x112   : > { %v805_v19 = vadd.f32 %v804_v16, %v803_v13  ;;  %v702_v20 = vadd.f32 %v701_v17, %v700_v12  ;;  %v810_v38 = vsel %vm650_vm2, %v768_v22, 0.0  ;;  %676 = vst.msk [vmem:[%s1944_s19 + $0xc8] sm:$0xff] %vm650_vm2, %v2050_v37  ;;  %v820_v10 = vsel %vm650_vm2, %v773_v56, 0.0 }
 0x113   : > { %v806_v23 = vsel %vm650_vm2, %v766_v18, 0.0  ;;  %v775_v14 = vmul.f32 %v1959_v32, %v1959_v32  ;;  %v717_v15 = vsel %vm650_vm2, %v1978_v43, 0.0  ;;  %v719_v18 = vsel %vm650_vm2, %v1959_v32, 0.0 }
 0x114   : > { %v704_v25 = vadd.f32 %v703_v21, %v702_v20  ;;  %v807_v26 = vadd.f32 %v806_v23, %v805_v19  ;;  %v776_v19 = vmul.f32 %v1971_v39, %v1971_v39  ;;  %v822_v20 = vsel %vm650_vm2, %v774_v35, 0.0 }
 0x115   : > { %v1559_v30 = vpop.f32.mrb[12].mxu0  ;;  %v777_v21 = vmul.f32 %v2000_v63, %v2000_v63  ;;  %v721_v43 = vsel %vm650_vm2, %v1971_v39, 0.0  ;;  %v725_v39 = vsel %vm650_vm2, %v2014_v7, 0.0  ;;  %v783_v56 = vmul.f32 %v2031_v24, %v2031_v24 }
 0x116   : > { %v809_v33 = vadd.f32 %v808_v28, %v807_v26  ;;  %665 = vst.msk [vmem:[%s1944_s19 + $0x70] sm:$0xff] %vm650_vm2, %v1559_v30  ;;  %v569_v34 = vpop.f32.mrb[13].mxu0  ;;  %v706_v36 = vadd.f32 %v705_v29, %v704_v25  ;;  %v771_v47 = vmul.f32 %v1559_v30, %v1559_v30  ;;  %v711_v53 = vsel %vm650_vm2, %v1559_v30, 0.0  ;;  %v2069_v57 = vpop.f32.mrb[12].mxu1 }
 0x117   : > { %663 = vst.msk [vmem:[%s1944_s19 + $0x60] sm:$0xff] %vm650_vm2, %v569_v34  ;;  %v707_v40 = vsel %vm650_vm2, %v569_v34, 0.0  ;;  %v769_v41 = vmul.f32 %v569_v34, %v569_v34  ;;  %v1560_v42 = vpop.f32.mrb[14].mxu0  ;;  %681 = vst.msk [vmem:[%s1944_s19 + $0xf0] sm:$0xff] %vm650_vm2, %v2069_v57  ;;  %v2074_v61 = vpop.f32.mrb[13].mxu1  ;;  %v824_v25 = vsel %vm650_vm2, %v775_v14, 0.0 }
 0x118   : > { %v708_v44 = vadd.f32 %v707_v40, %v706_v36  ;;  %v811_v45 = vadd.f32 %v810_v38, %v809_v33  ;;  %666 = vst.msk [vmem:[%s1944_s19 + $0x78] sm:$0xff] %vm650_vm2, %v1560_v42  ;;  %v572_v46 = vpop.f32.mrb[15].mxu0  ;;  %v772_v54 = vmul.f32 %v1560_v42, %v1560_v42  ;;  %v816_v62 = vsel %vm650_vm2, %v771_v47, 0.0  ;;  %679 = vst.msk [vmem:[%s1944_s19 + $0xe0] sm:$0xff] %vm650_vm2, %v2074_v61  ;;  %v2083_v2 = vpop.f32.mrb[14].mxu1 }
 0x119   : > { %v812_v48 = vsel %vm650_vm2, %v769_v41, 0.0  ;;  %664 = vst.msk [vmem:[%s1944_s19 + $0x68] sm:$0xff] %vm650_vm2, %v572_v46  ;;  %v709_v49 = vsel %vm650_vm2, %v572_v46, 0.0  ;;  %v770_v50 = vmul.f32 %v572_v46, %v572_v46  ;;  %v713_v0 = vsel %vm650_vm2, %v1560_v42, 0.0  ;;  %682 = vst.msk [vmem:[%s1944_s19 + $0xf8] sm:$0xff] %vm650_vm2, %v2083_v2  ;;  %v2090_v8 = vpop.f32.mrb[15].mxu1 }
 0x11a   : > { %v813_v51 = vadd.f32 %v812_v48, %v811_v45  ;;  %v710_v52 = vadd.f32 %v709_v49, %v708_v44  ;;  %v788_v6 = vmul.f32 %v2083_v2, %v2083_v2  ;;  %v818_v9 = vsel %vm650_vm2, %v772_v54, 0.0  ;;  %680 = vst.msk [vmem:[%s1944_s19 + $0xe8] sm:$0xff] %vm650_vm2, %v2090_v8 }
 0x11b   : > { %v814_v55 = vsel %vm650_vm2, %v770_v50, 0.0  ;;  %v723_v26 = vsel %vm650_vm2, %v2000_v63, 0.0  ;;  %v826_v29 = vsel %vm650_vm2, %v776_v19, 0.0  ;;  %v828_v30 = vsel %vm650_vm2, %v777_v21, 0.0 }
 0x11c   : > { %v712_v58 = vadd.f32 %v711_v53, %v710_v52  ;;  %v815_v59 = vadd.f32 %v814_v55, %v813_v51  ;;  %v2100_v13 = vsel %vm650_vm2, %v788_v6, 0.0  ;;  %v778_v33 = vmul.f32 %v2014_v7, %v2014_v7 }
 0x11d   : > { %v779_v38 = vmul.f32 %v1995_v60, %v1995_v60  ;;  %v727_v63 = vsel %vm650_vm2, %v1995_v60, 0.0  ;;  %v780_v42 = vmul.f32 %v2007_v3, %v2007_v3  ;;  %v781_v45 = vmul.f32 %v2036_v27, %v2036_v27 }
 0x11e   : > { %v817_v4 = vadd.f32 %v816_v62, %v815_v59  ;;  %v714_v5 = vadd.f32 %v713_v0, %v712_v58  ;;  %v830_v44 = vsel %vm650_vm2, %v778_v33, 0.0  ;;  %v729_v7 = vsel %vm650_vm2, %v2007_v3, 0.0 }
 0x11f   : > { %v832_v48 = vsel %vm650_vm2, %v779_v38, 0.0  ;;  %v731_v49 = vsel %vm650_vm2, %v2036_v27, 0.0  ;;  %v834_v51 = vsel %vm650_vm2, %v780_v42, 0.0  ;;  %v836_v52 = vsel %vm650_vm2, %v781_v45, 0.0  ;;  %v683_v38 = vld [vmem:[#allocation3] sm:$0x1] }
 0x120   : > { %v716_v11 = vadd.f32 %v715_v1, %v714_v5  ;;  %v819_v12 = vadd.f32 %v818_v9, %v817_v4  ;;  %v782_v53 = vmul.f32 %v2050_v37, %v2050_v37  ;;  %v733_v3 = vsel %vm650_vm2, %v2050_v37, 0.0 }
 0x121   : > { %v735_v27 = vsel %vm650_vm2, %v2031_v24, 0.0  ;;  %v784_v62 = vmul.f32 %v2043_v31, %v2043_v31  ;;  %v785_v1 = vmul.f32 %v2074_v61, %v2074_v61  ;;  %v840_v6 = vsel %vm650_vm2, %v783_v56, 0.0 }
 0x122   : > { %v821_v16 = vadd.f32 %v820_v10, %v819_v12  ;;  %v718_v17 = vadd.f32 %v717_v15, %v716_v11  ;;  %v838_v0 = vsel %vm650_vm2, %v782_v53, 0.0  ;;  %v737_v37 = vsel %vm650_vm2, %v2043_v31, 0.0 }
 0x123   : > { %v739_v9 = vsel %vm650_vm2, %v2074_v61, 0.0  ;;  %v842_v35 = vsel %vm650_vm2, %v784_v62, 0.0  ;;  %v844_v11 = vsel %vm650_vm2, %v785_v1, 0.0  ;;  %v786_v12 = vmul.f32 %v2090_v8, %v2090_v8 }
 0x124   : > { %v720_v22 = vadd.f32 %v719_v18, %v718_v17  ;;  %v823_v23 = vadd.f32 %v822_v20, %v821_v16  ;;  %v787_v16 = vmul.f32 %v2069_v57, %v2069_v57  ;;  %v741_v31 = vsel %vm650_vm2, %v2090_v8, 0.0 }
 0x125   : > { %v743_v61 = vsel %vm650_vm2, %v2069_v57, 0.0  ;;  %v846_v19 = vsel %vm650_vm2, %v786_v12, 0.0 }
 0x126   : > { %v825_v28 = vadd.f32 %v824_v25, %v823_v23  ;;  %v722_v32 = vadd.f32 %v721_v43, %v720_v22  ;;  %v848_v22 = vsel %vm650_vm2, %v787_v16, 0.0  ;;  %v745_v23 = vsel %vm650_vm2, %v2083_v2, 0.0 }
 0x128   : > { %v724_v34 = vadd.f32 %v723_v26, %v722_v32  ;;  %v827_v36 = vadd.f32 %v826_v29, %v825_v28 }
 0x12a   : > { %v829_v40 = vadd.f32 %v828_v30, %v827_v36  ;;  %v726_v41 = vadd.f32 %v725_v39, %v724_v34 }
 0x12c   : > { %v728_v46 = vadd.f32 %v727_v63, %v726_v41  ;;  %v831_v47 = vadd.f32 %v830_v44, %v829_v40  ;;  %v756_v41 = vld [vmem:[#allocation4] sm:$0x1] }
 0x12e   : > { %v833_v50 = vadd.f32 %v832_v48, %v831_v47  ;;  %v730_v60 = vadd.f32 %v729_v7, %v728_v46 }
 0x130   : > { %v732_v54 = vadd.f32 %v731_v49, %v730_v60  ;;  %v835_v55 = vadd.f32 %v834_v51, %v833_v50 }
 0x132   : > { %v837_v58 = vadd.f32 %v836_v52, %v835_v55  ;;  %v734_v59 = vadd.f32 %v733_v3, %v732_v54 }
 0x134   : > { %v736_v4 = vadd.f32 %v735_v27, %v734_v59  ;;  %v839_v5 = vadd.f32 %v838_v0, %v837_v58 }
 0x136   : > { %v841_v10 = vadd.f32 %v840_v6, %v839_v5  ;;  %v738_v24 = vadd.f32 %v737_v37, %v736_v4 }
 0x138   : > { %v740_v14 = vadd.f32 %v739_v9, %v738_v24  ;;  %v843_v15 = vadd.f32 %v842_v35, %v841_v10 }
 0x13a   : > { %v845_v17 = vadd.f32 %v844_v11, %v843_v15  ;;  %v742_v18 = vadd.f32 %v741_v31, %v740_v14 }
 0x13c   : > { %v744_v20 = vadd.f32 %v743_v61, %v742_v18  ;;  %v847_v21 = vadd.f32 %v846_v19, %v845_v17 }
 0x13e   : > { %v746_v25 = vadd.f32 %v745_v23, %v744_v20  ;;  %v849_v43 = vadd.f32 %v848_v22, %v847_v21 }
 0x140   : > { %v747_v26 = vrot.slane %v746_v25, 4  ;;  %v851_v28 = vadd.f32 %v2100_v13, %v849_v43 }
 0x142   : > { %v748_v8 = vadd.f32 %v747_v26, %v746_v25  ;;  %v852_v32 = vrot.slane %v851_v28, 4 }
 0x144   : > { %v749_v29 = vrot.slane %v748_v8, 2  ;;  %v853_v30 = vadd.f32 %v852_v32, %v851_v28 }
 0x146   : > { %v750_v33 = vadd.f32 %v749_v29, %v748_v8  ;;  %v854_v57 = vrot.slane %v853_v30, 2 }
 0x148   : > { %v751_v34 = vrot.slane %v750_v33, 1  ;;  %v855_v36 = vadd.f32 %v854_v57, %v853_v30 }
 0x14a   : > { %v752_v39 = vadd.f32 %v751_v34, %v750_v33  ;;  %v856_v40 = vrot.slane %v855_v36, 1 }
 0x14c   : > { %v753_v63 = vadd.f32 %v752_v39, %v683_v38  ;;  %v857_v2 = vadd.f32 %v856_v40, %v855_v36 }
 0x14e   : > { %755 = vst.msk [vmem:[#allocation3] sm:$0x1] %vm754_vm3, %v753_v63  ;;  %v858_v42 = vadd.f32 %v857_v2, %v756_v41 }
 0x150   : > { %859 = vst.msk [vmem:[#allocation4] sm:$0x1] %vm754_vm3, %v858_v42 }
 0x151 PF: > { %p1452_p4 = scmp.ne.s32.totalorder %s1754_s27, 1 }
 0x152   : > { %v912_v49 = vlaneseq (!%p1452_p4)  ;;  %s1453_s4 = sshll.u32 (!%p1452_p4), %s1750_s26, 8  ;;  %s987_s10 = sld [smem:[#allocation5]] (!%p1452_p4)  ;;  %v904_v60 = vld [vmem:[%s2664_s2] sm:$0x1] (!%p1452_p4)  ;;  %vm1085_vm4 = vcmask (!%p1452_p4), 523264  }
 0x153   : > { %863 = sbr.rel (%p1452_p4) target bundleno = 425 (0x1a9), region = 52  ;;  %s2178_s27 = scalar_lea.vmem (!%p1452_p4), [#allocation2], %s1453_s4  ;;  %v908_v55 = vld [vmem:[%s2665_s3] sm:$0x1] (!%p1452_p4) }
 0x154   : > { %v913_v50 = vshrl.u32 (!%p1452_p4), %v912_v49, 7  ;;  %v866_v53 = vld [vmem:[%s2178_s27] sm:$0xff] (!%p1452_p4)  ;;  %v867_v56 = vld [vmem:[%s2178_s27 + $0x8] sm:$0xff] (!%p1452_p4)  ;;  %v868_v3 = vld [vmem:[%s2178_s27 + $0x10] sm:$0xff] (!%p1452_p4) }
 0x155   : > { %v898_v13 = vld [vmem:[#allocation3] sm:$0x1] (!%p1452_p4)  ;;  %v869_v58 = vld [vmem:[%s2178_s27 + $0x18] sm:$0xff] (!%p1452_p4)  ;;  %v871_v0 = vld [vmem:[%s2178_s27 + $0x28] sm:$0xff] (!%p1452_p4) }
 0x156   : > { %v899_v45 = vmul.f32 (!%p1452_p4), 0.001953125, %v898_v13  ;;  %v914_v51 = vsub.s32 (!%p1452_p4), 0, %v913_v50  ;;  %v870_v59 = vld [vmem:[%s2178_s27 + $0x20] sm:$0xff] (!%p1452_p4)  ;;  %v872_v1 = vld [vmem:[%s2178_s27 + $0x30] sm:$0xff] (!%p1452_p4)  ;;  %v873_v4 = vld [vmem:[%s2178_s27 + $0x38] sm:$0xff] (!%p1452_p4) }
 0x157   : > { %v900_v44 = vld [vmem:[#allocation4] sm:$0x1] (!%p1452_p4)  ;;  %v875_v37 = vld [vmem:[%s2178_s27 + $0x48] sm:$0xff] (!%p1452_p4)  ;;  %v876_v9 = vld [vmem:[%s2178_s27 + $0x50] sm:$0xff] (!%p1452_p4) }
 0x158   : > { %v901_v46 = vmul.f32 (!%p1452_p4), 0.001953125, %v900_v44  ;;  %v902_v47 = vmul.f32 (!%p1452_p4), %v899_v45, %v899_v45  ;;  %v2193_v5 = vstv (!%p1452_p4), %s987_s10  ;;  %v874_v6 = vld [vmem:[%s2178_s27 + $0x40] sm:$0xff] (!%p1452_p4)  ;;  %v877_v12 = vld [vmem:[%s2178_s27 + $0x58] sm:$0xff] (!%p1452_p4)  ;;  %v879_v15 = vld [vmem:[%s2178_s27 + $0x68] sm:$0xff] (!%p1452_p4) }
 0x159   : > { %v878_v14 = vld [vmem:[%s2178_s27 + $0x60] sm:$0xff] (!%p1452_p4) }
 0x15a   : > { %v903_v48 = vsub.f32 %v901_v46, %v902_v47 }
 0x15c   : > { %v905_v7 = vadd.f32 1e-05, %v903_v48 }
 0x15e   : > { %1670 = vrsqrt.f32 %v905_v7 }
 0x168   : > { %v1671_v52 = vpop.eup %1670 }
 0x169   : > { %v907_v54 = vmul.f32 %v1671_v52, %v904_v60 }
 0x16b   : > { %v909_v27 = vmul.f32 %v907_v54, %v899_v45  ;;  %v2188_v62 = vrot.slane %v907_v54, %v914_v51  ;;  %v880_v54 = vld [vmem:[%s2178_s27 + $0x70] sm:$0xff] }
 0x16d   : > { %v910_v10 = vsub.f32 %v908_v55, %v909_v27  ;;  %v917_v24 = vmul.f32 %v2188_v62, %v866_v53  ;;  %v918_v35 = vmul.f32 %v2188_v62, %v867_v56  ;;  %v919_v11 = vmul.f32 %v2188_v62, %v868_v3  ;;  %v881_v3 = vld [vmem:[%s2178_s27 + $0x78] sm:$0xff] }
 0x16e   : > { %v920_v16 = vmul.f32 %v2188_v62, %v869_v58  ;;  %v921_v31 = vmul.f32 %v2188_v62, %v870_v59  ;;  %v922_v17 = vmul.f32 %v2188_v62, %v871_v0  ;;  %v923_v18 = vmul.f32 %v2188_v62, %v872_v1  ;;  %v882_v58 = vld [vmem:[%s2178_s27 + $0x80] sm:$0xff]  ;;  %v883_v1 = vld [vmem:[%s2178_s27 + $0x88] sm:$0xff] }
 0x16f   : > { %v2208_v61 = vrot.slane %v910_v10, %v914_v51  ;;  %v924_v19 = vmul.f32 %v2188_v62, %v873_v4  ;;  %v925_v20 = vmul.f32 %v2188_v62, %v874_v6  ;;  %v926_v21 = vmul.f32 %v2188_v62, %v875_v37  ;;  %v884_v10 = vld [vmem:[%s2178_s27 + $0x90] sm:$0xff] }
 0x170   : > { %v927_v22 = vmul.f32 %v2188_v62, %v876_v9  ;;  %v928_v23 = vmul.f32 %v2188_v62, %v877_v12  ;;  %v929_v25 = vmul.f32 %v2188_v62, %v878_v14  ;;  %v2217_v43 = vmul.f32 %v2188_v62, %v879_v15 }
 0x171   : > { %v955_v26 = vadd.f32 %v2208_v61, %v917_v24  ;;  %v956_v28 = vadd.f32 %v2208_v61, %v918_v35  ;;  %v957_v8 = vadd.f32 %v2208_v61, %v919_v11  ;;  %v958_v32 = vadd.f32 %v2208_v61, %v920_v16  ;;  %v885_v24 = vld [vmem:[%s2178_s27 + $0x98] sm:$0xff] }
 0x172   : > { %v959_v29 = vadd.f32 %v2208_v61, %v921_v31  ;;  %v960_v30 = vadd.f32 %v2208_v61, %v922_v17  ;;  %v961_v33 = vadd.f32 %v2208_v61, %v923_v18  ;;  %v962_v57 = vadd.f32 %v2208_v61, %v924_v19 }
 0x173   : > { %vm988_vm5 = vcmp.ge.f32.partialorder %v955_v26, 0.0  ;;  %v1021_v34 = vmul.f32 %v2193_v5, %v955_v26  ;;  %vm989_vm6 = vcmp.ge.f32.partialorder %v956_v28, 0.0  ;;  %v1022_v36 = vmul.f32 %v2193_v5, %v956_v28 }
 0x174   : > { %vm990_vm7 = vcmp.ge.f32.partialorder %v957_v8, 0.0  ;;  %v1023_v38 = vmul.f32 %v2193_v5, %v957_v8  ;;  %vm991_vm8 = vcmp.ge.f32.partialorder %v958_v32, 0.0  ;;  %v1024_v39 = vmul.f32 %v2193_v5, %v958_v32 }
 0x175   : > { %v2231_v40 = vsel %vm988_vm5, %v955_v26, %v1021_v34  ;;  %v2233_v41 = vsel %vm989_vm6, %v956_v28, %v1022_v36  ;;  %vm992_vm9 = vcmp.ge.f32.partialorder %v959_v29, 0.0  ;;  %v1025_v63 = vmul.f32 %v2193_v5, %v959_v29  ;;  %v887_v28 = vld [vmem:[%s2178_s27 + $0xa8] sm:$0xff] }
 0x176   : > { %1086 = vst.msk [vmem:[%s1905_s20] sm:$0xff] %vm1085_vm4, %v2231_v40  ;;  %1087 = vst.msk [vmem:[%s1905_s20 + $0x8] sm:$0xff] %vm1085_vm4, %v2233_v41  ;;  %v2242_v2 = vsel %vm990_vm7, %v957_v8, %v1023_v38  ;;  %v2244_v42 = vsel %vm991_vm8, %v958_v32, %v1024_v39  ;;  %vm993_vm10 = vcmp.ge.f32.partialorder %v960_v30, 0.0  ;;  %v1026_v13 = vmul.f32 %v2193_v5, %v960_v30  ;;  %v889_v38 = vld [vmem:[%s2178_s27 + $0xb8] sm:$0xff]  ;;  %v890_v39 = vld [vmem:[%s2178_s27 + $0xc0] sm:$0xff] }
 0x177   : > { %1088 = vst.msk [vmem:[%s1905_s20 + $0x10] sm:$0xff] %vm1085_vm4, %v2242_v2  ;;  %1089 = vst.msk [vmem:[%s1905_s20 + $0x18] sm:$0xff] %vm1085_vm4, %v2244_v42  ;;  %v2253_v44 = vsel %vm992_vm9, %v959_v29, %v1025_v63  ;;  %vm994_vm11 = vcmp.ge.f32.partialorder %v961_v33, 0.0  ;;  %v1027_v45 = vmul.f32 %v2193_v5, %v961_v33  ;;  %vm995_vm12 = vcmp.ge.f32.partialorder %v962_v57, 0.0 }
 0x178   : > { %1090 = vst.msk [vmem:[%s1905_s20 + $0x20] sm:$0xff] %vm1085_vm4, %v2253_v44  ;;  %v2259_v46 = vsel %vm993_vm10, %v960_v30, %v1026_v13  ;;  %v1028_v47 = vmul.f32 %v2193_v5, %v962_v57  ;;  %v963_v48 = vadd.f32 %v2208_v61, %v925_v20  ;;  %v964_v7 = vadd.f32 %v2208_v61, %v926_v21  ;;  %v888_v30 = vld [vmem:[%s2178_s27 + $0xb0] sm:$0xff] }
 0x179   : > { %1091 = vst.msk [vmem:[%s1905_s20 + $0x28] sm:$0xff] %vm1085_vm4, %v2259_v46  ;;  %v2267_v49 = vsel %vm994_vm11, %v961_v33, %v1027_v45  ;;  %v965_v50 = vadd.f32 %v2208_v61, %v927_v22  ;;  %v966_v60 = vadd.f32 %v2208_v61, %v928_v23  ;;  %v967_v51 = vadd.f32 %v2208_v61, %v929_v25  ;;  %v886_v25 = vld [vmem:[%s2178_s27 + $0xa0] sm:$0xff] }
 0x17a   : > { %1092 = vst.msk [vmem:[%s1905_s20 + $0x30] sm:$0xff] %vm1085_vm4, %v2267_v49  ;;  %v2275_v52 = vsel %vm995_vm12, %v962_v57, %v1028_v47  ;;  %vm996_vm13 = vcmp.ge.f32.partialorder %v963_v48, 0.0  ;;  %v1029_v53 = vmul.f32 %v2193_v5, %v963_v48  ;;  %vm997_vm14 = vcmp.ge.f32.partialorder %v964_v7, 0.0 }
 0x17b   : > { %1093 = vst.msk [vmem:[%s1905_s20 + $0x38] sm:$0xff] %vm1085_vm4, %v2275_v52  ;;  %v1030_v55 = vmul.f32 %v2193_v5, %v964_v7  ;;  %vm998_vm15 = vcmp.ge.f32.partialorder %v965_v50, 0.0  ;;  %v1031_v56 = vmul.f32 %v2193_v5, %v965_v50  ;;  %vm999_vm0 = vcmp.ge.f32.partialorder %v966_v60, 0.0 }
 0x17c   : > { %v2286_v59 = vsel %vm996_vm13, %v963_v48, %v1029_v53  ;;  %v1032_v27 = vmul.f32 %v2193_v5, %v966_v60  ;;  %vm1000_vm1 = vcmp.ge.f32.partialorder %v967_v51, 0.0  ;;  %v1033_v0 = vmul.f32 %v2193_v5, %v967_v51 }
 0x17d   : > { %1094 = vst.msk [vmem:[%s1905_s20 + $0x40] sm:$0xff] %vm1085_vm4, %v2286_v59  ;;  %v2294_v4 = vsel %vm997_vm14, %v964_v7, %v1030_v55  ;;  %v2296_v6 = vsel %vm998_vm15, %v965_v50, %v1031_v56  ;;  %v968_v37 = vadd.f32 %v2208_v61, %v2217_v43  ;;  %v931_v9 = vmul.f32 %v2188_v62, %v880_v54  ;;  %v891_v54 = vld [vmem:[%s2178_s27 + $0xc8] sm:$0xff] }
 0x17e   : > { %1095 = vst.msk [vmem:[%s1905_s20 + $0x48] sm:$0xff] %vm1085_vm4, %v2294_v4  ;;  %1096 = vst.msk [vmem:[%s1905_s20 + $0x50] sm:$0xff] %vm1085_vm4, %v2296_v6  ;;  %v2310_v35 = vsel %vm999_vm0, %v966_v60, %v1032_v27  ;;  %v2312_v11 = vsel %vm1000_vm1, %v967_v51, %v1033_v0  ;;  %v932_v12 = vmul.f32 %v2188_v62, %v881_v3  ;;  %vm1246_vm13 = vcmask 519168  }
 0x17f   : > { %v933_v14 = vmul.f32 %v2188_v62, %v882_v58  ;;  %1097 = vst.msk [vmem:[%s1905_s20 + $0x58] sm:$0xff] %vm1085_vm4, %v2310_v35  ;;  %1098 = vst.msk [vmem:[%s1905_s20 + $0x60] sm:$0xff] %vm1085_vm4, %v2312_v11  ;;  %vm1001_vm2 = vcmp.ge.f32.partialorder %v968_v37, 0.0  ;;  %v1034_v15 = vmul.f32 %v2193_v5, %v968_v37  ;;  %v969_v16 = vadd.f32 %v2208_v61, %v931_v9 }
 0x180   : > { %v934_v31 = vmul.f32 %v2188_v62, %v883_v1  ;;  %v970_v17 = vadd.f32 %v2208_v61, %v932_v12  ;;  %v935_v19 = vmul.f32 %v2188_v62, %v884_v10  ;;  %v936_v20 = vmul.f32 %v2188_v62, %v885_v24  ;;  %v892_v1 = vld [vmem:[%s2178_s27 + $0xd0] sm:$0xff]  ;;  %v893_v24 = vld [vmem:[%s2178_s27 + $0xd8] sm:$0xff]  ;;  %v894_v12 = vld [vmem:[%s2178_s27 + $0xe0] sm:$0xff] }
 0x181   : > { %v971_v18 = vadd.f32 %v2208_v61, %v933_v14  ;;  %v2329_v21 = vsel %vm1001_vm2, %v968_v37, %v1034_v15  ;;  %vm1002_vm3 = vcmp.ge.f32.partialorder %v969_v16, 0.0  ;;  %v1035_v22 = vmul.f32 %v2193_v5, %v969_v16  ;;  %v895_v14 = vld [vmem:[%s2178_s27 + $0xe8] sm:$0xff] }
 0x182   : > { %v972_v23 = vadd.f32 %v2208_v61, %v934_v31  ;;  %1099 = vst.msk [vmem:[%s1905_s20 + $0x68] sm:$0xff] %vm1085_vm4, %v2329_v21  ;;  %vm1003_vm5 = vcmp.ge.f32.partialorder %v970_v17, 0.0  ;;  %v1036_v43 = vmul.f32 %v2193_v5, %v970_v17  ;;  %v973_v29 = vadd.f32 %v2208_v61, %v935_v19 }
 0x183   : > { %vm1004_vm6 = vcmp.ge.f32.partialorder %v971_v18, 0.0  ;;  %v1037_v26 = vmul.f32 %v2193_v5, %v971_v18  ;;  %v2340_v8 = vsel %vm1002_vm3, %v969_v16, %v1035_v22  ;;  %v974_v34 = vadd.f32 %v2208_v61, %v936_v20  ;;  %v896_v20 = vld [vmem:[%s2178_s27 + $0xf0] sm:$0xff] }
 0x184   : > { %vm1005_vm7 = vcmp.ge.f32.partialorder %v972_v23, 0.0  ;;  %v1038_v32 = vmul.f32 %v2193_v5, %v972_v23  ;;  %1100 = vst.msk [vmem:[%s1905_s20 + $0x70] sm:$0xff] %vm1085_vm4, %v2340_v8  ;;  %v2348_v33 = vsel %vm1003_vm5, %v970_v17, %v1036_v43  ;;  %v937_v36 = vmul.f32 %v2188_v62, %v886_v25 }
 0x185   : > { %v2350_v57 = vsel %vm1004_vm6, %v971_v18, %v1037_v26  ;;  %1101 = vst.msk [vmem:[%s1905_s20 + $0x78] sm:$0xff] %vm1085_vm4, %v2348_v33  ;;  %vm1006_vm8 = vcmp.ge.f32.partialorder %v973_v29, 0.0  ;;  %v1039_v13 = vmul.f32 %v2193_v5, %v973_v29  ;;  %v938_v45 = vmul.f32 %v2188_v62, %v887_v28  ;;  %v897_v26 = vld [vmem:[%s2178_s27 + $0xf8] sm:$0xff] }
 0x186   : > { %1102 = vst.msk [vmem:[%s1905_s20 + $0x80] sm:$0xff] %vm1085_vm4, %v2350_v57  ;;  %v2362_v63 = vsel %vm1005_vm7, %v972_v23, %v1038_v32  ;;  %vm1007_vm9 = vcmp.ge.f32.partialorder %v974_v34, 0.0  ;;  %v1040_v47 = vmul.f32 %v2193_v5, %v974_v34  ;;  %v975_v48 = vadd.f32 %v2208_v61, %v937_v36 }
 0x187   : > { %1103 = vst.msk [vmem:[%s1905_s20 + $0x88] sm:$0xff] %vm1085_vm4, %v2362_v63  ;;  %v939_v7 = vmul.f32 %v2188_v62, %v888_v30  ;;  %v2372_v50 = vsel %vm1006_vm8, %v973_v29, %v1039_v13  ;;  %v976_v60 = vadd.f32 %v2208_v61, %v938_v45  ;;  %v940_v51 = vmul.f32 %v2188_v62, %v889_v38 }
 0x188   : > { %v941_v53 = vmul.f32 %v2188_v62, %v890_v39  ;;  %1104 = vst.msk [vmem:[%s1905_s20 + $0x90] sm:$0xff] %vm1085_vm4, %v2372_v50  ;;  %v2381_v55 = vsel %vm1007_vm9, %v974_v34, %v1040_v47  ;;  %vm1008_vm10 = vcmp.ge.f32.partialorder %v975_v48, 0.0  ;;  %v1041_v56 = vmul.f32 %v2193_v5, %v975_v48 }
 0x189   : > { %v977_v3 = vadd.f32 %v2208_v61, %v939_v7  ;;  %1105 = vst.msk [vmem:[%s1905_s20 + $0x98] sm:$0xff] %vm1085_vm4, %v2381_v55  ;;  %vm1009_vm11 = vcmp.ge.f32.partialorder %v976_v60, 0.0  ;;  %v1042_v58 = vmul.f32 %v2193_v5, %v976_v60  ;;  %v978_v27 = vadd.f32 %v2208_v61, %v940_v51 }
 0x18a   : > { %v979_v0 = vadd.f32 %v2208_v61, %v941_v53  ;;  %v2392_v37 = vsel %vm1008_vm10, %v975_v48, %v1041_v56  ;;  %v942_v10 = vmul.f32 %v2188_v62, %v891_v54  ;;  %v943_v19 = vmul.f32 %v2188_v62, %v892_v1 }
 0x18b   : > { %vm1010_vm12 = vcmp.ge.f32.partialorder %v977_v3, 0.0  ;;  %v1043_v9 = vmul.f32 %v2193_v5, %v977_v3  ;;  %1106 = vst.msk [vmem:[%s1905_s20 + $0xa0] sm:$0xff] %vm1085_vm4, %v2392_v37  ;;  %v2402_v15 = vsel %vm1009_vm11, %v976_v60, %v1042_v58  ;;  %vm1011_vm14 = vcmp.ge.f32.partialorder %v978_v27, 0.0 }
 0x18c   : > { %v1044_v16 = vmul.f32 %v2193_v5, %v978_v27  ;;  %vm1012_vm15 = vcmp.ge.f32.partialorder %v979_v0, 0.0  ;;  %1107 = vst.msk [vmem:[%s1905_s20 + $0xa8] sm:$0xff] %vm1085_vm4, %v2402_v15  ;;  %v1045_v17 = vmul.f32 %v2193_v5, %v979_v0  ;;  %v980_v18 = vadd.f32 %v2208_v61, %v942_v10 }
 0x18d   : > { %v2408_v31 = vsel %vm1010_vm12, %v977_v3, %v1043_v9  ;;  %v944_v23 = vmul.f32 %v2188_v62, %v893_v24  ;;  %v945_v25 = vmul.f32 %v2188_v62, %v894_v12  ;;  %v946_v43 = vmul.f32 %v2188_v62, %v895_v14 }
 0x18e   : > { %1108 = vst.msk [vmem:[%s1905_s20 + $0xb0] sm:$0xff] %vm1085_vm4, %v2408_v31  ;;  %v2417_v22 = vsel %vm1011_vm14, %v978_v27, %v1044_v16  ;;  %v2426_v28 = vsel %vm1012_vm15, %v979_v0, %v1045_v17  ;;  %vm1013_vm0 = vcmp.ge.f32.partialorder %v980_v18, 0.0  ;;  %v1046_v32 = vmul.f32 %v2193_v5, %v980_v18 }
 0x18f   : > { %1109 = vst.msk [vmem:[%s1905_s20 + $0xb8] sm:$0xff] %vm1085_vm4, %v2417_v22  ;;  %v981_v29 = vadd.f32 %v2208_v61, %v943_v19  ;;  %1110 = vst.msk [vmem:[%s1905_s20 + $0xc0] sm:$0xff] %vm1085_vm4, %v2426_v28  ;;  %v982_v30 = vadd.f32 %v2208_v61, %v944_v23  ;;  %v983_v34 = vadd.f32 %v2208_v61, %v945_v25 }
 0x190   : > { %v984_v36 = vadd.f32 %v2208_v61, %v946_v43  ;;  %v947_v38 = vmul.f32 %v2188_v62, %v896_v20  ;;  %v2437_v39 = vsel %vm1013_vm0, %v980_v18, %v1046_v32  ;;  %v948_v45 = vmul.f32 %v2188_v62, %v897_v26 }
 0x191   : > { %vm1014_vm1 = vcmp.ge.f32.partialorder %v981_v29, 0.0  ;;  %v1047_v13 = vmul.f32 %v2193_v5, %v981_v29  ;;  %1111 = vst.msk [vmem:[%s1905_s20 + $0xc8] sm:$0xff] %vm1085_vm4, %v2437_v39  ;;  %vm1015_vm2 = vcmp.ge.f32.partialorder %v982_v30, 0.0  ;;  %v1048_v47 = vmul.f32 %v2193_v5, %v982_v30 }
 0x192   : > { %vm1016_vm3 = vcmp.ge.f32.partialorder %v983_v34, 0.0  ;;  %v1049_v48 = vmul.f32 %v2193_v5, %v983_v34  ;;  %vm1017_vm5 = vcmp.ge.f32.partialorder %v984_v36, 0.0  ;;  %v1050_v60 = vmul.f32 %v2193_v5, %v984_v36 }
 0x193   : > { %v2446_v7 = vsel %vm1014_vm1, %v981_v29, %v1047_v13  ;;  %v985_v51 = vadd.f32 %v2208_v61, %v947_v38  ;;  %v2453_v62 = vsel %vm1015_vm2, %v982_v30, %v1048_v47  ;;  %v986_v54 = vadd.f32 %v2208_v61, %v948_v45 }
 0x194   : > { %1112 = vst.msk [vmem:[%s1905_s20 + $0xd0] sm:$0xff] %vm1085_vm4, %v2446_v7  ;;  %v2455_v53 = vsel %vm1016_vm3, %v983_v34, %v1049_v48  ;;  %v1493_v56 = vpack.c.bf16 %v2231_v40, %v2231_v40  ;;  %1113 = vst.msk [vmem:[%s1905_s20 + $0xd8] sm:$0xff] %vm1085_vm4, %v2453_v62  ;;  %v2466_v3 = vsel %vm1017_vm5, %v984_v36, %v1050_v60 }
 0x195   : > { %1114 = vst.msk [vmem:[%s1905_s20 + $0xe0] sm:$0xff] %vm1085_vm4, %v2455_v53  ;;  %vm1018_vm6 = vcmp.ge.f32.partialorder %v985_v51, 0.0  ;;  %v1051_v58 = vmul.f32 %v2193_v5, %v985_v51  ;;  %v1494_v61 = vpack.c.bf16 %v2233_v41, %v2233_v41  ;;  %1115 = vst.msk [vmem:[%s1905_s20 + $0xe8] sm:$0xff] %vm1085_vm4, %v2466_v3  ;;  %vm1019_vm7 = vcmp.ge.f32.partialorder %v986_v54, 0.0 }
 0x196   : > { %v1052_v40 = vmul.f32 %v2193_v5, %v986_v54  ;;  %1247 = vst.msk [vmem:[%s1903_s9] sm:$0xf] %vm1246_vm13, %v1493_v56  ;;  %v1495_v27 = vpack.c.bf16 %v2242_v2, %v2242_v2  ;;  %v1496_v0 = vpack.c.bf16 %v2244_v42, %v2244_v42  ;;  %v1497_v41 = vpack.c.bf16 %v2253_v44, %v2253_v44 }
 0x197   : > { %v1083_v1 = vsel %vm1018_vm6, %v985_v51, %v1051_v58  ;;  %1248 = vst.msk [vmem:[%s1903_s9 + $0x4] sm:$0xf] %vm1246_vm13, %v1494_v61  ;;  %v1498_v5 = vpack.c.bf16 %v2259_v46, %v2259_v46  ;;  %v1499_v9 = vpack.c.bf16 %v2267_v49, %v2267_v49  ;;  %v1500_v42 = vpack.c.bf16 %v2275_v52, %v2275_v52 }
 0x198   : > { %1116 = vst.msk [vmem:[%s1905_s20 + $0xf0] sm:$0xff] %vm1085_vm4, %v1083_v1  ;;  %v1084_v2 = vsel %vm1019_vm7, %v986_v54, %v1052_v40  ;;  %v1501_v44 = vpack.c.bf16 %v2286_v59, %v2286_v59  ;;  %v1502_v46 = vpack.c.bf16 %v2294_v4, %v2294_v4  ;;  %v1503_v49 = vpack.c.bf16 %v2296_v6, %v2296_v6 }
 0x199   : > { %1249 = vst.msk [vmem:[%s1903_s9 + $0x8] sm:$0xf] %vm1246_vm13, %v1495_v27  ;;  %1250 = vst.msk [vmem:[%s1903_s9 + $0xc] sm:$0xf] %vm1246_vm13, %v1496_v0  ;;  %v1504_v52 = vpack.c.bf16 %v2310_v35, %v2310_v35  ;;  %v1505_v59 = vpack.c.bf16 %v2312_v11, %v2312_v11  ;;  %v1506_v4 = vpack.c.bf16 %v2329_v21, %v2329_v21 }
 0x19a   : > { %1117 = vst.msk [vmem:[%s1905_s20 + $0xf8] sm:$0xff] %vm1085_vm4, %v1084_v2  ;;  %v1507_v6 = vpack.c.bf16 %v2340_v8, %v2340_v8  ;;  %v1508_v35 = vpack.c.bf16 %v2348_v33, %v2348_v33  ;;  %v1509_v11 = vpack.c.bf16 %v2350_v57, %v2350_v57  ;;  %v1510_v21 = vpack.c.bf16 %v2362_v63, %v2362_v63 }
 0x19b   : > { %1251 = vst.msk [vmem:[%s1903_s9 + $0x10] sm:$0xf] %vm1246_vm13, %v1497_v41  ;;  %1252 = vst.msk [vmem:[%s1903_s9 + $0x14] sm:$0xf] %vm1246_vm13, %v1498_v5  ;;  %v1511_v8 = vpack.c.bf16 %v2372_v50, %v2372_v50  ;;  %v1512_v33 = vpack.c.bf16 %v2381_v55, %v2381_v55  ;;  %v1513_v57 = vpack.c.bf16 %v2392_v37, %v2392_v37 }
 0x19c   : > { %1253 = vst.msk [vmem:[%s1903_s9 + $0x18] sm:$0xf] %vm1246_vm13, %v1499_v9  ;;  %1254 = vst.msk [vmem:[%s1903_s9 + $0x1c] sm:$0xf] %vm1246_vm13, %v1500_v42  ;;  %v1514_v63 = vpack.c.bf16 %v2402_v15, %v2402_v15  ;;  %v1515_v50 = vpack.c.bf16 %v2408_v31, %v2408_v31  ;;  %v1516_v55 = vpack.c.bf16 %v2417_v22, %v2417_v22 }
 0x19d   : > { %1255 = vst.msk [vmem:[%s1903_s9 + $0x20] sm:$0xf] %vm1246_vm13, %v1501_v44  ;;  %1256 = vst.msk [vmem:[%s1903_s9 + $0x24] sm:$0xf] %vm1246_vm13, %v1502_v46  ;;  %v1517_v37 = vpack.c.bf16 %v2426_v28, %v2426_v28  ;;  %v1518_v10 = vpack.c.bf16 %v2437_v39, %v2437_v39  ;;  %v1519_v24 = vpack.c.bf16 %v2446_v7, %v2446_v7 }
 0x19e   : > { %1257 = vst.msk [vmem:[%s1903_s9 + $0x28] sm:$0xf] %vm1246_vm13, %v1503_v49  ;;  %1258 = vst.msk [vmem:[%s1903_s9 + $0x2c] sm:$0xf] %vm1246_vm13, %v1504_v52  ;;  %v1520_v12 = vpack.c.bf16 %v2453_v62, %v2453_v62  ;;  %v1521_v14 = vpack.c.bf16 %v2455_v53, %v2455_v53  ;;  %v1522_v15 = vpack.c.bf16 %v2466_v3, %v2466_v3 }
 0x19f   : > { %1259 = vst.msk [vmem:[%s1903_s9 + $0x30] sm:$0xf] %vm1246_vm13, %v1505_v59  ;;  %1260 = vst.msk [vmem:[%s1903_s9 + $0x34] sm:$0xf] %vm1246_vm13, %v1506_v4  ;;  %v1523_v16 = vpack.c.bf16 %v1083_v1, %v1083_v1  ;;  %v1524_v31 = vpack.c.bf16 %v1084_v2, %v1084_v2 }
 0x1a0   : > { %1261 = vst.msk [vmem:[%s1903_s9 + $0x38] sm:$0xf] %vm1246_vm13, %v1507_v6  ;;  %1262 = vst.msk [vmem:[%s1903_s9 + $0x3c] sm:$0xf] %vm1246_vm13, %v1508_v35 }
 0x1a1   : > { %1263 = vst.msk [vmem:[%s1903_s9 + $0x40] sm:$0xf] %vm1246_vm13, %v1509_v11  ;;  %1264 = vst.msk [vmem:[%s1903_s9 + $0x44] sm:$0xf] %vm1246_vm13, %v1510_v21 }
 0x1a2   : > { %1265 = vst.msk [vmem:[%s1903_s9 + $0x48] sm:$0xf] %vm1246_vm13, %v1511_v8  ;;  %1266 = vst.msk [vmem:[%s1903_s9 + $0x4c] sm:$0xf] %vm1246_vm13, %v1512_v33 }
 0x1a3   : > { %1267 = vst.msk [vmem:[%s1903_s9 + $0x50] sm:$0xf] %vm1246_vm13, %v1513_v57  ;;  %1268 = vst.msk [vmem:[%s1903_s9 + $0x54] sm:$0xf] %vm1246_vm13, %v1514_v63 }
 0x1a4   : > { %1269 = vst.msk [vmem:[%s1903_s9 + $0x58] sm:$0xf] %vm1246_vm13, %v1515_v50  ;;  %1270 = vst.msk [vmem:[%s1903_s9 + $0x5c] sm:$0xf] %vm1246_vm13, %v1516_v55 }
 0x1a5   : > { %1271 = vst.msk [vmem:[%s1903_s9 + $0x60] sm:$0xf] %vm1246_vm13, %v1517_v37  ;;  %1272 = vst.msk [vmem:[%s1903_s9 + $0x64] sm:$0xf] %vm1246_vm13, %v1518_v10 }
 0x1a6   : > { %1273 = vst.msk [vmem:[%s1903_s9 + $0x68] sm:$0xf] %vm1246_vm13, %v1519_v24  ;;  %1274 = vst.msk [vmem:[%s1903_s9 + $0x6c] sm:$0xf] %vm1246_vm13, %v1520_v12 }
 0x1a7   : > { %1275 = vst.msk [vmem:[%s1903_s9 + $0x70] sm:$0xf] %vm1246_vm13, %v1521_v14  ;;  %1276 = vst.msk [vmem:[%s1903_s9 + $0x74] sm:$0xf] %vm1246_vm13, %v1522_v15 }
 0x1a8   : > { %1277 = vst.msk [vmem:[%s1903_s9 + $0x78] sm:$0xf] %vm1246_vm13, %v1523_v16  ;;  %1278 = vst.msk [vmem:[%s1903_s9 + $0x7c] sm:$0xf] %vm1246_vm13, %v1524_v31 }
 0x1a9 PF: > { %s1525_s18 = sshll.u32 %s1888_s21, 12  ;;  %s1300_s19 = sshll.u32 %s1905_s20, 4  ;;  %s2606_s19 = int_to_ptr.vmem [resolvable:$true] %s1300_s19 }
 0x1aa   : > { %s2603_s17 = scalar_lea.hbm %s2667_s5, %s1525_s18  ;;  %s2674_s4 = sand.u32 1, %s1742_s24  }
 0x1ab   : > { %s2610_s10 = scalar_lea.sflag [#allocation7], %s2674_s4  ;;  %s1672_s9 = scalar_lea.vmem %s2606_s19, 4096 }
 0x1ac   : > { %p1673_p5 = scmp.ne.s32.totalorder %s2606_s19, %s1672_s9  ;;  %s1769_s21 = smov [#allocation6]  }
 0x1ad   : > { %s1676_s13 = sshll.u32 %s1769_s21, 4  ;;  %s1677_s13 = int_to_ptr.vmem [resolvable:$false] %s1676_s13 }
 0x1ae   : > { %p1674_p7 = pnand %p1673_p5, %p1863_p6  ;;  %s1678_s14 = scalar_lea.vmem %s1677_s13, 8192 }
 0x1af   : > { %p1679_p10 = scmp.lt.s32.totalorder %s2606_s19, %s1677_s13  ;;  %p1680_p11 = scmp.lt.s32.totalorder %s1678_s14, %s1672_s9 }
 0x1b0   : > { %p1675_p9 = pneg %p1674_p7 }
 0x1b1   : > { %p1681_p12 = por %p1680_p11, %p1679_p10 }
 0x1b3   : > { %p1682_p13 = pnand %p1681_p12, %p1675_p9 }
 0x1b5   : > { %1685 = shalt.err (!%p1682_p13)
}
 0x1b6   : > { %s1686_s20 = scalar_lea.hbm %s2603_s17, 4096  ;;  %s1690_s15 = scalar_lea.hbm %s2667_s5, 8192 }
 0x1b7   : > { %p1687_p0 = scmp.ne.s32.totalorder %s2603_s17, %s1686_s20  ;;  %p1691_p3 = scmp.lt.u32.totalorder %s2603_s17, %s2667_s5 }
 0x1b8   : > { %p1692_p4 = scmp.lt.u32.totalorder %s1690_s15, %s1686_s20  ;;  %p1694_p7 = scmp.lt.u32.totalorder %s1686_s20, %s2603_s17 }
 0x1b9   : > { %p1688_p1 = pnand %p1687_p0, %p1863_p6 }
 0x1ba   : > { %p1693_p5 = por %p1692_p4, %p1691_p3 }
 0x1bb   : > { %p1689_p2 = pneg %p1688_p1 }
 0x1bc   : > { %p1695_p9 = por %p1694_p7, %p1693_p5 }
 0x1be   : > { %p1696_p10 = pnand %p1695_p9, %p1689_p2 }
 0x1c0   : > { %1699 = shalt.err (!%p1696_p10)
}
 0x1c1   : > { %s1770_s7 = smov 128   ;;  %s1771_s4 = smov 8  }
 0x1c2   : > { %1579 = dma.vmem_to_hbm [thread:$0]  (%p1863_p6), %s2606_s19, 4096, %s2603_s17, %s2610_s10, %s1770_s7, %s1770_s7, %s1771_s4  }
 0x1c3 PF: > { %p1585_p11 = scmp.ge.s32.totalorder %s1766_s30, 2  ;;  %s1319_s9 = sand.u32 1, %s1738_s23  }
 0x1c4   : > { %s1320_s21 = scalar_lea.sflag [#allocation7], %s1319_s9 }
 0x1c5   : > { %p1582_p12 = pnand %p1585_p11, %p1870_p8 }
 0x1c7   : > { %1733 = dma.done.wait (!%p1582_p12), %s1320_s21, 4096  }
 0x1c8   : > { %1735 = vsyncadd (!%p1582_p12), %s1320_s21, 4294963200  ;;  %s21_s30 = sadd.s32 1, %s1766_s30   ;;  %s2675_s11 = sld [smem:[#allocation9_spill]] }
 0x1c9   : > { %p18_p13 = scmp.ge.s32.totalorder %s21_s30, 6   ;;  %s2676_s23 = smov %s1742_s24 }
 0x1ca   : > { %s2677_s24 = smov %s1746_s25  ;;  %s2678_s25 = smov %s1879_s16 }
 0x1cb   : > { %s2679_s26 = smov %s1758_s28  ;;  %s2680_s27 = smov %s1762_s29 }
 0x1cc   : > { %s2681_s28 = smov %s2684_s8  ;;  %20 = sbr.rel (!%p18_p13) target bundleno = 7 (0x7), region = 101 }
 0x1ce   : > { %s2682_s29 = smov %s2675_s11 }
 0x1d3   :  { %1334 = vsyncpa [#allocation7], 1 }
 0x1d4   :  { %1336 = vsyncpa [#allocation7 + $0x1], 1 }

// kernel: ae_encoder_forward.5
= control target key start
LH: loop header
LB: loop body
LE: loop exit
PB: predicated region body
PF: predicated region fallthrough
CT: control target
= control target key end

     0   :  { %s5271_s18 = smov 0   ;;  %s5273_s19 = smov 0   ;;  %s7244_s0 = inlined_call_operand.vmem [shape: bf16[2,18,18,64], index: 0, kind: input, shape index: {}]   ;;  %s7245_s1 = inlined_call_operand.vmem [shape: bf16[576,128], index: 1, kind: input, shape index: {}]   ;;  %s7246_s2 = inlined_call_operand.vmem [shape: f32[1,128], index: 2, kind: input, shape index: {}]   ;;  %s7247_s3 = inlined_call_operand.vmem [shape: f32[1,128], index: 3, kind: input, shape index: {}]   ;;  %s7248_s4 = inlined_call_operand.<no memory space> [shape: f32[1], index: 4, kind: input, shape index: {}]   ;;  %s7249_s5 = inlined_call_operand.vmem [shape: f32[2,256,128], index: 5, kind: output, shape index: {}]  }
   0x1   :  { %s5275_s20 = smov 0   ;;  %s5277_s21 = smov 0  }
   0x2   :  { %s5279_s22 = smov 0  }
   0x3 LB: > { %s25_s4 = sadd.s32 1, %s5229_s20  ;;  %s28_s23 = sadd.s32 1, %s5233_s21  ;;  %s5237_s22 = sphi %s5279_s22, %s16_s22   ;;  %s5233_s21 = sphi %s5277_s21, %s7332_s21   ;;  %s5229_s20 = sphi %s5275_s20, %s7331_s20   ;;  %s5225_s19 = sphi %s5273_s19, %s7330_s19   ;;  %s5221_s18 = sphi %s5271_s18, %s7329_s18  }
   0x4   : > { %p26_p0 = scmp.ge.s32.totalorder %s25_s4, 2  ;;  %p4207_p1 = scmp.ge.s32.totalorder %s5237_s22, 1 }
   0x5   : > { %p214_p2 = scmp.lt.s32.totalorder %s5237_s22, 5 }
   0x6   : > { %s7334_s4 = smov (%p26_p0, %s25_s4), 0  ;;  %s7336_s23 = smov (!%p26_p0, %s28_s23), %s5233_s21 }
   0x7   : > { %p215_p3 = pnand %p4207_p1, %p214_p2  ;;  %p30_p4 = scmp.ge.s32.totalorder %s7336_s23, 2 }
   0x8   : > { %s246_s24 = ssub.s32 (!%p215_p3), 1, %s5225_s19  ;;  %s257_s25 = smul.u32 (!%p215_p3), %s5221_s18, %s5225_s19 }
   0x9   : > { %s7338_s23 = smov (%p30_p4, %s7336_s23), 0  ;;  %218 = sbr.rel (%p215_p3) target bundleno = 698 (0x2ba), region = 40 }
   0xa   : > { %s247_s26 = smul.u32 (!%p215_p3), %s5221_s18, %s246_s24  ;;  %p265_p5 = scmp.eq.s32.totalorder (!%p215_p3), %s5225_s19, 0 }
   0xb   : > { %p258_p6 = scmp.lt.s32.totalorder (!%p215_p3), %s257_s25, 1  ;;  %p266_p7 = scmp.eq.s32.totalorder (!%p215_p3), %s5221_s18, 0 }
   0xc   : > { %s248_s27 = sadd.s32 (!%p215_p3), %s5225_s19, %s247_s26 }
   0xd   : > { %p249_p8 = scmp.lt.s32.totalorder (!%p215_p3), %s248_s27, 1  ;;  %p267_p9 = pnand (!%p215_p3), %p266_p7, %p265_p5 }
  0x10   : > { %s7340_s25 = smov (!%p258_p6, %s257_s25), 1  ;;  %s7342_s27 = smov (!%p249_p8, %s248_s27), 1 }
  0x11   : > { %s4589_s28 = sshll.u32 %s7340_s25, 8  ;;  %s4890_s29 = smul.u32 216, %s7342_s27  ;;  %v5239_v0 = vmov (!%p267_p9), 0.0  }
  0x12   : > { %s5315_s7 = scalar_lea.vmem %s7249_s5, %s4589_s28  ;;  %270 = sbr.rel (%p267_p9) target bundleno = 25 (0x19), region = 44  ;;  %271 = vst [vmem:[#allocation3] sm:$0x1] (!%p267_p9), %v5239_v0  ;;  %272 = vst [vmem:[#allocation4] sm:$0x1] (!%p267_p9), %v5239_v0 }
  0x13   : > { %s5320_s10 = scalar_lea.vmem %s7244_s0, %s4890_s29 }
  0x19 PF: > { %p4211_p10 = scmp.ne.s32.totalorder %s5225_s19, 0 }
  0x1b   : > { %275 = sbr.rel (%p4211_p10) target bundleno = 621 (0x26d), region = 48 }
  0x22   : > { %v5324_v1 = vld [vmem:[%s5320_s10 + $0xc] sm:$0xf]  ;;  %v5327_v2 = vld [vmem:[%s5320_s10 + $0x10] sm:$0xf]  ;;  %v5332_v4 = vld [vmem:[%s5320_s10 + $0x9c] sm:$0xf] }
  0x23   : > { %v4436_v3 = vcombine.low %v5324_v1, %v5327_v2  ;;  %v5335_v5 = vld [vmem:[%s5320_s10 + $0xa0] sm:$0xf]  ;;  %s5240_s11 = smov 64   ;;  %v277_v7 = vld [vmem:[%s5320_s10 + $0x4] sm:$0xf]  ;;  %v949_v56 = vshll.u32 %v5327_v2, 16 }
  0x24   : > { %7262 = vst [vmem:[#allocation6_spill] sm:$0xff] %v5335_v5  ;;  %v276_v6 = vld [vmem:[%s5320_s10] sm:$0xf]  ;;  %v4448_v8 = vcombine.low %v5332_v4, %v5335_v5  ;;  %v5343_v9 = vld [vmem:[%s5320_s10 + $0x8] sm:$0x1]  ;;  %v337_v12 = vshll.u32 %v277_v7, 16 }
  0x25   : > { %2364 = vrot.lane.b32.xlu0 %v4436_v3, %s5240_s11  ;;  %vm324_vm0 = vsmask.f32 3328  ;;  %v328_v10 = vshrl.u32 %v276_v6, 16  ;;  %v331_v11 = vshll.u32 %v276_v6, 16  ;;  %v341_v13 = vshrl.u32 %v277_v7, 16 }
  0x26   : > { %v347_v14 = vshll.u32 %v5343_v9, 16  ;;  %v5348_v15 = vld [vmem:[%s5320_s10 + $0x18] sm:$0xf]  ;;  %v5351_v17 = vld [vmem:[%s5320_s10 + $0x1c] sm:$0xf]  ;;  %v339_v20 = vrot.slane %v337_v12, 5 }
  0x27   : > { %v330_v16 = vrot.slane %v328_v10, 4  ;;  %v300_v18 = vld [vmem:[%s5320_s10 + $0x90] sm:$0xf]  ;;  %vm325_vm1 = vsmask.f32 7440  ;;  %v333_v19 = vrot.slane %v331_v11, 5  ;;  %v4437_v26 = vcombine.low %v5348_v15, %v5351_v17 }
  0x28   : > { %v343_v21 = vrot.slane %v341_v13, 4  ;;  %v349_v22 = vrot.slane %v347_v14, 5  ;;  %v301_v23 = vld [vmem:[%s5320_s10 + $0x94] sm:$0xf]  ;;  %v320_v27 = vld [vmem:[%s5320_s10 + $0x98] sm:$0x1]  ;;  %vm5359_vm2 = vmor %vm324_vm0, %vm325_vm1 }
  0x29   : > { %2388 = vrot.lane.b32.xlu0 %v4448_v8, %s5240_s11  ;;  %v334_v24 = vor.u32 %v333_v19, %v330_v16  ;;  %v616_v28 = vshrl.u32 %v300_v18, 16  ;;  %v619_v30 = vshll.u32 %v300_v18, 16  ;;  %v278_v31 = vld [vmem:[%s5320_s10 + $0xc] sm:$0xf]  ;;  %v625_v35 = vshll.u32 %v301_v23, 16 }
  0x2a   : > { %v344_v25 = vor.u32 %v343_v21, %v339_v20  ;;  %v629_v37 = vshrl.u32 %v301_v23, 16  ;;  %v635_v38 = vshll.u32 %v320_v27, 16  ;;  %v279_v39 = vld [vmem:[%s5320_s10 + $0x10] sm:$0xf]  ;;  %v309_v43 = vld [vmem:[%s5320_s10 + $0x14] sm:$0x1] }
  0x2b   : > { %v335_v32 = vrot.slane %v334_v24, 4  ;;  %v618_v34 = vrot.slane %v616_v28, 4  ;;  %v621_v36 = vrot.slane %v619_v30, 5  ;;  %v627_v42 = vrot.slane %v625_v35, 5  ;;  %v5383_v12 = vld [vmem:[%s5320_s10 + $0xa8] sm:$0xf] }
  0x2c   : > { %v345_v33 = vrot.slane %v344_v25, 4  ;;  %v352_v44 = vshrl.u32 %v278_v31, 16  ;;  %v631_v47 = vrot.slane %v629_v37, 4  ;;  %v637_v48 = vrot.slane %v635_v38, 5  ;;  %v5386_v13 = vld [vmem:[%s5320_s10 + $0xac] sm:$0xf] }
  0x2d   : > { %2366 = vrot.lane.b32.xlu0 %v4437_v26, %s5240_s11  ;;  %v340_v40 = vsel %vm5359_vm2, %v335_v32, %v339_v20  ;;  %v622_v46 = vor.u32 %v621_v36, %v618_v34  ;;  %v355_v50 = vshll.u32 %v278_v31, 16  ;;  %v361_v51 = vshll.u32 %v279_v39, 16  ;;  %7265 = vst [vmem:[#allocation7_spill] sm:$0xff] %v5386_v13  ;;  %v302_v19 = vld [vmem:[%s5320_s10 + $0x9c] sm:$0xf]  ;;  %v4948_v28 = vld [vmem:[%s7245_s1 + $0x40] sm:$0xff]  }
  0x2e   : > { %v350_v41 = vsel %vm5359_vm2, %v345_v33, %v349_v22  ;;  %v354_v49 = vrot.slane %v352_v44, 4  ;;  %v632_v53 = vor.u32 %v631_v47, %v627_v42  ;;  %v365_v54 = vshrl.u32 %v279_v39, 16  ;;  %v5394_v21 = vld [vmem:[%s5320_s10 + $0x24] sm:$0xf]  ;;  %v303_v22 = vld [vmem:[%s5320_s10 + $0xa0] sm:$0xf]  ;;  %4590 = vmatprep.subr.bf16.mxu0 %v4948_v28  ;;  %4874 = vmatprep.subr.bf16.mxu1 %v4948_v28 }
  0x2f   : > { %v4404_v45 = vcombine.low %v340_v40, %v350_v41  ;;  %v623_v52 = vrot.slane %v622_v46, 4  ;;  %v371_v55 = vshll.u32 %v309_v43, 16  ;;  %v953_v57 = vshrl.u32 %v5327_v2, 16  ;;  %v5403_v26 = vld [vmem:[%s5320_s10 + $0x28] sm:$0xf]  ;;  %v4950_v44 = vld [vmem:[%s7245_s1] sm:$0xff]  }
  0x30   : > { %v357_v58 = vrot.slane %v355_v50, 5  ;;  %v363_v59 = vrot.slane %v361_v51, 5  ;;  %v940_v60 = vshrl.u32 %v5324_v1, 16  ;;  %v633_v62 = vrot.slane %v632_v53, 4  ;;  %v321_v27 = vld [vmem:[%s5320_s10 + $0xa4] sm:$0x1]  ;;  %4591 = vmatpush3.bf16.msra.mxu0 %v4950_v44  ;;  %4882 = vmatpush3.bf16.msra.mxu1 %v4950_v44 }
  0x31   : > { %2220 = vrot.lane.b32.xlu1 %v4404_v45, %s5240_s11  ;;  %v628_v61 = vsel %vm5359_vm2, %v623_v52, %v627_v42  ;;  %v367_v63 = vrot.slane %v365_v54, 4  ;;  %v943_v0 = vshll.u32 %v5324_v1, 16  ;;  %v1228_v3 = vshrl.u32 %v5332_v4, 16  ;;  %v280_v34 = vld [vmem:[%s5320_s10 + $0x18] sm:$0xf] }
  0x32   : > { %v358_v6 = vor.u32 %v357_v58, %v354_v49  ;;  %v1231_v7 = vshll.u32 %v5332_v4, 16  ;;  %v638_v8 = vsel %vm5359_vm2, %v633_v62, %v637_v48  ;;  %v373_v11 = vrot.slane %v371_v55, 5  ;;  %v281_v39 = vld [vmem:[%s5320_s10 + $0x1c] sm:$0xf]  ;;  %v310_v47 = vld [vmem:[%s5320_s10 + $0x20] sm:$0x1] }
  0x33   : > { %v368_v10 = vor.u32 %v367_v63, %v363_v59  ;;  %v5388_v14 = vrot.slane %v949_v56, 5  ;;  %v5390_v1 = vrot.slane %v953_v57, 4  ;;  %v4416_v16 = vcombine.low %v628_v61, %v638_v8  ;;  %v4951_v58 = vld [vmem:[%s7245_s1 + $0x48] sm:$0xff]  }
  0x34   : > { %v359_v18 = vrot.slane %v358_v6, 4  ;;  %v942_v4 = vrot.slane %v940_v60, 4  ;;  %v945_v23 = vrot.slane %v943_v0, 5  ;;  %v4449_v25 = vcombine.low %v5383_v12, %v5386_v13  ;;  %4592 = vmatprep.subr.bf16.mxu0 %v4951_v58  ;;  %4875 = vmatprep.subr.bf16.mxu1 %v4951_v58 }
  0x35   : > { %v369_v20 = vrot.slane %v368_v10, 4  ;;  %2244 = vrot.lane.b32.xlu1 %v4416_v16, %s5240_s11  ;;  %v1230_v30 = vrot.slane %v1228_v3, 4  ;;  %v1233_v31 = vrot.slane %v1231_v7, 5  ;;  %v640_v33 = vshrl.u32 %v302_v19, 16 }
  0x36   : > { %v364_v24 = vsel %vm5359_vm2, %v359_v18, %v363_v59  ;;  %v1241_v35 = vshrl.u32 %v5335_v5, 16  ;;  %v643_v37 = vshll.u32 %v302_v19, 16  ;;  %v649_v38 = vshll.u32 %v303_v22, 16 }
  0x37   : > { %v374_v32 = vsel %vm5359_vm2, %v369_v20, %v373_v11  ;;  %v4438_v40 = vcombine.low %v5394_v21, %v5403_v26  ;;  %v642_v41 = vrot.slane %v640_v33, 4  ;;  %v653_v42 = vshrl.u32 %v303_v22, 16 }
  0x38   : > { %v4405_v36 = vcombine.low %v364_v24, %v374_v32  ;;  %v659_v43 = vshll.u32 %v321_v27, 16  ;;  %v645_v45 = vrot.slane %v643_v37, 5  ;;  %v651_v46 = vrot.slane %v649_v38, 5  ;;  %v5440_v24 = vld [vmem:[%s5320_s10 + $0xb4] sm:$0xf] }
  0x39   : > { %2390 = vrot.lane.b32.xlu1 %v4449_v25, %s5240_s11  ;;  %v376_v48 = vshrl.u32 %v280_v34, 16  ;;  %v379_v49 = vshll.u32 %v280_v34, 16  ;;  %v946_v50 = vor.u32 %v945_v23, %v942_v4  ;;  %v1234_v51 = vor.u32 %v1233_v31, %v1230_v30  ;;  %v5443_v25 = vld [vmem:[%s5320_s10 + $0xb8] sm:$0xf]  ;;  %v304_v32 = vld [vmem:[%s5320_s10 + $0xa8] sm:$0xf] }
  0x3a   : > { %2222 = vrot.lane.b32.xlu0 %v4405_v36, %s5240_s11  ;;  %v655_v52 = vrot.slane %v653_v42, 4  ;;  %v385_v53 = vshll.u32 %v281_v39, 16  ;;  %v646_v54 = vor.u32 %v645_v45, %v642_v41  ;;  %v389_v57 = vshrl.u32 %v281_v39, 16  ;;  %7268 = vst [vmem:[#allocation10_spill] sm:$0xff] %v5443_v25  ;;  %v305_v34 = vld [vmem:[%s5320_s10 + $0xac] sm:$0xf] }
  0x3b   : > { %v378_v55 = vrot.slane %v376_v48, 4  ;;  %v381_v56 = vrot.slane %v379_v49, 5  ;;  %v661_v60 = vrot.slane %v659_v43, 5  ;;  %v395_v62 = vshll.u32 %v310_v47, 16  ;;  %v5460_v38 = vld [vmem:[%s5320_s10 + $0x30] sm:$0xf] }
  0x3c   : > { %v656_v59 = vor.u32 %v655_v52, %v651_v46  ;;  %v387_v61 = vrot.slane %v385_v53, 5  ;;  %v647_v0 = vrot.slane %v646_v54, 4  ;;  %v391_v6 = vrot.slane %v389_v57, 4  ;;  %v5463_v39 = vld [vmem:[%s5320_s10 + $0x34] sm:$0xf]  ;;  %v4952_v45 = vld [vmem:[%s7245_s1 + $0x8] sm:$0xff]  }
  0x3d   : > { %v382_v3 = vor.u32 %v381_v56, %v378_v55  ;;  %v5427_v7 = vrot.slane %v946_v50, 4  ;;  %v5429_v8 = vrot.slane %v1241_v35, 4  ;;  %v964_v10 = vshrl.u32 %v5348_v15, 16  ;;  %v322_v35 = vld [vmem:[%s5320_s10 + $0xb0] sm:$0x1]  ;;  %4593 = vmatpush3.bf16.msra.mxu0 %v4952_v45  ;;  %4883 = vmatpush3.bf16.msra.mxu1 %v4952_v45 }
  0x3e   : > { %2368 = vrot.lane.b32.xlu0 %v4438_v40, %s5240_s11  ;;  %v657_v11 = vrot.slane %v656_v59, 4  ;;  %v652_v16 = vsel %vm5359_vm2, %v647_v0, %v651_v46  ;;  %v392_v19 = vor.u32 %v391_v6, %v387_v61  ;;  %v397_v4 = vrot.slane %v395_v62, 5  ;;  %v282_v40 = vld [vmem:[%s5320_s10 + $0x24] sm:$0xf]  ;;  %v283_v50 = vld [vmem:[%s5320_s10 + $0x28] sm:$0xf] }
  0x3f   : > { %7266 = vst [vmem:[#allocation8_spill] sm:$0xff] %v5429_v8  ;;  %v383_v18 = vrot.slane %v382_v3, 4  ;;  %v5434_v20 = vrot.slane %v1234_v51, 4  ;;  %v967_v22 = vshll.u32 %v5348_v15, 16  ;;  %v5449_v33 = vrot.slane %v964_v10, 4  ;;  %v4953_v56 = vld [vmem:[%s7245_s1 + $0x50] sm:$0xff]  }
  0x40   : > { %v662_v23 = vsel %vm5359_vm2, %v657_v11, %v661_v60  ;;  %v393_v31 = vrot.slane %v392_v19, 4  ;;  %v977_v15 = vshrl.u32 %v5351_v17, 16  ;;  %v4450_v37 = vcombine.low %v5440_v24, %v5443_v25  ;;  %v311_v54 = vld [vmem:[%s5320_s10 + $0x2c] sm:$0x1]  ;;  %4594 = vmatprep.subr.bf16.mxu0 %v4953_v56  ;;  %v4954_v6 = vld [vmem:[%s7245_s1 + $0x10] sm:$0xff]   ;;  %4876 = vmatprep.subr.bf16.mxu1 %v4953_v56 }
  0x41   : > { %7267 = vst [vmem:[#allocation9_spill] sm:$0xff] %v5434_v20  ;;  %v4417_v28 = vcombine.low %v652_v16, %v662_v23  ;;  %v388_v30 = vsel %vm5359_vm2, %v383_v18, %v387_v61  ;;  %v5466_v41 = vrot.slane %v967_v22, 5  ;;  %v664_v43 = vshrl.u32 %v304_v32, 16  ;;  %v4955_v18 = vld [vmem:[%s7245_s1 + $0x58] sm:$0xff]   ;;  %4595 = vmatpush3.bf16.msra.mxu0 %v4954_v6  ;;  %4884 = vmatpush3.bf16.msra.mxu1 %v4954_v6  ;;  %v4259_v45 = vld [vmem:[%s5320_s10 + $0xc4] sm:$0xf] }
  0x42   : > { %v398_v36 = vsel %vm5359_vm2, %v393_v31, %v397_v4  ;;  %v667_v44 = vshll.u32 %v304_v32, 16  ;;  %v1252_v46 = vshrl.u32 %v5383_v12, 16  ;;  %v673_v47 = vshll.u32 %v305_v34, 16  ;;  %4596 = vmatprep.subr.bf16.mxu0 %v4955_v18  ;;  %4877 = vmatprep.subr.bf16.mxu1 %v4955_v18  ;;  %v4959_v56 = vld [vmem:[%s7245_s1 + $0x68] sm:$0xff]   ;;  %v284_v6 = vld [vmem:[%s5320_s10 + $0x30] sm:$0xf] }
  0x43   : > { %2246 = vrot.lane.b32.xlu1 %v4417_v28, %s5240_s11  ;;  %v4406_v42 = vcombine.low %v388_v30, %v398_v36  ;;  %v677_v48 = vshrl.u32 %v305_v34, 16  ;;  %v683_v49 = vshll.u32 %v322_v35, 16  ;;  %v4439_v51 = vcombine.low %v5460_v38, %v5463_v39  ;;  %v4956_v34 = vld [vmem:[%s7245_s1 + $0x18] sm:$0xff]   ;;  %v285_v18 = vld [vmem:[%s5320_s10 + $0x34] sm:$0xf] }
  0x44   : > { %v666_v52 = vrot.slane %v664_v43, 4  ;;  %v669_v53 = vrot.slane %v667_v44, 5  ;;  %v400_v55 = vshrl.u32 %v282_v40, 16  ;;  %v1255_v57 = vshll.u32 %v5383_v12, 16  ;;  %v4258_v44 = vld [vmem:[%s5320_s10 + $0xc0] sm:$0xf] }
  0x45   : > { %2224 = vrot.lane.b32.xlu0 %v4406_v42, %s5240_s11  ;;  %v675_v58 = vrot.slane %v673_v47, 5  ;;  %v679_v59 = vrot.slane %v677_v48, 4  ;;  %v403_v60 = vshll.u32 %v282_v40, 16  ;;  %v685_v62 = vrot.slane %v683_v49, 5  ;;  %4597 = vmatpush3.bf16.msra.mxu0 %v4956_v34 }
  0x46   : > { %v670_v61 = vor.u32 %v669_v53, %v666_v52  ;;  %v402_v0 = vrot.slane %v400_v55, 4  ;;  %v409_v3 = vshll.u32 %v283_v50, 16  ;;  %v413_v16 = vshrl.u32 %v283_v50, 16  ;;  %v306_v50 = vld [vmem:[%s5320_s10 + $0xb4] sm:$0xf]  ;;  %4885 = vmatpush3.bf16.msra.mxu1 %v4956_v34 }
  0x47   : > { %2392 = vrot.lane.b32.xlu1 %v4450_v37, %s5240_s11  ;;  %v680_v10 = vor.u32 %v679_v59, %v675_v58  ;;  %v405_v11 = vrot.slane %v403_v60, 5  ;;  %v419_v12 = vshll.u32 %v311_v54, 16  ;;  %v988_v19 = vshrl.u32 %v5394_v21, 16  ;;  %v4957_v37 = vld [vmem:[%s7245_s1 + $0x60] sm:$0xff]   ;;  %v307_v55 = vld [vmem:[%s5320_s10 + $0xb8] sm:$0xf] }
  0x48   : > { %v991_v4 = vshll.u32 %v5394_v21, 16  ;;  %v671_v22 = vrot.slane %v670_v61, 4  ;;  %v411_v23 = vrot.slane %v409_v3, 5  ;;  %v970_v28 = vor.u32 %v5466_v41, %v5449_v33  ;;  %4598 = vmatprep.subr.bf16.mxu0 %v4957_v37  ;;  %v5536_v59 = vld [vmem:[%s5320_s10 + $0x40] sm:$0xf]  ;;  %4878 = vmatprep.subr.bf16.mxu1 %v4957_v37 }
  0x49   : > { %2370 = vrot.lane.b32.xlu0 %v4439_v51, %s5240_s11  ;;  %v681_v30 = vrot.slane %v680_v10, 4  ;;  %v406_v31 = vor.u32 %v405_v11, %v402_v0  ;;  %v415_v32 = vrot.slane %v413_v16, 4  ;;  %v5497_v35 = vrot.slane %v1252_v46, 4  ;;  %v4958_v51 = vld [vmem:[%s7245_s1 + $0x20] sm:$0xff]   ;;  %v323_v60 = vld [vmem:[%s5320_s10 + $0xbc] sm:$0x1] }
  0x4a   : > { %v5499_v36 = vrot.slane %v1255_v57, 5  ;;  %v676_v33 = vsel %vm5359_vm2, %v671_v22, %v675_v58  ;;  %v421_v43 = vrot.slane %v419_v12, 5  ;;  %v5512_v46 = vrot.slane %v977_v15, 4  ;;  %v5533_v58 = vld [vmem:[%s5320_s10 + $0x3c] sm:$0xf]  ;;  %4599 = vmatpush3.bf16.msra.mxu0 %v4958_v51  ;;  %4886 = vmatpush3.bf16.msra.mxu1 %v4958_v51 }
  0x4b   : > { %v686_v40 = vsel %vm5359_vm2, %v681_v30, %v685_v62  ;;  %v407_v41 = vrot.slane %v406_v31, 4  ;;  %v416_v42 = vor.u32 %v415_v32, %v411_v23  ;;  %v5514_v47 = vrot.slane %v988_v19, 4  ;;  %v4960_v19 = vld [vmem:[%s7245_s1 + $0x28] sm:$0xff]   ;;  %v312_v30 = vld [vmem:[%s5320_s10 + $0x38] sm:$0x1]  ;;  %4600 = vmatprep.subr.bf16.mxu0 %v4959_v56  ;;  %v4961_v31 = vld [vmem:[%s7245_s1 + $0x70] sm:$0xff]   ;;  %4879 = vmatprep.subr.bf16.mxu1 %v4959_v56 }
  0x4c   : > { %v5516_v48 = vrot.slane %v991_v4, 5  ;;  %v4418_v49 = vcombine.low %v676_v33, %v686_v40  ;;  %v5522_v52 = vrot.slane %v970_v28, 4  ;;  %v1265_v53 = vshrl.u32 %v5386_v13, 16  ;;  %v4308_v40 = vld [vmem:[%s5320_s10 + $0x18] sm:$0xf] }
  0x4d   : > { %v412_v15 = vsel %vm5359_vm2, %v407_v41, %v411_v23  ;;  %v417_v54 = vrot.slane %v416_v42, 4  ;;  %v4451_v57 = vcombine.low %v4258_v44, %v4259_v45  ;;  %v1258_v61 = vor.u32 %v5499_v36, %v5497_v35  ;;  %v4963_v56 = vld [vmem:[%s7245_s1 + $0x78] sm:$0xff]   ;;  %v5614_v36 = vld [vmem:[%s5320_s10 + $0x14] sm:$0x1] }
  0x4e   : > { %2248 = vrot.lane.b32.xlu1 %v4418_v49, %s5240_s11  ;;  %v1001_v62 = vshrl.u32 %v5403_v26, 16  ;;  %v688_v3 = vshrl.u32 %v306_v50, 16  ;;  %v994_v10 = vor.u32 %v5516_v48, %v5514_v47  ;;  %v691_v16 = vshll.u32 %v306_v50, 16  ;;  %4601 = vmatpush3.bf16.msra.mxu0 %v4960_v19 }
  0x4f   : > { %v422_v0 = vsel %vm5359_vm2, %v417_v54, %v421_v43  ;;  %v697_v12 = vshll.u32 %v307_v55, 16  ;;  %v4440_v4 = vcombine.low %v5533_v58, %v5536_v59  ;;  %v701_v23 = vshrl.u32 %v307_v55, 16  ;;  %v4962_v54 = vld [vmem:[%s7245_s1 + $0x30] sm:$0xff]   ;;  %4887 = vmatpush3.bf16.msra.mxu1 %v4960_v19  ;;  %4602 = vmatprep.subr.bf16.mxu0 %v4961_v31 }
  0x50   : > { %v4407_v11 = vcombine.low %v412_v15, %v422_v0  ;;  %v690_v22 = vrot.slane %v688_v3, 4  ;;  %v707_v28 = vshll.u32 %v323_v60, 16  ;;  %v693_v32 = vrot.slane %v691_v16, 5  ;;  %v4309_v15 = vld [vmem:[%s5320_s10 + $0x1c] sm:$0xf]  ;;  %4880 = vmatprep.subr.bf16.mxu1 %v4961_v31 }
  0x51   : > { %v699_v34 = vrot.slane %v697_v12, 5  ;;  %v424_v33 = vshrl.u32 %v284_v6, 16  ;;  %v427_v37 = vshll.u32 %v284_v6, 16  ;;  %v1276_v41 = vshrl.u32 %v5440_v24, 16  ;;  %v5570_v16 = vld [vmem:[%s5320_s10 + $0x20] sm:$0x1] }
  0x52   : > { %2226 = vrot.lane.b32.xlu0 %v4407_v11, %s5240_s11  ;;  %2394 = vrot.lane.b32.xlu1 %v4451_v57, %s5240_s11  ;;  %v703_v42 = vrot.slane %v701_v23, 4  ;;  %v709_v43 = vrot.slane %v707_v28, 5  ;;  %v433_v44 = vshll.u32 %v285_v18, 16  ;;  %vm775_vm3 = vcmask 1042432   ;;  %7269 = vst [vmem:[#allocation11_spill] sm:$0xff] %v5570_v16 }
  0x53   : > { %vm776_vm4 = vcmask 1046532   ;;  %v694_v45 = vor.u32 %v693_v32, %v690_v22  ;;  %v426_v49 = vrot.slane %v424_v33, 4  ;;  %v429_v50 = vrot.slane %v427_v37, 5  ;;  %4603 = vmatpush3.bf16.msra.mxu0 %v4962_v54  ;;  %4888 = vmatpush3.bf16.msra.mxu1 %v4962_v54 }
  0x54   : > { %v437_v51 = vshrl.u32 %v285_v18, 16  ;;  %v704_v55 = vor.u32 %v703_v42, %v699_v34  ;;  %v435_v57 = vrot.slane %v433_v44, 5  ;;  %v443_v60 = vshll.u32 %v312_v30, 16  ;;  %4604 = vmatprep.subr.bf16.mxu0 %v4963_v56  ;;  %4881 = vmatprep.subr.bf16.mxu1 %v4963_v56  ;;  %vm5631_vm5 = vmor %vm775_vm3, %vm776_vm4 }
  0x55   : > { %v1549_v0 = vshrl.u32 %v4308_v40, 16  ;;  %v695_v3 = vrot.slane %v694_v45, 4  ;;  %v430_v6 = vor.u32 %v429_v50, %v426_v49  ;;  %v1552_v12 = vshll.u32 %v4308_v40, 16  ;;  %v4967_v50 = vld [vmem:[%s7245_s1 + $0x100] sm:$0xff]  }
  0x56   : > { %2372 = vrot.lane.b32.xlu0 %v4440_v4, %s5240_s11  ;;  %v439_v11 = vrot.slane %v437_v51, 4  ;;  %v705_v18 = vrot.slane %v704_v55, 4  ;;  %v445_v22 = vrot.slane %v443_v60, 5  ;;  %v1558_v28 = vshll.u32 %v4309_v15, 16  ;;  %v4964_v4 = vld [vmem:[%s7245_s1 + $0x38] sm:$0xff]  }
  0x57   : > { %v1551_v23 = vrot.slane %v1549_v0, 4  ;;  %v700_v19 = vsel %vm5359_vm2, %v695_v3, %v699_v34  ;;  %v431_v30 = vrot.slane %v430_v6, 4  ;;  %v1554_v33 = vrot.slane %v1552_v12, 5  ;;  %v5606_v3 = vld [vmem:[%s5320_s10 + $0x4c] sm:$0xf]  ;;  %4605 = vmatpush3.bf16.msra.mxu0 %v4964_v4  ;;  %4889 = vmatpush3.bf16.msra.mxu1 %v4964_v4 }
  0x58   : > { %v440_v32 = vor.u32 %v439_v11, %v435_v57  ;;  %v710_v37 = vsel %vm5359_vm2, %v705_v18, %v709_v43  ;;  %v1560_v40 = vrot.slane %v1558_v28, 5  ;;  %v1562_v31 = vshrl.u32 %v4309_v15, 16  ;;  %v4966_v43 = vld [vmem:[%s7245_s1 + $0xc0] sm:$0xff]   ;;  %4834 = vmatprep.subr.bf16.mxu0 %v4967_v50  ;;  %v4342_v51 = vld [vmem:[%s5320_s10 + $0x38] sm:$0x1] }
  0x59   : > { %v1568_v42 = vshll.u32 %v5570_v16, 16  ;;  %v4419_v44 = vcombine.low %v700_v19, %v710_v37  ;;  %v436_v34 = vsel %vm5359_vm2, %v431_v30, %v435_v57  ;;  %v1555_v49 = vor.u32 %v1554_v33, %v1551_v23  ;;  %v5595_v57 = vld [vmem:[%s5320_s10 + $0x48] sm:$0xf]  ;;  %v287_v19 = vld [vmem:[%s5320_s10 + $0x40] sm:$0xf]  ;;  %4702 = vmatprep.subr.bf16.mxu1 %v4966_v43 }
  0x5a   : > { %v441_v45 = vrot.slane %v440_v32, 4  ;;  %v5591_v15 = vrot.slane %v1265_v53, 4  ;;  %v1564_v55 = vrot.slane %v1562_v31, 4  ;;  %v5600_v60 = vrot.slane %v1258_v61, 4  ;;  %v4276_v53 = vld [vmem:[%s5320_s10 + $0xc] sm:$0xe] }
  0x5b   : > { %2250 = vrot.lane.b32.xlu1 %v4419_v44, %s5240_s11  ;;  %v1556_v56 = vrot.slane %v1555_v49, 4  ;;  %v5611_v6 = vrot.slane %v1001_v62, 4  ;;  %v1570_v35 = vrot.slane %v1568_v42, 5  ;;  %v286_v61 = vld [vmem:[%s5320_s10 + $0x3c] sm:$0xf]  ;;  %v5620_v18 = vrot.slane %v994_v10, 4 }
  0x5c   : > { %7270 = vst [vmem:[#allocation12_spill] sm:$0xff] %v5591_v15  ;;  %7271 = vst [vmem:[#allocation13_spill] sm:$0xff] %v5600_v60  ;;  %v446_v0 = vsel %vm5359_vm2, %v441_v45, %v445_v22  ;;  %v1565_v12 = vor.u32 %v1564_v55, %v1560_v40  ;;  %v5624_v22 = vrot.slane %v1276_v41, 4  ;;  %v1279_v62 = vshll.u32 %v5440_v24, 16  ;;  %v313_v32 = vld [vmem:[%s5320_s10 + $0x44] sm:$0x1] }
  0x5d   : > { %v4408_v11 = vcombine.low %v436_v34, %v446_v0  ;;  %v1561_v23 = vsel %vm5359_vm2, %v1556_v56, %v1560_v40  ;;  %v4441_v48 = vcombine.low %v5595_v57, %v5606_v3  ;;  %v4292_v10 = vrot.slane %v4276_v53, 9  ;;  %v4310_v44 = vld [vmem:[%s5320_s10 + $0x24] sm:$0xf]  ;;  %v5650_v43 = vld [vmem:[%s5320_s10 + $0x28] sm:$0xf] }
  0x5e   : > { %7272 = vst [vmem:[#allocation14_spill] sm:$0xff] %v5624_v22  ;;  %v1566_v47 = vrot.slane %v1565_v12, 4  ;;  %v1389_v24 = vrot.slane %v5327_v2, 5  ;;  %v1012_v41 = vshrl.u32 %v5460_v38, 16  ;;  %v1392_v30 = vrot.slane %v5614_v36, 5  ;;  %7275 = vst [vmem:[#allocation15_spill] sm:$0xff] %v5650_v43 }
  0x5f   : > { %2228 = vrot.lane.b32.xlu0 %v4408_v11, %s5240_s11  ;;  %v448_v33 = vshrl.u32 %v286_v61, 16  ;;  %v451_v4 = vshll.u32 %v286_v61, 16  ;;  %v457_v42 = vshll.u32 %v287_v19, 16  ;;  %v1015_v34 = vshll.u32 %v5460_v38, 16  ;;  %v4341_v53 = vld [vmem:[%s5320_s10 + $0x2c] sm:$0x1] }
  0x60   : > { %v1571_v37 = vsel %vm5359_vm2, %v1566_v47, %v1570_v35  ;;  %v1390_v40 = vsel %vm5631_vm5, %v4292_v10, %v1389_v24  ;;  %v1391_v31 = vrot.slane %v1389_v24, 4  ;;  %v461_v0 = vshrl.u32 %v287_v19, 16  ;;  %v4344_v15 = vld [vmem:[%s5320_s10 + $0x50] sm:$0x1]  ;;  %v4283_v16 = vld [vmem:[%s5320_s10 + $0x60] sm:$0xe] }
  0x61   : > { %v4500_v2 = vcombine.low %v1561_v23, %v1571_v37  ;;  %v450_v45 = vrot.slane %v448_v33, 4  ;;  %v453_v49 = vrot.slane %v451_v4, 5  ;;  %v459_v55 = vrot.slane %v457_v42, 5  ;;  %v4328_v22 = vld [vmem:[%s5320_s10 + $0x90] sm:$0xf] }
  0x62   : > { %v1393_v50 = vsel %vm5631_vm5, %v1391_v31, %v1392_v30  ;;  %v467_v56 = vshll.u32 %v313_v32, 16  ;;  %v1573_v35 = vshrl.u32 %v4310_v44, 16  ;;  %v1576_v38 = vshll.u32 %v4310_v44, 16 }
  0x63   : > { %2374 = vrot.lane.b32.xlu0 %v4441_v48, %s5240_s11  ;;  %2636 = vrot.lane.b32.xlu1 %v4500_v2, %s5240_s11  ;;  %v4468_v11 = vcombine.low %v1390_v40, %v1393_v50  ;;  %v454_v12 = vor.u32 %v453_v49, %v450_v45  ;;  %v463_v23 = vrot.slane %v461_v0, 4  ;;  %v1582_v47 = vshll.u32 %v5650_v43, 16 }
  0x64   : > { %v1586_v48 = vshrl.u32 %v5650_v43, 16  ;;  %v1575_v24 = vrot.slane %v1573_v35, 4  ;;  %v1578_v30 = vrot.slane %v1576_v38, 5  ;;  %v1592_v33 = vshll.u32 %v4341_v53, 16  ;;  %v5678_v35 = vld [vmem:[%s5320_s10 + $0x58] sm:$0xf] }
  0x65   : > { %v455_v10 = vrot.slane %v454_v12, 4  ;;  %v464_v19 = vor.u32 %v463_v23, %v459_v55  ;;  %v469_v32 = vrot.slane %v467_v56, 5  ;;  %v1584_v4 = vrot.slane %v1582_v47, 5  ;;  %v5671_v56 = vld [vmem:[%s5320_s10 + $0x54] sm:$0xf]  ;;  %7277 = vst [vmem:[#allocation17_spill] sm:$0xff] %v5678_v35 }
  0x66   : > { %v1588_v37 = vrot.slane %v1586_v48, 4  ;;  %v5660_v40 = vrot.slane %v1012_v41, 4  ;;  %v5662_v31 = vrot.slane %v1015_v34, 5  ;;  %v1025_v42 = vshrl.u32 %v5463_v39, 16  ;;  %v4277_v34 = vld [vmem:[%s5320_s10 + $0x18] sm:$0xe] }
  0x67   : > { %2492 = vrot.lane.b32.xlu1 %v4468_v11, %s5240_s11  ;;  %v1579_v44 = vor.u32 %v1578_v30, %v1575_v24  ;;  %v460_v2 = vsel %vm5359_vm2, %v455_v10, %v459_v55  ;;  %v465_v45 = vrot.slane %v464_v19, 4  ;;  %v1594_v50 = vrot.slane %v1592_v33, 5  ;;  %v5681_v55 = vld [vmem:[%s5320_s10 + $0x20] sm:$0x1]  ;;  %v288_v48 = vld [vmem:[%s5320_s10 + $0x48] sm:$0xf] }
  0x68   : > { %v1589_v49 = vor.u32 %v1588_v37, %v1584_v4  ;;  %v5668_v0 = vrot.slane %v1279_v62, 5  ;;  %v5684_v23 = vrot.slane %v1025_v42, 4  ;;  %v289_v10 = vld [vmem:[%s5320_s10 + $0x4c] sm:$0xf]  ;;  %v1018_v24 = vor.u32 %v5662_v31, %v5660_v40  ;;  %v4343_v38 = vld [vmem:[%s5320_s10 + $0x44] sm:$0x1] }
  0x69   : > { %v1580_v41 = vrot.slane %v1579_v44, 4  ;;  %v470_v11 = vsel %vm5359_vm2, %v465_v45, %v469_v32  ;;  %v1036_v30 = vshrl.u32 %v5533_v58, 16  ;;  %v4293_v19 = vrot.slane %v4277_v34, 9  ;;  %v314_v32 = vld [vmem:[%s5320_s10 + $0x50] sm:$0x1] }
  0x6a   : > { %7276 = vst [vmem:[#allocation16_spill] sm:$0xff] %v5668_v0  ;;  %v1590_v12 = vrot.slane %v1589_v49, 4  ;;  %v4409_v62 = vcombine.low %v460_v2, %v470_v11  ;;  %v1396_v42 = vrot.slane %v5351_v17, 5  ;;  %v1399_v44 = vrot.slane %v5681_v55, 5  ;;  %v4312_v49 = vld [vmem:[%s5320_s10 + $0x30] sm:$0xf] }
  0x6b   : > { %v1585_v47 = vsel %vm5359_vm2, %v1580_v41, %v1584_v4  ;;  %v4442_v4 = vcombine.low %v5671_v56, %v5678_v35  ;;  %v472_v40 = vshrl.u32 %v288_v48, 16  ;;  %v475_v31 = vshll.u32 %v288_v48, 16 }
  0x6c   : > { %v1595_v33 = vsel %vm5359_vm2, %v1590_v12, %v1594_v50  ;;  %2230 = vrot.lane.b32.xlu0 %v4409_v62, %s5240_s11  ;;  %v481_v2 = vshll.u32 %v289_v10, 16  ;;  %v485_v45 = vshrl.u32 %v289_v10, 16  ;;  %v1039_v50 = vshll.u32 %v5533_v58, 16  ;;  %v4313_v12 = vld [vmem:[%s5320_s10 + $0x34] sm:$0xf] }
  0x6d   : > { %v4501_v37 = vcombine.low %v1585_v47, %v1595_v33  ;;  %v1397_v41 = vsel %vm5631_vm5, %v4293_v19, %v1396_v42  ;;  %v1398_v34 = vrot.slane %v1396_v42, 4  ;;  %v491_v11 = vshll.u32 %v314_v32, 16 }
  0x6e   : > { %v474_v62 = vrot.slane %v472_v40, 4  ;;  %v477_v47 = vrot.slane %v475_v31, 5  ;;  %v483_v33 = vrot.slane %v481_v2, 5  ;;  %v487_v61 = vrot.slane %v485_v45, 4 }
  0x6f   : > { %2638 = vrot.lane.b32.xlu1 %v4501_v37, %s5240_s11  ;;  %v1400_v48 = vsel %vm5631_vm5, %v1398_v34, %v1399_v44  ;;  %v493_v10 = vrot.slane %v491_v11, 5  ;;  %v1597_v58 = vshrl.u32 %v4312_v49, 16  ;;  %v1600_v63 = vshll.u32 %v4312_v49, 16 }
  0x70   : > { %2376 = vrot.lane.b32.xlu0 %v4442_v4, %s5240_s11  ;;  %v4469_v37 = vcombine.low %v1397_v41, %v1400_v48  ;;  %v478_v53 = vor.u32 %v477_v47, %v474_v62  ;;  %v488_v19 = vor.u32 %v487_v61, %v483_v33  ;;  %v1606_v32 = vshll.u32 %v4313_v12, 16  ;;  %v5716_v61 = vld [vmem:[%s5320_s10 + $0x60] sm:$0xf]  ;;  %v4278_v47 = vld [vmem:[%s5320_s10 + $0x24] sm:$0xe] }
  0x71   : > { %v1599_v42 = vrot.slane %v1597_v58, 4  ;;  %v1602_v40 = vrot.slane %v1600_v63, 5  ;;  %v1610_v31 = vshrl.u32 %v4313_v12, 16  ;;  %v1616_v2 = vshll.u32 %v4342_v51, 16  ;;  %v5719_v63 = vld [vmem:[%s5320_s10 + $0x64] sm:$0xf] }
  0x72   : > { %v1049_v45 = vshrl.u32 %v5536_v59, 16  ;;  %v479_v4 = vrot.slane %v478_v53, 4  ;;  %v489_v44 = vrot.slane %v488_v19, 4  ;;  %v1608_v34 = vrot.slane %v1606_v32, 5  ;;  %v5728_v19 = vld [vmem:[%s5320_s10 + $0x2c] sm:$0x1] }
  0x73   : > { %2494 = vrot.lane.b32.xlu1 %v4469_v37, %s5240_s11  ;;  %v5713_v49 = vrot.slane %v1018_v24, 4  ;;  %v1603_v41 = vor.u32 %v1602_v40, %v1599_v42  ;;  %v1612_v11 = vrot.slane %v1610_v31, 4  ;;  %v1038_v12 = vrot.slane %v1036_v30, 4  ;;  %v290_v32 = vld [vmem:[%s5320_s10 + $0x54] sm:$0xf] }
  0x74   : > { %v484_v62 = vsel %vm5359_vm2, %v479_v4, %v483_v33  ;;  %v494_v53 = vsel %vm5359_vm2, %v489_v44, %v493_v10  ;;  %v1618_v37 = vrot.slane %v1616_v2, 5  ;;  %v1041_v42 = vrot.slane %v1039_v50, 5  ;;  %v291_v33 = vld [vmem:[%s5320_s10 + $0x58] sm:$0xf]  ;;  %v315_v44 = vld [vmem:[%s5320_s10 + $0x5c] sm:$0x1] }
  0x75   : > { %v4410_v48 = vcombine.low %v484_v62, %v494_v53  ;;  %v1604_v24 = vrot.slane %v1603_v41, 4  ;;  %v1613_v58 = vor.u32 %v1612_v11, %v1608_v34  ;;  %v5731_v30 = vrot.slane %v1049_v45, 4 }
  0x76   : > { %v4443_v40 = vcombine.low %v5716_v61, %v5719_v63  ;;  %v4294_v2 = vrot.slane %v4278_v47, 9  ;;  %v1403_v4 = vrot.slane %v5403_v26, 5  ;;  %v1406_v50 = vrot.slane %v5728_v19, 5  ;;  %v4315_v47 = vld [vmem:[%s5320_s10 + $0x40] sm:$0xf] }
  0x77   : > { %2232 = vrot.lane.b32.xlu0 %v4410_v48, %s5240_s11  ;;  %v1609_v10 = vsel %vm5359_vm2, %v1604_v24, %v1608_v34  ;;  %v1614_v31 = vrot.slane %v1613_v58, 4  ;;  %v496_v45 = vshrl.u32 %v290_v32, 16  ;;  %v499_v53 = vshll.u32 %v290_v32, 16  ;;  %v4314_v48 = vld [vmem:[%s5320_s10 + $0x3c] sm:$0xf] }
  0x78   : > { %v1404_v11 = vsel %vm5631_vm5, %v4294_v2, %v1403_v4  ;;  %v1405_v62 = vrot.slane %v1403_v4, 4  ;;  %v1042_v34 = vor.u32 %v1041_v42, %v1038_v12  ;;  %v505_v51 = vshll.u32 %v291_v33, 16 }
  0x79   : > { %v1619_v41 = vsel %vm5359_vm2, %v1614_v31, %v1618_v37  ;;  %v498_v58 = vrot.slane %v496_v45, 4  ;;  %v501_v21 = vrot.slane %v499_v53, 5  ;;  %v509_v27 = vshrl.u32 %v291_v33, 16 }
  0x7a   : > { %v4502_v24 = vcombine.low %v1609_v10, %v1619_v41  ;;  %v1407_v54 = vsel %vm5631_vm5, %v1405_v62, %v1406_v50  ;;  %v515_v37 = vshll.u32 %v315_v44, 16  ;;  %v507_v2 = vrot.slane %v505_v51, 5 }
  0x7b   : > { %2378 = vrot.lane.b32.xlu0 %v4443_v40, %s5240_s11  ;;  %v4470_v31 = vcombine.low %v1404_v11, %v1407_v54  ;;  %v1621_v32 = vshrl.u32 %v4314_v48, 16  ;;  %v1624_v4 = vshll.u32 %v4314_v48, 16  ;;  %v1060_v12 = vshrl.u32 %v5595_v57, 16  ;;  %v5761_v48 = vld [vmem:[%s5320_s10 + $0x70] sm:$0xf] }
  0x7c   : > { %2640 = vrot.lane.b32.xlu1 %v4502_v24, %s5240_s11  ;;  %v502_v42 = vor.u32 %v501_v21, %v498_v58  ;;  %v511_v10 = vrot.slane %v509_v27, 4  ;;  %v1630_v45 = vshll.u32 %v4315_v47, 16  ;;  %v1634_v50 = vshrl.u32 %v4315_v47, 16  ;;  %v5758_v27 = vld [vmem:[%s5320_s10 + $0x6c] sm:$0xf]  ;;  %7278 = vst [vmem:[#allocation18_spill] sm:$0xff] %v5761_v48 }
  0x7d   : > { %v1623_v40 = vrot.slane %v1621_v32, 4  ;;  %v1626_v41 = vrot.slane %v1624_v4, 5  ;;  %v1640_v33 = vshll.u32 %v4343_v38, 16  ;;  %v517_v53 = vrot.slane %v515_v37, 5  ;;  %v4263_v47 = vld [vmem:[%s5320_s10 + $0x38] sm:$0x1] }
  0x7e   : > { %v503_v44 = vrot.slane %v502_v42, 4  ;;  %v512_v62 = vor.u32 %v511_v10, %v507_v2  ;;  %v1632_v54 = vrot.slane %v1630_v45, 5  ;;  %v5754_v51 = vrot.slane %v1042_v34, 4  ;;  %v4279_v34 = vld [vmem:[%s5320_s10 + $0x30] sm:$0xe] }
  0x7f   : > { %v1627_v11 = vor.u32 %v1626_v41, %v1623_v40  ;;  %v1636_v21 = vrot.slane %v1634_v50, 4  ;;  %v1063_v37 = vshll.u32 %v5595_v57, 16  ;;  %v1642_v4 = vrot.slane %v1640_v33, 5  ;;  %v292_v42 = vld [vmem:[%s5320_s10 + $0x60] sm:$0xf] }
  0x80   : > { %2496 = vrot.lane.b32.xlu1 %v4470_v31, %s5240_s11  ;;  %v508_v38 = vsel %vm5359_vm2, %v503_v44, %v507_v2  ;;  %v513_v58 = vrot.slane %v512_v62, 4  ;;  %v5770_v10 = vrot.slane %v1060_v12, 4  ;;  %v293_v2 = vld [vmem:[%s5320_s10 + $0x64] sm:$0xf]  ;;  %v1073_v41 = vshrl.u32 %v5606_v3, 16 }
  0x81   : > { %v1628_v31 = vrot.slane %v1627_v11, 4  ;;  %v1637_v32 = vor.u32 %v1636_v21, %v1632_v54  ;;  %v316_v62 = vld [vmem:[%s5320_s10 + $0x68] sm:$0x1]  ;;  %v4444_v12 = vcombine.low %v5758_v27, %v5761_v48  ;;  %v4295_v11 = vrot.slane %v4279_v34, 9  ;;  %v4317_v45 = vld [vmem:[%s5320_s10 + $0x4c] sm:$0xf] }
  0x82   : > { %v518_v40 = vsel %vm5359_vm2, %v513_v58, %v517_v53  ;;  %v4316_v33 = vld [vmem:[%s5320_s10 + $0x48] sm:$0xf]  ;;  %v1410_v21 = vrot.slane %v5463_v39, 5  ;;  %v1413_v24 = vrot.slane %v4263_v47, 5  ;;  %v523_v58 = vshll.u32 %v292_v42, 16 }
  0x83   : > { %v4411_v50 = vcombine.low %v508_v38, %v518_v40  ;;  %v1633_v44 = vsel %vm5359_vm2, %v1628_v31, %v1632_v54  ;;  %v1638_v57 = vrot.slane %v1637_v32, 4  ;;  %v520_v38 = vshrl.u32 %v292_v42, 16 }
  0x84   : > { %v529_v54 = vshll.u32 %v293_v2, 16  ;;  %v1065_v31 = vrot.slane %v1063_v37, 5  ;;  %v1411_v40 = vsel %vm5631_vm5, %v4295_v11, %v1410_v21  ;;  %v1412_v60 = vrot.slane %v1410_v21, 4 }
  0x85   : > { %2234 = vrot.lane.b32.xlu0 %v4411_v50, %s5240_s11  ;;  %v1643_v53 = vsel %vm5359_vm2, %v1638_v57, %v1642_v4  ;;  %v522_v34 = vrot.slane %v520_v38, 4  ;;  %v525_v13 = vrot.slane %v523_v58, 5  ;;  %v533_v47 = vshrl.u32 %v293_v2, 16 }
  0x86   : > { %v4503_v32 = vcombine.low %v1633_v44, %v1643_v53  ;;  %v531_v20 = vrot.slane %v529_v54, 5  ;;  %v1414_v50 = vsel %vm5631_vm5, %v1412_v60, %v1413_v24  ;;  %v539_v4 = vshll.u32 %v316_v62, 16 }
  0x87   : > { %v1645_v57 = vshrl.u32 %v4316_v33, 16  ;;  %v1648_v42 = vshll.u32 %v4316_v33, 16  ;;  %v4471_v37 = vcombine.low %v1411_v40, %v1414_v50  ;;  %v526_v44 = vor.u32 %v525_v13, %v522_v34  ;;  %v4264_v50 = vld [vmem:[%s5320_s10 + $0x44] sm:$0x1] }
  0x88   : > { %2642 = vrot.lane.b32.xlu1 %v4503_v32, %s5240_s11  ;;  %v535_v11 = vrot.slane %v533_v47, 4  ;;  %v1654_v21 = vshll.u32 %v4317_v45, 16  ;;  %v541_v53 = vrot.slane %v539_v4, 5  ;;  %v1658_v2 = vshrl.u32 %v4317_v45, 16  ;;  %v4280_v4 = vld [vmem:[%s5320_s10 + $0x3c] sm:$0xe] }
  0x89   : > { %2380 = vrot.lane.b32.xlu0 %v4444_v12, %s5240_s11  ;;  %v1647_v38 = vrot.slane %v1645_v57, 4  ;;  %v1650_v58 = vrot.slane %v1648_v42, 5  ;;  %v527_v54 = vrot.slane %v526_v44, 4  ;;  %v1664_v60 = vshll.u32 %v4344_v15, 16  ;;  %v4246_v12 = vld [vmem:[%s5320_s10 + $0x78] sm:$0xf] }
  0x8a   : > { %v536_v32 = vor.u32 %v535_v11, %v531_v20  ;;  %v1656_v8 = vrot.slane %v1654_v21, 5  ;;  %v1066_v24 = vor.u32 %v1065_v31, %v5770_v10  ;;  %v1660_v33 = vrot.slane %v1658_v2, 4  ;;  %v5804_v15 = vld [vmem:[%s5320_s10 + $0x7c] sm:$0xf]  ;;  %v294_v42 = vld [vmem:[%s5320_s10 + $0x6c] sm:$0xf] }
  0x8b   : > { %v1651_v13 = vor.u32 %v1650_v58, %v1647_v38  ;;  %v5799_v40 = vrot.slane %v1073_v41, 4  ;;  %v532_v45 = vsel %vm5359_vm2, %v527_v54, %v531_v20  ;;  %v1666_v47 = vrot.slane %v1664_v60, 5  ;;  %v317_v21 = vld [vmem:[%s5320_s10 + $0x74] sm:$0x1] }
  0x8c   : > { %2498 = vrot.lane.b32.xlu1 %v4471_v37, %s5240_s11  ;;  %v537_v34 = vrot.slane %v536_v32, 4  ;;  %v1661_v31 = vor.u32 %v1660_v33, %v1656_v8  ;;  %v295_v37 = vld [vmem:[%s5320_s10 + $0x70] sm:$0xf]  ;;  %v5812_v41 = vrot.slane %v1066_v24, 4  ;;  %v4318_v38 = vld [vmem:[%s5320_s10 + $0x54] sm:$0xf]  ;;  %v4445_v2 = vcombine.low %v4246_v12, %v5804_v15 }
  0x8d   : > { %7279 = vst [vmem:[#allocation19_spill] sm:$0xff] %v5799_v40  ;;  %v1652_v10 = vrot.slane %v1651_v13, 4  ;;  %v4296_v54 = vrot.slane %v4280_v4, 9  ;;  %v1417_v32 = vrot.slane %v5536_v59, 5  ;;  %v1420_v60 = vrot.slane %v4264_v50, 5 }
  0x8e   : > { %v542_v57 = vsel %vm5359_vm2, %v537_v34, %v541_v53  ;;  %7280 = vst [vmem:[#allocation20_spill] sm:$0xff] %v5812_v41  ;;  %v1662_v11 = vrot.slane %v1661_v31, 4  ;;  %v544_v24 = vshrl.u32 %v294_v42, 16  ;;  %v1084_v13 = vshrl.u32 %v5671_v56, 16 }
  0x8f   : > { %v4412_v44 = vcombine.low %v532_v45, %v542_v57  ;;  %v1657_v20 = vsel %vm5359_vm2, %v1652_v10, %v1656_v8  ;;  %v547_v8 = vshll.u32 %v294_v42, 16  ;;  %v1418_v45 = vsel %vm5631_vm5, %v4296_v54, %v1417_v32  ;;  %v4319_v57 = vld [vmem:[%s5320_s10 + $0x58] sm:$0xf] }
  0x90   : > { %v1667_v53 = vsel %vm5359_vm2, %v1662_v11, %v1666_v47  ;;  %v1419_v12 = vrot.slane %v1417_v32, 4  ;;  %v546_v34 = vrot.slane %v544_v24, 4  ;;  %v553_v31 = vshll.u32 %v295_v37, 16 }
  0x91   : > { %2236 = vrot.lane.b32.xlu0 %v4412_v44, %s5240_s11  ;;  %v4504_v33 = vcombine.low %v1657_v20, %v1667_v53  ;;  %v549_v10 = vrot.slane %v547_v8, 5  ;;  %v557_v4 = vshrl.u32 %v295_v37, 16  ;;  %v563_v50 = vshll.u32 %v317_v21, 16  ;;  %v4345_v44 = vld [vmem:[%s5320_s10 + $0x5c] sm:$0x1] }
  0x92   : > { %v1421_v47 = vsel %vm5631_vm5, %v1419_v12, %v1420_v60  ;;  %v1669_v42 = vshrl.u32 %v4318_v38, 16  ;;  %v1672_v11 = vshll.u32 %v4318_v38, 16  ;;  %v555_v54 = vrot.slane %v553_v31, 5 }
  0x93   : > { %2644 = vrot.lane.b32.xlu1 %v4504_v33, %s5240_s11  ;;  %v4472_v20 = vcombine.low %v1418_v45, %v1421_v47  ;;  %v550_v53 = vor.u32 %v549_v10, %v546_v34  ;;  %v559_v32 = vrot.slane %v557_v4, 4  ;;  %v565_v24 = vrot.slane %v563_v50, 5  ;;  %v4248_v47 = vld [vmem:[%s5320_s10 + $0x84] sm:$0xf]  ;;  %v5840_v50 = vld [vmem:[%s5320_s10 + $0x88] sm:$0xf] }
  0x94   : > { %v1671_v8 = vrot.slane %v1669_v42, 4  ;;  %v1674_v37 = vrot.slane %v1672_v11, 5  ;;  %v1678_v33 = vshll.u32 %v4319_v57, 16  ;;  %v1682_v21 = vshrl.u32 %v4319_v57, 16  ;;  %v4265_v57 = vld [vmem:[%s5320_s10 + $0x50] sm:$0x1] }
  0x95   : > { %2382 = vrot.lane.b32.xlu0 %v4445_v2, %s5240_s11  ;;  %v551_v58 = vrot.slane %v550_v53, 4  ;;  %v560_v60 = vor.u32 %v559_v32, %v555_v54  ;;  %v1688_v12 = vshll.u32 %v4345_v44, 16  ;;  %v1087_v38 = vshll.u32 %v5671_v56, 16  ;;  %v4281_v42 = vld [vmem:[%s5320_s10 + $0x48] sm:$0xe] }
  0x96   : > { %v1097_v2 = vshrl.u32 %v5678_v35, 16  ;;  %v1675_v45 = vor.u32 %v1674_v37, %v1671_v8  ;;  %v1680_v34 = vrot.slane %v1678_v33, 5  ;;  %v1684_v4 = vrot.slane %v1682_v21, 4  ;;  %v296_v11 = vld [vmem:[%s5320_s10 + $0x78] sm:$0xf] }
  0x97   : > { %2500 = vrot.lane.b32.xlu1 %v4472_v20, %s5240_s11  ;;  %v556_v10 = vsel %vm5359_vm2, %v551_v58, %v555_v54  ;;  %v561_v31 = vrot.slane %v560_v60, 4  ;;  %v1086_v53 = vrot.slane %v1084_v13, 4  ;;  %v1690_v8 = vrot.slane %v1688_v12, 5  ;;  %v297_v33 = vld [vmem:[%s5320_s10 + $0x7c] sm:$0xf] }
  0x98   : > { %v1676_v56 = vrot.slane %v1675_v45, 4  ;;  %v1685_v32 = vor.u32 %v1684_v4, %v1680_v34  ;;  %v1089_v58 = vrot.slane %v1087_v38, 5  ;;  %v5848_v54 = vrot.slane %v1097_v2, 4  ;;  %v318_v12 = vld [vmem:[%s5320_s10 + $0x80] sm:$0x1] }
  0x99   : > { %v566_v20 = vsel %vm5359_vm2, %v561_v31, %v565_v24  ;;  %v4297_v44 = vrot.slane %v4281_v42, 9  ;;  %v1424_v45 = vrot.slane %v5606_v3, 5  ;;  %v4446_v13 = vcombine.low %v4248_v47, %v5840_v50  ;;  %v4320_v42 = vld [vmem:[%s5320_s10 + $0x60] sm:$0xf] }
  0x9a   : > { %7281 = vst [vmem:[#allocation21_spill] sm:$0xff] %v5848_v54  ;;  %v4413_v37 = vcombine.low %v556_v10, %v566_v20  ;;  %v1681_v60 = vsel %vm5359_vm2, %v1676_v56, %v1680_v34  ;;  %v1686_v21 = vrot.slane %v1685_v32, 4  ;;  %v1427_v24 = vrot.slane %v4265_v57, 5  ;;  %v4327_v54 = vld [vmem:[%s5320_s10 + $0x88] sm:$0xf] }
  0x9b   : > { %v568_v38 = vshrl.u32 %v296_v11, 16  ;;  %v571_v2 = vshll.u32 %v296_v11, 16  ;;  %v1425_v34 = vsel %vm5631_vm5, %v4297_v44, %v1424_v45  ;;  %v1426_v31 = vrot.slane %v1424_v45, 4  ;;  %v4346_v11 = vld [vmem:[%s5320_s10 + $0x68] sm:$0x1] }
  0x9c   : > { %2238 = vrot.lane.b32.xlu0 %v4413_v37, %s5240_s11  ;;  %v1691_v10 = vsel %vm5359_vm2, %v1686_v21, %v1690_v8  ;;  %v577_v4 = vshll.u32 %v297_v33, 16  ;;  %v4321_v37 = vld [vmem:[%s5320_s10 + $0x64] sm:$0xf]  ;;  %v581_v62 = vshrl.u32 %v297_v33, 16  ;;  %v587_v5 = vshll.u32 %v318_v12, 16 }
  0x9d   : > { %v4505_v56 = vcombine.low %v1681_v60, %v1691_v10  ;;  %v570_v20 = vrot.slane %v568_v38, 4  ;;  %v573_v32 = vrot.slane %v571_v2, 5  ;;  %v1428_v47 = vsel %vm5631_vm5, %v1426_v31, %v1427_v24 }
  0x9e   : > { %v579_v57 = vrot.slane %v577_v4, 5  ;;  %v4473_v8 = vcombine.low %v1425_v34, %v1428_v47  ;;  %v1693_v21 = vshrl.u32 %v4320_v42, 16  ;;  %v1696_v45 = vshll.u32 %v4320_v42, 16  ;;  %v5873_v42 = vld [vmem:[%s5320_s10 + $0x94] sm:$0xf] }
  0x9f   : > { %2646 = vrot.lane.b32.xlu1 %v4505_v56, %s5240_s11  ;;  %v574_v44 = vor.u32 %v573_v32, %v570_v20  ;;  %v1090_v25 = vor.u32 %v1089_v58, %v1086_v53  ;;  %v583_v60 = vrot.slane %v581_v62, 4  ;;  %v1702_v38 = vshll.u32 %v4321_v37, 16  ;;  %v4250_v58 = vld [vmem:[%s5320_s10 + $0x90] sm:$0xf]  ;;  %v4282_v47 = vld [vmem:[%s5320_s10 + $0x54] sm:$0xe] }
  0xa0   : > { %2384 = vrot.lane.b32.xlu0 %v4446_v13, %s5240_s11  ;;  %v1706_v2 = vshrl.u32 %v4321_v37, 16  ;;  %v1695_v24 = vrot.slane %v1693_v21, 4  ;;  %v1698_v31 = vrot.slane %v1696_v45, 5  ;;  %v1712_v33 = vshll.u32 %v4346_v11, 16  ;;  %v4266_v21 = vld [vmem:[%s5320_s10 + $0x5c] sm:$0x1] }
  0xa1   : > { %v575_v10 = vrot.slane %v574_v44, 4  ;;  %v584_v12 = vor.u32 %v583_v60, %v579_v57  ;;  %v589_v4 = vrot.slane %v587_v5, 5  ;;  %v1704_v56 = vrot.slane %v1702_v38, 5  ;;  %v298_v45 = vld [vmem:[%s5320_s10 + $0x84] sm:$0xf] }
  0xa2   : > { %v1708_v13 = vrot.slane %v1706_v2, 4  ;;  %v1108_v53 = vshrl.u32 %v5716_v61, 16  ;;  %v1699_v62 = vor.u32 %v1698_v31, %v1695_v24  ;;  %v1714_v37 = vrot.slane %v1712_v33, 5  ;;  %v299_v24 = vld [vmem:[%s5320_s10 + $0x88] sm:$0xf] }
  0xa3   : > { %2502 = vrot.lane.b32.xlu1 %v4473_v8, %s5240_s11  ;;  %v580_v20 = vsel %vm5359_vm2, %v575_v10, %v579_v57  ;;  %v585_v32 = vrot.slane %v584_v12, 4  ;;  %v5878_v11 = vrot.slane %v1090_v25, 4  ;;  %v1111_v8 = vshll.u32 %v5716_v61, 16  ;;  %v319_v33 = vld [vmem:[%s5320_s10 + $0x8c] sm:$0x1]  ;;  %v5892_v12 = vpop.permute.xlu0 %2364  ;;  %v5910_v43 = vpop.permute.xlu1 %2220 }
  0xa4   : > { %v1709_v5 = vor.u32 %v1708_v13, %v1704_v56  ;;  %v1700_v44 = vrot.slane %v1699_v62, 4  ;;  %v5887_v57 = vrot.slane %v1108_v53, 4  ;;  %v4298_v31 = vrot.slane %v4282_v47, 9 }
  0xa5   : > { %7282 = vst [vmem:[#allocation22_spill] sm:$0xff] %v5878_v11  ;;  %v590_v38 = vsel %vm5359_vm2, %v585_v32, %v589_v4  ;;  %v4447_v13 = vcombine.low %v4250_v58, %v5873_v42  ;;  %v1431_v4 = vrot.slane %v5678_v35, 5  ;;  %v1434_v62 = vrot.slane %v4266_v21, 5  ;;  %v4323_v58 = vld [vmem:[%s5320_s10 + $0x70] sm:$0xf] }
  0xa6   : > { %v1710_v2 = vrot.slane %v1709_v5, 4  ;;  %v4414_v10 = vcombine.low %v580_v20, %v590_v38  ;;  %v1705_v25 = vsel %vm5359_vm2, %v1700_v44, %v1704_v56  ;;  %v592_v20 = vshrl.u32 %v298_v45, 16  ;;  %v4322_v5 = vld [vmem:[%s5320_s10 + $0x6c] sm:$0xf] }
  0xa7   : > { %v595_v32 = vshll.u32 %v298_v45, 16  ;;  %v601_v56 = vshll.u32 %v299_v24, 16  ;;  %v5900_v47 = vrot.slane %v1111_v8, 5  ;;  %v1432_v44 = vsel %vm5631_vm5, %v4298_v31, %v1431_v4 }
  0xa8   : > { %v1715_v61 = vsel %vm5359_vm2, %v1710_v2, %v1714_v37  ;;  %2240 = vrot.lane.b32.xlu0 %v4414_v10, %s5240_s11  ;;  %v1433_v37 = vrot.slane %v1431_v4, 4  ;;  %v605_v38 = vshrl.u32 %v299_v24, 16  ;;  %v594_v21 = vrot.slane %v592_v20, 4  ;;  %v4267_v20 = vld [vmem:[%s5320_s10 + $0x68] sm:$0x1] }
  0xa9   : > { %v4506_v53 = vcombine.low %v1705_v25, %v1715_v61  ;;  %v597_v2 = vrot.slane %v595_v32, 5  ;;  %v603_v10 = vrot.slane %v601_v56, 5  ;;  %v611_v25 = vshll.u32 %v319_v33, 16  ;;  %v4347_v61 = vld [vmem:[%s5320_s10 + $0x74] sm:$0x1]  ;;  %v5914_v32 = vpop.permute.xlu0 %2388 }
  0xaa   : > { %v1435_v45 = vsel %vm5631_vm5, %v1433_v37, %v1434_v62  ;;  %v607_v60 = vrot.slane %v605_v38, 4  ;;  %v1717_v8 = vshrl.u32 %v4322_v5, 16  ;;  %v1720_v34 = vshll.u32 %v4322_v5, 16  ;;  %v4325_v5 = vld [vmem:[%s5320_s10 + $0x7c] sm:$0xf] }
  0xab   : > { %2648 = vrot.lane.b32.xlu1 %v4506_v53, %s5240_s11  ;;  %v4474_v24 = vcombine.low %v1432_v44, %v1435_v45  ;;  %v598_v31 = vor.u32 %v597_v2, %v594_v21  ;;  %v613_v4 = vrot.slane %v611_v25, 5  ;;  %v1726_v53 = vshll.u32 %v4323_v58, 16  ;;  %v4324_v45 = vld [vmem:[%s5320_s10 + $0x78] sm:$0xf]  ;;  %v4348_v44 = vld [vmem:[%s5320_s10 + $0x80] sm:$0x1] }
  0xac   : > { %2386 = vrot.lane.b32.xlu0 %v4447_v13, %s5240_s11  ;;  %v608_v33 = vor.u32 %v607_v60, %v603_v10  ;;  %v1719_v56 = vrot.slane %v1717_v8, 4  ;;  %v1722_v11 = vrot.slane %v1720_v34, 5  ;;  %v1730_v62 = vshrl.u32 %v4323_v58, 16 }
  0xad   : > { %v599_v37 = vrot.slane %v598_v31, 4  ;;  %v1728_v38 = vrot.slane %v1726_v53, 5  ;;  %v1736_v13 = vshll.u32 %v4347_v61, 16  ;;  %v4299_v58 = vrot.slane %v4283_v16, 9 }
  0xae   : > { %v609_v21 = vrot.slane %v608_v33, 4  ;;  %v1723_v2 = vor.u32 %v1722_v11, %v1719_v56  ;;  %v1732_v25 = vrot.slane %v1730_v62, 4  ;;  %v1438_v8 = vrot.slane %v5719_v63, 5  ;;  %v5928_v33 = vpop.permute.xlu1 %2244  ;;  %v5932_v62 = vpop.permute.xlu0 %2366 }
  0xaf   : > { %2504 = vrot.lane.b32.xlu1 %v4474_v24, %s5240_s11  ;;  %v604_v34 = vsel %vm5359_vm2, %v599_v37, %v603_v10  ;;  %v1738_v60 = vrot.slane %v1736_v13, 5  ;;  %v1441_v53 = vrot.slane %v4267_v20, 5  ;;  %v1741_v16 = vshrl.u32 %v4324_v45, 16 }
  0xb0   : > { %v614_v24 = vsel %vm5359_vm2, %v609_v21, %v613_v4  ;;  %v1724_v61 = vrot.slane %v1723_v2, 4  ;;  %v1733_v31 = vor.u32 %v1732_v25, %v1728_v38  ;;  %v1439_v10 = vsel %vm5631_vm5, %v4299_v58, %v1438_v8  ;;  %v4268_v21 = vld [vmem:[%s5320_s10 + $0x74] sm:$0x1] }
  0xb1   : > { %v4415_v11 = vcombine.low %v604_v34, %v614_v24  ;;  %v1440_v56 = vrot.slane %v1438_v8, 4  ;;  %v1744_v13 = vshll.u32 %v4324_v45, 16  ;;  %v1750_v20 = vshll.u32 %v4325_v5, 16  ;;  %v4284_v8 = vld [vmem:[%s5320_s10 + $0x6c] sm:$0xe] }
  0xb2   : > { %v1729_v37 = vsel %vm5359_vm2, %v1724_v61, %v1728_v38  ;;  %v1734_v4 = vrot.slane %v1733_v31, 4  ;;  %v1743_v25 = vrot.slane %v1741_v16, 4  ;;  %v1754_v34 = vshrl.u32 %v4325_v5, 16  ;;  %v4326_v31 = vld [vmem:[%s5320_s10 + $0x84] sm:$0xf]  ;;  %v5950_v24 = vpop.permute.xlu1 %2390 }
  0xb3   : > { %2242 = vrot.lane.b32.xlu0 %v4415_v11, %s5240_s11  ;;  %v1442_v2 = vsel %vm5631_vm5, %v1440_v56, %v1441_v53  ;;  %v1760_v58 = vshll.u32 %v4348_v44, 16  ;;  %v1746_v61 = vrot.slane %v1744_v13, 5  ;;  %v1752_v45 = vrot.slane %v1750_v20, 5  ;;  %v4349_v53 = vld [vmem:[%s5320_s10 + $0x8c] sm:$0x1] }
  0xb4   : > { %v1739_v38 = vsel %vm5359_vm2, %v1734_v4, %v1738_v60  ;;  %v4475_v41 = vcombine.low %v1439_v10, %v1442_v2  ;;  %v1756_v40 = vrot.slane %v1754_v34, 4  ;;  %v4300_v56 = vrot.slane %v4284_v8, 9 }
  0xb5   : > { %v4507_v35 = vcombine.low %v1729_v37, %v1739_v38  ;;  %v1747_v5 = vor.u32 %v1746_v61, %v1743_v25  ;;  %v1762_v44 = vrot.slane %v1760_v58, 5  ;;  %v1445_v16 = vrot.slane %v5761_v48, 5  ;;  %v5953_v37 = vpop.permute.xlu0 %2222  ;;  %v4285_v58 = vld [vmem:[%s5320_s10 + $0x78] sm:$0xe]  ;;  %v6206_v48 = vld [vmem:[%s5320_s10 + $0xb0] sm:$0x1] }
  0xb6   : > { %v1757_v60 = vor.u32 %v1756_v40, %v1752_v45  ;;  %v1448_v4 = vrot.slane %v4268_v21, 5  ;;  %v1765_v13 = vshrl.u32 %v4326_v31, 16  ;;  %v1768_v20 = vshll.u32 %v4326_v31, 16 }
  0xb7   : > { %2650 = vrot.lane.b32.xlu1 %v4507_v35, %s5240_s11  ;;  %v1748_v10 = vrot.slane %v1747_v5, 4  ;;  %v1446_v2 = vsel %vm5631_vm5, %v4300_v56, %v1445_v16  ;;  %v1447_v25 = vrot.slane %v1445_v16, 4  ;;  %v1774_v34 = vshll.u32 %v4327_v54, 16  ;;  %v4269_v35 = vld [vmem:[%s5320_s10 + $0x80] sm:$0x1] }
  0xb8   : > { %v1758_v8 = vrot.slane %v1757_v60, 4  ;;  %v1767_v38 = vrot.slane %v1765_v13, 4  ;;  %v1770_v61 = vrot.slane %v1768_v20, 5  ;;  %v1778_v11 = vshrl.u32 %v4327_v54, 16  ;;  %v4329_v54 = vld [vmem:[%s5320_s10 + $0x94] sm:$0xf] }
  0xb9   : > { %v1753_v40 = vsel %vm5359_vm2, %v1748_v10, %v1752_v45  ;;  %v1449_v21 = vsel %vm5631_vm5, %v1447_v25, %v1448_v4  ;;  %v1776_v31 = vrot.slane %v1774_v34, 5  ;;  %v1784_v5 = vshll.u32 %v4349_v53, 16  ;;  %v5974_v53 = vpop.permute.xlu1 %2246 }
  0xba   : > { %v1763_v56 = vsel %vm5359_vm2, %v1758_v8, %v1762_v44  ;;  %v4476_v16 = vcombine.low %v1446_v2, %v1449_v21  ;;  %v1771_v60 = vor.u32 %v1770_v61, %v1767_v38  ;;  %v1780_v13 = vrot.slane %v1778_v11, 4  ;;  %v5977_v2 = vpop.permute.xlu0 %2368 }
  0xbb   : > { %2506 = vrot.lane.b32.xlu1 %v4475_v41, %s5240_s11  ;;  %v1114_v20 = vor.u32 %v5900_v47, %v5887_v57  ;;  %v7283_v45 = vshrl.u32 %v5719_v63, 16  ;;  %v4508_v4 = vcombine.low %v1753_v40, %v1763_v56  ;;  %v1786_v25 = vrot.slane %v1784_v5, 5  ;;  %v4350_v57 = vld [vmem:[%s5320_s10 + $0x98] sm:$0x1] }
  0xbc   : > { %v1772_v41 = vrot.slane %v1771_v60, 4  ;;  %v1781_v34 = vor.u32 %v1780_v13, %v1776_v31  ;;  %v4301_v0 = vrot.slane %v4285_v58, 9  ;;  %v1452_v44 = vrot.slane %v5804_v15, 5  ;;  %v711_v60 = vld [vmem:[%s5320_s10] sm:$0xe] }
  0xbd   : > { %v5972_v10 = vrot.slane %v7283_v45, 4  ;;  %2652 = vrot.lane.b32.xlu0 %v4508_v4, %s5240_s11  ;;  %v1455_v11 = vrot.slane %v4269_v35, 5  ;;  %v1789_v47 = vshrl.u32 %v4328_v22, 16  ;;  %v1792_v8 = vshll.u32 %v4328_v22, 16  ;;  %v4286_v45 = vld [vmem:[%s5320_s10 + $0x84] sm:$0xe] }
  0xbe   : > { %v1798_v38 = vshll.u32 %v4329_v54, 16  ;;  %v1777_v61 = vsel %vm5359_vm2, %v1772_v41, %v1776_v31  ;;  %v1782_v40 = vrot.slane %v1781_v34, 4  ;;  %v1453_v15 = vsel %vm5631_vm5, %v4301_v0, %v1452_v44 }
  0xbf   : > { %2508 = vrot.lane.b32.xlu1 %v4476_v16, %s5240_s11  ;;  %v1454_v58 = vrot.slane %v1452_v44, 4  ;;  %v1791_v21 = vrot.slane %v1789_v47, 4  ;;  %v1794_v5 = vrot.slane %v1792_v8, 5  ;;  %v1802_v35 = vshrl.u32 %v4329_v54, 16  ;;  %v4270_v44 = vld [vmem:[%s5320_s10 + $0x8c] sm:$0x1]  ;;  %v5995_v47 = vpop.permute.xlu1 %2392 }
  0xc0   : > { %v1800_v56 = vrot.slane %v1798_v38, 5  ;;  %v5987_v22 = vrot.slane %v1114_v20, 4  ;;  %v1787_v16 = vsel %vm5359_vm2, %v1782_v40, %v1786_v25  ;;  %v1808_v13 = vshll.u32 %v4350_v57, 16  ;;  %v5017_v38 = vld [vmem:[%s5320_s10 + $0x4] sm:$0xf]  ;;  %v6000_v40 = vpop.permute.xlu0 %2224 }
  0xc1   : > { %v1456_v31 = vsel %vm5631_vm5, %v1454_v58, %v1455_v11  ;;  %v4509_v0 = vcombine.low %v1777_v61, %v1787_v16  ;;  %v1795_v41 = vor.u32 %v1794_v5, %v1791_v21  ;;  %v1804_v34 = vrot.slane %v1802_v35, 4  ;;  %v723_v25 = vld [vmem:[%s5320_s10 + $0x90] sm:$0xe]  ;;  %v5018_v16 = vld [vmem:[%s5320_s10] sm:$0xf] }
  0xc2   : > { %7284 = vst [vmem:[#allocation23_spill] sm:$0xff] %v5987_v22  ;;  %v4477_v4 = vcombine.low %v1453_v15, %v1456_v31  ;;  %v1132_v54 = vshrl.u32 %v5758_v27, 16  ;;  %v1810_v20 = vrot.slane %v1808_v13, 5  ;;  %v4212_v8 = vrot.slane %v711_v60, 9 }
  0xc3   : > { %v780_v22 = vrot.slane %v5017_v38, 5  ;;  %2654 = vrot.lane.b32.xlu0 %v4509_v0, %s5240_s11  ;;  %v1796_v11 = vrot.slane %v1795_v41, 4  ;;  %v1805_v57 = vor.u32 %v1804_v34, %v1800_v56  ;;  %vm2716_vm6 = vcmask 523264   ;;  %v4330_v34 = vld [vmem:[%s5320_s10 + $0x9c] sm:$0xf] }
  0xc4   : > { %2510 = vrot.lane.b32.xlu1 %v4477_v4, %s5240_s11  ;;  %v4302_v61 = vrot.slane %v4286_v45, 9  ;;  %v1459_v21 = vrot.slane %v5840_v50, 5  ;;  %v1462_v5 = vrot.slane %v4270_v44, 5  ;;  %v4388_v31 = vcombine.low %v5018_v16, %v5017_v38  ;;  %v5019_v4 = vld [vmem:[%s5320_s10 + $0x94] sm:$0xf] }
  0xc5   : > { %v781_v15 = vsel %vm5631_vm5, %v4212_v8, %v780_v22  ;;  %v782_v58 = vrot.slane %v780_v22, 4  ;;  %v1801_v35 = vsel %vm5359_vm2, %v1796_v11, %v1800_v56  ;;  %v1806_v60 = vrot.slane %v1805_v57, 4  ;;  %v6024_v11 = vpop.permute.xlu1 %2248  ;;  %v4351_v16 = vld [vmem:[%s5320_s10 + $0xa4] sm:$0x1] }
  0xc6   : > { %v4224_v13 = vrot.slane %v723_v25, 9  ;;  %v7285_v0 = vrot.slane %v5343_v9, 5  ;;  %v1460_v22 = vsel %vm5631_vm5, %v4302_v61, %v1459_v21  ;;  %v1461_v50 = vrot.slane %v1459_v21, 4  ;;  %v5020_v9 = vld [vmem:[%s5320_s10 + $0x98] sm:$0x1] }
  0xc7   : > { %v864_v41 = vrot.slane %v5019_v4, 5  ;;  %v1811_v56 = vsel %vm5359_vm2, %v1806_v60, %v1810_v20  ;;  %v2719_v8 = vsel %vm2716_vm6, %v4388_v31, %v5910_v43  ;;  %v867_v38 = vrot.slane %v5020_v9, 5  ;;  %v4331_v25 = vld [vmem:[%s5320_s10 + $0xa0] sm:$0xf]  ;;  %v6031_v20 = vpop.permute.xlu0 %2370  ;;  %v5021_v60 = vld [vmem:[%s5320_s10 + $0x90] sm:$0xf] }
  0xc8   : > { %v784_v45 = vsel %vm5631_vm5, %v782_v58, %v7285_v0  ;;  %v4510_v57 = vcombine.low %v1801_v35, %v1811_v56  ;;  %v1463_v61 = vsel %vm5631_vm5, %v1461_v50, %v1462_v5  ;;  %v4400_v31 = vcombine.low %v5021_v60, %v5019_v4  ;;  %v4986_v35 = vld [vmem:[%s7245_s1 + $0x108] sm:$0xff]   ;;  %v4969_v4 = vld [vmem:[%s7245_s1 + $0x80] sm:$0xff]  }
  0xc9   : > { %v4420_v44 = vcombine.low %v781_v15, %v784_v45  ;;  %v865_v58 = vsel %vm5631_vm5, %v4224_v13, %v864_v41  ;;  %v866_v21 = vrot.slane %v864_v41, 4  ;;  %v4478_v15 = vcombine.low %v1460_v22, %v1463_v61  ;;  %v712_v41 = vld [vmem:[%s5320_s10 + $0xc] sm:$0xe]  ;;  %v5022_v9 = vld [vmem:[%s7245_s1 + $0x100] sm:$0xff]   ;;  %v4287_v61 = vld [vmem:[%s5320_s10 + $0x90] sm:$0xe]  ;;  %v6062_v60 = vpop.permute.xlu1 %2394 }
  0xca   : > { %v1813_v0 = vshrl.u32 %v4330_v34, 16  ;;  %2656 = vrot.lane.b32.xlu0 %v4510_v57, %s5240_s11  ;;  %v1816_v13 = vshll.u32 %v4330_v34, 16  ;;  %v1822_v45 = vshll.u32 %v4331_v25, 16  ;;  %v1826_v50 = vshrl.u32 %v4331_v25, 16  ;;  %v4970_v57 = vld [vmem:[%s7245_s1 + $0xc8] sm:$0xff]  }
  0xcb   : > { %v2783_v43 = vsel %vm2716_vm6, %v4420_v44, %v5892_v12  ;;  %v868_v5 = vsel %vm5631_vm5, %v866_v21, %v867_v38  ;;  %2512 = vrot.lane.b32.xlu1 %v4478_v15, %s5240_s11  ;;  %v1832_v44 = vshll.u32 %v4351_v16, 16  ;;  %v2767_v34 = vsel %vm2716_vm6, %v4400_v31, %v5928_v33  ;;  %v5023_v16 = vld [vmem:[%s5320_s10 + $0x10] sm:$0xf]  ;;  %v4271_v15 = vld [vmem:[%s5320_s10 + $0x98] sm:$0x1] }
  0xcc   : > { %3341 = vmatprep.mubr.bf16.mxu0 %v2783_v43  ;;  %v4432_v22 = vcombine.low %v865_v58, %v868_v5  ;;  %v1815_v56 = vrot.slane %v1813_v0, 4  ;;  %v1818_v38 = vrot.slane %v1816_v13, 5  ;;  %v1824_v25 = vrot.slane %v1822_v45, 5  ;;  %v4997_v31 = vld [vmem:[%s7245_s1 + $0x110] sm:$0xff]  }
  0xcd   : > { %3342 = vmatmul.mubr.bf16.vlgmr.msra.gmra.mrb[0].mxu0 %v2719_v8  ;;  %v1828_v8 = vrot.slane %v1826_v50, 4  ;;  %v4213_v21 = vrot.slane %v712_v41, 9  ;;  %v787_v43 = vrot.slane %v5023_v16, 5  ;;  %v1834_v13 = vrot.slane %v1832_v44, 5  ;;  %v5024_v45 = vld [vmem:[%s5320_s10 + $0x14] sm:$0x1] }
  0xce   : > { %4835 = vmatpush3.bf16.msra.mxu0 %v5022_v9  ;;  %v2831_v33 = vsel %vm2716_vm6, %v4432_v22, %v5914_v32  ;;  %v1819_v0 = vor.u32 %v1818_v38, %v1815_v56  ;;  %v790_v50 = vrot.slane %v5024_v45, 5  ;;  %v724_v9 = vld [vmem:[%s5320_s10 + $0x9c] sm:$0xe]  ;;  %v6069_v32 = vpop.permute.xlu0 %2226  ;;  %v4303_v58 = vrot.slane %v4287_v61, 9  ;;  %v5025_v44 = vld [vmem:[%s5320_s10 + $0xc] sm:$0xf] }
  0xcf   : > { %4836 = vmatprep.subr.bf16.mxu0 %v4986_v35  ;;  %3437 = vmatprep.mubr.bf16.mxu1 %v2831_v33  ;;  %v1829_v5 = vor.u32 %v1828_v8, %v1824_v25  ;;  %v788_v41 = vsel %vm5631_vm5, %v4213_v21, %v787_v43  ;;  %v789_v22 = vrot.slane %v787_v43, 4  ;;  %v1466_v12 = vrot.slane %v5873_v42, 5  ;;  %v4972_v45 = vld [vmem:[%s7245_s1 + $0x88] sm:$0xff]  }
  0xd0   : > { %3438 = vmatmul.mubr.bf16.vlgmr.msra.gmra.mrb[0].mxu1 %v2767_v34  ;;  %v1820_v33 = vrot.slane %v1819_v0, 4  ;;  %v1469_v38 = vrot.slane %v4271_v15, 5  ;;  %v4389_v8 = vcombine.low %v5025_v44, %v5023_v16  ;;  %v4225_v61 = vrot.slane %v724_v9, 9  ;;  %v4332_v21 = vld [vmem:[%s5320_s10 + $0xa8] sm:$0xf]  ;;  %v4975_v44 = vld [vmem:[%s7245_s1 + $0x90] sm:$0xff]  }
  0xd1   : > { %4703 = vmatpush3.bf16.msra.mxu1 %v4969_v4  ;;  %v1830_v56 = vrot.slane %v1829_v5, 4  ;;  %v791_v34 = vsel %vm5631_vm5, %v789_v22, %v790_v50  ;;  %v1467_v42 = vsel %vm5631_vm5, %v4303_v58, %v1466_v12  ;;  %v1468_v4 = vrot.slane %v1466_v12, 4  ;;  %v5026_v58 = vld [vmem:[%s5320_s10 + $0xa0] sm:$0xf]  ;;  %v5027_v50 = vld [vmem:[%s5320_s10 + $0xa4] sm:$0x1] }
  0xd2   : > { %4837 = vmatpush3.bf16.msra.mxu0 %v4986_v35  ;;  %4704 = vmatprep.subr.bf16.mxu1 %v4970_v57  ;;  %v1825_v16 = vsel %vm5359_vm2, %v1820_v33, %v1824_v25  ;;  %v4421_v35 = vcombine.low %v788_v41, %v791_v34  ;;  %v2723_v15 = vsel %vm2716_vm6, %v4389_v8, %v5953_v37  ;;  %v4333_v57 = vld [vmem:[%s5320_s10 + $0xac] sm:$0xf]  ;;  %v871_v5 = vrot.slane %v5026_v58, 5  ;;  %v4973_v25 = vld [vmem:[%s7245_s1 + $0xd0] sm:$0xff]   ;;  %v5004_v37 = vld [vmem:[%s7245_s1 + $0x118] sm:$0xff]   ;;  %v6109_v34 = vpop.permute.xlu0 %2372 }
  0xd3   : > { %4838 = vmatprep.subr.bf16.mxu0 %v4997_v31  ;;  %v1835_v43 = vsel %vm5359_vm2, %v1830_v56, %v1834_v13  ;;  %v1470_v12 = vsel %vm5631_vm5, %v1468_v4, %v1469_v38  ;;  %v874_v9 = vrot.slane %v5027_v50, 5  ;;  %v4352_v22 = vld [vmem:[%s5320_s10 + $0xb0] sm:$0x1]  ;;  %v6098_v13 = vpop.permute.xlu1 %2250  ;;  %v5028_v56 = vld [vmem:[%s5320_s10 + $0x9c] sm:$0xf]  ;;  %v1837_v8 = vshrl.u32 %v4332_v21, 16 }
  0xd4   : > { %v4511_v0 = vcombine.low %v1825_v16, %v1835_v43  ;;  %v2787_v41 = vsel %vm2716_vm6, %v4421_v35, %v5932_v62  ;;  %v4479_v33 = vcombine.low %v1467_v42, %v1470_v12  ;;  %v4401_v38 = vcombine.low %v5028_v56, %v5026_v58  ;;  %v713_v16 = vld [vmem:[%s5320_s10 + $0x18] sm:$0xe]  ;;  %v6124_v12 = vld [vmem:[%s5320_s10 + $0x70] sm:$0xf]  ;;  %v4288_v50 = vld [vmem:[%s5320_s10 + $0x9c] sm:$0xe] }
  0xd5   : > { %4705 = vmatpush3.bf16.msra.mxu1 %v4972_v45  ;;  %3349 = vmatprep.mubr.bf16.mxu0 %v2787_v41  ;;  %v872_v4 = vsel %vm5631_vm5, %v4225_v61, %v871_v5  ;;  %v873_v62 = vrot.slane %v871_v5, 4  ;;  %v1840_v42 = vshll.u32 %v4332_v21, 16  ;;  %v1846_v45 = vshll.u32 %v4333_v57, 16  ;;  %v4976_v43 = vld [vmem:[%s7245_s1 + $0xd8] sm:$0xff]  }
  0xd6   : > { %4839 = vmatpush3.bf16.msra.mxu0 %v4997_v31  ;;  %2658 = vrot.lane.b32.xlu0 %v4511_v0, %s5240_s11  ;;  %v6120_v35 = vrot.slane %v1132_v54, 4  ;;  %v1839_v31 = vrot.slane %v1837_v8, 4  ;;  %v1850_v0 = vshrl.u32 %v4333_v57, 16  ;;  %v1856_v61 = vshll.u32 %v4352_v22, 16 }
  0xd7   : > { %2514 = vrot.lane.b32.xlu1 %v4479_v33, %s5240_s11  ;;  %3350 = vmatmul.mubr.bf16.gmra.mrb[4].mxu0 %v2723_v15  ;;  %v875_v58 = vsel %vm5631_vm5, %v873_v62, %v874_v9  ;;  %v1842_v5 = vrot.slane %v1840_v42, 5  ;;  %v1848_v54 = vrot.slane %v1846_v45, 5  ;;  %v2771_v15 = vsel %vm2716_vm6, %v4401_v38, %v5974_v53  ;;  %v6133_v33 = vld [vmem:[%s5320_s10 + $0xa4] sm:$0x1]  ;;  %v5031_v62 = vld [vmem:[%s5320_s10 + $0x20] sm:$0x1]  ;;  %v6140_v53 = vpop.permute.xlu1 %2636 }
  0xd8   : > { %4706 = vmatprep.subr.bf16.mxu1 %v4973_v25  ;;  %4840 = vmatprep.subr.bf16.mxu0 %v5004_v37  ;;  %v4433_v41 = vcombine.low %v872_v4, %v875_v58  ;;  %v1852_v57 = vrot.slane %v1850_v0, 4  ;;  %v4214_v22 = vrot.slane %v713_v16, 9  ;;  %7286 = vst [vmem:[#allocation24_spill] sm:$0xff] %v6133_v33  ;;  %v1858_v9 = vrot.slane %v1856_v61, 5  ;;  %v5030_v25 = vld [vmem:[%s5320_s10 + $0x1c] sm:$0xf] }
  0xd9   : > { %4707 = vmatpush3.bf16.msra.mxu1 %v4975_v44  ;;  %v1843_v56 = vor.u32 %v1842_v5, %v1839_v31  ;;  %v794_v8 = vrot.slane %v5030_v25, 5  ;;  %v797_v42 = vrot.slane %v5031_v62, 5  ;;  %v4978_v4 = vld [vmem:[%s7245_s1 + $0x98] sm:$0xff]   ;;  %v4304_v45 = vrot.slane %v4288_v50, 9  ;;  %v725_v31 = vld [vmem:[%s5320_s10 + $0xa8] sm:$0xe] }
  0xda   : > { %4841 = vmatpush3.bf16.msra.mxu0 %v5004_v37  ;;  %4708 = vmatprep.subr.bf16.mxu1 %v4976_v43  ;;  %v2835_v38 = vsel %vm2716_vm6, %v4433_v41, %v5950_v24  ;;  %v1853_v44 = vor.u32 %v1852_v57, %v1848_v54  ;;  %v5032_v37 = vld [vmem:[%s5320_s10 + $0xa0] sm:$0xf]  ;;  %v6149_v43 = vpop.permute.xlu0 %2228  ;;  %v1476_v5 = vrot.slane %v6133_v33, 5  ;;  %v5033_v62 = vld [vmem:[%s5320_s10 + $0x18] sm:$0xf] }
  0xdb   : > { %v1473_v16 = vrot.slane %v5032_v37, 5  ;;  %v4979_v0 = vld [vmem:[%s7245_s1 + $0xe0] sm:$0xff]   ;;  %3445 = vmatprep.mubr.bf16.mxu1 %v2835_v38  ;;  %v1844_v61 = vrot.slane %v1843_v56, 4  ;;  %v795_v58 = vsel %vm5631_vm5, %v4214_v22, %v794_v8  ;;  %v796_v24 = vrot.slane %v794_v8, 4  ;;  %v5034_v8 = vld [vmem:[%s5320_s10 + $0xac] sm:$0xf] }
  0xdc   : > { %3446 = vmatmul.mubr.bf16.gmra.mrb[4].mxu1 %v2771_v15  ;;  %v1854_v50 = vrot.slane %v1853_v44, 4  ;;  %v4390_v37 = vcombine.low %v5033_v62, %v5030_v25  ;;  %v4226_v22 = vrot.slane %v725_v31, 9  ;;  %v878_v21 = vrot.slane %v5034_v8, 5  ;;  %v4334_v15 = vld [vmem:[%s5320_s10 + $0xb4] sm:$0xf] }
  0xdd   : > { %v1474_v41 = vsel %vm5631_vm5, %v4304_v45, %v1473_v16  ;;  %v1475_v57 = vrot.slane %v1473_v16, 4  ;;  %v1849_v56 = vsel %vm5359_vm2, %v1844_v61, %v1848_v54  ;;  %v798_v38 = vsel %vm5631_vm5, %v796_v24, %v797_v42  ;;  %4709 = vmatpush3.bf16.msra.mxu1 %v4978_v4  ;;  %v4335_v16 = vld [vmem:[%s5320_s10 + $0xb8] sm:$0xf]  ;;  %v4353_v42 = vld [vmem:[%s5320_s10 + $0xbc] sm:$0x1] }
  0xde   : > { %v1859_v44 = vsel %vm5359_vm2, %v1854_v50, %v1858_v9  ;;  %v4422_v45 = vcombine.low %v795_v58, %v798_v38  ;;  %v2727_v54 = vsel %vm2716_vm6, %v4390_v37, %v6000_v40  ;;  %4710 = vmatprep.subr.bf16.mxu1 %v4979_v0  ;;  %v879_v4 = vsel %vm5631_vm5, %v4226_v22, %v878_v21  ;;  %v4981_v9 = vld [vmem:[%s7245_s1 + $0xa0] sm:$0xff]   ;;  %v6176_v58 = vpop.permute.xlu1 %2492  ;;  %v5035_v40 = vld [vmem:[%s5320_s10 + $0xb0] sm:$0x1]  ;;  %v5036_v50 = vld [vmem:[%s5320_s10 + $0xa8] sm:$0xf]  ;;  %v6185_v62 = vpop.permute.xlu0 %2374 }
  0xdf   : > { %v1477_v25 = vsel %vm5631_vm5, %v1475_v57, %v1476_v5  ;;  %v4512_v31 = vcombine.low %v1849_v56, %v1859_v44  ;;  %v880_v24 = vrot.slane %v878_v21, 4  ;;  %v881_v0 = vrot.slane %v5035_v40, 5  ;;  %v4982_v21 = vld [vmem:[%s7245_s1 + $0xe8] sm:$0xff]   ;;  %v714_v22 = vld [vmem:[%s5320_s10 + $0x24] sm:$0xe] }
  0xe0   : > { %v4480_v61 = vcombine.low %v1474_v41, %v1477_v25  ;;  %v2791_v5 = vsel %vm2716_vm6, %v4422_v45, %v5977_v2  ;;  %v4402_v57 = vcombine.low %v5036_v50, %v5034_v8  ;;  %v1861_v41 = vshrl.u32 %v4334_v15, 16  ;;  %v6194_v45 = vld [vmem:[%s5320_s10 + $0x38] sm:$0x1]  ;;  %v4289_v40 = vld [vmem:[%s5320_s10 + $0xa8] sm:$0xe] }
  0xe1   : > { %2660 = vrot.lane.b32.xlu0 %v4512_v31, %s5240_s11  ;;  %3357 = vmatprep.mubr.bf16.mxu0 %v2791_v5  ;;  %v1864_v37 = vshll.u32 %v4334_v15, 16  ;;  %v1870_v56 = vshll.u32 %v4335_v16, 16  ;;  %v1874_v38 = vshrl.u32 %v4335_v16, 16  ;;  %v1880_v2 = vshll.u32 %v4353_v42, 16  ;;  %v5038_v25 = vld [vmem:[%s5320_s10 + $0x28] sm:$0xf] }
  0xe2   : > { %v7287_v44 = vshll.u32 %v5758_v27, 16  ;;  %2516 = vrot.lane.b32.xlu1 %v4480_v61, %s5240_s11  ;;  %3358 = vmatmul.mubr.bf16.gmra.mrb[8].mxu0 %v2727_v54  ;;  %v882_v15 = vsel %vm5631_vm5, %v880_v24, %v881_v0  ;;  %v1863_v16 = vrot.slane %v1861_v41, 4  ;;  %v2775_v50 = vsel %vm2716_vm6, %v4402_v57, %v6024_v11  ;;  %v5039_v61 = vld [vmem:[%s5320_s10 + $0x2c] sm:$0x1]  ;;  %v726_v57 = vld [vmem:[%s5320_s10 + $0xb4] sm:$0xe] }
  0xe3   : > { %v4434_v42 = vcombine.low %v879_v4, %v882_v15  ;;  %4711 = vmatpush3.bf16.msra.mxu1 %v4981_v9  ;;  %v1866_v31 = vrot.slane %v1864_v37, 5  ;;  %v1872_v27 = vrot.slane %v1870_v56, 5  ;;  %v1876_v5 = vrot.slane %v1874_v38, 4  ;;  %v4984_v4 = vld [vmem:[%s7245_s1 + $0xa8] sm:$0xff]   ;;  %v4985_v41 = vld [vmem:[%s7245_s1 + $0xf0] sm:$0xff]   ;;  %v6217_v37 = vpop.permute.xlu1 %2638  ;;  %v6222_v15 = vpop.permute.xlu0 %2230 }
  0xe4   : > { %v6191_v8 = vrot.slane %v7287_v44, 5  ;;  %v4215_v44 = vrot.slane %v714_v22, 9  ;;  %v801_v33 = vrot.slane %v5038_v25, 5  ;;  %v804_v54 = vrot.slane %v5039_v61, 5  ;;  %4712 = vmatprep.subr.bf16.mxu1 %v4982_v21  ;;  %v5040_v22 = vld [vmem:[%s5320_s10 + $0xac] sm:$0xf] }
  0xe5   : > { %v2839_v24 = vsel %vm2716_vm6, %v4434_v42, %v5995_v47  ;;  %v1867_v9 = vor.u32 %v1866_v31, %v1863_v16  ;;  %v1877_v0 = vor.u32 %v1876_v5, %v1872_v27  ;;  %v1882_v11 = vrot.slane %v1880_v2, 5  ;;  %v5041_v31 = vld [vmem:[%s5320_s10 + $0x24] sm:$0xf] }
  0xe6   : > { %3453 = vmatprep.mubr.bf16.mxu1 %v2839_v24  ;;  %v802_v21 = vsel %vm5631_vm5, %v4215_v44, %v801_v33  ;;  %v803_v56 = vrot.slane %v801_v33, 4  ;;  %v4305_v38 = vrot.slane %v4289_v40, 9  ;;  %v1480_v47 = vrot.slane %v5040_v22, 5  ;;  %v5043_v22 = vld [vmem:[%s5320_s10 + $0xbc] sm:$0x1] }
  0xe7   : > { %3454 = vmatmul.mubr.bf16.gmra.mrb[8].mxu1 %v2775_v50  ;;  %v1868_v2 = vrot.slane %v1867_v9, 4  ;;  %v1878_v16 = vrot.slane %v1877_v0, 4  ;;  %v1483_v42 = vrot.slane %v6206_v48, 5  ;;  %v4391_v5 = vcombine.low %v5041_v31, %v5038_v25  ;;  %v4336_v50 = vld [vmem:[%s5320_s10 + $0xc0] sm:$0xf]  ;;  %v6252_v31 = vpop.permute.xlu1 %2494 }
  0xe8   : > { %v805_v61 = vsel %vm5631_vm5, %v803_v56, %v804_v54  ;;  %v1481_v33 = vsel %vm5631_vm5, %v4305_v38, %v1480_v47  ;;  %v1482_v40 = vrot.slane %v1480_v47, 4  ;;  %v4227_v44 = vrot.slane %v726_v57, 9  ;;  %4713 = vmatpush3.bf16.msra.mxu1 %v4984_v4  ;;  %v4337_v0 = vld [vmem:[%s5320_s10 + $0xc4] sm:$0xf]  ;;  %v5042_v38 = vld [vmem:[%s5320_s10 + $0xb8] sm:$0xf] }
  0xe9   : > { %v1873_v24 = vsel %vm5359_vm2, %v1868_v2, %v1872_v27  ;;  %v1883_v9 = vsel %vm5359_vm2, %v1878_v16, %v1882_v11  ;;  %v4423_v25 = vcombine.low %v802_v21, %v805_v61  ;;  %v2731_v54 = vsel %vm2716_vm6, %v4391_v5, %v6069_v32  ;;  %4714 = vmatprep.subr.bf16.mxu1 %v4985_v41  ;;  %v4988_v27 = vld [vmem:[%s7245_s1 + $0xb0] sm:$0xff]   ;;  %v4354_v11 = vld [vmem:[%s5320_s10 + $0xc8] sm:$0x1] }
  0xea   : > { %v4513_v56 = vcombine.low %v1873_v24, %v1883_v9  ;;  %v1484_v57 = vsel %vm5631_vm5, %v1482_v40, %v1483_v42  ;;  %v885_v4 = vrot.slane %v5042_v38, 5  ;;  %v888_v47 = vrot.slane %v5043_v22, 5  ;;  %v5044_v41 = vld [vmem:[%s5320_s10 + $0xb4] sm:$0xf]  ;;  %v4989_v42 = vld [vmem:[%s7245_s1 + $0xf8] sm:$0xff]   ;;  %v6258_v24 = vpop.permute.xlu0 %2376 }
  0xeb   : > { %v2795_v21 = vsel %vm2716_vm6, %v4423_v25, %v6031_v20  ;;  %v4481_v32 = vcombine.low %v1481_v33, %v1484_v57  ;;  %v4403_v2 = vcombine.low %v5044_v41, %v5042_v38  ;;  %v1885_v16 = vshrl.u32 %v4336_v50, 16  ;;  %v715_v33 = vld [vmem:[%s5320_s10 + $0x30] sm:$0xe]  ;;  %v4290_v22 = vld [vmem:[%s5320_s10 + $0xb4] sm:$0xe] }
  0xec   : > { %2662 = vrot.lane.b32.xlu0 %v4513_v56, %s5240_s11  ;;  %3365 = vmatprep.mubr.bf16.mxu0 %v2795_v21  ;;  %v886_v5 = vsel %vm5631_vm5, %v4227_v44, %v885_v4  ;;  %v887_v61 = vrot.slane %v885_v4, 4  ;;  %v1888_v40 = vshll.u32 %v4336_v50, 16  ;;  %v1894_v20 = vshll.u32 %v4337_v0, 16 }
  0xed   : > { %v7288_v9 = vshrl.u32 %v6124_v12, 16  ;;  %2518 = vrot.lane.b32.xlu1 %v4481_v32, %s5240_s11  ;;  %3366 = vmatmul.mubr.bf16.gmra.mrb[12].mxu0 %v2731_v54  ;;  %v1887_v56 = vrot.slane %v1885_v16, 4  ;;  %v1898_v57 = vshrl.u32 %v4337_v0, 16  ;;  %v1904_v38 = vshll.u32 %v4354_v11, 16  ;;  %v4991_v54 = vld [vmem:[%s7245_s1 + $0xb8] sm:$0xff]  }
  0xee   : > { %v1138_v44 = vor.u32 %v6191_v8, %v6120_v35  ;;  %v889_v50 = vsel %vm5631_vm5, %v887_v61, %v888_v47  ;;  %4715 = vmatpush3.bf16.msra.mxu1 %v4988_v27  ;;  %v1890_v4 = vrot.slane %v1888_v40, 5  ;;  %v1896_v12 = vrot.slane %v1894_v20, 5  ;;  %v6276_v35 = vld [vmem:[%s5320_s10 + $0xbc] sm:$0x1]  ;;  %v5045_v27 = vld [vmem:[%s5320_s10 + $0x34] sm:$0xf] }
  0xef   : > { %v6262_v25 = vrot.slane %v7288_v9, 4  ;;  %v4435_v21 = vcombine.low %v886_v5, %v889_v50  ;;  %v2779_v0 = vsel %vm2716_vm6, %v4403_v2, %v6098_v13  ;;  %v1900_v11 = vrot.slane %v1898_v57, 4  ;;  %4716 = vmatprep.subr.bf16.mxu1 %v4989_v42  ;;  %v5046_v16 = vld [vmem:[%s5320_s10 + $0x38] sm:$0x1]  ;;  %v6283_v13 = vpop.permute.xlu1 %2640 }
  0xf0   : > { %v4216_v32 = vrot.slane %v715_v33, 9  ;;  %v1891_v8 = vor.u32 %v1890_v4, %v1887_v56  ;;  %v1906_v47 = vrot.slane %v1904_v38, 5  ;;  %v808_v41 = vrot.slane %v5045_v27, 5  ;;  %v5047_v9 = vld [vmem:[%s5320_s10 + $0xb8] sm:$0xf] }
  0xf1   : > { %v811_v61 = vrot.slane %v5046_v16, 5  ;;  %v2843_v40 = vsel %vm2716_vm6, %v4435_v21, %v6062_v60  ;;  %v1901_v20 = vor.u32 %v1900_v11, %v1896_v12  ;;  %v4306_v5 = vrot.slane %v4290_v22, 9  ;;  %v6288_v60 = vpop.permute.xlu0 %2232  ;;  %v5048_v22 = vld [vmem:[%s5320_s10 + $0x30] sm:$0xf]  ;;  %v4338_v16 = vld [vmem:[%s5320_s10 + $0xcc] sm:$0xf] }
  0xf2   : > { %v1487_v50 = vrot.slane %v5047_v9, 5  ;;  %3461 = vmatprep.mubr.bf16.mxu1 %v2843_v40  ;;  %v1892_v2 = vrot.slane %v1891_v8, 4  ;;  %v809_v42 = vsel %vm5631_vm5, %v4216_v32, %v808_v41  ;;  %v810_v33 = vrot.slane %v808_v41, 4  ;;  %4717 = vmatpush3.bf16.msra.mxu1 %v4991_v54  ;;  %v5049_v54 = vld [vmem:[%s5320_s10 + $0x18] sm:$0xf] }
  0xf3   : > { %v1490_v56 = vrot.slane %v6276_v35, 5  ;;  %3462 = vmatmul.mubr.bf16.gmra.mrb[12].mxu1 %v2779_v0  ;;  %v1902_v57 = vrot.slane %v1901_v20, 4  ;;  %v4392_v21 = vcombine.low %v5048_v22, %v5045_v27  ;;  %v6299_v8 = vld [vmem:[%s5320_s10 + $0x1c] sm:$0xf]  ;;  %v952_v41 = vsel %vm5359_vm2, %v5427_v7, %v5388_v14  ;;  %v4339_v20 = vld [vmem:[%s5320_s10 + $0xd0] sm:$0xf] }
  0xf4   : > { %v1488_v38 = vsel %vm5631_vm5, %v4306_v5, %v1487_v50  ;;  %v1489_v4 = vrot.slane %v1487_v50, 4  ;;  %v1897_v11 = vsel %vm5359_vm2, %v1892_v2, %v1896_v12  ;;  %v812_v32 = vsel %vm5631_vm5, %v810_v33, %v811_v61  ;;  %v4355_v5 = vld [vmem:[%s5320_s10 + $0xd4] sm:$0x1]  ;;  %v716_v22 = vld [vmem:[%s5320_s10 + $0x3c] sm:$0xe] }
  0xf5   : > { %v4484_v0 = vcombine.low %v5049_v54, %v6299_v8  ;;  %v1907_v27 = vsel %vm5359_vm2, %v1902_v57, %v1906_v47  ;;  %v4424_v40 = vcombine.low %v809_v42, %v812_v32  ;;  %v2735_v61 = vsel %vm2716_vm6, %v4392_v21, %v6149_v43  ;;  %v4291_v32 = vld [vmem:[%s5320_s10 + $0xc0] sm:$0xe]  ;;  %v6337_v54 = vld [vmem:[%s5320_s10 + $0x78] sm:$0xf] }
  0xf6   : > { %v1491_v12 = vsel %vm5631_vm5, %v1489_v4, %v1490_v56  ;;  %v4514_v9 = vcombine.low %v1897_v11, %v1907_v27  ;;  %v7289_v7 = vor.u32 %v5390_v1, %v5388_v14  ;;  %v7290_v42 = vshll.u32 %v5614_v36, 16 }
  0xf7   : > { %v4482_v50 = vcombine.low %v1488_v38, %v1491_v12  ;;  %v2911_v2 = vsel %vm2716_vm6, %v4484_v0, %v6140_v53  ;;  %v2799_v47 = vsel %vm2716_vm6, %v4424_v40, %v6109_v34  ;;  %v1909_v43 = vshrl.u32 %v4338_v16, 16  ;;  %v6325_v38 = vpop.permute.xlu1 %2496  ;;  %v6330_v34 = vpop.permute.xlu0 %2378  ;;  %v6341_v12 = vld [vmem:[%s5320_s10 + $0xc8] sm:$0x1] }
  0xf8   : > { %v957_v33 = vrot.slane %v7289_v7, 4  ;;  %3502 = vmatprep.mubr.bf16.mxu1 %v2911_v2  ;;  %v961_v56 = vrot.slane %v7290_v42, 5  ;;  %v1912_v57 = vshll.u32 %v4338_v16, 16  ;;  %v6327_v4 = vrot.slane %v1138_v44, 4  ;;  %2664 = vrot.lane.b32.xlu0 %v4514_v9, %s5240_s11 }
  0xf9   : > { %3373 = vmatprep.mubr.bf16.mxu0 %v2799_v47  ;;  %v1918_v14 = vshll.u32 %v4339_v20, 16  ;;  %v1922_v1 = vshrl.u32 %v4339_v20, 16  ;;  %v1928_v53 = vshll.u32 %v4355_v5, 16  ;;  %2520 = vrot.lane.b32.xlu1 %v4482_v50, %s5240_s11  ;;  %v1911_v21 = vrot.slane %v1909_v43, 4  ;;  %v5052_v5 = vld [vmem:[%s5320_s10 + $0x40] sm:$0xf] }
  0xfa   : > { %3374 = vmatmul.mubr.bf16.gmra.mrb[16].mxu0 %v2735_v61  ;;  %v962_v36 = vsel %vm5359_vm2, %v957_v33, %v961_v56  ;;  %v1914_v44 = vrot.slane %v1912_v57, 5  ;;  %v4217_v11 = vrot.slane %v716_v22, 9  ;;  %v1156_v0 = vshrl.u32 %v6337_v54, 16  ;;  %v5053_v50 = vld [vmem:[%s5320_s10 + $0x44] sm:$0x1] }
  0xfb   : > { %v4452_v16 = vcombine.low %v952_v41, %v962_v36  ;;  %v1920_v27 = vrot.slane %v1918_v14, 5  ;;  %v1924_v40 = vrot.slane %v1922_v1, 4  ;;  %v1930_v61 = vrot.slane %v1928_v53, 5  ;;  %v6348_v47 = vld [vmem:[%s5320_s10 + $0xc4] sm:$0xf]  ;;  %v6354_v14 = vpop.permute.xlu1 %2642 }
  0xfc   : > { %v1915_v20 = vor.u32 %v1914_v44, %v1911_v21  ;;  %v815_v9 = vrot.slane %v5052_v5, 5  ;;  %v818_v2 = vrot.slane %v5053_v50, 5  ;;  %v4307_v22 = vrot.slane %v4291_v32, 9  ;;  %v5055_v36 = vld [vmem:[%s5320_s10 + $0x3c] sm:$0xf]  ;;  %v6359_v44 = vpop.permute.xlu0 %2234 }
  0xfd   : > { %v2847_v7 = vsel %vm2716_vm6, %v4452_v16, %v6176_v58  ;;  %v1925_v33 = vor.u32 %v1924_v40, %v1920_v27  ;;  %v1494_v41 = vrot.slane %v6348_v47, 5  ;;  %v1497_v57 = vrot.slane %v6341_v12, 5  ;;  %v5056_v16 = vld [vmem:[%s5320_s10 + $0x24] sm:$0xf]  ;;  %v5057_v40 = vld [vmem:[%s5320_s10 + $0x28] sm:$0xf] }
  0xfe   : > { %3503 = vmatmul.mubr.bf16.vlgmr.msra.gmra.mrb[16].mxu1 %v2847_v7  ;;  %v1916_v42 = vrot.slane %v1915_v20, 4  ;;  %v816_v56 = vsel %vm5631_vm5, %v4217_v11, %v815_v9  ;;  %v817_v43 = vrot.slane %v815_v9, 4  ;;  %v4393_v21 = vcombine.low %v5055_v36, %v5052_v5  ;;  %v717_v7 = vld [vmem:[%s5320_s10 + $0x48] sm:$0xe] }
  0xff   : > { %v1926_v58 = vrot.slane %v1925_v33, 4  ;;  %v1495_v1 = vsel %vm5631_vm5, %v4307_v22, %v1494_v41  ;;  %v1496_v53 = vrot.slane %v1494_v41, 4  ;;  %v4485_v20 = vcombine.low %v5056_v16, %v5057_v40 }
 0x100   : > { %v1921_v32 = vsel %vm5359_vm2, %v1916_v42, %v1920_v27  ;;  %v819_v11 = vsel %vm5631_vm5, %v817_v43, %v818_v2  ;;  %v7291_v9 = vshll.u32 %v5351_v17, 16  ;;  %v1159_v33 = vshll.u32 %v6337_v54, 16  ;;  %v718_v43 = vld [vmem:[%s5320_s10 + $0x54] sm:$0xe] }
 0x101   : > { %v1931_v5 = vsel %vm5359_vm2, %v1926_v58, %v1930_v61  ;;  %v4425_v22 = vcombine.low %v816_v56, %v819_v11  ;;  %v1498_v27 = vsel %vm5631_vm5, %v1496_v53, %v1497_v57  ;;  %v2739_v42 = vsel %vm2716_vm6, %v4393_v21, %v6222_v15  ;;  %v5058_v15 = vld [vmem:[%s5320_s10 + $0x4c] sm:$0xf]  ;;  %v6392_v11 = vld [vmem:[%s5320_s10 + $0x34] sm:$0xf] }
 0x102   : > { %v975_v50 = vrot.slane %v7291_v9, 5  ;;  %v4515_v41 = vcombine.low %v1921_v32, %v1931_v5  ;;  %v4483_v2 = vcombine.low %v1495_v1, %v1498_v27  ;;  %v2915_v17 = vsel %vm2716_vm6, %v4485_v20, %v6217_v37  ;;  %v5059_v37 = vld [vmem:[%s5320_s10 + $0x50] sm:$0x1]  ;;  %v6403_v9 = vpop.permute.xlu0 %2380 }
 0x103   : > { %v2803_v61 = vsel %vm2716_vm6, %v4425_v22, %v6185_v62  ;;  %3510 = vmatprep.mubr.bf16.mxu1 %v2915_v17  ;;  %v7292_v57 = vshll.u32 %v5681_v55, 16  ;;  %v4218_v53 = vrot.slane %v717_v7, 9  ;;  %v6385_v1 = vrot.slane %v1156_v0, 4  ;;  %v5060_v32 = vld [vmem:[%s5320_s10 + $0x30] sm:$0xf] }
 0x104   : > { %v980_v56 = vor.u32 %v5512_v46, %v975_v50  ;;  %2666 = vrot.lane.b32.xlu0 %v4515_v41, %s5240_s11  ;;  %3381 = vmatprep.mubr.bf16.mxu0 %v2803_v61  ;;  %v822_v36 = vrot.slane %v5058_v15, 5  ;;  %v825_v21 = vrot.slane %v5059_v37, 5  ;;  %v4486_v62 = vcombine.low %v5060_v32, %v6392_v11  ;;  %v6395_v46 = vpop.permute.xlu1 %2498  ;;  %v5062_v22 = vld [vmem:[%s5320_s10 + $0x48] sm:$0xf] }
 0x105   : > { %v985_v58 = vrot.slane %v7292_v57, 5  ;;  %2522 = vrot.lane.b32.xlu1 %v4483_v2, %s5240_s11  ;;  %3382 = vmatmul.mubr.bf16.gmra.mrb[20].mxu0 %v2739_v42  ;;  %v976_v55 = vsel %vm5359_vm2, %v5522_v52, %v975_v50  ;;  %v7293_v16 = vshll.u32 %v5403_v26, 16  ;;  %v4219_v20 = vrot.slane %v718_v43, 9  ;;  %v5063_v42 = vld [vmem:[%s5320_s10 + $0x58] sm:$0xf] }
 0x106   : > { %v981_v0 = vrot.slane %v980_v56, 4  ;;  %v823_v7 = vsel %vm5631_vm5, %v4218_v53, %v822_v36  ;;  %v824_v5 = vrot.slane %v822_v36, 4  ;;  %v4394_v27 = vcombine.low %v5062_v22, %v5058_v15  ;;  %v5064_v56 = vld [vmem:[%s5320_s10 + $0x5c] sm:$0x1]  ;;  %v5065_v36 = vld [vmem:[%s5320_s10 + $0x44] sm:$0x1] }
 0x107   : > { %v999_v40 = vrot.slane %v7293_v16, 5  ;;  %v7294_v41 = vshll.u32 %v5728_v19, 16  ;;  %v2919_v26 = vsel %vm2716_vm6, %v4486_v62, %v6283_v13  ;;  %v829_v17 = vrot.slane %v5063_v42, 5 }
 0x108   : > { %v986_v52 = vsel %vm5359_vm2, %v981_v0, %v985_v58  ;;  %v826_v61 = vsel %vm5631_vm5, %v824_v5, %v825_v21  ;;  %v832_v57 = vrot.slane %v5064_v56, 5  ;;  %v1055_v37 = vshll.u32 %v5065_v36, 16  ;;  %v5067_v5 = vld [vmem:[%s5320_s10 + $0x3c] sm:$0xf] }
 0x109   : > { %v1009_v2 = vrot.slane %v7294_v41, 5  ;;  %v1004_v50 = vor.u32 %v5611_v6, %v999_v40  ;;  %v4453_v43 = vcombine.low %v976_v55, %v986_v52  ;;  %v1000_v19 = vsel %vm5359_vm2, %v5620_v18, %v999_v40  ;;  %v719_v6 = vld [vmem:[%s5320_s10 + $0x60] sm:$0xe]  ;;  %v6432_v55 = vpop.permute.xlu1 %2644  ;;  %v5066_v40 = vld [vmem:[%s5320_s10 + $0x54] sm:$0xf] }
 0x10a   : > { %v4426_v53 = vcombine.low %v823_v7, %v826_v61  ;;  %v830_v13 = vsel %vm5631_vm5, %v4219_v20, %v829_v17  ;;  %v831_v15 = vrot.slane %v829_v17, 4  ;;  %v2743_v18 = vsel %vm2716_vm6, %v4394_v27, %v6288_v60  ;;  %v6441_v60 = vpop.permute.xlu0 %2236 }
 0x10b   : > { %v1005_v58 = vrot.slane %v1004_v50, 4  ;;  %v2851_v21 = vsel %vm2716_vm6, %v4453_v43, %v6252_v31  ;;  %v7295_v32 = vshll.u32 %v5463_v39, 16  ;;  %v4395_v20 = vcombine.low %v5066_v40, %v5063_v42  ;;  %v6452_v50 = vld [vmem:[%s5320_s10 + $0x64] sm:$0xf]  ;;  %v720_v43 = vld [vmem:[%s5320_s10 + $0x6c] sm:$0xe] }
 0x10c   : > { %3511 = vmatmul.mubr.bf16.gmra.mrb[20].mxu1 %v2851_v21  ;;  %v2807_v0 = vsel %vm2716_vm6, %v4426_v53, %v6258_v24  ;;  %v833_v31 = vsel %vm5631_vm5, %v831_v15, %v832_v57  ;;  %v6445_v24 = vld [vmem:[%s5320_s10 + $0x40] sm:$0xf]  ;;  %v4220_v27 = vrot.slane %v719_v6, 9  ;;  %v836_v42 = vrot.slane %v6452_v50, 5 }
 0x10d   : > { %v1023_v62 = vrot.slane %v7295_v32, 5  ;;  %v1010_v16 = vsel %vm5359_vm2, %v1005_v58, %v1009_v2  ;;  %3389 = vmatprep.mubr.bf16.mxu0 %v2807_v0  ;;  %3518 = vmatprep.mubr.bf16.mxu1 %v2919_v26  ;;  %v4427_v7 = vcombine.low %v830_v13, %v833_v31  ;;  %v4487_v22 = vcombine.low %v5067_v5, %v6445_v24  ;;  %v5070_v26 = vld [vmem:[%s5320_s10 + $0x68] sm:$0x1]  ;;  %v6477_v15 = vpop.permute.xlu1 %2500  ;;  %v6485_v0 = vld [vmem:[%s5320_s10 + $0x70] sm:$0xf] }
 0x10e   : > { %v4454_v39 = vcombine.low %v1000_v19, %v1010_v16  ;;  %3390 = vmatmul.mubr.bf16.gmra.mrb[24].mxu0 %v2743_v18  ;;  %v7296_v2 = vshll.u32 %v6194_v45, 16  ;;  %v839_v17 = vrot.slane %v5070_v26, 5  ;;  %v6459_v61 = vrot.slane %v1159_v33, 5  ;;  %v5071_v19 = vld [vmem:[%s5320_s10 + $0x50] sm:$0x1]  ;;  %v2383_v21 = vpop.permute.xlu0 %2382 }
 0x10f   : > { %v1028_v41 = vor.u32 %v5684_v23, %v1023_v62  ;;  %v1079_v56 = vshll.u32 %v5071_v19, 16  ;;  %v2811_v57 = vsel %vm2716_vm6, %v4427_v7, %v6330_v34  ;;  %v1024_v23 = vsel %vm5359_vm2, %v5713_v49, %v1023_v62  ;;  %v6490_v31 = vld [vmem:[%s5320_s10 + $0x7c] sm:$0xf]  ;;  %v721_v26 = vld [vmem:[%s5320_s10 + $0x78] sm:$0xe] }
 0x110   : > { %v1033_v52 = vrot.slane %v7296_v2, 5  ;;  %3397 = vmatprep.mubr.bf16.mxu0 %v2811_v57  ;;  %v837_v53 = vsel %vm5631_vm5, %v4220_v27, %v836_v42  ;;  %v838_v58 = vrot.slane %v836_v42, 4  ;;  %v7297_v54 = vshll.u32 %v5536_v59, 16  ;;  %v5078_v57 = vld [vmem:[%s5320_s10 + $0x5c] sm:$0x1] }
 0x111   : > { %v1029_v45 = vrot.slane %v1028_v41, 4  ;;  %v2855_v13 = vsel %vm2716_vm6, %v4454_v39, %v6325_v38  ;;  %v2747_v34 = vsel %vm2716_vm6, %v4395_v20, %v6359_v44  ;;  %v2923_v49 = vsel %vm2716_vm6, %v4487_v22, %v6354_v14  ;;  %v5073_v14 = vld [vmem:[%s5320_s10 + $0x74] sm:$0x1] }
 0x112   : > { %v1047_v33 = vrot.slane %v7297_v54, 5  ;;  %v4221_v6 = vrot.slane %v720_v43, 9  ;;  %v840_v59 = vsel %vm5631_vm5, %v838_v58, %v839_v17  ;;  %v1057_v38 = vrot.slane %v1055_v37, 5  ;;  %v6515_v43 = vpop.permute.xlu1 %2646  ;;  %v6524_v54 = vld [vmem:[%s5320_s10 + $0x7c] sm:$0xf] }
 0x113   : > { %v1034_v36 = vsel %vm5359_vm2, %v1029_v45, %v1033_v52  ;;  %v4428_v62 = vcombine.low %v837_v53, %v840_v59  ;;  %v843_v44 = vrot.slane %v6485_v0, 5  ;;  %v846_v16 = vrot.slane %v5073_v14, 5  ;;  %v6509_v52 = vld [vmem:[%s5320_s10 + $0x4c] sm:$0xf]  ;;  %v2239_v53 = vpop.permute.xlu0 %2238  ;;  %v5081_v14 = vld [vmem:[%s5320_s10 + $0x84] sm:$0xf] }
 0x114   : > { %v1052_v18 = vor.u32 %v5731_v30, %v1047_v33  ;;  %v4455_v32 = vcombine.low %v1024_v23, %v1034_v36  ;;  %v1165_v40 = vshll.u32 %v6490_v31, 16  ;;  %3519 = vmatmul.mubr.bf16.gmra.mrb[24].mxu1 %v2855_v13  ;;  %v1048_v30 = vsel %vm5359_vm2, %v5754_v51, %v1047_v33  ;;  %v5075_v51 = vld [vmem:[%s5320_s10 + $0x60] sm:$0xf]  ;;  %v7300_v13 = vld [vmem:[#allocation20_spill] sm:$0xff] }
 0x115   : > { %v7298_v20 = vshll.u32 %v5606_v3, 16  ;;  %v1169_v7 = vshrl.u32 %v6490_v31, 16  ;;  %3526 = vmatprep.mubr.bf16.mxu1 %v2923_v49  ;;  %v2815_v5 = vsel %vm2716_vm6, %v4428_v62, %v6403_v9  ;;  %v844_v22 = vsel %vm5631_vm5, %v4221_v6, %v843_v44  ;;  %v5076_v3 = vld [vmem:[%s5320_s10 + $0x48] sm:$0xf]  ;;  %v5080_v36 = vld [vmem:[%s5320_s10 + $0x80] sm:$0x1] }
 0x116   : > { %v1053_v37 = vrot.slane %v1052_v18, 4  ;;  %v845_v27 = vrot.slane %v843_v44, 4  ;;  %v1162_v41 = vor.u32 %v6459_v61, %v6385_v1  ;;  %3398 = vmatmul.mubr.bf16.gmra.mrb[28].mxu0 %v2747_v34  ;;  %v4396_v2 = vcombine.low %v5075_v51, %v6452_v50  ;;  %v7299_v61 = vld [vmem:[#allocation19_spill] sm:$0xff] }
 0x117   : > { %v1071_v39 = vrot.slane %v7298_v20, 5  ;;  %v4488_v42 = vcombine.low %v5076_v3, %v6509_v52  ;;  %3405 = vmatprep.mubr.bf16.mxu0 %v2815_v5  ;;  %v1081_v19 = vrot.slane %v1079_v56, 5  ;;  %v1103_v23 = vshll.u32 %v5078_v57, 16 }
 0x118   : > { %v1058_v9 = vsel %vm5359_vm2, %v1053_v37, %v1057_v38  ;;  %v847_v1 = vsel %vm5631_vm5, %v845_v27, %v846_v16  ;;  %v2859_v45 = vsel %vm2716_vm6, %v4455_v32, %v6395_v46  ;;  %v850_v33 = vrot.slane %v6524_v54, 5  ;;  %v7301_v38 = vld [vmem:[#allocation17_spill] sm:$0xff] }
 0x119   : > { %v4456_v17 = vcombine.low %v1048_v30, %v1058_v9  ;;  %v1076_v50 = vor.u32 %v7299_v61, %v1071_v39  ;;  %v4429_v58 = vcombine.low %v844_v22, %v847_v1  ;;  %v1072_v34 = vsel %vm5359_vm2, %v7300_v13, %v1071_v39  ;;  %v7303_v39 = vld [vmem:[#allocation21_spill] sm:$0xff]  ;;  %v5082_v22 = vld [vmem:[%s5320_s10 + $0x68] sm:$0x1]  ;;  %v5084_v9 = vld [vmem:[%s5320_s10 + $0x54] sm:$0xf]  ;;  %v2385_v61 = vpop.permute.xlu0 %2384 }
 0x11a   : > { %v4222_v6 = vrot.slane %v721_v26, 9  ;;  %v853_v56 = vrot.slane %v5080_v36, 5  ;;  %v6531_v59 = vrot.slane %v1169_v7, 4  ;;  %v2927_v46 = vsel %vm2716_vm6, %v4488_v42, %v6432_v55  ;;  %v6562_v26 = vld [vmem:[%s5320_s10 + $0x58] sm:$0xf] }
 0x11b   : > { %v1077_v49 = vrot.slane %v1076_v50, 4  ;;  %v852_v18 = vrot.slane %v850_v33, 4  ;;  %v7302_v32 = vshll.u32 %v7301_v38, 16  ;;  %v6537_v44 = vrot.slane %v1162_v41, 4  ;;  %v6549_v41 = vpop.permute.xlu1 %2502  ;;  %v7304_v50 = vld [vmem:[#allocation22_spill] sm:$0xff] }
 0x11c   : > { %v1180_v16 = vshrl.u32 %v5081_v14, 16  ;;  %v2751_v30 = vsel %vm2716_vm6, %v4396_v2, %v6441_v60  ;;  %3527 = vmatmul.mubr.bf16.gmra.mrb[28].mxu1 %v2859_v45  ;;  %v2819_v55 = vsel %vm2716_vm6, %v4429_v58, %v2383_v21  ;;  %v1105_v5 = vrot.slane %v1103_v23, 5  ;;  %v722_v2 = vld [vmem:[%s5320_s10 + $0x84] sm:$0xe]  ;;  %v6557_v21 = vld [vmem:[%s5320_s10 + $0x88] sm:$0xf] }
 0x11d   : > { %v1095_v62 = vrot.slane %v7302_v32, 5  ;;  %v1082_v37 = vsel %vm5359_vm2, %v1077_v49, %v1081_v19  ;;  %v1127_v27 = vshll.u32 %v5082_v22, 16  ;;  %3534 = vmatprep.mubr.bf16.mxu1 %v2927_v46  ;;  %v851_v60 = vsel %vm5631_vm5, %v4222_v6, %v850_v33  ;;  %v5086_v58 = vld [vmem:[%s5320_s10 + $0x6c] sm:$0xf] }
 0x11e   : > { %v6545_v20 = vcombine.low %v1072_v34, %v1082_v37  ;;  %v854_v51 = vsel %vm5631_vm5, %v852_v18, %v853_v56  ;;  %v857_v3 = vrot.slane %v6557_v21, 5  ;;  %v1183_v42 = vshll.u32 %v5081_v14, 16  ;;  %3406 = vmatmul.mubr.bf16.gmra.mrb[32].mxu0 %v2751_v30  ;;  %v5087_v56 = vld [vmem:[%s5320_s10 + $0x8c] sm:$0x1] }
 0x11f   : > { %v1100_v7 = vor.u32 %v7303_v39, %v1095_v62  ;;  %v4489_v1 = vcombine.low %v5084_v9, %v6562_v26  ;;  %v1096_v19 = vsel %vm5359_vm2, %v7304_v50, %v1095_v62  ;;  %v6568_v23 = vrot.slane %v1180_v16, 4  ;;  %3413 = vmatprep.mubr.bf16.mxu0 %v2819_v55  ;;  %v6583_v62 = vld [vmem:[%s5320_s10 + $0x88] sm:$0xf]  ;;  %v2649_v37 = vpop.permute.xlu1 %2648  ;;  %v6599_v9 = vld [vmem:[%s5320_s10 + $0x64] sm:$0xf] }
 0x120   : > { %v2863_v45 = vsel %vm2716_vm6, %v4456_v17, %v6477_v15  ;;  %v4397_v33 = vcombine.low %v5086_v58, %v6485_v0  ;;  %v7305_v13 = vshll.u32 %v5719_v63, 16  ;;  %v4430_v49 = vcombine.low %v851_v60, %v854_v51  ;;  %v5089_v0 = vld [vmem:[%s5320_s10 + $0x74] sm:$0x1]  ;;  %v7306_v55 = vld [vmem:[#allocation23_spill] sm:$0xff] }
 0x121   : > { %v1101_v57 = vrot.slane %v1100_v7, 4  ;;  %v4223_v36 = vrot.slane %v722_v2, 9  ;;  %v860_v46 = vrot.slane %v5087_v56, 5  ;;  %v859_v38 = vrot.slane %v857_v3, 4  ;;  %v7307_v7 = vld [vmem:[#allocation18_spill] sm:$0xff]  ;;  %v2241_v2 = vpop.permute.xlu0 %2240 }
 0x122   : > { %v1119_v34 = vrot.slane %v7305_v13, 5  ;;  %v1129_v17 = vrot.slane %v1127_v27, 5  ;;  %v1185_v32 = vrot.slane %v1183_v42, 5  ;;  %v1193_v63 = vshrl.u32 %v6583_v62, 16  ;;  %v5090_v27 = vld [vmem:[%s5320_s10 + $0x90] sm:$0xf] }
 0x123   : > { %v1106_v6 = vsel %vm5359_vm2, %v1101_v57, %v1105_v5  ;;  %v1151_v14 = vshll.u32 %v5089_v0, 16  ;;  %v2931_v16 = vsel %vm2716_vm6, %v4489_v1, %v6515_v43  ;;  %v2755_v30 = vsel %vm2716_vm6, %v4397_v33, %v2239_v53  ;;  %v5091_v43 = vld [vmem:[%s5320_s10 + $0x60] sm:$0xf] }
 0x124   : > { %v6579_v18 = vcombine.low %v1096_v19, %v1106_v6  ;;  %v1124_v15 = vor.u32 %v5972_v10, %v1119_v34  ;;  %v1120_v10 = vsel %vm5359_vm2, %v7306_v55, %v1119_v34  ;;  %v7308_v5 = vshll.u32 %v7307_v7, 16  ;;  %3535 = vmatmul.mubr.bf16.gmra.mrb[32].mxu1 %v2863_v45  ;;  %v5093_v57 = vld [vmem:[%s5320_s10 + $0x80] sm:$0x1]  ;;  %v5097_v7 = vld [vmem:[%s5320_s10 + $0x94] sm:$0xf] }
 0x125   : > { %v1204_v60 = vshrl.u32 %v5090_v27, 16  ;;  %v1207_v51 = vshll.u32 %v5090_v27, 16  ;;  %v2823_v42 = vsel %vm2716_vm6, %v4430_v49, %v2385_v61  ;;  %v4490_v53 = vcombine.low %v5091_v43, %v6599_v9  ;;  %3542 = vmatprep.mubr.bf16.mxu1 %v2931_v16  ;;  %v5094_v49 = vld [vmem:[%s5320_s10 + $0x78] sm:$0xf]  ;;  %v7309_v27 = vld [vmem:[#allocation15_spill] sm:$0xff] }
 0x126   : > { %v1125_v39 = vrot.slane %v1124_v15, 4  ;;  %v1143_v22 = vrot.slane %v7308_v5, 5  ;;  %v858_v1 = vsel %vm5631_vm5, %v4223_v36, %v857_v3  ;;  %v861_v50 = vsel %vm5631_vm5, %v859_v38, %v860_v46  ;;  %3414 = vmatmul.mubr.bf16.gmra.mrb[36].mxu0 %v2755_v30  ;;  %v4356_v46 = vld [vmem:[%s5320_s10 + $0x18] sm:$0xe]  ;;  %v5095_v30 = vld [vmem:[%s5320_s10 + $0x8c] sm:$0x1] }
 0x127   : > { %v1175_v45 = vshll.u32 %v5093_v57, 16  ;;  %v1153_v13 = vrot.slane %v1151_v14, 5  ;;  %v1189_v3 = vshll.u32 %v6583_v62, 16  ;;  %v6616_v34 = vrot.slane %v1193_v63, 4  ;;  %3421 = vmatprep.mubr.bf16.mxu0 %v2823_v42  ;;  %v5098_v42 = vld [vmem:[%s5320_s10 + $0x6c] sm:$0xf] }
 0x128   : > { %v1130_v19 = vsel %vm5359_vm2, %v1125_v39, %v1129_v17  ;;  %v1144_v61 = vsel %vm5359_vm2, %v6327_v4, %v1143_v22  ;;  %v1148_v33 = vor.u32 %v6262_v25, %v1143_v22  ;;  %v4398_v6 = vcombine.low %v5094_v49, %v6524_v54  ;;  %v2505_v54 = vpop.permute.xlu1 %2504  ;;  %v6646_v43 = vld [vmem:[%s5320_s10 + $0x70] sm:$0xf] }
 0x129   : > { %v6612_v58 = vcombine.low %v1120_v10, %v1130_v19  ;;  %v1998_v36 = vrot.slane %v6299_v8, 5  ;;  %v1186_v4 = vor.u32 %v1185_v32, %v6568_v23  ;;  %v4431_v56 = vcombine.low %v858_v1, %v861_v50  ;;  %v2387_v8 = vpop.permute.xlu0 %2386  ;;  %v5100_v19 = vld [vmem:[%s5320_s10 + $0x84] sm:$0xf] }
 0x12a   : > { %v1149_v38 = vrot.slane %v1148_v33, 4  ;;  %v1167_v15 = vrot.slane %v1165_v40, 5  ;;  %v1206_v25 = vrot.slane %v1204_v60, 4  ;;  %v1209_v17 = vrot.slane %v1207_v51, 5 }
 0x12b   : > { %v2867_v62 = vsel %vm2716_vm6, %v6545_v20, %v6549_v41  ;;  %v2935_v63 = vsel %vm2716_vm6, %v4490_v53, %v2649_v37  ;;  %v1177_v32 = vrot.slane %v1175_v45, 5  ;;  %v2759_v0 = vsel %vm2716_vm6, %v4398_v6, %v2241_v2  ;;  %v7311_v45 = vld [vmem:[#allocation11_spill] sm:$0xff] }
 0x12c   : > { %v1154_v23 = vsel %vm5359_vm2, %v1149_v38, %v1153_v13  ;;  %v1168_v31 = vsel %vm5359_vm2, %v6537_v44, %v1167_v15  ;;  %v1172_v40 = vor.u32 %v6531_v59, %v1167_v15  ;;  %v4372_v14 = vrot.slane %v4356_v46, 9  ;;  %3543 = vmatmul.mubr.bf16.gmra.mrb[36].mxu1 %v2867_v62  ;;  %v5096_v44 = vld [vmem:[%s5320_s10 + $0x2c] sm:$0x1]  ;;  %v2651_v50 = vpop.permute.xlu1 %2650 }
 0x12d   : > { %v2000_v20 = vrot.slane %v1998_v36, 4  ;;  %v6636_v41 = vcombine.low %v1144_v61, %v1154_v23  ;;  %v1187_v16 = vrot.slane %v1186_v4, 4  ;;  %v1199_v37 = vshll.u32 %v5095_v30, 16  ;;  %3550 = vmatprep.mubr.bf16.mxu1 %v2935_v63  ;;  %v2243_v6 = vpop.permute.xlu0 %2242  ;;  %v4358_v4 = vld [vmem:[%s5320_s10 + $0x30] sm:$0xe] }
 0x12e   : > { %v2827_v55 = vsel %vm2716_vm6, %v4431_v56, %v2387_v8  ;;  %v1173_v10 = vrot.slane %v1172_v40, 4  ;;  %v2008_v39 = vrot.slane %v5096_v44, 5  ;;  %v1210_v59 = vor.u32 %v1209_v17, %v1206_v25  ;;  %3422 = vmatmul.mubr.bf16.gmra.mrb[40].mxu0 %v2759_v0  ;;  %v5101_v8 = vld [vmem:[%s5320_s10 + $0x98] sm:$0x1]  ;;  %v6684_v44 = vld [vmem:[%s5320_s10 + $0x7c] sm:$0xf] }
 0x12f   : > { %v1217_v5 = vshrl.u32 %v5097_v7, 16  ;;  %v1191_v22 = vrot.slane %v1189_v3, 5  ;;  %v7310_v60 = vrot.slane %v7309_v27, 5  ;;  %v1213_v2 = vshll.u32 %v5097_v7, 16  ;;  %3429 = vmatprep.mubr.bf16.mxu0 %v2827_v55  ;;  %v4357_v3 = vld [vmem:[%s5320_s10 + $0x24] sm:$0xe] }
 0x130   : > { %v4491_v53 = vcombine.low %v5098_v42, %v6646_v43  ;;  %v1178_v1 = vsel %vm5359_vm2, %v1173_v10, %v1177_v32  ;;  %v4399_v61 = vcombine.low %v5100_v19, %v6557_v21  ;;  %v1999_v57 = vsel %vm5631_vm5, %v4372_v14, %v1998_v36  ;;  %v7313_v36 = vld [vmem:[#allocation10_spill] sm:$0xff]  ;;  %v5103_v10 = vld [vmem:[%s5320_s10 + $0x78] sm:$0xf] }
 0x131   : > { %v2007_v51 = vrot.slane %v7310_v60, 4  ;;  %v7312_v33 = vrot.slane %v7311_v45, 5  ;;  %v6660_v49 = vcombine.low %v1168_v31, %v1178_v1  ;;  %v2012_v56 = vrot.slane %v6392_v11, 5  ;;  %v5105_v1 = vld [vmem:[%s5320_s10 + $0xc0] sm:$0xf] }
 0x132   : > { %v1192_v46 = vsel %vm5359_vm2, %v1187_v16, %v1191_v22  ;;  %v1196_v21 = vor.u32 %v6616_v34, %v1191_v22  ;;  %v1201_v38 = vrot.slane %v1199_v37, 5  ;;  %v7314_v15 = vshrl.u32 %v7313_v36, 16  ;;  %v7315_v37 = vld [vmem:[#allocation24_spill] sm:$0xff] }
 0x133   : > { %v2002_v13 = vsel %vm5631_vm5, %v2000_v20, %v7312_v33  ;;  %v1211_v17 = vrot.slane %v1210_v59, 4  ;;  %v1219_v62 = vrot.slane %v1217_v5, 4  ;;  %v2871_v63 = vsel %vm2716_vm6, %v6579_v18, %v2505_v54  ;;  %v5102_v20 = vld [vmem:[%s5320_s10 + $0x38] sm:$0x1]  ;;  %v2507_v5 = vpop.permute.xlu1 %2506  ;;  %v4360_v33 = vld [vmem:[%s5320_s10 + $0x48] sm:$0xe] }
 0x134   : > { %v6669_v25 = vrot.slane %v7314_v15, 4  ;;  %v1223_v23 = vshll.u32 %v5101_v8, 16  ;;  %v2939_v11 = vsel %vm2716_vm6, %v4491_v53, %v2651_v50  ;;  %v4373_v31 = vrot.slane %v4357_v3, 9  ;;  %3551 = vmatmul.mubr.bf16.gmra.mrb[40].mxu1 %v2871_v63  ;;  %v7319_v63 = vld [vmem:[#allocation8_spill] sm:$0xff] }
 0x135   : > { %v1197_v40 = vrot.slane %v1196_v21, 4  ;;  %v2009_v34 = vsel %vm5631_vm5, %v2007_v51, %v2008_v39  ;;  %v2763_v32 = vsel %vm2716_vm6, %v4399_v61, %v2243_v6  ;;  %v4516_v0 = vcombine.low %v1999_v57, %v2002_v13  ;;  %3558 = vmatprep.mubr.bf16.mxu1 %v2939_v11  ;;  %v4359_v51 = vld [vmem:[%s5320_s10 + $0x3c] sm:$0xe]  ;;  %v2653_v57 = vpop.permute.xlu0 %2652  ;;  %v7317_v6 = vld [vmem:[#allocation6_spill] sm:$0xff]  ;;  %v5107_v11 = vld [vmem:[%s5320_s10 + $0x50] sm:$0x1] }
 0x136   : > { %v4374_v14 = vrot.slane %v4358_v4, 9  ;;  %v2015_v16 = vrot.slane %v5102_v20, 5  ;;  %v2014_v18 = vrot.slane %v2012_v56, 4  ;;  %v1215_v30 = vrot.slane %v1213_v2, 5  ;;  %3430 = vmatmul.mubr.bf16.gmra.mrb[44].mxu0 %v2763_v32 }
 0x137   : > { %v1202_v54 = vsel %vm5359_vm2, %v1197_v40, %v1201_v38  ;;  %v1247_v55 = vshll.u32 %v7315_v37, 16  ;;  %v4492_v39 = vcombine.low %v5103_v10, %v6684_v44  ;;  %v2019_v59 = vrot.slane %v6445_v24, 5  ;;  %v5106_v24 = vld [vmem:[%s5320_s10 + $0x44] sm:$0x1]  ;;  %4842 = vmatprep.mubr.msk.bf16.mxu0 %vm2716_vm6, %v4516_v0  ;;  %v7320_v0 = vld [vmem:[#allocation9_spill] sm:$0xff]  ;;  %v7324_v10 = vld [vmem:[#allocation7_spill] sm:$0xff] }
 0x138   : > { %v6688_v7 = vcombine.low %v1192_v46, %v1202_v54  ;;  %v7316_v22 = vmov %v7310_v60  ;;  %v1216_v2 = vsel %vm5359_vm2, %v1211_v17, %v1215_v30  ;;  %v1220_v42 = vor.u32 %v1219_v62, %v1215_v30 }
 0x139   : > { %v2006_v60 = vsel %vm5631_vm5, %v4373_v31, %v7316_v22  ;;  %v1225_v53 = vrot.slane %v1223_v23, 5  ;;  %v1300_v50 = vshrl.u32 %v5105_v1, 16  ;;  %v1303_v19 = vshll.u32 %v5105_v1, 16 }
 0x13a   : > { %v2022_v61 = vrot.slane %v5106_v24, 5  ;;  %v2013_v27 = vsel %vm5631_vm5, %v4374_v14, %v2012_v56  ;;  %v2016_v45 = vsel %vm5631_vm5, %v2014_v18, %v2015_v16  ;;  %v2026_v13 = vrot.slane %v6509_v52, 5  ;;  %v7321_v16 = vld [vmem:[#allocation16_spill] sm:$0xff]  ;;  %v7322_v18 = vld [vmem:[#allocation14_spill] sm:$0xff] }
 0x13b   : > { %v1221_v3 = vrot.slane %v1220_v42, 4  ;;  %v7318_v4 = vshll.u32 %v7317_v6, 16  ;;  %v2875_v21 = vsel %vm2716_vm6, %v6612_v58, %v2507_v5  ;;  %v4517_v38 = vcombine.low %v2006_v60, %v2009_v34  ;;  %v2509_v5 = vpop.permute.xlu1 %2508 }
 0x13c   : > { %v4375_v15 = vrot.slane %v4359_v51, 9  ;;  %v2021_v17 = vrot.slane %v2019_v59, 4  ;;  %v2943_v62 = vsel %vm2716_vm6, %v4492_v39, %v2653_v57  ;;  %v1249_v23 = vrot.slane %v1247_v55, 5  ;;  %3559 = vmatmul.mubr.bf16.gmra.mrb[44].mxu1 %v2875_v21  ;;  %v5108_v51 = vld [vmem:[%s5320_s10 + $0x84] sm:$0xf] }
 0x13d   : > { %v1239_v46 = vrot.slane %v7318_v4, 5  ;;  %v1226_v56 = vsel %vm5359_vm2, %v1221_v3, %v1225_v53  ;;  %v2029_v52 = vrot.slane %v5107_v11, 5  ;;  %v4518_v31 = vcombine.low %v2013_v27, %v2016_v45  ;;  %3566 = vmatprep.mubr.bf16.mxu1 %v2943_v62  ;;  %v7326_v45 = vld [vmem:[#allocation12_spill] sm:$0xff]  ;;  %v5110_v62 = vld [vmem:[%s5320_s10 + $0x5c] sm:$0x1] }
 0x13e   : > { %v4376_v40 = vrot.slane %v4360_v33, 9  ;;  %v6715_v32 = vcombine.low %v1216_v2, %v1226_v56  ;;  %v1271_v58 = vshll.u32 %v6206_v48, 16  ;;  %v2028_v34 = vrot.slane %v2026_v13, 4  ;;  %4843 = vmatmul.mubr.msk.bf16.vlgmr.msra.gmra.mrb[48].mxu0 %vm2716_vm6, %v4517_v38  ;;  %v6739_v2 = vld [vmem:[%s5320_s10 + $0x88] sm:$0xf] }
 0x13f   : > { %v1244_v8 = vor.u32 %v7319_v63, %v1239_v46  ;;  %v1240_v14 = vsel %vm5359_vm2, %v7320_v0, %v1239_v46  ;;  %v7323_v54 = vor.u32 %v7321_v16, %v7322_v18  ;;  %v6726_v37 = vrot.slane %v1300_v50, 4  ;;  %4846 = vmatprep.mubr.msk.bf16.mxu0 %vm2716_vm6, %v4518_v31  ;;  %v2655_v50 = vpop.permute.xlu0 %2654  ;;  %v5112_v18 = vld [vmem:[%s5320_s10 + $0x90] sm:$0xf] }
 0x140   : > { %v6728_v55 = vrot.slane %v1303_v19, 5  ;;  %v7325_v48 = vshll.u32 %v7324_v10, 16  ;;  %v2020_v22 = vsel %vm5631_vm5, %v4375_v15, %v2019_v59  ;;  %v2023_v60 = vsel %vm5631_vm5, %v2021_v17, %v2022_v61  ;;  %v4361_v19 = vld [vmem:[%s5320_s10 + $0x54] sm:$0xe]  ;;  %v7327_v15 = vld [vmem:[#allocation13_spill] sm:$0xff] }
 0x141   : > { %v1245_v20 = vrot.slane %v1244_v8, 4  ;;  %v6724_v30 = vrot.slane %v7323_v54, 4  ;;  %v4493_v42 = vcombine.low %v5108_v51, %v6739_v2  ;;  %v1309_v1 = vshll.u32 %v6348_v47, 16  ;;  %v6782_v54 = vld [vmem:[%s5320_s10 + $0x94] sm:$0xf] }
 0x142   : > { %v1263_v39 = vrot.slane %v7325_v48, 5  ;;  %v2027_v59 = vsel %vm5631_vm5, %v4376_v40, %v2026_v13  ;;  %v2033_v24 = vrot.slane %v6562_v26, 5  ;;  %v2030_v57 = vsel %vm5631_vm5, %v2028_v34, %v2029_v52  ;;  %v4362_v26 = vld [vmem:[%s5320_s10 + $0x60] sm:$0xe] }
 0x143   : > { %v1250_v53 = vsel %vm5359_vm2, %v1245_v20, %v1249_v23  ;;  %v2040_v27 = vrot.slane %v6599_v9, 5  ;;  %v1273_v3 = vrot.slane %v1271_v58, 5  ;;  %v1313_v6 = vshrl.u32 %v6348_v47, 16  ;;  %v5111_v23 = vld [vmem:[%s5320_s10 + $0x68] sm:$0x1]  ;;  %v2511_v20 = vpop.permute.xlu1 %2510 }
 0x144   : > { %v6750_v61 = vcombine.low %v1240_v14, %v1250_v53  ;;  %v1268_v33 = vor.u32 %v7326_v45, %v1263_v39  ;;  %v1295_v4 = vshll.u32 %v6276_v35, 16  ;;  %v2879_v13 = vsel %vm2716_vm6, %v6636_v41, %v2509_v5  ;;  %v5114_v53 = vld [vmem:[%s5320_s10 + $0x74] sm:$0x1] }
 0x145   : > { %v4519_v46 = vcombine.low %v2020_v22, %v2023_v60  ;;  %v2947_v21 = vsel %vm2716_vm6, %v4493_v42, %v2655_v50  ;;  %v4377_v38 = vrot.slane %v4361_v19, 9  ;;  %v1264_v9 = vsel %vm5359_vm2, %v7327_v15, %v1263_v39  ;;  %3567 = vmatmul.mubr.bf16.gmra.mrb[48].mxu1 %v2879_v13 }
 0x146   : > { %v1269_v17 = vrot.slane %v1268_v33, 4  ;;  %v2036_v56 = vrot.slane %v5110_v62, 5  ;;  %v4520_v63 = vcombine.low %v2027_v59, %v2030_v57  ;;  %v2035_v8 = vrot.slane %v2033_v24, 4  ;;  %3574 = vmatprep.mubr.bf16.mxu1 %v2947_v21  ;;  %v4364_v59 = vld [vmem:[%s5320_s10 + $0x78] sm:$0xe] }
 0x147   : > { %v7328_v47 = vshll.u32 %v7313_v36, 16  ;;  %v2043_v41 = vrot.slane %v5111_v23, 5  ;;  %v4378_v11 = vrot.slane %v4362_v26, 9  ;;  %v2042_v52 = vrot.slane %v2040_v27, 4  ;;  %4847 = vmatmul.mubr.msk.bf16.gmra.mrb[52].mxu0 %vm2716_vm6, %v4519_v46  ;;  %v2513_v26 = vpop.permute.xlu1 %2512  ;;  %v5116_v21 = vld [vmem:[%s5320_s10 + $0x9c] sm:$0xf] }
 0x148   : > { %v1274_v31 = vsel %vm5359_vm2, %v1269_v17, %v1273_v3  ;;  %v1306_v40 = vor.u32 %v6728_v55, %v6726_v37  ;;  %v1297_v34 = vrot.slane %v1295_v4, 5  ;;  %v1315_v0 = vrot.slane %v1313_v6, 4  ;;  %4850 = vmatprep.mubr.msk.bf16.mxu0 %vm2716_vm6, %v4520_v63  ;;  %v2657_v55 = vpop.permute.xlu0 %2656  ;;  %v5115_v3 = vld [vmem:[%s5320_s10 + $0x80] sm:$0x1] }
 0x149   : > { %v1287_v35 = vrot.slane %v7328_v47, 5  ;;  %v6773_v58 = vcombine.low %v1264_v9, %v1274_v31  ;;  %v1319_v14 = vshll.u32 %v6341_v12, 16  ;;  %v2034_v16 = vsel %vm5631_vm5, %v4377_v38, %v2033_v24  ;;  %v4363_v12 = vld [vmem:[%s5320_s10 + $0x6c] sm:$0xe]  ;;  %v6813_v38 = vld [vmem:[%s5320_s10 + $0xa0] sm:$0xf] }
 0x14a   : > { %v4494_v37 = vcombine.low %v5112_v18, %v6782_v54  ;;  %v2047_v10 = vrot.slane %v6646_v43, 5  ;;  %v2041_v5 = vsel %vm5631_vm5, %v4378_v11, %v2040_v27  ;;  %v2044_v22 = vsel %vm5631_vm5, %v2042_v52, %v2043_v41  ;;  %v4366_v52 = vld [vmem:[%s5320_s10 + $0x90] sm:$0xe]  ;;  %v5118_v31 = vld [vmem:[%s5320_s10 + $0x8c] sm:$0x1] }
 0x14b   : > { %v1292_v36 = vor.u32 %v6669_v25, %v1287_v35  ;;  %v2037_v25 = vsel %vm5631_vm5, %v2035_v8, %v2036_v56  ;;  %v1288_v48 = vsel %vm5359_vm2, %v6724_v30, %v1287_v35  ;;  %v2054_v60 = vrot.slane %v6684_v44, 5  ;;  %v4365_v35 = vld [vmem:[%s5320_s10 + $0x84] sm:$0xe] }
 0x14c   : > { %v1311_v51 = vrot.slane %v1309_v1, 5  ;;  %v1307_v42 = vrot.slane %v1306_v40, 4  ;;  %v2050_v50 = vrot.slane %v5114_v53, 5  ;;  %v2883_v43 = vsel %vm2716_vm6, %v6660_v49, %v2511_v20  ;;  %v2659_v62 = vpop.permute.xlu0 %2658 }
 0x14d   : > { %v1293_v39 = vrot.slane %v1292_v36, 4  ;;  %v4521_v19 = vcombine.low %v2034_v16, %v2037_v25  ;;  %v2951_v24 = vsel %vm2716_vm6, %v4494_v37, %v2657_v55  ;;  %v4379_v57 = vrot.slane %v4363_v12, 9  ;;  %3575 = vmatmul.mubr.bf16.gmra.mrb[52].mxu1 %v2883_v43  ;;  %v5121_v37 = vld [vmem:[%s5320_s10 + $0xac] sm:$0xf]  ;;  %v5122_v43 = vld [vmem:[%s5320_s10 + $0xa4] sm:$0x1] }
 0x14e   : > { %v4522_v44 = vcombine.low %v2041_v5, %v2044_v22  ;;  %v2049_v1 = vrot.slane %v2047_v10, 4  ;;  %v1316_v45 = vor.u32 %v1315_v0, %v1311_v51  ;;  %v1321_v33 = vrot.slane %v1319_v14, 5  ;;  %3582 = vmatprep.mubr.bf16.mxu1 %v2951_v24  ;;  %v5119_v14 = vld [vmem:[%s5320_s10 + $0x98] sm:$0x1]  ;;  %v4367_v22 = vld [vmem:[%s5320_s10 + $0x9c] sm:$0xe] }
 0x14f   : > { %v1298_v30 = vsel %vm5359_vm2, %v1293_v39, %v1297_v34  ;;  %v2057_v6 = vrot.slane %v5115_v3, 5  ;;  %v4380_v49 = vrot.slane %v4364_v59, 9  ;;  %v2056_v4 = vrot.slane %v2054_v60, 4  ;;  %4851 = vmatmul.mubr.msk.bf16.gmra.mrb[56].mxu0 %vm2716_vm6, %v4521_v19  ;;  %v5125_v3 = vld [vmem:[%s5320_s10 + $0xb8] sm:$0xf] }
 0x150   : > { %v6805_v27 = vcombine.low %v1288_v48, %v1298_v30  ;;  %v1312_v13 = vsel %vm5359_vm2, %v1307_v42, %v1311_v51  ;;  %v1317_v46 = vrot.slane %v1316_v45, 4  ;;  %v4495_v15 = vcombine.low %v5116_v21, %v6813_v38  ;;  %4854 = vmatprep.mubr.msk.bf16.mxu0 %vm2716_vm6, %v4522_v44  ;;  %v4368_v42 = vld [vmem:[%s5320_s10 + $0xa8] sm:$0xe] }
 0x151   : > { %v2048_v9 = vsel %vm5631_vm5, %v4379_v57, %v2047_v10  ;;  %v2051_v17 = vsel %vm5631_vm5, %v2049_v1, %v2050_v50  ;;  %v2061_v56 = vrot.slane %v6739_v2, 5  ;;  %v2055_v8 = vsel %vm5631_vm5, %v4380_v49, %v2054_v60  ;;  %v5123_v57 = vld [vmem:[%s5320_s10 + $0xb0] sm:$0x1] }
 0x152   : > { %v1322_v63 = vsel %vm5359_vm2, %v1317_v46, %v1321_v33  ;;  %v2058_v47 = vsel %vm5631_vm5, %v2056_v4, %v2057_v6  ;;  %v2068_v23 = vrot.slane %v6782_v54, 5  ;;  %v2887_v11 = vsel %vm2716_vm6, %v6688_v7, %v2513_v26  ;;  %v2515_v7 = vpop.permute.xlu1 %2514  ;;  %v5120_v54 = vld [vmem:[%s5320_s10 + $0xa8] sm:$0xf]  ;;  %v5124_v33 = vld [vmem:[%s5320_s10 + $0xb4] sm:$0xf] }
 0x153   : > { %v6830_v41 = vcombine.low %v1312_v13, %v1322_v63  ;;  %v4523_v2 = vcombine.low %v2048_v9, %v2051_v17  ;;  %v2955_v29 = vsel %vm2716_vm6, %v4495_v15, %v2659_v62  ;;  %v2064_v40 = vrot.slane %v5118_v31, 5  ;;  %v2661_v10 = vpop.permute.xlu0 %2660  ;;  %v5126_v15 = vld [vmem:[%s5320_s10 + $0xc4] sm:$0xf]  ;;  %v4370_v62 = vld [vmem:[%s5320_s10 + $0xc0] sm:$0xe] }
 0x154   : > { %v4524_v36 = vcombine.low %v2055_v8, %v2058_v47  ;;  %v4381_v34 = vrot.slane %v4365_v35, 9  ;;  %v2063_v0 = vrot.slane %v2061_v56, 4  ;;  %v2071_v20 = vrot.slane %v5119_v14, 5  ;;  %v5127_v8 = vld [vmem:[%s5320_s10 + $0xbc] sm:$0x1] }
 0x155   : > { %3583 = vmatmul.mubr.bf16.gmra.mrb[56].mxu1 %v2887_v11  ;;  %v4382_v16 = vrot.slane %v4366_v52, 9  ;;  %v2070_v18 = vrot.slane %v2068_v23, 4  ;;  %v4496_v25 = vcombine.low %v5120_v54, %v5121_v37  ;;  %v2075_v48 = vrot.slane %v6813_v38, 5  ;;  %v4369_v38 = vld [vmem:[%s5320_s10 + $0xb4] sm:$0xe] }
 0x156   : > { %3590 = vmatprep.mubr.bf16.mxu1 %v2955_v29  ;;  %v2062_v55 = vsel %vm5631_vm5, %v4381_v34, %v2061_v56  ;;  %v2065_v12 = vsel %vm5631_vm5, %v2063_v0, %v2064_v40  ;;  %v2082_v60 = vrot.slane %v5121_v37, 5  ;;  %v2891_v51 = vsel %vm2716_vm6, %v6715_v32, %v2515_v7  ;;  %v2517_v32 = vpop.permute.xlu1 %2516  ;;  %v5128_v52 = vld [vmem:[%s5320_s10 + $0xc8] sm:$0x1]  ;;  %v5129_v34 = vld [vmem:[%s5320_s10 + $0xd0] sm:$0xf] }
 0x157   : > { %4855 = vmatmul.mubr.msk.bf16.gmra.mrb[60].mxu0 %vm2716_vm6, %v4523_v2  ;;  %v2069_v39 = vsel %vm5631_vm5, %v4382_v16, %v2068_v23  ;;  %v2072_v5 = vsel %vm5631_vm5, %v2070_v18, %v2071_v20  ;;  %v4525_v53 = vcombine.low %v2062_v55, %v2065_v12  ;;  %v2959_v50 = vsel %vm2716_vm6, %v4496_v25, %v2661_v10  ;;  %v4371_v16 = vld [vmem:[%s5320_s10 + $0xcc] sm:$0xe]  ;;  %v5130_v7 = vld [vmem:[%s5320_s10 + $0xc0] sm:$0xf]  ;;  %v5131_v25 = vld [vmem:[%s5320_s10 + $0xd4] sm:$0x1] }
 0x158   : > { %4858 = vmatprep.mubr.msk.bf16.mxu0 %vm2716_vm6, %v4524_v36  ;;  %v2078_v59 = vrot.slane %v5122_v43, 5  ;;  %v4526_v30 = vcombine.low %v2069_v39, %v2072_v5  ;;  %v4383_v19 = vrot.slane %v4367_v22, 9  ;;  %v2077_v24 = vrot.slane %v2075_v48, 4 }
 0x159   : > { %v2085_v44 = vrot.slane %v5123_v57, 5  ;;  %v4384_v1 = vrot.slane %v4368_v42, 9  ;;  %v2084_v45 = vrot.slane %v2082_v60, 4  ;;  %v4497_v6 = vcombine.low %v5124_v33, %v5125_v3 }
 0x15a   : > { %v2076_v49 = vsel %vm5631_vm5, %v4383_v19, %v2075_v48  ;;  %v2079_v4 = vsel %vm5631_vm5, %v2077_v24, %v2078_v59  ;;  %v2089_v13 = vrot.slane %v5125_v3, 5  ;;  %v2096_v9 = vrot.slane %v5126_v15, 5 }
 0x15b   : > { %v2083_v26 = vsel %vm5631_vm5, %v4384_v1, %v2082_v60  ;;  %v2086_v21 = vsel %vm5631_vm5, %v2084_v45, %v2085_v44  ;;  %v2895_v17 = vsel %vm2716_vm6, %v6750_v61, %v2517_v32  ;;  %v4527_v56 = vcombine.low %v2076_v49, %v2079_v4 }
 0x15c   : > { %v2092_v47 = vrot.slane %v5127_v8, 5  ;;  %v4528_v35 = vcombine.low %v2083_v26, %v2086_v21  ;;  %v4385_v23 = vrot.slane %v4369_v38, 9  ;;  %v2091_v11 = vrot.slane %v2089_v13, 4 }
 0x15d   : > { %3591 = vmatmul.mubr.bf16.gmra.mrb[60].mxu1 %v2891_v51  ;;  %v2099_v2 = vrot.slane %v5128_v52, 5  ;;  %v4386_v29 = vrot.slane %v4370_v62, 9  ;;  %v2098_v31 = vrot.slane %v2096_v9, 4  ;;  %v2103_v0 = vrot.slane %v5129_v34, 5 }
 0x15e   : > { %3598 = vmatprep.mubr.bf16.mxu1 %v2959_v50  ;;  %v2663_v46 = vpop.permute.xlu0 %2662  ;;  %v2090_v40 = vsel %vm5631_vm5, %v4385_v23, %v2089_v13  ;;  %v2093_v36 = vsel %vm5631_vm5, %v2091_v11, %v2092_v47  ;;  %v4498_v54 = vcombine.low %v5130_v7, %v5126_v15  ;;  %v2106_v55 = vrot.slane %v5131_v25, 5 }
 0x15f   : > { %4859 = vmatmul.mubr.msk.bf16.gmra.mrb[64].mxu0 %vm2716_vm6, %v4525_v53  ;;  %v2963_v63 = vsel %vm2716_vm6, %v4497_v6, %v2663_v46  ;;  %v2519_v61 = vpop.permute.xlu1 %2518  ;;  %v2097_v14 = vsel %vm5631_vm5, %v4386_v29, %v2096_v9  ;;  %v2100_v20 = vsel %vm5631_vm5, %v2098_v31, %v2099_v2  ;;  %v4529_v37 = vcombine.low %v2090_v40, %v2093_v36  ;;  %v5132_v53 = vld [vmem:[%s5320_s10 + $0xcc] sm:$0xf]  ;;  %s4584_s10 = sshll.u32 %s5221_s18, 8 }
 0x160   : > { %4862 = vmatprep.mubr.msk.bf16.mxu0 %vm2716_vm6, %v4526_v30  ;;  %v2899_v18 = vsel %vm2716_vm6, %v6773_v58, %v2519_v61  ;;  %v4530_v12 = vcombine.low %v2097_v14, %v2100_v20  ;;  %v4387_v10 = vrot.slane %v4371_v16, 9  ;;  %v2105_v48 = vrot.slane %v2103_v0, 4  ;;  %s7014_s11 = scalar_lea.vmem [#allocation2], %s4584_s10 }
 0x161   : > { %v4499_v50 = vcombine.low %v5132_v53, %v5129_v34 }
 0x162   : > { %v2104_v58 = vsel %vm5631_vm5, %v4387_v10, %v2103_v0  ;;  %v2107_v60 = vsel %vm5631_vm5, %v2105_v48, %v2106_v55 }
 0x163   : > { %v4531_v42 = vcombine.low %v2104_v58, %v2107_v60 }
 0x165   : > { %3599 = vmatmul.mubr.bf16.gmra.mrb[64].mxu1 %v2895_v17 }
 0x166   : > { %3606 = vmatprep.mubr.bf16.mxu1 %v2963_v63 }
 0x167   : > { %4863 = vmatmul.mubr.msk.bf16.gmra.mrb[68].mxu0 %vm2716_vm6, %v4527_v56 }
 0x168   : > { %4866 = vmatprep.mubr.msk.bf16.mxu0 %vm2716_vm6, %v4528_v35 }
 0x16a   : > { %v2665_v39 = vpop.permute.xlu0 %2664 }
 0x16b   : > { %v2967_v5 = vsel %vm2716_vm6, %v4498_v54, %v2665_v39  ;;  %v2521_v22 = vpop.permute.xlu1 %2520 }
 0x16c   : > { %v2903_v51 = vsel %vm2716_vm6, %v6805_v27, %v2521_v22 }
 0x16d   : > { %3607 = vmatmul.mubr.bf16.gmra.mrb[68].mxu1 %v2899_v18 }
 0x16e   : > { %3614 = vmatprep.mubr.bf16.mxu1 %v2967_v5 }
 0x16f   : > { %4867 = vmatmul.mubr.msk.bf16.gmra.mrb[72].mxu0 %vm2716_vm6, %v4529_v37 }
 0x170   : > { %4870 = vmatprep.mubr.msk.bf16.mxu0 %vm2716_vm6, %v4530_v12 }
 0x175   : > { %3615 = vmatmul.mubr.bf16.gmra.mrb[72].mxu1 %v2903_v51 }
 0x176   : > { %v2667_v43 = vpop.permute.xlu0 %2666 }
 0x177   : > { %4871 = vmatmul.mubr.msk.bf16.gmra.mrb[76].mxu0 %vm2716_vm6, %v4531_v42  ;;  %v2523_v59 = vpop.permute.xlu1 %2522  ;;  %v2971_v30 = vsel %vm2716_vm6, %v4499_v50, %v2667_v43 }
 0x178   : > { %3622 = vmatprep.mubr.bf16.mxu1 %v2971_v30  ;;  %v2907_v19 = vsel %vm2716_vm6, %v6830_v41, %v2523_v59 }
 0x17d   : > { %3623 = vmatmul.mubr.bf16.gmra.mrb[76].mxu1 %v2907_v19 }
 0x1a0   : > { %v4606_v28 = vpop.f32.mrb[0].mxu0 }
 0x1a1   : > { %v4607_v24 = vpop.f32.mrb[1].mxu0 }
 0x1a2   : > { %v4608_v57 = vadd.f32 %v4607_v24, %v4606_v28  ;;  %v4609_v44 = vpop.f32.mrb[2].mxu0 }
 0x1a3   : > { %v4610_v27 = vpop.f32.mrb[3].mxu0  ;;  %v4678_v45 = vpop.f32.mrb[0].mxu1 }
 0x1a4   : > { %v4611_v1 = vadd.f32 %v4610_v27, %v4609_v44  ;;  %v4679_v32 = vpop.f32.mrb[1].mxu1 }
 0x1a5   : > { %v6908_v33 = vadd.f32 %v4679_v32, %v4678_v45  ;;  %v4681_v3 = vpop.f32.mrb[2].mxu1 }
 0x1a6   : > { %v4682_v6 = vpop.f32.mrb[3].mxu1 }
 0x1a7   : > { %v6910_v49 = vadd.f32 %v4682_v6, %v4681_v3 }
 0x1aa   : > { %v4612_v4 = vpop.f32.mrb[4].mxu0 }
 0x1ab   : > { %v4613_v13 = vpop.f32.mrb[5].mxu0 }
 0x1ac   : > { %v6912_v46 = vadd.f32 %v4613_v13, %v4612_v4  ;;  %v4615_v41 = vpop.f32.mrb[6].mxu0 }
 0x1ad   : > { %v4616_v26 = vpop.f32.mrb[7].mxu0 }
 0x1ae   : > { %v6914_v21 = vadd.f32 %v4616_v26, %v4615_v41 }
 0x1af   : > { %v4684_v38 = vpop.f32.mrb[4].mxu1 }
 0x1b0   : > { %v4685_v15 = vpop.f32.mrb[5].mxu1 }
 0x1b1   : > { %v6916_v9 = vadd.f32 %v4685_v15, %v4684_v38  ;;  %v4687_v17 = vpop.f32.mrb[6].mxu1 }
 0x1b2   : > { %v4688_v62 = vpop.f32.mrb[7].mxu1 }
 0x1b3   : > { %v6918_v56 = vadd.f32 %v4688_v62, %v4687_v17 }
 0x1b5   : > { %v4618_v63 = vpop.f32.mrb[8].mxu0 }
 0x1b6   : > { %v4619_v8 = vpop.f32.mrb[9].mxu0 }
 0x1b7   : > { %v6920_v47 = vadd.f32 %v4619_v8, %v4618_v63  ;;  %v4621_v35 = vpop.f32.mrb[10].mxu0 }
 0x1b8   : > { %v4622_v23 = vpop.f32.mrb[11].mxu0 }
 0x1b9   : > { %v6922_v11 = vadd.f32 %v4622_v23, %v4621_v35 }
 0x1ba   : > { %v4690_v52 = vpop.f32.mrb[8].mxu1 }
 0x1bb   : > { %v4691_v2 = vpop.f32.mrb[9].mxu1 }
 0x1bc   : > { %v6924_v29 = vadd.f32 %v4691_v2, %v4690_v52  ;;  %v4693_v31 = vpop.f32.mrb[10].mxu1 }
 0x1bd   : > { %v4694_v61 = vpop.f32.mrb[11].mxu1 }
 0x1be   : > { %v6926_v40 = vadd.f32 %v4694_v61, %v4693_v31 }
 0x1c0   : > { %v4624_v36 = vpop.f32.mrb[12].mxu0 }
 0x1c1   : > { %v4625_v34 = vpop.f32.mrb[13].mxu0 }
 0x1c2   : > { %v6928_v0 = vadd.f32 %v4625_v34, %v4624_v36  ;;  %v4627_v14 = vpop.f32.mrb[14].mxu0 }
 0x1c3   : > { %v4628_v20 = vpop.f32.mrb[15].mxu0 }
 0x1c4   : > { %v6930_v16 = vadd.f32 %v4628_v20, %v4627_v14 }
 0x1c6   : > { %v4696_v18 = vpop.f32.mrb[12].mxu1 }
 0x1c7   : > { %v4697_v7 = vpop.f32.mrb[13].mxu1 }
 0x1c8   : > { %v6932_v54 = vadd.f32 %v4697_v7, %v4696_v18  ;;  %v4699_v37 = vpop.f32.mrb[14].mxu1 }
 0x1c9   : > { %v4700_v25 = vpop.f32.mrb[15].mxu1 }
 0x1ca   : > { %v6934_v55 = vadd.f32 %v4700_v25, %v4699_v37 }
 0x1cd   : > { %v4630_v12 = vpop.f32.mrb[16].mxu0 }
 0x1ce   : > { %v4631_v10 = vpop.f32.mrb[17].mxu0 }
 0x1cf   : > { %v6936_v48 = vadd.f32 %v4631_v10, %v4630_v12  ;;  %v4633_v39 = vpop.f32.mrb[18].mxu0 }
 0x1d0   : > { %v4634_v5 = vpop.f32.mrb[19].mxu0 }
 0x1d1   : > { %v6938_v22 = vadd.f32 %v4634_v5, %v4633_v39  ;;  %v4718_v58 = vpop.f32.mrb[16].mxu1 }
 0x1d2   : > { %v4719_v60 = vpop.f32.mrb[17].mxu1 }
 0x1d3   : > { %v4720_v51 = vadd.f32 %v4719_v60, %v4718_v58  ;;  %v4721_v42 = vpop.f32.mrb[18].mxu1 }
 0x1d4   : > { %v4722_v53 = vpop.f32.mrb[19].mxu1 }
 0x1d5   : > { %v4723_v50 = vadd.f32 %v4722_v53, %v4721_v42  ;;  %v6940_v43 = vadd.f32 %v4720_v51, %v4608_v57 }
 0x1d7   : > { %v6942_v59 = vadd.f32 %v4723_v50, %v4611_v1 }
 0x1d8   : > { %v4636_v30 = vpop.f32.mrb[20].mxu0 }
 0x1d9   : > { %v4637_v19 = vpop.f32.mrb[21].mxu0 }
 0x1da   : > { %v6944_v28 = vadd.f32 %v4637_v19, %v4636_v30  ;;  %v4639_v24 = vpop.f32.mrb[22].mxu0 }
 0x1db   : > { %v4640_v44 = vpop.f32.mrb[23].mxu0 }
 0x1dc   : > { %v6946_v27 = vadd.f32 %v4640_v44, %v4639_v24 }
 0x1df   : > { %v4724_v45 = vpop.f32.mrb[20].mxu1 }
 0x1e0   : > { %v4725_v32 = vpop.f32.mrb[21].mxu1 }
 0x1e1   : > { %v4726_v3 = vadd.f32 %v4725_v32, %v4724_v45  ;;  %v4727_v6 = vpop.f32.mrb[22].mxu1  ;;  %v4642_v4 = vpop.f32.mrb[24].mxu0 }
 0x1e2   : > { %v4728_v13 = vpop.f32.mrb[23].mxu1  ;;  %v4643_v41 = vpop.f32.mrb[25].mxu0 }
 0x1e3   : > { %v4729_v26 = vadd.f32 %v4728_v13, %v4727_v6  ;;  %v6948_v57 = vadd.f32 %v4643_v41, %v4642_v4  ;;  %v4645_v1 = vpop.f32.mrb[26].mxu0  ;;  %v6951_v38 = vadd.f32 %v4726_v3, %v6912_v46 }
 0x1e4   : > { %v4646_v15 = vpop.f32.mrb[27].mxu0 }
 0x1e5   : > { %v6953_v17 = vadd.f32 %v4646_v15, %v4645_v1  ;;  %v6956_v62 = vadd.f32 %v4729_v26, %v6914_v21 }
 0x1e7   : > { %v4730_v63 = vpop.f32.mrb[24].mxu1 }
 0x1e8   : > { %v4731_v8 = vpop.f32.mrb[25].mxu1 }
 0x1e9   : > { %v4732_v35 = vadd.f32 %v4731_v8, %v4730_v63  ;;  %v4733_v23 = vpop.f32.mrb[26].mxu1  ;;  %v4648_v52 = vpop.f32.mrb[28].mxu0 }
 0x1ea   : > { %v4734_v2 = vpop.f32.mrb[27].mxu1  ;;  %v4649_v31 = vpop.f32.mrb[29].mxu0 }
 0x1eb   : > { %v4735_v61 = vadd.f32 %v4734_v2, %v4733_v23  ;;  %v6958_v36 = vadd.f32 %v4649_v31, %v4648_v52  ;;  %v4651_v34 = vpop.f32.mrb[30].mxu0  ;;  %v6961_v46 = vadd.f32 %v4732_v35, %v6920_v47 }
 0x1ec   : > { %v4652_v14 = vpop.f32.mrb[31].mxu0 }
 0x1ed   : > { %v6963_v20 = vadd.f32 %v4652_v14, %v4651_v34  ;;  %v6966_v21 = vadd.f32 %v4735_v61, %v6922_v11 }
 0x1ef   : > { %v4736_v18 = vpop.f32.mrb[28].mxu1 }
 0x1f0   : > { %v4737_v7 = vpop.f32.mrb[29].mxu1 }
 0x1f1   : > { %v4738_v37 = vadd.f32 %v4737_v7, %v4736_v18  ;;  %v4739_v25 = vpop.f32.mrb[30].mxu1  ;;  %v4654_v12 = vpop.f32.mrb[32].mxu0 }
 0x1f2   : > { %v4740_v10 = vpop.f32.mrb[31].mxu1  ;;  %v4655_v39 = vpop.f32.mrb[33].mxu0 }
 0x1f3   : > { %v4741_v5 = vadd.f32 %v4740_v10, %v4739_v25  ;;  %v6968_v58 = vadd.f32 %v4655_v39, %v4654_v12  ;;  %v4657_v60 = vpop.f32.mrb[34].mxu0  ;;  %v6971_v47 = vadd.f32 %v4738_v37, %v6928_v0 }
 0x1f4   : > { %v4658_v51 = vpop.f32.mrb[35].mxu0 }
 0x1f5   : > { %v6973_v42 = vadd.f32 %v4658_v51, %v4657_v60  ;;  %v6976_v11 = vadd.f32 %v4741_v5, %v6930_v16 }
 0x1f7   : > { %v4742_v53 = vpop.f32.mrb[32].mxu1 }
 0x1f8   : > { %v4743_v50 = vpop.f32.mrb[33].mxu1 }
 0x1f9   : > { %v4744_v30 = vadd.f32 %v4743_v50, %v4742_v53  ;;  %v4745_v19 = vpop.f32.mrb[34].mxu1  ;;  %v4660_v24 = vpop.f32.mrb[36].mxu0 }
 0x1fa   : > { %v4746_v44 = vpop.f32.mrb[35].mxu1  ;;  %v4661_v45 = vpop.f32.mrb[37].mxu0 }
 0x1fb   : > { %v4747_v32 = vadd.f32 %v4746_v44, %v4745_v19  ;;  %v6978_v3 = vadd.f32 %v4661_v45, %v4660_v24  ;;  %v4663_v6 = vpop.f32.mrb[38].mxu0  ;;  %v6981_v0 = vadd.f32 %v4744_v30, %v6936_v48 }
 0x1fc   : > { %v4664_v4 = vpop.f32.mrb[39].mxu0 }
 0x1fd   : > { %v6983_v13 = vadd.f32 %v4664_v4, %v4663_v6  ;;  %v6986_v16 = vadd.f32 %v4747_v32, %v6938_v22 }
 0x1ff   : > { %v4748_v41 = vpop.f32.mrb[36].mxu1 }
 0x200   : > { %v4749_v26 = vpop.f32.mrb[37].mxu1 }
 0x201   : > { %v4750_v1 = vadd.f32 %v4749_v26, %v4748_v41  ;;  %v4751_v15 = vpop.f32.mrb[38].mxu1  ;;  %v4666_v63 = vpop.f32.mrb[40].mxu0 }
 0x202   : > { %v4752_v8 = vpop.f32.mrb[39].mxu1  ;;  %v4667_v35 = vpop.f32.mrb[41].mxu0 }
 0x203   : > { %v4753_v23 = vadd.f32 %v4752_v8, %v4751_v15  ;;  %v6988_v52 = vadd.f32 %v4667_v35, %v4666_v63  ;;  %v4669_v2 = vpop.f32.mrb[42].mxu0  ;;  %v6991_v48 = vadd.f32 %v4750_v1, %v6944_v28 }
 0x204   : > { %v4670_v31 = vpop.f32.mrb[43].mxu0 }
 0x205   : > { %v6993_v61 = vadd.f32 %v4670_v31, %v4669_v2  ;;  %v6996_v22 = vadd.f32 %v4753_v23, %v6946_v27 }
 0x207   : > { %v4754_v34 = vpop.f32.mrb[40].mxu1 }
 0x208   : > { %v4755_v14 = vpop.f32.mrb[41].mxu1 }
 0x209   : > { %v4756_v18 = vadd.f32 %v4755_v14, %v4754_v34  ;;  %v4757_v7 = vpop.f32.mrb[42].mxu1  ;;  %v4672_v37 = vpop.f32.mrb[44].mxu0 }
 0x20a   : > { %v4758_v25 = vpop.f32.mrb[43].mxu1  ;;  %v4673_v12 = vpop.f32.mrb[45].mxu0 }
 0x20b   : > { %v4759_v10 = vadd.f32 %v4758_v25, %v4757_v7  ;;  %v6998_v39 = vadd.f32 %v4673_v12, %v4672_v37  ;;  %v4675_v5 = vpop.f32.mrb[46].mxu0  ;;  %v7001_v28 = vadd.f32 %v4756_v18, %v6948_v57 }
 0x20c   : > { %v4676_v60 = vpop.f32.mrb[47].mxu0 }
 0x20d   : > { %v7003_v51 = vadd.f32 %v4676_v60, %v4675_v5  ;;  %v7006_v27 = vadd.f32 %v4759_v10, %v6953_v17 }
 0x20f   : > { %v4760_v53 = vpop.f32.mrb[44].mxu1 }
 0x210   : > { %v4761_v50 = vpop.f32.mrb[45].mxu1 }
 0x211   : > { %v4762_v30 = vadd.f32 %v4761_v50, %v4760_v53  ;;  %v4763_v19 = vpop.f32.mrb[46].mxu1  ;;  %v4844_v24 = vpop.f32.mrb[48].mxu0 }
 0x212   : > { %v4764_v44 = vpop.f32.mrb[47].mxu1  ;;  %v3674_v45 = vadd.f32 %v4844_v24, %v6951_v38  ;;  %v3665_v32 = vpop.f32.mrb[49].mxu0 }
 0x213   : > { %v4765_v6 = vadd.f32 %v4764_v44, %v4763_v19  ;;  %v3666_v57 = vadd.f32 %v3665_v32, %v6940_v43  ;;  %v4845_v4 = vpop.f32.mrb[50].mxu0  ;;  %v7012_v41 = vadd.f32 %v4762_v30, %v6958_v36 }
 0x214   : > { %3796 = vst [vmem:[%s7014_s11 + $0x10] sm:$0xff] %v3674_v45  ;;  %v3677_v17 = vadd.f32 %v4845_v4, %v6956_v62  ;;  %v3668_v26 = vpop.f32.mrb[51].mxu0  ;;  %v3869_v35 = vmul.f32 %v3674_v45, %v3674_v45 }
 0x215   : > { %3794 = vst [vmem:[%s7014_s11] sm:$0xff] %v3666_v57  ;;  %v3669_v38 = vadd.f32 %v3668_v26, %v6942_v59  ;;  %v7021_v1 = vadd.f32 %v4765_v6, %v6963_v20  ;;  %v3867_v43 = vmul.f32 %v3666_v57, %v3666_v57 }
 0x216   : > { %3797 = vst [vmem:[%s7014_s11 + $0x18] sm:$0xff] %v3677_v17  ;;  %v3870_v14 = vmul.f32 %v3677_v17, %v3677_v17 }
 0x217   : > { %3795 = vst [vmem:[%s7014_s11 + $0x8] sm:$0xff] %v3669_v38  ;;  %v3827_v36 = vadd.f32 %v3669_v38, %v3666_v57  ;;  %v3868_v15 = vmul.f32 %v3669_v38, %v3669_v38 }
 0x218   : > { %v4766_v63 = vpop.f32.mrb[48].mxu1 }
 0x219   : > { %v4767_v8 = vpop.f32.mrb[49].mxu1  ;;  %v3828_v23 = vadd.f32 %v3827_v36, %v3674_v45  ;;  %v3899_v2 = vadd.f32 %v3868_v15, %v3867_v43 }
 0x21a   : > { %v4768_v31 = vadd.f32 %v4767_v8, %v4766_v63  ;;  %v4769_v62 = vpop.f32.mrb[50].mxu1  ;;  %v4848_v34 = vpop.f32.mrb[52].mxu0 }
 0x21b   : > { %v4770_v59 = vpop.f32.mrb[51].mxu1  ;;  %v3690_v20 = vadd.f32 %v4848_v34, %v6971_v47  ;;  %v3681_v18 = vpop.f32.mrb[53].mxu0  ;;  %v3900_v7 = vadd.f32 %v3899_v2, %v3869_v35  ;;  %v3829_v12 = vadd.f32 %v3828_v23, %v3677_v17 }
 0x21c   : > { %v4771_v37 = vadd.f32 %v4770_v59, %v4769_v62  ;;  %v3682_v25 = vadd.f32 %v3681_v18, %v6961_v46  ;;  %v4849_v10 = vpop.f32.mrb[54].mxu0  ;;  %v7030_v53 = vadd.f32 %v4768_v31, %v6968_v58 }
 0x21d   : > { %3800 = vst [vmem:[%s7014_s11 + $0x30] sm:$0xff] %v3690_v20  ;;  %v3693_v5 = vadd.f32 %v4849_v10, %v6976_v11  ;;  %v3684_v60 = vpop.f32.mrb[55].mxu0  ;;  %v3901_v47 = vadd.f32 %v3900_v7, %v3870_v14  ;;  %v3873_v6 = vmul.f32 %v3690_v20, %v3690_v20 }
 0x21e   : > { %3798 = vst [vmem:[%s7014_s11 + $0x20] sm:$0xff] %v3682_v25  ;;  %v3830_v50 = vadd.f32 %v3829_v12, %v3682_v25  ;;  %v3871_v30 = vmul.f32 %v3682_v25, %v3682_v25  ;;  %v3685_v19 = vadd.f32 %v3684_v60, %v6966_v21  ;;  %v7036_v24 = vadd.f32 %v4771_v37, %v6973_v42 }
 0x21f   : > { %3801 = vst [vmem:[%s7014_s11 + $0x38] sm:$0xff] %v3693_v5  ;;  %v3874_v38 = vmul.f32 %v3693_v5, %v3693_v5 }
 0x220   : > { %v3902_v46 = vadd.f32 %v3901_v47, %v3871_v30  ;;  %3799 = vst [vmem:[%s7014_s11 + $0x28] sm:$0xff] %v3685_v19  ;;  %v3831_v44 = vadd.f32 %v3830_v50, %v3685_v19  ;;  %v3872_v45 = vmul.f32 %v3685_v19, %v3685_v19  ;;  %v4772_v32 = vpop.f32.mrb[52].mxu1 }
 0x221   : > { %v4773_v11 = vpop.f32.mrb[53].mxu1 }
 0x222   : > { %v3832_v58 = vadd.f32 %v3831_v44, %v3690_v20  ;;  %v3903_v57 = vadd.f32 %v3902_v46, %v3872_v45  ;;  %v4774_v4 = vadd.f32 %v4773_v11, %v4772_v32  ;;  %v4775_v17 = vpop.f32.mrb[54].mxu1  ;;  %v4852_v26 = vpop.f32.mrb[56].mxu0 }
 0x223   : > { %v4776_v21 = vpop.f32.mrb[55].mxu1  ;;  %v3706_v43 = vadd.f32 %v4852_v26, %v6991_v48  ;;  %v3697_v42 = vpop.f32.mrb[57].mxu0 }
 0x224   : > { %v3904_v36 = vadd.f32 %v3903_v57, %v3873_v6  ;;  %v4777_v15 = vadd.f32 %v4776_v21, %v4775_v17  ;;  %v3698_v63 = vadd.f32 %v3697_v42, %v6981_v0  ;;  %v3833_v8 = vadd.f32 %v3832_v58, %v3693_v5  ;;  %v4853_v35 = vpop.f32.mrb[58].mxu0 }
 0x225   : > { %3804 = vst [vmem:[%s7014_s11 + $0x50] sm:$0xff] %v3706_v43  ;;  %v3709_v23 = vadd.f32 %v4853_v35, %v6996_v22  ;;  %v3700_v2 = vpop.f32.mrb[59].mxu0  ;;  %v3577_v31 = vadd.f32 %v4774_v4, %v6978_v3  ;;  %v3877_v22 = vmul.f32 %v3706_v43, %v3706_v43 }
 0x226   : > { %3802 = vst [vmem:[%s7014_s11 + $0x40] sm:$0xff] %v3698_v63  ;;  %v3834_v62 = vadd.f32 %v3833_v8, %v3698_v63  ;;  %v3875_v34 = vmul.f32 %v3698_v63, %v3698_v63  ;;  %v3905_v14 = vadd.f32 %v3904_v36, %v3874_v38  ;;  %v3701_v48 = vadd.f32 %v3700_v2, %v6986_v16 }
 0x227   : > { %3805 = vst [vmem:[%s7014_s11 + $0x58] sm:$0xff] %v3709_v23  ;;  %v3580_v59 = vadd.f32 %v4777_v15, %v6983_v13  ;;  %v3878_v60 = vmul.f32 %v3709_v23, %v3709_v23 }
 0x228   : > { %v3906_v20 = vadd.f32 %v3905_v14, %v3875_v34  ;;  %3803 = vst [vmem:[%s7014_s11 + $0x48] sm:$0xff] %v3701_v48  ;;  %v3835_v0 = vadd.f32 %v3834_v62, %v3701_v48  ;;  %v3876_v18 = vmul.f32 %v3701_v48, %v3701_v48  ;;  %v4778_v7 = vpop.f32.mrb[56].mxu1 }
 0x229   : > { %v4779_v37 = vpop.f32.mrb[57].mxu1 }
 0x22a   : > { %v3836_v25 = vadd.f32 %v3835_v0, %v3706_v43  ;;  %v3907_v12 = vadd.f32 %v3906_v20, %v3876_v18  ;;  %v4780_v3 = vadd.f32 %v4779_v37, %v4778_v7  ;;  %v4781_v10 = vpop.f32.mrb[58].mxu1  ;;  %v4856_v5 = vpop.f32.mrb[60].mxu0 }
 0x22b   : > { %v4782_v50 = vpop.f32.mrb[59].mxu1  ;;  %v3722_v16 = vadd.f32 %v4856_v5, %v7012_v41  ;;  %v3713_v13 = vpop.f32.mrb[61].mxu0 }
 0x22c   : > { %v3908_v30 = vadd.f32 %v3907_v12, %v3877_v22  ;;  %v4783_v47 = vadd.f32 %v4782_v50, %v4781_v10  ;;  %v3714_v19 = vadd.f32 %v3713_v13, %v7001_v28  ;;  %v3837_v46 = vadd.f32 %v3836_v25, %v3709_v23  ;;  %v4857_v44 = vpop.f32.mrb[62].mxu0 }
 0x22d   : > { %3808 = vst [vmem:[%s7014_s11 + $0x70] sm:$0xff] %v3722_v16  ;;  %v3725_v45 = vadd.f32 %v4857_v44, %v7021_v1  ;;  %v3716_v32 = vpop.f32.mrb[63].mxu0  ;;  %v3585_v11 = vadd.f32 %v4780_v3, %v6988_v52  ;;  %v3881_v1 = vmul.f32 %v3722_v16, %v3722_v16 }
 0x22e   : > { %3806 = vst [vmem:[%s7014_s11 + $0x60] sm:$0xff] %v3714_v19  ;;  %v3838_v6 = vadd.f32 %v3837_v46, %v3714_v19  ;;  %v3879_v58 = vmul.f32 %v3714_v19, %v3714_v19  ;;  %v3909_v57 = vadd.f32 %v3908_v30, %v3878_v60  ;;  %v3717_v41 = vadd.f32 %v3716_v32, %v7006_v27 }
 0x22f   : > { %3809 = vst [vmem:[%s7014_s11 + $0x78] sm:$0xff] %v3725_v45  ;;  %v3588_v4 = vadd.f32 %v4783_v47, %v6993_v61  ;;  %v3882_v63 = vmul.f32 %v3725_v45, %v3725_v45 }
 0x230   : > { %v3910_v17 = vadd.f32 %v3909_v57, %v3879_v58  ;;  %3807 = vst [vmem:[%s7014_s11 + $0x68] sm:$0xff] %v3717_v41  ;;  %v3839_v28 = vadd.f32 %v3838_v6, %v3717_v41  ;;  %v3880_v26 = vmul.f32 %v3717_v41, %v3717_v41  ;;  %v4784_v38 = vpop.f32.mrb[60].mxu1 }
 0x231   : > { %v4785_v21 = vpop.f32.mrb[61].mxu1 }
 0x232   : > { %v3840_v43 = vadd.f32 %v3839_v28, %v3722_v16  ;;  %v3911_v42 = vadd.f32 %v3910_v17, %v3880_v26  ;;  %v4786_v52 = vadd.f32 %v4785_v21, %v4784_v38  ;;  %v4787_v36 = vpop.f32.mrb[62].mxu1  ;;  %v4860_v15 = vpop.f32.mrb[64].mxu0 }
 0x233   : > { %v4788_v8 = vpop.f32.mrb[63].mxu1  ;;  %v3738_v27 = vadd.f32 %v4860_v15, %v3577_v31  ;;  %v3729_v35 = vpop.f32.mrb[65].mxu0 }
 0x234   : > { %v3912_v61 = vadd.f32 %v3911_v42, %v3881_v1  ;;  %v4789_v23 = vadd.f32 %v4788_v8, %v4787_v36  ;;  %v3730_v2 = vadd.f32 %v3729_v35, %v7030_v53  ;;  %v3841_v62 = vadd.f32 %v3840_v43, %v3725_v45  ;;  %v4861_v34 = vpop.f32.mrb[66].mxu0 }
 0x235   : > { %3812 = vst [vmem:[%s7014_s11 + $0x90] sm:$0xff] %v3738_v27  ;;  %v3741_v14 = vadd.f32 %v4861_v34, %v3580_v59  ;;  %v3732_v48 = vpop.f32.mrb[67].mxu0  ;;  %v3593_v20 = vadd.f32 %v4786_v52, %v6998_v39  ;;  %v3885_v59 = vmul.f32 %v3738_v27, %v3738_v27 }
 0x236   : > { %3810 = vst [vmem:[%s7014_s11 + $0x80] sm:$0xff] %v3730_v2  ;;  %v3842_v0 = vadd.f32 %v3841_v62, %v3730_v2  ;;  %v3883_v18 = vmul.f32 %v3730_v2, %v3730_v2  ;;  %v3913_v7 = vadd.f32 %v3912_v61, %v3882_v63  ;;  %v3733_v31 = vadd.f32 %v3732_v48, %v7036_v24 }
 0x237   : > { %3813 = vst [vmem:[%s7014_s11 + $0x98] sm:$0xff] %v3741_v14  ;;  %v3596_v37 = vadd.f32 %v4789_v23, %v7003_v51  ;;  %v3886_v16 = vmul.f32 %v3741_v14, %v3741_v14 }
 0x238   : > { %v3914_v22 = vadd.f32 %v3913_v7, %v3883_v18  ;;  %3811 = vst [vmem:[%s7014_s11 + $0x88] sm:$0xff] %v3733_v31  ;;  %v3843_v25 = vadd.f32 %v3842_v0, %v3733_v31  ;;  %v3884_v53 = vmul.f32 %v3733_v31, %v3733_v31  ;;  %v4790_v12 = vpop.f32.mrb[64].mxu1 }
 0x239   : > { %v4791_v3 = vpop.f32.mrb[65].mxu1 }
 0x23a   : > { %v3844_v10 = vadd.f32 %v3843_v25, %v3738_v27  ;;  %v3915_v5 = vadd.f32 %v3914_v22, %v3884_v53  ;;  %v4792_v39 = vadd.f32 %v4791_v3, %v4790_v12  ;;  %v4793_v60 = vpop.f32.mrb[66].mxu1  ;;  %v4864_v50 = vpop.f32.mrb[68].mxu0 }
 0x23b   : > { %v4794_v13 = vpop.f32.mrb[67].mxu1  ;;  %v3754_v24 = vadd.f32 %v4864_v50, %v3593_v20  ;;  %v3745_v30 = vpop.f32.mrb[69].mxu0 }
 0x23c   : > { %v3916_v51 = vadd.f32 %v3915_v5, %v3885_v59  ;;  %v4795_v47 = vadd.f32 %v4794_v13, %v4793_v60  ;;  %v3746_v19 = vadd.f32 %v3745_v30, %v3585_v11  ;;  %v3845_v46 = vadd.f32 %v3844_v10, %v3741_v14  ;;  %v4865_v44 = vpop.f32.mrb[70].mxu0 }
 0x23d   : > { %3816 = vst [vmem:[%s7014_s11 + $0xb0] sm:$0xff] %v3754_v24  ;;  %v3757_v45 = vadd.f32 %v4865_v44, %v3596_v37  ;;  %v3748_v32 = vpop.f32.mrb[71].mxu0  ;;  %v3601_v6 = vadd.f32 %v4792_v39, %v6908_v33  ;;  %v3889_v43 = vmul.f32 %v3754_v24, %v3754_v24 }
 0x23e   : > { %3814 = vst [vmem:[%s7014_s11 + $0xa0] sm:$0xff] %v3746_v19  ;;  %v3846_v58 = vadd.f32 %v3845_v46, %v3746_v19  ;;  %v3887_v57 = vmul.f32 %v3746_v19, %v3746_v19  ;;  %v3917_v41 = vadd.f32 %v3916_v51, %v3886_v16  ;;  %v3749_v17 = vadd.f32 %v3748_v32, %v3588_v4 }
 0x23f   : > { %3817 = vst [vmem:[%s7014_s11 + $0xb8] sm:$0xff] %v3757_v45  ;;  %v3604_v28 = vadd.f32 %v4795_v47, %v6910_v49  ;;  %v3890_v63 = vmul.f32 %v3757_v45, %v3757_v45 }
 0x240   : > { %v3918_v26 = vadd.f32 %v3917_v41, %v3887_v57  ;;  %3815 = vst [vmem:[%s7014_s11 + $0xa8] sm:$0xff] %v3749_v17  ;;  %v3847_v38 = vadd.f32 %v3846_v58, %v3749_v17  ;;  %v3888_v21 = vmul.f32 %v3749_v17, %v3749_v17  ;;  %v4796_v11 = vpop.f32.mrb[68].mxu1 }
 0x241   : > { %v4797_v1 = vpop.f32.mrb[69].mxu1 }
 0x242   : > { %v3848_v42 = vadd.f32 %v3847_v38, %v3754_v24  ;;  %v3919_v52 = vadd.f32 %v3918_v26, %v3888_v21  ;;  %v4798_v36 = vadd.f32 %v4797_v1, %v4796_v11  ;;  %v4799_v33 = vpop.f32.mrb[70].mxu1  ;;  %v4868_v15 = vpop.f32.mrb[72].mxu0 }
 0x243   : > { %v4800_v8 = vpop.f32.mrb[71].mxu1  ;;  %v3761_v4 = vpop.f32.mrb[73].mxu0 }
 0x244   : > { %v3920_v27 = vadd.f32 %v3919_v52, %v3889_v43  ;;  %v4801_v35 = vadd.f32 %v4800_v8, %v4799_v33  ;;  %v3609_v49 = vadd.f32 %v4798_v36, %v6916_v9  ;;  %v3762_v61 = vadd.f32 %v3761_v4, %v3601_v6  ;;  %v4869_v23 = vpop.f32.mrb[74].mxu0 }
 0x245   : > { %v3849_v2 = vadd.f32 %v3848_v42, %v3757_v45  ;;  %v3764_v62 = vpop.f32.mrb[75].mxu0 }
 0x246   : > { %v3770_v34 = vadd.f32 %v4868_v15, %v3609_v49  ;;  %3818 = vst [vmem:[%s7014_s11 + $0xc0] sm:$0xff] %v3762_v61  ;;  %v3891_v14 = vmul.f32 %v3762_v61, %v3762_v61  ;;  %v3921_v48 = vadd.f32 %v3920_v27, %v3890_v63  ;;  %v3612_v20 = vadd.f32 %v4801_v35, %v6918_v56 }
 0x247   : > { %v3850_v0 = vadd.f32 %v3849_v2, %v3762_v61  ;;  %v3765_v18 = vadd.f32 %v3764_v62, %v3604_v28  ;;  %v3826_v62 = vld [vmem:[#allocation3] sm:$0x1] }
 0x248   : > { %3820 = vst [vmem:[%s7014_s11 + $0xd0] sm:$0xff] %v3770_v34  ;;  %v3922_v7 = vadd.f32 %v3921_v48, %v3891_v14  ;;  %v3773_v31 = vadd.f32 %v4869_v23, %v3612_v20  ;;  %v4802_v37 = vpop.f32.mrb[72].mxu1  ;;  %v3893_v59 = vmul.f32 %v3770_v34, %v3770_v34  ;;  %v3866_v14 = vld [vmem:[#allocation4] sm:$0x1] }
 0x249   : > { %3819 = vst [vmem:[%s7014_s11 + $0xc8] sm:$0xff] %v3765_v18  ;;  %v3851_v9 = vadd.f32 %v3850_v0, %v3765_v18  ;;  %v3892_v22 = vmul.f32 %v3765_v18, %v3765_v18  ;;  %v4803_v25 = vpop.f32.mrb[73].mxu1 }
 0x24a   : > { %3821 = vst [vmem:[%s7014_s11 + $0xd8] sm:$0xff] %v3773_v31  ;;  %v4804_v53 = vadd.f32 %v4803_v25, %v4802_v37  ;;  %v4805_v12 = vpop.f32.mrb[74].mxu1  ;;  %v4872_v3 = vpop.f32.mrb[76].mxu0  ;;  %v3894_v13 = vmul.f32 %v3773_v31, %v3773_v31 }
 0x24b   : > { %v3852_v10 = vadd.f32 %v3851_v9, %v3770_v34  ;;  %v3923_v5 = vadd.f32 %v3922_v7, %v3892_v22  ;;  %v4806_v39 = vpop.f32.mrb[75].mxu1  ;;  %v3777_v56 = vpop.f32.mrb[77].mxu0 }
 0x24c   : > { %v4807_v60 = vadd.f32 %v4806_v39, %v4805_v12  ;;  %v3617_v50 = vadd.f32 %v4804_v53, %v6924_v29  ;;  %v4873_v16 = vpop.f32.mrb[78].mxu0 }
 0x24d   : > { %v3924_v24 = vadd.f32 %v3923_v5, %v3893_v59  ;;  %v3853_v30 = vadd.f32 %v3852_v10, %v3773_v31  ;;  %v3780_v51 = vpop.f32.mrb[79].mxu0 }
 0x24e   : > { %v3778_v47 = vadd.f32 %v3777_v56, %v3617_v50  ;;  %v3620_v19 = vadd.f32 %v4807_v60, %v6926_v40 }
 0x24f   : > { %v3925_v46 = vadd.f32 %v3924_v24, %v3894_v13 }
 0x250   : > { %3822 = vst [vmem:[%s7014_s11 + $0xe0] sm:$0xff] %v3778_v47  ;;  %v3854_v44 = vadd.f32 %v3853_v30, %v3778_v47  ;;  %v3895_v45 = vmul.f32 %v3778_v47, %v3778_v47  ;;  %v3781_v32 = vadd.f32 %v3780_v51, %v3620_v19  ;;  %v4808_v6 = vpop.f32.mrb[76].mxu1 }
 0x251   : > { %v4809_v58 = vpop.f32.mrb[77].mxu1 }
 0x252   : > { %v3926_v57 = vadd.f32 %v3925_v46, %v3895_v45  ;;  %3823 = vst [vmem:[%s7014_s11 + $0xe8] sm:$0xff] %v3781_v32  ;;  %v3855_v29 = vadd.f32 %v3854_v44, %v3781_v32  ;;  %v3896_v41 = vmul.f32 %v3781_v32, %v3781_v32  ;;  %v4810_v17 = vadd.f32 %v4809_v58, %v4808_v6  ;;  %v4811_v28 = vpop.f32.mrb[78].mxu1 }
 0x253   : > { %v4812_v26 = vpop.f32.mrb[79].mxu1 }
 0x254   : > { %v3927_v38 = vadd.f32 %v3926_v57, %v3896_v41  ;;  %v3625_v21 = vadd.f32 %v4810_v17, %v6932_v54  ;;  %v4813_v40 = vadd.f32 %v4812_v26, %v4811_v28 }
 0x256   : > { %v3786_v11 = vadd.f32 %v4872_v3, %v3625_v21  ;;  %v3628_v1 = vadd.f32 %v4813_v40, %v6934_v55 }
 0x258   : > { %3824 = vst [vmem:[%s7014_s11 + $0xf0] sm:$0xff] %v3786_v11  ;;  %v3856_v43 = vadd.f32 %v3855_v29, %v3786_v11  ;;  %v3897_v42 = vmul.f32 %v3786_v11, %v3786_v11  ;;  %v3789_v52 = vadd.f32 %v4873_v16, %v3628_v1 }
 0x25a   : > { %v3928_v36 = vadd.f32 %v3927_v38, %v3897_v42  ;;  %3825 = vst [vmem:[%s7014_s11 + $0xf8] sm:$0xff] %v3789_v52  ;;  %v3857_v33 = vadd.f32 %v3856_v43, %v3789_v52  ;;  %v3898_v15 = vmul.f32 %v3789_v52, %v3789_v52 }
 0x25c   : > { %v3858_v63 = vrot.slane %v3857_v33, 4  ;;  %v3929_v8 = vadd.f32 %v3928_v36, %v3898_v15 }
 0x25e   : > { %v3859_v4 = vadd.f32 %v3858_v63, %v3857_v33  ;;  %v3930_v27 = vrot.slane %v3929_v8, 4 }
 0x260   : > { %v3860_v35 = vrot.slane %v3859_v4, 2  ;;  %v3931_v49 = vadd.f32 %v3930_v27, %v3929_v8 }
 0x262   : > { %v3861_v61 = vadd.f32 %v3860_v35, %v3859_v4  ;;  %v3932_v54 = vrot.slane %v3931_v49, 2 }
 0x264   : > { %v3862_v23 = vrot.slane %v3861_v61, 1  ;;  %v3933_v2 = vadd.f32 %v3932_v54, %v3931_v49 }
 0x266   : > { %v3863_v55 = vadd.f32 %v3862_v23, %v3861_v61  ;;  %v3934_v34 = vrot.slane %v3933_v2, 1 }
 0x268   : > { %v3864_v48 = vadd.f32 %v3863_v55, %v3826_v62  ;;  %v3935_v20 = vadd.f32 %v3934_v34, %v3933_v2 }
 0x26a   : > { %3865 = vst [vmem:[#allocation3] sm:$0x1] %v3864_v48  ;;  %v3936_v0 = vadd.f32 %v3935_v20, %v3866_v14 }
 0x26c   : > { %3937 = vst [vmem:[#allocation4] sm:$0x1] %v3936_v0 }
 0x26d PF: > { %p4585_p11 = scmp.ne.s32.totalorder %s5225_s19, 1 }
 0x26e   : > { %v3990_v53 = vlaneseq (!%p4585_p11)  ;;  %s4586_s28 = sshll.u32 (!%p4585_p11), %s5221_s18, 8  ;;  %v3982_v3 = vld [vmem:[%s7246_s2] sm:$0x1] (!%p4585_p11) }
 0x26f   : > { %3941 = sbr.rel (%p4585_p11) target bundleno = 698 (0x2ba), region = 52  ;;  %s7092_s19 = scalar_lea.vmem (!%p4585_p11), [#allocation2], %s4586_s28  ;;  %v3986_v56 = vld [vmem:[%s7247_s3] sm:$0x1] (!%p4585_p11) }
 0x270   : > { %v3991_v12 = vshrl.u32 (!%p4585_p11), %v3990_v53, 7  ;;  %v3944_v5 = vld [vmem:[%s7092_s19] sm:$0xff] (!%p4585_p11)  ;;  %v3945_v60 = vld [vmem:[%s7092_s19 + $0x8] sm:$0xff] (!%p4585_p11)  ;;  %v3946_v50 = vld [vmem:[%s7092_s19 + $0x10] sm:$0xff] (!%p4585_p11) }
 0x271   : > { %v3976_v18 = vld [vmem:[#allocation3] sm:$0x1] (!%p4585_p11)  ;;  %v3947_v24 = vld [vmem:[%s7092_s19 + $0x18] sm:$0xff] (!%p4585_p11)  ;;  %v3949_v44 = vld [vmem:[%s7092_s19 + $0x28] sm:$0xff] (!%p4585_p11) }
 0x272   : > { %v3977_v31 = vmul.f32 (!%p4585_p11), 0.001953125, %v3976_v18  ;;  %v3992_v59 = vsub.s32 (!%p4585_p11), 0, %v3991_v12  ;;  %v3948_v30 = vld [vmem:[%s7092_s19 + $0x20] sm:$0xff] (!%p4585_p11)  ;;  %v3950_v32 = vld [vmem:[%s7092_s19 + $0x30] sm:$0xff] (!%p4585_p11)  ;;  %v3951_v57 = vld [vmem:[%s7092_s19 + $0x38] sm:$0xff] (!%p4585_p11) }
 0x273   : > { %v3978_v7 = vld [vmem:[#allocation4] sm:$0x1] (!%p4585_p11)  ;;  %v3953_v21 = vld [vmem:[%s7092_s19 + $0x48] sm:$0xff] (!%p4585_p11)  ;;  %v3954_v1 = vld [vmem:[%s7092_s19 + $0x50] sm:$0xff] (!%p4585_p11) }
 0x274   : > { %v3979_v37 = vmul.f32 (!%p4585_p11), 0.001953125, %v3978_v7  ;;  %v3980_v9 = vmul.f32 (!%p4585_p11), %v3977_v31, %v3977_v31  ;;  %v3952_v41 = vld [vmem:[%s7092_s19 + $0x40] sm:$0xff] (!%p4585_p11)  ;;  %v3955_v52 = vld [vmem:[%s7092_s19 + $0x58] sm:$0xff] (!%p4585_p11)  ;;  %v3957_v4 = vld [vmem:[%s7092_s19 + $0x68] sm:$0xff] (!%p4585_p11) }
 0x275   : > { %v3956_v15 = vld [vmem:[%s7092_s19 + $0x60] sm:$0xff] (!%p4585_p11)  ;;  %v3958_v49 = vld [vmem:[%s7092_s19 + $0x70] sm:$0xff] (!%p4585_p11)  ;;  %v3959_v23 = vld [vmem:[%s7092_s19 + $0x78] sm:$0xff] (!%p4585_p11) }
 0x276   : > { %v3981_v22 = vsub.f32 %v3979_v37, %v3980_v9  ;;  %v3960_v55 = vld [vmem:[%s7092_s19 + $0x80] sm:$0xff]  ;;  %v3961_v48 = vld [vmem:[%s7092_s19 + $0x88] sm:$0xff]  ;;  %v3962_v18 = vld [vmem:[%s7092_s19 + $0x90] sm:$0xff] }
 0x277   : > { %v3963_v37 = vld [vmem:[%s7092_s19 + $0x98] sm:$0xff] }
 0x278   : > { %v3983_v25 = vadd.f32 1e-05, %v3981_v22 }
 0x27a   : > { %5133 = vrsqrt.f32 %v3983_v25  ;;  %v3964_v25 = vld [vmem:[%s7092_s19 + $0xa0] sm:$0xff] }
 0x284   : > { %v5134_v10 = vpop.eup %5133 }
 0x285   : > { %v3985_v39 = vmul.f32 %v5134_v10, %v3982_v3 }
 0x287   : > { %v3987_v16 = vmul.f32 %v3985_v39, %v3977_v31  ;;  %v7100_v13 = vrot.slane %v3985_v39, %v3992_v59 }
 0x289   : > { %v3988_v51 = vsub.f32 %v3986_v56, %v3987_v16  ;;  %v3995_v47 = vmul.f32 %v7100_v13, %v3944_v5  ;;  %v3996_v19 = vmul.f32 %v7100_v13, %v3945_v60  ;;  %v3997_v46 = vmul.f32 %v7100_v13, %v3946_v50  ;;  %v3966_v56 = vld [vmem:[%s7092_s19 + $0xb0] sm:$0xff] }
 0x28a   : > { %v3998_v45 = vmul.f32 %v7100_v13, %v3947_v24  ;;  %v3999_v58 = vmul.f32 %v7100_v13, %v3948_v30  ;;  %v4000_v29 = vmul.f32 %v7100_v13, %v3949_v44  ;;  %v4001_v38 = vmul.f32 %v7100_v13, %v3950_v32  ;;  %v3967_v24 = vld [vmem:[%s7092_s19 + $0xb8] sm:$0xff]  ;;  %v3969_v32 = vld [vmem:[%s7092_s19 + $0xc8] sm:$0xff] }
 0x28b   : > { %v7110_v6 = vrot.slane %v3988_v51, %v3992_v59  ;;  %v4002_v11 = vmul.f32 %v7100_v13, %v3951_v57  ;;  %v4003_v42 = vmul.f32 %v7100_v13, %v3952_v41  ;;  %v4004_v33 = vmul.f32 %v7100_v13, %v3953_v21  ;;  %v3965_v59 = vld [vmem:[%s7092_s19 + $0xa8] sm:$0xff]  ;;  %v3970_v41 = vld [vmem:[%s7092_s19 + $0xd0] sm:$0xff] }
 0x28c   : > { %v4005_v8 = vmul.f32 %v7100_v13, %v3954_v1  ;;  %v4006_v35 = vmul.f32 %v7100_v13, %v3955_v52  ;;  %v4007_v54 = vmul.f32 %v7100_v13, %v3956_v15  ;;  %v4008_v62 = vmul.f32 %v7100_v13, %v3957_v4  ;;  %v3972_v1 = vld [vmem:[%s7092_s19 + $0xe0] sm:$0xff] }
 0x28d   : > { %v4033_v17 = vadd.f32 %v7110_v6, %v3995_v47  ;;  %v4034_v28 = vadd.f32 %v7110_v6, %v3996_v19  ;;  %v4035_v26 = vadd.f32 %v7110_v6, %v3997_v46  ;;  %v4036_v40 = vadd.f32 %v7110_v6, %v3998_v45  ;;  %v3968_v19 = vld [vmem:[%s7092_s19 + $0xc0] sm:$0xff] }
 0x28e   : > { %v4037_v43 = vadd.f32 %v7110_v6, %v3999_v58  ;;  %v4038_v36 = vadd.f32 %v7110_v6, %v4000_v29  ;;  %v4039_v63 = vadd.f32 %v7110_v6, %v4001_v38  ;;  %v4040_v27 = vadd.f32 %v7110_v6, %v4002_v11  ;;  %v3971_v38 = vld [vmem:[%s7092_s19 + $0xd8] sm:$0xff] }
 0x28f   : > { %5135 = vtanh.f32 %v4033_v17  ;;  %v4041_v61 = vadd.f32 %v7110_v6, %v4003_v42  ;;  %v4042_v2 = vadd.f32 %v7110_v6, %v4004_v33  ;;  %v4043_v34 = vadd.f32 %v7110_v6, %v4005_v8  ;;  %v3974_v8 = vld [vmem:[%s7092_s19 + $0xf0] sm:$0xff] }
 0x290   : > { %5137 = vtanh.f32 %v4034_v28  ;;  %v4009_v14 = vmul.f32 %v7100_v13, %v3958_v49  ;;  %v4044_v20 = vadd.f32 %v7110_v6, %v4006_v35  ;;  %v4010_v0 = vmul.f32 %v7100_v13, %v3959_v23  ;;  %v3975_v49 = vld [vmem:[%s7092_s19 + $0xf8] sm:$0xff] }
 0x291   : > { %5139 = vtanh.f32 %v4035_v26  ;;  %v4045_v7 = vadd.f32 %v7110_v6, %v4007_v54  ;;  %v4011_v31 = vmul.f32 %v7100_v13, %v3960_v55  ;;  %v4046_v9 = vadd.f32 %v7110_v6, %v4008_v62 }
 0x292   : > { %5141 = vtanh.f32 %v4036_v40  ;;  %v4012_v22 = vmul.f32 %v7100_v13, %v3961_v48  ;;  %v4047_v12 = vadd.f32 %v7110_v6, %v4009_v14  ;;  %v4013_v3 = vmul.f32 %v7100_v13, %v3962_v18 }
 0x293   : > { %5143 = vtanh.f32 %v4037_v43  ;;  %v4048_v5 = vadd.f32 %v7110_v6, %v4010_v0  ;;  %v4014_v39 = vmul.f32 %v7100_v13, %v3963_v37  ;;  %v4049_v50 = vadd.f32 %v7110_v6, %v4011_v31 }
 0x294   : > { %5145 = vtanh.f32 %v4038_v36  ;;  %v4015_v16 = vmul.f32 %v7100_v13, %v3964_v25  ;;  %v4050_v51 = vadd.f32 %v7110_v6, %v4012_v22  ;;  %v4016_v47 = vmul.f32 %v7100_v13, %v3965_v59  ;;  %v3973_v36 = vld [vmem:[%s7092_s19 + $0xe8] sm:$0xff] }
 0x295   : > { %5147 = vtanh.f32 %v4039_v63  ;;  %v4051_v44 = vadd.f32 %v7110_v6, %v4013_v3  ;;  %v4017_v45 = vmul.f32 %v7100_v13, %v3966_v56  ;;  %v4052_v57 = vadd.f32 %v7110_v6, %v4014_v39 }
 0x296   : > { %5149 = vtanh.f32 %v4040_v27  ;;  %v4018_v29 = vmul.f32 %v7100_v13, %v3967_v24  ;;  %v4053_v28 = vadd.f32 %v7110_v6, %v4015_v16  ;;  %v4019_v26 = vmul.f32 %v7100_v13, %v3968_v19 }
 0x297   : > { %5151 = vtanh.f32 %v4041_v61  ;;  %v4054_v40 = vadd.f32 %v7110_v6, %v4016_v47  ;;  %v4020_v11 = vmul.f32 %v7100_v13, %v3969_v32  ;;  %v4055_v42 = vadd.f32 %v7110_v6, %v4017_v45 }
 0x298   : > { %5153 = vtanh.f32 %v4042_v2  ;;  %v4021_v52 = vmul.f32 %v7100_v13, %v3970_v41  ;;  %v4056_v15 = vadd.f32 %v7110_v6, %v4018_v29  ;;  %v4022_v63 = vmul.f32 %v7100_v13, %v3971_v38 }
 0x299   : > { %v5136_v53 = vpop.eup %5135  ;;  %5155 = vtanh.f32 %v4043_v34  ;;  %v4057_v27 = vadd.f32 %v7110_v6, %v4019_v26  ;;  %v4023_v35 = vmul.f32 %v7100_v13, %v3972_v1  ;;  %v4058_v54 = vadd.f32 %v7110_v6, %v4020_v11 }
 0x29a   : > { %v5138_v10 = vpop.eup %5137  ;;  %4097 = vst [vmem:[%s5315_s7] sm:$0xff] %v5136_v53  ;;  %5157 = vtanh.f32 %v4044_v20  ;;  %v4024_v23 = vmul.f32 %v7100_v13, %v3973_v36  ;;  %v4059_v62 = vadd.f32 %v7110_v6, %v4021_v52  ;;  %v4025_v55 = vmul.f32 %v7100_v13, %v3974_v8 }
 0x29b   : > { %v5140_v60 = vpop.eup %5139  ;;  %4098 = vst [vmem:[%s5315_s7 + $0x8] sm:$0xff] %v5138_v10  ;;  %5159 = vtanh.f32 %v4045_v7  ;;  %v4060_v14 = vadd.f32 %v7110_v6, %v4022_v63  ;;  %v4026_v48 = vmul.f32 %v7100_v13, %v3975_v49  ;;  %v4061_v0 = vadd.f32 %v7110_v6, %v4023_v35 }
 0x29c   : > { %v5142_v30 = vpop.eup %5141  ;;  %4099 = vst [vmem:[%s5315_s7 + $0x10] sm:$0xff] %v5140_v60  ;;  %5161 = vtanh.f32 %v4046_v9  ;;  %v4062_v7 = vadd.f32 %v7110_v6, %v4024_v23  ;;  %v4063_v37 = vadd.f32 %v7110_v6, %v4025_v55 }
 0x29d   : > { %v5144_v46 = vpop.eup %5143  ;;  %4100 = vst [vmem:[%s5315_s7 + $0x18] sm:$0xff] %v5142_v30  ;;  %5163 = vtanh.f32 %v4047_v12  ;;  %v4064_v9 = vadd.f32 %v7110_v6, %v4026_v48 }
 0x29e   : > { %v5146_v58 = vpop.eup %5145  ;;  %4101 = vst [vmem:[%s5315_s7 + $0x20] sm:$0xff] %v5144_v46  ;;  %5165 = vtanh.f32 %v4048_v5 }
 0x29f   : > { %v5148_v17 = vpop.eup %5147  ;;  %4102 = vst [vmem:[%s5315_s7 + $0x28] sm:$0xff] %v5146_v58  ;;  %5167 = vtanh.f32 %v4049_v50 }
 0x2a0   : > { %v5150_v21 = vpop.eup %5149  ;;  %4103 = vst [vmem:[%s5315_s7 + $0x30] sm:$0xff] %v5148_v17  ;;  %5169 = vtanh.f32 %v4050_v51 }
 0x2a1   : > { %v5152_v43 = vpop.eup %5151  ;;  %4104 = vst [vmem:[%s5315_s7 + $0x38] sm:$0xff] %v5150_v21  ;;  %5171 = vtanh.f32 %v4051_v44 }
 0x2a2   : > { %v5154_v33 = vpop.eup %5153  ;;  %4105 = vst [vmem:[%s5315_s7 + $0x40] sm:$0xff] %v5152_v43  ;;  %5173 = vtanh.f32 %v4052_v57 }
 0x2a3   : > { %v5156_v4 = vpop.eup %5155  ;;  %4106 = vst [vmem:[%s5315_s7 + $0x48] sm:$0xff] %v5154_v33  ;;  %5175 = vtanh.f32 %v4053_v28 }
 0x2a4   : > { %v5158_v61 = vpop.eup %5157  ;;  %4107 = vst [vmem:[%s5315_s7 + $0x50] sm:$0xff] %v5156_v4  ;;  %5177 = vtanh.f32 %v4054_v40 }
 0x2a5   : > { %v5160_v2 = vpop.eup %5159  ;;  %4108 = vst [vmem:[%s5315_s7 + $0x58] sm:$0xff] %v5158_v61  ;;  %5179 = vtanh.f32 %v4055_v42 }
 0x2a6   : > { %v5162_v34 = vpop.eup %5161  ;;  %4109 = vst [vmem:[%s5315_s7 + $0x60] sm:$0xff] %v5160_v2  ;;  %5181 = vtanh.f32 %v4056_v15 }
 0x2a7   : > { %v5164_v20 = vpop.eup %5163  ;;  %4110 = vst [vmem:[%s5315_s7 + $0x68] sm:$0xff] %v5162_v34  ;;  %5183 = vtanh.f32 %v4057_v27 }
 0x2a8   : > { %v5166_v18 = vpop.eup %5165  ;;  %4111 = vst [vmem:[%s5315_s7 + $0x70] sm:$0xff] %v5164_v20  ;;  %5185 = vtanh.f32 %v4058_v54 }
 0x2a9   : > { %v5168_v31 = vpop.eup %5167  ;;  %4112 = vst [vmem:[%s5315_s7 + $0x78] sm:$0xff] %v5166_v18  ;;  %5187 = vtanh.f32 %v4059_v62 }
 0x2aa   : > { %v5170_v13 = vpop.eup %5169  ;;  %4113 = vst [vmem:[%s5315_s7 + $0x80] sm:$0xff] %v5168_v31  ;;  %5189 = vtanh.f32 %v4060_v14 }
 0x2ab   : > { %v5172_v22 = vpop.eup %5171  ;;  %4114 = vst [vmem:[%s5315_s7 + $0x88] sm:$0xff] %v5170_v13  ;;  %5191 = vtanh.f32 %v4061_v0 }
 0x2ac   : > { %v5174_v25 = vpop.eup %5173  ;;  %4115 = vst [vmem:[%s5315_s7 + $0x90] sm:$0xff] %v5172_v22  ;;  %5193 = vtanh.f32 %v4062_v7 }
 0x2ad   : > { %v5176_v53 = vpop.eup %5175  ;;  %4116 = vst [vmem:[%s5315_s7 + $0x98] sm:$0xff] %v5174_v25  ;;  %5195 = vtanh.f32 %v4063_v37 }
 0x2ae   : > { %v5178_v12 = vpop.eup %5177  ;;  %4117 = vst [vmem:[%s5315_s7 + $0xa0] sm:$0xff] %v5176_v53  ;;  %5197 = vtanh.f32 %v4064_v9 }
 0x2af   : > { %v5180_v6 = vpop.eup %5179  ;;  %4118 = vst [vmem:[%s5315_s7 + $0xa8] sm:$0xff] %v5178_v12 }
 0x2b0   : > { %v5182_v3 = vpop.eup %5181  ;;  %4119 = vst [vmem:[%s5315_s7 + $0xb0] sm:$0xff] %v5180_v6 }
 0x2b1   : > { %v5184_v59 = vpop.eup %5183  ;;  %4120 = vst [vmem:[%s5315_s7 + $0xb8] sm:$0xff] %v5182_v3 }
 0x2b2   : > { %v5186_v10 = vpop.eup %5185  ;;  %4121 = vst [vmem:[%s5315_s7 + $0xc0] sm:$0xff] %v5184_v59 }
 0x2b3   : > { %v5188_v5 = vpop.eup %5187  ;;  %4122 = vst [vmem:[%s5315_s7 + $0xc8] sm:$0xff] %v5186_v10 }
 0x2b4   : > { %v5190_v39 = vpop.eup %5189  ;;  %4123 = vst [vmem:[%s5315_s7 + $0xd0] sm:$0xff] %v5188_v5 }
 0x2b5   : > { %v5192_v56 = vpop.eup %5191  ;;  %4124 = vst [vmem:[%s5315_s7 + $0xd8] sm:$0xff] %v5190_v39 }
 0x2b6   : > { %v5194_v60 = vpop.eup %5193  ;;  %4125 = vst [vmem:[%s5315_s7 + $0xe0] sm:$0xff] %v5192_v56 }
 0x2b7   : > { %v5196_v50 = vpop.eup %5195  ;;  %4126 = vst [vmem:[%s5315_s7 + $0xe8] sm:$0xff] %v5194_v60 }
 0x2b8   : > { %v5198_v16 = vpop.eup %5197  ;;  %4127 = vst [vmem:[%s5315_s7 + $0xf0] sm:$0xff] %v5196_v50 }
 0x2b9   : > { %4128 = vst [vmem:[%s5315_s7 + $0xf8] sm:$0xff] %v5198_v16 }
 0x2ba PF: > { %s16_s22 = sadd.s32 1, %s5237_s22   ;;  %s7329_s18 = smov %s5229_s20 }
 0x2bb   : > { %p13_p12 = scmp.ge.s32.totalorder %s16_s22, 6   ;;  %s7330_s19 = smov %s5233_s21 }
 0x2bc   : > { %s7331_s20 = smov %s7334_s4  ;;  %s7332_s21 = smov %s7338_s23 }
 0x2bd   :  { %15 = sbr.rel (!%p13_p12) target bundleno = 3 (0x3), region = 86 }

// kernel: ae_encoder_forward.4
= control target key start
LH: loop header
LB: loop body
LE: loop exit
PB: predicated region body
PF: predicated region fallthrough
CT: control target
= control target key end

     0   :  { %s8221_s0 = inlined_call_operand.vmem [shape: bf16[2,18,18,64], index: 0, kind: input, shape index: {}]   ;;  %s8222_s1 = inlined_call_operand.vmem [shape: bf16[576,64], index: 1, kind: input, shape index: {}]   ;;  %s8223_s2 = inlined_call_operand.vmem [shape: f32[1,64], index: 2, kind: input, shape index: {}]   ;;  %s8224_s3 = inlined_call_operand.vmem [shape: f32[1,64], index: 3, kind: input, shape index: {}]   ;;  %s8225_s4 = inlined_call_operand.<no memory space> [shape: f32[1], index: 4, kind: input, shape index: {}]   ;;  %s8226_s5 = inlined_call_operand.hbm [shape: f32[2,256,64], index: 5, kind: output, shape index: {0}]   ;;  %s8227_s6 = inlined_call_operand.vmem [shape: bf16[2,256,64], index: 6, kind: output, shape index: {1}]  }
   0x1   :  { %12 = sst [smem:[#allocation5]] %s8225_s4 }
   0x2   :  { %13 = vsyncpa [#allocation7], 0 }
   0x3   :  { %15 = vsyncpa [#allocation7 + $0x1], 0  ;;  %s5765_s23 = smov 0   ;;  %s5767_s24 = smov 0  }
   0x4   :  { %s5769_s25 = smov 0   ;;  %s5771_s26 = smov 0  }
   0x5   :  { %s5773_s27 = smov 0   ;;  %s5775_s28 = smov 0  }
   0x6   :  { %s5777_s29 = smov 0   ;;  %s5779_s30 = smov 0  }
   0x7 LB: > { %s4592_s4 = sadd.s32 4294967295, %s5720_s30   ;;  %s4593_s7 = sadd.s32 4294967294, %s5720_s30   ;;  %s5720_s30 = sphi %s5779_s30, %s21_s30   ;;  %s5716_s29 = sphi %s5777_s29, %s8320_s29   ;;  %s5712_s28 = sphi %s5775_s28, %s8319_s28   ;;  %s5708_s27 = sphi %s5773_s27, %s8318_s27   ;;  %s5704_s26 = sphi %s5771_s26, %s8317_s26   ;;  %s5700_s25 = sphi %s5769_s25, %s8316_s25   ;;  %s5696_s24 = sphi %s5767_s24, %s8315_s24   ;;  %s5692_s23 = sphi %s5765_s23, %s8314_s23  }
   0x8   : > { %s30_s8 = sadd.s32 1, %s5712_s28  ;;  %s33_s9 = sadd.s32 1, %s5716_s29 }
   0x9   : > { %p31_p0 = scmp.ge.s32.totalorder %s30_s8, 2  ;;  %s153_s10 = smul.u32 %s5712_s28, %s5716_s29 }
   0xa   : > { %p168_p1 = scmp.ne.s32.totalorder %s5700_s25, %s5696_s24  ;;  %p169_p2 = scmp.eq.s32.totalorder %s4592_s4, 3 }
   0xb   : > { %s8322_s8 = smov (%p31_p0, %s30_s8), 0  ;;  %s8324_s9 = smov (!%p31_p0, %s33_s9), %s5716_s29 }
   0xc   : > { %p174_p3 = scmp.ne.s32.totalorder %s5696_s24, %s5692_s23  ;;  %p35_p4 = scmp.ge.s32.totalorder %s8324_s9, 2 }
   0xd   : > { %p175_p5 = scmp.eq.s32.totalorder %s4593_s7, 3  ;;  %p5818_p6 = por %p169_p2, %p168_p1 }
   0xe   : > { %p4596_p7 = scmp.ge.s32.totalorder %s5720_s30, 1  ;;  %s8326_s9 = smov (%p35_p4, %s8324_s9), 0 }
   0xf   : > { %8243 = sst [smem:[#allocation9_spill]] %s8326_s9  ;;  %p5825_p8 = por %p175_p5, %p174_p3 }
  0x10   : > { %p247_p9 = scmp.lt.s32.totalorder %s5720_s30, 5  ;;  %s154_s13 = smul.u32 %s8326_s9, %s8322_s8 }
  0x11   : > { %s158_s15 = sadd.s32 1, %s5700_s25 }
  0x12   : > { %p248_p10 = pnand %p4596_p7, %p247_p9  ;;  %s155_s14 = ssub.s32 %s153_s10, %s154_s13 }
  0x13   : > { %p156_p11 = scmp.eq.s32.totalorder %s155_s14, 0  ;;  %s8228_s17 = sand.u32 (!%p248_p10), 1, %s5696_s24  }
  0x14   : > { %251 = sbr.rel (%p248_p10) target bundleno = 748 (0x2ec), region = 40  ;;  %s286_s18 = ssub.s32 (!%p248_p10), 1, %s5708_s27 }
  0x15   : > { %s5834_s16 = scalar_select %p156_p11, %s5700_s25, %s158_s15  }
  0x16   : > { %s4597_s19 = sshll.u32 (!%p248_p10), %s8228_s17, 8  ;;  %s287_s20 = smul.u32 (!%p248_p10), %s5704_s26, %s286_s18 }
  0x17   : > { %s5843_s21 = smul.u32 (!%p248_p10), %s5704_s26, %s5708_s27  ;;  %p306_p12 = scmp.eq.s32.totalorder (!%p248_p10), %s5708_s27, 0 }
  0x18   : > { %s288_s22 = sadd.s32 (!%p248_p10), %s5708_s27, %s287_s20  ;;  %p307_p1 = scmp.eq.s32.totalorder (!%p248_p10), %s5704_s26, 0 }
  0x19   : > { %p289_p13 = scmp.lt.s32.totalorder (!%p248_p10), %s288_s22, 1  ;;  %p299_p0 = scmp.lt.s32.totalorder (!%p248_p10), %s5843_s21, 1 }
  0x1a   : > { %p308_p2 = pnand (!%p248_p10), %p307_p1, %p306_p12  ;;  %s5860_s20 = scalar_lea.vmem (!%p248_p10), [#allocation6], %s4597_s19 }
  0x1b   : > { %s8328_s22 = smov (!%p289_p13, %s288_s22), 1  ;;  %vm312_vm0 = vcmask (!%p308_p2), 516096   ;;  %v5722_v0 = vmov (!%p308_p2), 0.0  }
  0x1c   : > { %s300_s4 = scalar_select %p299_p0, %s5843_s21, 1 }
  0x1d   : > { %s5348_s7 = smul.u32 216, %s8328_s22  ;;  %313 = vst.msk [vmem:[#allocation3] sm:$0x1] (!%p308_p2), %vm312_vm0, %v5722_v0  ;;  %314 = vst.msk [vmem:[#allocation4] sm:$0x1] (!%p308_p2), %vm312_vm0, %v5722_v0 }
  0x1e   : > { %s5014_s10 = sshll.u32 %s300_s4, 7  ;;  %311 = sbr.rel (%p308_p2) target bundleno = 37 (0x25), region = 44 }
  0x1f   : > { %s5853_s15 = scalar_lea.vmem %s8221_s0, %s5348_s7  ;;  %s5858_s9 = scalar_lea.vmem %s8227_s6, %s5014_s10 }
  0x25 PF: > { %p4601_p3 = scmp.ne.s32.totalorder %s5708_s27, 0 }
  0x27   : > { %317 = sbr.rel (%p4601_p3) target bundleno = 634 (0x27a), region = 48 }
  0x2e   : > { %v5864_v1 = vld [vmem:[%s5853_s15 + $0xc] sm:$0xf]  ;;  %v5867_v2 = vld [vmem:[%s5853_s15 + $0x10] sm:$0xf]  ;;  %v5872_v4 = vld [vmem:[%s5853_s15 + $0x9c] sm:$0xf] }
  0x2f   : > { %v4826_v3 = vcombine.low %v5864_v1, %v5867_v2  ;;  %v5875_v5 = vld [vmem:[%s5853_s15 + $0xa0] sm:$0xf]  ;;  %s5723_s17 = smov 64   ;;  %v319_v7 = vld [vmem:[%s5853_s15 + $0x4] sm:$0xf]  ;;  %v991_v56 = vshll.u32 %v5867_v2, 16 }
  0x30   : > { %8245 = vst [vmem:[#allocation10_spill] sm:$0xff] %v5875_v5  ;;  %v318_v6 = vld [vmem:[%s5853_s15] sm:$0xf]  ;;  %v4838_v8 = vcombine.low %v5872_v4, %v5875_v5  ;;  %v5883_v9 = vld [vmem:[%s5853_s15 + $0x8] sm:$0x1]  ;;  %v379_v12 = vshll.u32 %v319_v7, 16 }
  0x31   : > { %2406 = vrot.lane.b32.xlu0 %v4826_v3, %s5723_s17  ;;  %vm366_vm1 = vsmask.f32 3328  ;;  %v370_v10 = vshrl.u32 %v318_v6, 16  ;;  %v373_v11 = vshll.u32 %v318_v6, 16  ;;  %v383_v13 = vshrl.u32 %v319_v7, 16 }
  0x32   : > { %v389_v14 = vshll.u32 %v5883_v9, 16  ;;  %v5888_v15 = vld [vmem:[%s5853_s15 + $0x18] sm:$0xf]  ;;  %v5891_v17 = vld [vmem:[%s5853_s15 + $0x1c] sm:$0xf]  ;;  %v381_v20 = vrot.slane %v379_v12, 5 }
  0x33   : > { %v372_v16 = vrot.slane %v370_v10, 4  ;;  %v342_v18 = vld [vmem:[%s5853_s15 + $0x90] sm:$0xf]  ;;  %vm367_vm2 = vsmask.f32 7440  ;;  %v375_v19 = vrot.slane %v373_v11, 5  ;;  %v4827_v26 = vcombine.low %v5888_v15, %v5891_v17 }
  0x34   : > { %v385_v21 = vrot.slane %v383_v13, 4  ;;  %v391_v22 = vrot.slane %v389_v14, 5  ;;  %v343_v23 = vld [vmem:[%s5853_s15 + $0x94] sm:$0xf]  ;;  %v362_v27 = vld [vmem:[%s5853_s15 + $0x98] sm:$0x1]  ;;  %vm5899_vm3 = vmor %vm366_vm1, %vm367_vm2 }
  0x35   : > { %2430 = vrot.lane.b32.xlu0 %v4838_v8, %s5723_s17  ;;  %v376_v24 = vor.u32 %v375_v19, %v372_v16  ;;  %v658_v28 = vshrl.u32 %v342_v18, 16  ;;  %v661_v30 = vshll.u32 %v342_v18, 16  ;;  %v320_v31 = vld [vmem:[%s5853_s15 + $0xc] sm:$0xf]  ;;  %v667_v35 = vshll.u32 %v343_v23, 16 }
  0x36   : > { %v386_v25 = vor.u32 %v385_v21, %v381_v20  ;;  %v671_v37 = vshrl.u32 %v343_v23, 16  ;;  %v677_v38 = vshll.u32 %v362_v27, 16  ;;  %v321_v39 = vld [vmem:[%s5853_s15 + $0x10] sm:$0xf]  ;;  %v351_v43 = vld [vmem:[%s5853_s15 + $0x14] sm:$0x1] }
  0x37   : > { %v377_v32 = vrot.slane %v376_v24, 4  ;;  %v660_v34 = vrot.slane %v658_v28, 4  ;;  %v663_v36 = vrot.slane %v661_v30, 5  ;;  %v669_v42 = vrot.slane %v667_v35, 5  ;;  %v5923_v12 = vld [vmem:[%s5853_s15 + $0xa8] sm:$0xf] }
  0x38   : > { %v387_v33 = vrot.slane %v386_v25, 4  ;;  %v394_v44 = vshrl.u32 %v320_v31, 16  ;;  %v673_v47 = vrot.slane %v671_v37, 4  ;;  %v679_v48 = vrot.slane %v677_v38, 5  ;;  %v5926_v13 = vld [vmem:[%s5853_s15 + $0xac] sm:$0xf] }
  0x39   : > { %2408 = vrot.lane.b32.xlu0 %v4827_v26, %s5723_s17  ;;  %v382_v40 = vsel %vm5899_vm3, %v377_v32, %v381_v20  ;;  %v664_v46 = vor.u32 %v663_v36, %v660_v34  ;;  %v397_v50 = vshll.u32 %v320_v31, 16  ;;  %v403_v51 = vshll.u32 %v321_v39, 16  ;;  %8248 = vst [vmem:[#allocation11_spill] sm:$0xff] %v5926_v13  ;;  %v344_v19 = vld [vmem:[%s5853_s15 + $0x9c] sm:$0xf]  ;;  %v5439_v28 = vld [vmem:[%s8222_s1 + $0x40] sm:$0xff]  }
  0x3a   : > { %v392_v41 = vsel %vm5899_vm3, %v387_v33, %v391_v22  ;;  %v396_v49 = vrot.slane %v394_v44, 4  ;;  %v674_v53 = vor.u32 %v673_v47, %v669_v42  ;;  %v407_v54 = vshrl.u32 %v321_v39, 16  ;;  %v5934_v21 = vld [vmem:[%s5853_s15 + $0x24] sm:$0xf]  ;;  %v345_v22 = vld [vmem:[%s5853_s15 + $0xa0] sm:$0xf]  ;;  %5048 = vmatprep.subr.bf16.mxu0 %v5439_v28  ;;  %5332 = vmatprep.subr.bf16.mxu1 %v5439_v28 }
  0x3b   : > { %v4794_v45 = vcombine.low %v382_v40, %v392_v41  ;;  %v665_v52 = vrot.slane %v664_v46, 4  ;;  %v413_v55 = vshll.u32 %v351_v43, 16  ;;  %v995_v57 = vshrl.u32 %v5867_v2, 16  ;;  %v5943_v26 = vld [vmem:[%s5853_s15 + $0x28] sm:$0xf]  ;;  %v5441_v44 = vld [vmem:[%s8222_s1] sm:$0xff]  }
  0x3c   : > { %v399_v58 = vrot.slane %v397_v50, 5  ;;  %v405_v59 = vrot.slane %v403_v51, 5  ;;  %v982_v60 = vshrl.u32 %v5864_v1, 16  ;;  %v675_v62 = vrot.slane %v674_v53, 4  ;;  %v363_v27 = vld [vmem:[%s5853_s15 + $0xa4] sm:$0x1]  ;;  %5049 = vmatpush3.bf16.msra.mxu0 %v5441_v44  ;;  %5340 = vmatpush3.bf16.msra.mxu1 %v5441_v44 }
  0x3d   : > { %2262 = vrot.lane.b32.xlu1 %v4794_v45, %s5723_s17  ;;  %v670_v61 = vsel %vm5899_vm3, %v665_v52, %v669_v42  ;;  %v409_v63 = vrot.slane %v407_v54, 4  ;;  %v985_v0 = vshll.u32 %v5864_v1, 16  ;;  %v1270_v3 = vshrl.u32 %v5872_v4, 16  ;;  %v322_v34 = vld [vmem:[%s5853_s15 + $0x18] sm:$0xf] }
  0x3e   : > { %v400_v6 = vor.u32 %v399_v58, %v396_v49  ;;  %v1273_v7 = vshll.u32 %v5872_v4, 16  ;;  %v680_v8 = vsel %vm5899_vm3, %v675_v62, %v679_v48  ;;  %v415_v11 = vrot.slane %v413_v55, 5  ;;  %v323_v39 = vld [vmem:[%s5853_s15 + $0x1c] sm:$0xf]  ;;  %v352_v47 = vld [vmem:[%s5853_s15 + $0x20] sm:$0x1] }
  0x3f   : > { %v410_v10 = vor.u32 %v409_v63, %v405_v59  ;;  %v5928_v14 = vrot.slane %v991_v56, 5  ;;  %v5930_v1 = vrot.slane %v995_v57, 4  ;;  %v4806_v16 = vcombine.low %v670_v61, %v680_v8  ;;  %v5442_v58 = vld [vmem:[%s8222_s1 + $0x48] sm:$0xff]  }
  0x40   : > { %v401_v18 = vrot.slane %v400_v6, 4  ;;  %v984_v4 = vrot.slane %v982_v60, 4  ;;  %v987_v23 = vrot.slane %v985_v0, 5  ;;  %v4839_v25 = vcombine.low %v5923_v12, %v5926_v13  ;;  %5050 = vmatprep.subr.bf16.mxu0 %v5442_v58  ;;  %5333 = vmatprep.subr.bf16.mxu1 %v5442_v58 }
  0x41   : > { %v411_v20 = vrot.slane %v410_v10, 4  ;;  %2286 = vrot.lane.b32.xlu1 %v4806_v16, %s5723_s17  ;;  %v1272_v30 = vrot.slane %v1270_v3, 4  ;;  %v1275_v31 = vrot.slane %v1273_v7, 5  ;;  %v682_v33 = vshrl.u32 %v344_v19, 16 }
  0x42   : > { %v406_v24 = vsel %vm5899_vm3, %v401_v18, %v405_v59  ;;  %v1283_v35 = vshrl.u32 %v5875_v5, 16  ;;  %v685_v37 = vshll.u32 %v344_v19, 16  ;;  %v691_v38 = vshll.u32 %v345_v22, 16 }
  0x43   : > { %v416_v32 = vsel %vm5899_vm3, %v411_v20, %v415_v11  ;;  %v4828_v40 = vcombine.low %v5934_v21, %v5943_v26  ;;  %v684_v41 = vrot.slane %v682_v33, 4  ;;  %v695_v42 = vshrl.u32 %v345_v22, 16 }
  0x44   : > { %v4795_v36 = vcombine.low %v406_v24, %v416_v32  ;;  %v701_v43 = vshll.u32 %v363_v27, 16  ;;  %v687_v45 = vrot.slane %v685_v37, 5  ;;  %v693_v46 = vrot.slane %v691_v38, 5  ;;  %v5980_v24 = vld [vmem:[%s5853_s15 + $0xb4] sm:$0xf] }
  0x45   : > { %2432 = vrot.lane.b32.xlu1 %v4839_v25, %s5723_s17  ;;  %v418_v48 = vshrl.u32 %v322_v34, 16  ;;  %v421_v49 = vshll.u32 %v322_v34, 16  ;;  %v988_v50 = vor.u32 %v987_v23, %v984_v4  ;;  %v1276_v51 = vor.u32 %v1275_v31, %v1272_v30  ;;  %v5983_v25 = vld [vmem:[%s5853_s15 + $0xb8] sm:$0xf]  ;;  %v346_v32 = vld [vmem:[%s5853_s15 + $0xa8] sm:$0xf] }
  0x46   : > { %2264 = vrot.lane.b32.xlu0 %v4795_v36, %s5723_s17  ;;  %v697_v52 = vrot.slane %v695_v42, 4  ;;  %v427_v53 = vshll.u32 %v323_v39, 16  ;;  %v688_v54 = vor.u32 %v687_v45, %v684_v41  ;;  %v431_v57 = vshrl.u32 %v323_v39, 16  ;;  %8251 = vst [vmem:[#allocation14_spill] sm:$0xff] %v5983_v25  ;;  %v347_v34 = vld [vmem:[%s5853_s15 + $0xac] sm:$0xf] }
  0x47   : > { %v420_v55 = vrot.slane %v418_v48, 4  ;;  %v423_v56 = vrot.slane %v421_v49, 5  ;;  %v703_v60 = vrot.slane %v701_v43, 5  ;;  %v437_v62 = vshll.u32 %v352_v47, 16  ;;  %v6000_v38 = vld [vmem:[%s5853_s15 + $0x30] sm:$0xf] }
  0x48   : > { %v698_v59 = vor.u32 %v697_v52, %v693_v46  ;;  %v429_v61 = vrot.slane %v427_v53, 5  ;;  %v689_v0 = vrot.slane %v688_v54, 4  ;;  %v433_v6 = vrot.slane %v431_v57, 4  ;;  %v6003_v39 = vld [vmem:[%s5853_s15 + $0x34] sm:$0xf]  ;;  %v5443_v45 = vld [vmem:[%s8222_s1 + $0x8] sm:$0xff]  }
  0x49   : > { %v424_v3 = vor.u32 %v423_v56, %v420_v55  ;;  %v5967_v7 = vrot.slane %v988_v50, 4  ;;  %v5969_v8 = vrot.slane %v1283_v35, 4  ;;  %v1006_v10 = vshrl.u32 %v5888_v15, 16  ;;  %v364_v35 = vld [vmem:[%s5853_s15 + $0xb0] sm:$0x1]  ;;  %5051 = vmatpush3.bf16.msra.mxu0 %v5443_v45  ;;  %5341 = vmatpush3.bf16.msra.mxu1 %v5443_v45 }
  0x4a   : > { %2410 = vrot.lane.b32.xlu0 %v4828_v40, %s5723_s17  ;;  %v699_v11 = vrot.slane %v698_v59, 4  ;;  %v694_v16 = vsel %vm5899_vm3, %v689_v0, %v693_v46  ;;  %v434_v19 = vor.u32 %v433_v6, %v429_v61  ;;  %v439_v4 = vrot.slane %v437_v62, 5  ;;  %v324_v40 = vld [vmem:[%s5853_s15 + $0x24] sm:$0xf]  ;;  %v325_v50 = vld [vmem:[%s5853_s15 + $0x28] sm:$0xf] }
  0x4b   : > { %8249 = vst [vmem:[#allocation12_spill] sm:$0xff] %v5969_v8  ;;  %v425_v18 = vrot.slane %v424_v3, 4  ;;  %v5974_v20 = vrot.slane %v1276_v51, 4  ;;  %v1009_v22 = vshll.u32 %v5888_v15, 16  ;;  %v5989_v33 = vrot.slane %v1006_v10, 4  ;;  %v5444_v56 = vld [vmem:[%s8222_s1 + $0x50] sm:$0xff]  }
  0x4c   : > { %v704_v23 = vsel %vm5899_vm3, %v699_v11, %v703_v60  ;;  %v435_v31 = vrot.slane %v434_v19, 4  ;;  %v1019_v15 = vshrl.u32 %v5891_v17, 16  ;;  %v4840_v37 = vcombine.low %v5980_v24, %v5983_v25  ;;  %v353_v54 = vld [vmem:[%s5853_s15 + $0x2c] sm:$0x1]  ;;  %5052 = vmatprep.subr.bf16.mxu0 %v5444_v56  ;;  %v5445_v6 = vld [vmem:[%s8222_s1 + $0x10] sm:$0xff]   ;;  %5334 = vmatprep.subr.bf16.mxu1 %v5444_v56 }
  0x4d   : > { %8250 = vst [vmem:[#allocation13_spill] sm:$0xff] %v5974_v20  ;;  %v4807_v28 = vcombine.low %v694_v16, %v704_v23  ;;  %v430_v30 = vsel %vm5899_vm3, %v425_v18, %v429_v61  ;;  %v6006_v41 = vrot.slane %v1009_v22, 5  ;;  %v706_v43 = vshrl.u32 %v346_v32, 16  ;;  %v5446_v18 = vld [vmem:[%s8222_s1 + $0x58] sm:$0xff]   ;;  %5053 = vmatpush3.bf16.msra.mxu0 %v5445_v6  ;;  %5342 = vmatpush3.bf16.msra.mxu1 %v5445_v6  ;;  %v4649_v45 = vld [vmem:[%s5853_s15 + $0xc4] sm:$0xf] }
  0x4e   : > { %v440_v36 = vsel %vm5899_vm3, %v435_v31, %v439_v4  ;;  %v709_v44 = vshll.u32 %v346_v32, 16  ;;  %v1294_v46 = vshrl.u32 %v5923_v12, 16  ;;  %v715_v47 = vshll.u32 %v347_v34, 16  ;;  %5054 = vmatprep.subr.bf16.mxu0 %v5446_v18  ;;  %5335 = vmatprep.subr.bf16.mxu1 %v5446_v18  ;;  %v5450_v56 = vld [vmem:[%s8222_s1 + $0x68] sm:$0xff]   ;;  %v326_v6 = vld [vmem:[%s5853_s15 + $0x30] sm:$0xf] }
  0x4f   : > { %2288 = vrot.lane.b32.xlu1 %v4807_v28, %s5723_s17  ;;  %v4796_v42 = vcombine.low %v430_v30, %v440_v36  ;;  %v719_v48 = vshrl.u32 %v347_v34, 16  ;;  %v725_v49 = vshll.u32 %v364_v35, 16  ;;  %v4829_v51 = vcombine.low %v6000_v38, %v6003_v39  ;;  %v5447_v34 = vld [vmem:[%s8222_s1 + $0x18] sm:$0xff]   ;;  %v327_v18 = vld [vmem:[%s5853_s15 + $0x34] sm:$0xf] }
  0x50   : > { %v708_v52 = vrot.slane %v706_v43, 4  ;;  %v711_v53 = vrot.slane %v709_v44, 5  ;;  %v442_v55 = vshrl.u32 %v324_v40, 16  ;;  %v1297_v57 = vshll.u32 %v5923_v12, 16  ;;  %v4648_v44 = vld [vmem:[%s5853_s15 + $0xc0] sm:$0xf] }
  0x51   : > { %2266 = vrot.lane.b32.xlu0 %v4796_v42, %s5723_s17  ;;  %v717_v58 = vrot.slane %v715_v47, 5  ;;  %v721_v59 = vrot.slane %v719_v48, 4  ;;  %v445_v60 = vshll.u32 %v324_v40, 16  ;;  %v727_v62 = vrot.slane %v725_v49, 5  ;;  %5055 = vmatpush3.bf16.msra.mxu0 %v5447_v34 }
  0x52   : > { %v712_v61 = vor.u32 %v711_v53, %v708_v52  ;;  %v444_v0 = vrot.slane %v442_v55, 4  ;;  %v451_v3 = vshll.u32 %v325_v50, 16  ;;  %v455_v16 = vshrl.u32 %v325_v50, 16  ;;  %v348_v50 = vld [vmem:[%s5853_s15 + $0xb4] sm:$0xf]  ;;  %5343 = vmatpush3.bf16.msra.mxu1 %v5447_v34 }
  0x53   : > { %2434 = vrot.lane.b32.xlu1 %v4840_v37, %s5723_s17  ;;  %v722_v10 = vor.u32 %v721_v59, %v717_v58  ;;  %v447_v11 = vrot.slane %v445_v60, 5  ;;  %v461_v12 = vshll.u32 %v353_v54, 16  ;;  %v1030_v19 = vshrl.u32 %v5934_v21, 16  ;;  %v5448_v37 = vld [vmem:[%s8222_s1 + $0x60] sm:$0xff]   ;;  %v349_v55 = vld [vmem:[%s5853_s15 + $0xb8] sm:$0xf] }
  0x54   : > { %v1033_v4 = vshll.u32 %v5934_v21, 16  ;;  %v713_v22 = vrot.slane %v712_v61, 4  ;;  %v453_v23 = vrot.slane %v451_v3, 5  ;;  %v1012_v28 = vor.u32 %v6006_v41, %v5989_v33  ;;  %5056 = vmatprep.subr.bf16.mxu0 %v5448_v37  ;;  %v6076_v59 = vld [vmem:[%s5853_s15 + $0x40] sm:$0xf]  ;;  %5336 = vmatprep.subr.bf16.mxu1 %v5448_v37 }
  0x55   : > { %2412 = vrot.lane.b32.xlu0 %v4829_v51, %s5723_s17  ;;  %v723_v30 = vrot.slane %v722_v10, 4  ;;  %v448_v31 = vor.u32 %v447_v11, %v444_v0  ;;  %v457_v32 = vrot.slane %v455_v16, 4  ;;  %v6037_v35 = vrot.slane %v1294_v46, 4  ;;  %v5449_v51 = vld [vmem:[%s8222_s1 + $0x20] sm:$0xff]   ;;  %v365_v60 = vld [vmem:[%s5853_s15 + $0xbc] sm:$0x1] }
  0x56   : > { %v6039_v36 = vrot.slane %v1297_v57, 5  ;;  %v718_v33 = vsel %vm5899_vm3, %v713_v22, %v717_v58  ;;  %v463_v43 = vrot.slane %v461_v12, 5  ;;  %v6052_v46 = vrot.slane %v1019_v15, 4  ;;  %v6073_v58 = vld [vmem:[%s5853_s15 + $0x3c] sm:$0xf]  ;;  %5057 = vmatpush3.bf16.msra.mxu0 %v5449_v51  ;;  %5344 = vmatpush3.bf16.msra.mxu1 %v5449_v51 }
  0x57   : > { %v728_v40 = vsel %vm5899_vm3, %v723_v30, %v727_v62  ;;  %v449_v41 = vrot.slane %v448_v31, 4  ;;  %v458_v42 = vor.u32 %v457_v32, %v453_v23  ;;  %v6054_v47 = vrot.slane %v1030_v19, 4  ;;  %v5451_v19 = vld [vmem:[%s8222_s1 + $0x28] sm:$0xff]   ;;  %v354_v30 = vld [vmem:[%s5853_s15 + $0x38] sm:$0x1]  ;;  %5058 = vmatprep.subr.bf16.mxu0 %v5450_v56  ;;  %v5452_v31 = vld [vmem:[%s8222_s1 + $0x70] sm:$0xff]   ;;  %5337 = vmatprep.subr.bf16.mxu1 %v5450_v56 }
  0x58   : > { %v6056_v48 = vrot.slane %v1033_v4, 5  ;;  %v4808_v49 = vcombine.low %v718_v33, %v728_v40  ;;  %v6062_v52 = vrot.slane %v1012_v28, 4  ;;  %v1307_v53 = vshrl.u32 %v5926_v13, 16  ;;  %v4698_v40 = vld [vmem:[%s5853_s15 + $0x18] sm:$0xf] }
  0x59   : > { %v454_v15 = vsel %vm5899_vm3, %v449_v41, %v453_v23  ;;  %v459_v54 = vrot.slane %v458_v42, 4  ;;  %v4841_v57 = vcombine.low %v4648_v44, %v4649_v45  ;;  %v1300_v61 = vor.u32 %v6039_v36, %v6037_v35  ;;  %v5454_v56 = vld [vmem:[%s8222_s1 + $0x78] sm:$0xff]   ;;  %v6154_v36 = vld [vmem:[%s5853_s15 + $0x14] sm:$0x1] }
  0x5a   : > { %2290 = vrot.lane.b32.xlu1 %v4808_v49, %s5723_s17  ;;  %v1043_v62 = vshrl.u32 %v5943_v26, 16  ;;  %v730_v3 = vshrl.u32 %v348_v50, 16  ;;  %v1036_v10 = vor.u32 %v6056_v48, %v6054_v47  ;;  %v733_v16 = vshll.u32 %v348_v50, 16  ;;  %5059 = vmatpush3.bf16.msra.mxu0 %v5451_v19 }
  0x5b   : > { %v464_v0 = vsel %vm5899_vm3, %v459_v54, %v463_v43  ;;  %v739_v12 = vshll.u32 %v349_v55, 16  ;;  %v4830_v4 = vcombine.low %v6073_v58, %v6076_v59  ;;  %v743_v23 = vshrl.u32 %v349_v55, 16  ;;  %v5453_v54 = vld [vmem:[%s8222_s1 + $0x30] sm:$0xff]   ;;  %5345 = vmatpush3.bf16.msra.mxu1 %v5451_v19  ;;  %5060 = vmatprep.subr.bf16.mxu0 %v5452_v31 }
  0x5c   : > { %v4797_v11 = vcombine.low %v454_v15, %v464_v0  ;;  %v732_v22 = vrot.slane %v730_v3, 4  ;;  %v749_v28 = vshll.u32 %v365_v60, 16  ;;  %v735_v32 = vrot.slane %v733_v16, 5  ;;  %v4699_v15 = vld [vmem:[%s5853_s15 + $0x1c] sm:$0xf]  ;;  %5338 = vmatprep.subr.bf16.mxu1 %v5452_v31 }
  0x5d   : > { %v741_v34 = vrot.slane %v739_v12, 5  ;;  %v466_v33 = vshrl.u32 %v326_v6, 16  ;;  %v469_v37 = vshll.u32 %v326_v6, 16  ;;  %v1318_v41 = vshrl.u32 %v5980_v24, 16  ;;  %v6110_v16 = vld [vmem:[%s5853_s15 + $0x20] sm:$0x1] }
  0x5e   : > { %2268 = vrot.lane.b32.xlu0 %v4797_v11, %s5723_s17  ;;  %2436 = vrot.lane.b32.xlu1 %v4841_v57, %s5723_s17  ;;  %v745_v42 = vrot.slane %v743_v23, 4  ;;  %v751_v43 = vrot.slane %v749_v28, 5  ;;  %v475_v44 = vshll.u32 %v327_v18, 16  ;;  %vm817_vm4 = vcmask 1042432   ;;  %8252 = vst [vmem:[#allocation15_spill] sm:$0xff] %v6110_v16 }
  0x5f   : > { %vm818_vm5 = vcmask 1046532   ;;  %v736_v45 = vor.u32 %v735_v32, %v732_v22  ;;  %v468_v49 = vrot.slane %v466_v33, 4  ;;  %v471_v50 = vrot.slane %v469_v37, 5  ;;  %5061 = vmatpush3.bf16.msra.mxu0 %v5453_v54  ;;  %5346 = vmatpush3.bf16.msra.mxu1 %v5453_v54 }
  0x60   : > { %v479_v51 = vshrl.u32 %v327_v18, 16  ;;  %v746_v55 = vor.u32 %v745_v42, %v741_v34  ;;  %v477_v57 = vrot.slane %v475_v44, 5  ;;  %v485_v60 = vshll.u32 %v354_v30, 16  ;;  %5062 = vmatprep.subr.bf16.mxu0 %v5454_v56  ;;  %5339 = vmatprep.subr.bf16.mxu1 %v5454_v56  ;;  %vm6171_vm6 = vmor %vm817_vm4, %vm818_vm5 }
  0x61   : > { %v1591_v0 = vshrl.u32 %v4698_v40, 16  ;;  %v737_v3 = vrot.slane %v736_v45, 4  ;;  %v472_v6 = vor.u32 %v471_v50, %v468_v49  ;;  %v1594_v12 = vshll.u32 %v4698_v40, 16  ;;  %v5458_v50 = vld [vmem:[%s8222_s1 + $0x100] sm:$0xff]  }
  0x62   : > { %2414 = vrot.lane.b32.xlu0 %v4830_v4, %s5723_s17  ;;  %v481_v11 = vrot.slane %v479_v51, 4  ;;  %v747_v18 = vrot.slane %v746_v55, 4  ;;  %v487_v22 = vrot.slane %v485_v60, 5  ;;  %v1600_v28 = vshll.u32 %v4699_v15, 16  ;;  %v5455_v4 = vld [vmem:[%s8222_s1 + $0x38] sm:$0xff]  }
  0x63   : > { %v1593_v23 = vrot.slane %v1591_v0, 4  ;;  %v742_v19 = vsel %vm5899_vm3, %v737_v3, %v741_v34  ;;  %v473_v30 = vrot.slane %v472_v6, 4  ;;  %v1596_v33 = vrot.slane %v1594_v12, 5  ;;  %v6146_v3 = vld [vmem:[%s5853_s15 + $0x4c] sm:$0xf]  ;;  %5063 = vmatpush3.bf16.msra.mxu0 %v5455_v4  ;;  %5347 = vmatpush3.bf16.msra.mxu1 %v5455_v4 }
  0x64   : > { %v482_v32 = vor.u32 %v481_v11, %v477_v57  ;;  %v752_v37 = vsel %vm5899_vm3, %v747_v18, %v751_v43  ;;  %v1602_v40 = vrot.slane %v1600_v28, 5  ;;  %v1604_v31 = vshrl.u32 %v4699_v15, 16  ;;  %v5457_v43 = vld [vmem:[%s8222_s1 + $0xc0] sm:$0xff]   ;;  %5292 = vmatprep.subr.bf16.mxu0 %v5458_v50  ;;  %v4732_v51 = vld [vmem:[%s5853_s15 + $0x38] sm:$0x1] }
  0x65   : > { %v1610_v42 = vshll.u32 %v6110_v16, 16  ;;  %v4809_v44 = vcombine.low %v742_v19, %v752_v37  ;;  %v478_v34 = vsel %vm5899_vm3, %v473_v30, %v477_v57  ;;  %v1597_v49 = vor.u32 %v1596_v33, %v1593_v23  ;;  %v6135_v57 = vld [vmem:[%s5853_s15 + $0x48] sm:$0xf]  ;;  %v329_v19 = vld [vmem:[%s5853_s15 + $0x40] sm:$0xf]  ;;  %5160 = vmatprep.subr.bf16.mxu1 %v5457_v43 }
  0x66   : > { %v483_v45 = vrot.slane %v482_v32, 4  ;;  %v6131_v15 = vrot.slane %v1307_v53, 4  ;;  %v1606_v55 = vrot.slane %v1604_v31, 4  ;;  %v6140_v60 = vrot.slane %v1300_v61, 4  ;;  %v4666_v53 = vld [vmem:[%s5853_s15 + $0xc] sm:$0xe] }
  0x67   : > { %2292 = vrot.lane.b32.xlu1 %v4809_v44, %s5723_s17  ;;  %v1598_v56 = vrot.slane %v1597_v49, 4  ;;  %v6151_v6 = vrot.slane %v1043_v62, 4  ;;  %v1612_v35 = vrot.slane %v1610_v42, 5  ;;  %v328_v61 = vld [vmem:[%s5853_s15 + $0x3c] sm:$0xf]  ;;  %v6160_v18 = vrot.slane %v1036_v10, 4 }
  0x68   : > { %8253 = vst [vmem:[#allocation16_spill] sm:$0xff] %v6131_v15  ;;  %8254 = vst [vmem:[#allocation17_spill] sm:$0xff] %v6140_v60  ;;  %v488_v0 = vsel %vm5899_vm3, %v483_v45, %v487_v22  ;;  %v1607_v12 = vor.u32 %v1606_v55, %v1602_v40  ;;  %v6164_v22 = vrot.slane %v1318_v41, 4  ;;  %v1321_v62 = vshll.u32 %v5980_v24, 16  ;;  %v355_v32 = vld [vmem:[%s5853_s15 + $0x44] sm:$0x1] }
  0x69   : > { %v4798_v11 = vcombine.low %v478_v34, %v488_v0  ;;  %v1603_v23 = vsel %vm5899_vm3, %v1598_v56, %v1602_v40  ;;  %v4831_v48 = vcombine.low %v6135_v57, %v6146_v3  ;;  %v4682_v10 = vrot.slane %v4666_v53, 9  ;;  %v4700_v44 = vld [vmem:[%s5853_s15 + $0x24] sm:$0xf]  ;;  %v6190_v43 = vld [vmem:[%s5853_s15 + $0x28] sm:$0xf] }
  0x6a   : > { %8255 = vst [vmem:[#allocation18_spill] sm:$0xff] %v6164_v22  ;;  %v1608_v47 = vrot.slane %v1607_v12, 4  ;;  %v1431_v24 = vrot.slane %v5867_v2, 5  ;;  %v1054_v41 = vshrl.u32 %v6000_v38, 16  ;;  %v1434_v30 = vrot.slane %v6154_v36, 5  ;;  %8258 = vst [vmem:[#allocation19_spill] sm:$0xff] %v6190_v43 }
  0x6b   : > { %2270 = vrot.lane.b32.xlu0 %v4798_v11, %s5723_s17  ;;  %v490_v33 = vshrl.u32 %v328_v61, 16  ;;  %v493_v4 = vshll.u32 %v328_v61, 16  ;;  %v499_v42 = vshll.u32 %v329_v19, 16  ;;  %v1057_v34 = vshll.u32 %v6000_v38, 16  ;;  %v4731_v53 = vld [vmem:[%s5853_s15 + $0x2c] sm:$0x1] }
  0x6c   : > { %v1613_v37 = vsel %vm5899_vm3, %v1608_v47, %v1612_v35  ;;  %v1432_v40 = vsel %vm6171_vm6, %v4682_v10, %v1431_v24  ;;  %v1433_v31 = vrot.slane %v1431_v24, 4  ;;  %v503_v0 = vshrl.u32 %v329_v19, 16  ;;  %v4734_v15 = vld [vmem:[%s5853_s15 + $0x50] sm:$0x1]  ;;  %v4673_v16 = vld [vmem:[%s5853_s15 + $0x60] sm:$0xe] }
  0x6d   : > { %v4890_v2 = vcombine.low %v1603_v23, %v1613_v37  ;;  %v492_v45 = vrot.slane %v490_v33, 4  ;;  %v495_v49 = vrot.slane %v493_v4, 5  ;;  %v501_v55 = vrot.slane %v499_v42, 5  ;;  %v4718_v22 = vld [vmem:[%s5853_s15 + $0x90] sm:$0xf] }
  0x6e   : > { %v1435_v50 = vsel %vm6171_vm6, %v1433_v31, %v1434_v30  ;;  %v509_v56 = vshll.u32 %v355_v32, 16  ;;  %v1615_v35 = vshrl.u32 %v4700_v44, 16  ;;  %v1618_v38 = vshll.u32 %v4700_v44, 16 }
  0x6f   : > { %2416 = vrot.lane.b32.xlu0 %v4831_v48, %s5723_s17  ;;  %2678 = vrot.lane.b32.xlu1 %v4890_v2, %s5723_s17  ;;  %v4858_v11 = vcombine.low %v1432_v40, %v1435_v50  ;;  %v496_v12 = vor.u32 %v495_v49, %v492_v45  ;;  %v505_v23 = vrot.slane %v503_v0, 4  ;;  %v1624_v47 = vshll.u32 %v6190_v43, 16 }
  0x70   : > { %v1628_v48 = vshrl.u32 %v6190_v43, 16  ;;  %v1617_v24 = vrot.slane %v1615_v35, 4  ;;  %v1620_v30 = vrot.slane %v1618_v38, 5  ;;  %v1634_v33 = vshll.u32 %v4731_v53, 16  ;;  %v6218_v35 = vld [vmem:[%s5853_s15 + $0x58] sm:$0xf] }
  0x71   : > { %v497_v10 = vrot.slane %v496_v12, 4  ;;  %v506_v19 = vor.u32 %v505_v23, %v501_v55  ;;  %v511_v32 = vrot.slane %v509_v56, 5  ;;  %v1626_v4 = vrot.slane %v1624_v47, 5  ;;  %v6211_v56 = vld [vmem:[%s5853_s15 + $0x54] sm:$0xf]  ;;  %8260 = vst [vmem:[#allocation21_spill] sm:$0xff] %v6218_v35 }
  0x72   : > { %v1630_v37 = vrot.slane %v1628_v48, 4  ;;  %v6200_v40 = vrot.slane %v1054_v41, 4  ;;  %v6202_v31 = vrot.slane %v1057_v34, 5  ;;  %v1067_v42 = vshrl.u32 %v6003_v39, 16  ;;  %v4667_v34 = vld [vmem:[%s5853_s15 + $0x18] sm:$0xe] }
  0x73   : > { %2534 = vrot.lane.b32.xlu1 %v4858_v11, %s5723_s17  ;;  %v1621_v44 = vor.u32 %v1620_v30, %v1617_v24  ;;  %v502_v2 = vsel %vm5899_vm3, %v497_v10, %v501_v55  ;;  %v507_v45 = vrot.slane %v506_v19, 4  ;;  %v1636_v50 = vrot.slane %v1634_v33, 5  ;;  %v6221_v55 = vld [vmem:[%s5853_s15 + $0x20] sm:$0x1]  ;;  %v330_v48 = vld [vmem:[%s5853_s15 + $0x48] sm:$0xf] }
  0x74   : > { %v1631_v49 = vor.u32 %v1630_v37, %v1626_v4  ;;  %v6208_v0 = vrot.slane %v1321_v62, 5  ;;  %v6224_v23 = vrot.slane %v1067_v42, 4  ;;  %v331_v10 = vld [vmem:[%s5853_s15 + $0x4c] sm:$0xf]  ;;  %v1060_v24 = vor.u32 %v6202_v31, %v6200_v40  ;;  %v4733_v38 = vld [vmem:[%s5853_s15 + $0x44] sm:$0x1] }
  0x75   : > { %v1622_v41 = vrot.slane %v1621_v44, 4  ;;  %v512_v11 = vsel %vm5899_vm3, %v507_v45, %v511_v32  ;;  %v1078_v30 = vshrl.u32 %v6073_v58, 16  ;;  %v4683_v19 = vrot.slane %v4667_v34, 9  ;;  %v356_v32 = vld [vmem:[%s5853_s15 + $0x50] sm:$0x1] }
  0x76   : > { %8259 = vst [vmem:[#allocation20_spill] sm:$0xff] %v6208_v0  ;;  %v1632_v12 = vrot.slane %v1631_v49, 4  ;;  %v4799_v62 = vcombine.low %v502_v2, %v512_v11  ;;  %v1438_v42 = vrot.slane %v5891_v17, 5  ;;  %v1441_v44 = vrot.slane %v6221_v55, 5  ;;  %v4702_v49 = vld [vmem:[%s5853_s15 + $0x30] sm:$0xf] }
  0x77   : > { %v1627_v47 = vsel %vm5899_vm3, %v1622_v41, %v1626_v4  ;;  %v4832_v4 = vcombine.low %v6211_v56, %v6218_v35  ;;  %v514_v40 = vshrl.u32 %v330_v48, 16  ;;  %v517_v31 = vshll.u32 %v330_v48, 16 }
  0x78   : > { %v1637_v33 = vsel %vm5899_vm3, %v1632_v12, %v1636_v50  ;;  %2272 = vrot.lane.b32.xlu0 %v4799_v62, %s5723_s17  ;;  %v523_v2 = vshll.u32 %v331_v10, 16  ;;  %v527_v45 = vshrl.u32 %v331_v10, 16  ;;  %v1081_v50 = vshll.u32 %v6073_v58, 16  ;;  %v4703_v12 = vld [vmem:[%s5853_s15 + $0x34] sm:$0xf] }
  0x79   : > { %v4891_v37 = vcombine.low %v1627_v47, %v1637_v33  ;;  %v1439_v41 = vsel %vm6171_vm6, %v4683_v19, %v1438_v42  ;;  %v1440_v34 = vrot.slane %v1438_v42, 4  ;;  %v533_v11 = vshll.u32 %v356_v32, 16 }
  0x7a   : > { %v516_v62 = vrot.slane %v514_v40, 4  ;;  %v519_v47 = vrot.slane %v517_v31, 5  ;;  %v525_v33 = vrot.slane %v523_v2, 5  ;;  %v529_v61 = vrot.slane %v527_v45, 4 }
  0x7b   : > { %2680 = vrot.lane.b32.xlu1 %v4891_v37, %s5723_s17  ;;  %v1442_v48 = vsel %vm6171_vm6, %v1440_v34, %v1441_v44  ;;  %v535_v10 = vrot.slane %v533_v11, 5  ;;  %v1639_v58 = vshrl.u32 %v4702_v49, 16  ;;  %v1642_v63 = vshll.u32 %v4702_v49, 16 }
  0x7c   : > { %2418 = vrot.lane.b32.xlu0 %v4832_v4, %s5723_s17  ;;  %v4859_v37 = vcombine.low %v1439_v41, %v1442_v48  ;;  %v520_v53 = vor.u32 %v519_v47, %v516_v62  ;;  %v530_v19 = vor.u32 %v529_v61, %v525_v33  ;;  %v1648_v32 = vshll.u32 %v4703_v12, 16  ;;  %v6256_v61 = vld [vmem:[%s5853_s15 + $0x60] sm:$0xf]  ;;  %v4668_v47 = vld [vmem:[%s5853_s15 + $0x24] sm:$0xe] }
  0x7d   : > { %v1641_v42 = vrot.slane %v1639_v58, 4  ;;  %v1644_v40 = vrot.slane %v1642_v63, 5  ;;  %v1652_v31 = vshrl.u32 %v4703_v12, 16  ;;  %v1658_v2 = vshll.u32 %v4732_v51, 16  ;;  %v6259_v63 = vld [vmem:[%s5853_s15 + $0x64] sm:$0xf] }
  0x7e   : > { %v1091_v45 = vshrl.u32 %v6076_v59, 16  ;;  %v521_v4 = vrot.slane %v520_v53, 4  ;;  %v531_v44 = vrot.slane %v530_v19, 4  ;;  %v1650_v34 = vrot.slane %v1648_v32, 5  ;;  %v6268_v19 = vld [vmem:[%s5853_s15 + $0x2c] sm:$0x1] }
  0x7f   : > { %2536 = vrot.lane.b32.xlu1 %v4859_v37, %s5723_s17  ;;  %v6253_v49 = vrot.slane %v1060_v24, 4  ;;  %v1645_v41 = vor.u32 %v1644_v40, %v1641_v42  ;;  %v1654_v11 = vrot.slane %v1652_v31, 4  ;;  %v1080_v12 = vrot.slane %v1078_v30, 4  ;;  %v332_v32 = vld [vmem:[%s5853_s15 + $0x54] sm:$0xf] }
  0x80   : > { %v526_v62 = vsel %vm5899_vm3, %v521_v4, %v525_v33  ;;  %v536_v53 = vsel %vm5899_vm3, %v531_v44, %v535_v10  ;;  %v1660_v37 = vrot.slane %v1658_v2, 5  ;;  %v1083_v42 = vrot.slane %v1081_v50, 5  ;;  %v333_v33 = vld [vmem:[%s5853_s15 + $0x58] sm:$0xf]  ;;  %v357_v44 = vld [vmem:[%s5853_s15 + $0x5c] sm:$0x1] }
  0x81   : > { %v4800_v48 = vcombine.low %v526_v62, %v536_v53  ;;  %v1646_v24 = vrot.slane %v1645_v41, 4  ;;  %v1655_v58 = vor.u32 %v1654_v11, %v1650_v34  ;;  %v6271_v30 = vrot.slane %v1091_v45, 4 }
  0x82   : > { %v4833_v40 = vcombine.low %v6256_v61, %v6259_v63  ;;  %v4684_v2 = vrot.slane %v4668_v47, 9  ;;  %v1445_v4 = vrot.slane %v5943_v26, 5  ;;  %v1448_v50 = vrot.slane %v6268_v19, 5  ;;  %v4705_v47 = vld [vmem:[%s5853_s15 + $0x40] sm:$0xf] }
  0x83   : > { %2274 = vrot.lane.b32.xlu0 %v4800_v48, %s5723_s17  ;;  %v1651_v10 = vsel %vm5899_vm3, %v1646_v24, %v1650_v34  ;;  %v1656_v31 = vrot.slane %v1655_v58, 4  ;;  %v538_v45 = vshrl.u32 %v332_v32, 16  ;;  %v541_v53 = vshll.u32 %v332_v32, 16  ;;  %v4704_v48 = vld [vmem:[%s5853_s15 + $0x3c] sm:$0xf] }
  0x84   : > { %v1446_v11 = vsel %vm6171_vm6, %v4684_v2, %v1445_v4  ;;  %v1447_v62 = vrot.slane %v1445_v4, 4  ;;  %v1084_v34 = vor.u32 %v1083_v42, %v1080_v12  ;;  %v547_v51 = vshll.u32 %v333_v33, 16 }
  0x85   : > { %v1661_v41 = vsel %vm5899_vm3, %v1656_v31, %v1660_v37  ;;  %v540_v58 = vrot.slane %v538_v45, 4  ;;  %v543_v21 = vrot.slane %v541_v53, 5  ;;  %v551_v27 = vshrl.u32 %v333_v33, 16 }
  0x86   : > { %v4892_v24 = vcombine.low %v1651_v10, %v1661_v41  ;;  %v1449_v54 = vsel %vm6171_vm6, %v1447_v62, %v1448_v50  ;;  %v557_v37 = vshll.u32 %v357_v44, 16  ;;  %v549_v2 = vrot.slane %v547_v51, 5 }
  0x87   : > { %2420 = vrot.lane.b32.xlu0 %v4833_v40, %s5723_s17  ;;  %v4860_v31 = vcombine.low %v1446_v11, %v1449_v54  ;;  %v1663_v32 = vshrl.u32 %v4704_v48, 16  ;;  %v1666_v4 = vshll.u32 %v4704_v48, 16  ;;  %v1102_v12 = vshrl.u32 %v6135_v57, 16  ;;  %v6301_v48 = vld [vmem:[%s5853_s15 + $0x70] sm:$0xf] }
  0x88   : > { %2682 = vrot.lane.b32.xlu1 %v4892_v24, %s5723_s17  ;;  %v544_v42 = vor.u32 %v543_v21, %v540_v58  ;;  %v553_v10 = vrot.slane %v551_v27, 4  ;;  %v1672_v45 = vshll.u32 %v4705_v47, 16  ;;  %v1676_v50 = vshrl.u32 %v4705_v47, 16  ;;  %v6298_v27 = vld [vmem:[%s5853_s15 + $0x6c] sm:$0xf]  ;;  %8261 = vst [vmem:[#allocation22_spill] sm:$0xff] %v6301_v48 }
  0x89   : > { %v1665_v40 = vrot.slane %v1663_v32, 4  ;;  %v1668_v41 = vrot.slane %v1666_v4, 5  ;;  %v1682_v33 = vshll.u32 %v4733_v38, 16  ;;  %v559_v53 = vrot.slane %v557_v37, 5  ;;  %v4653_v47 = vld [vmem:[%s5853_s15 + $0x38] sm:$0x1] }
  0x8a   : > { %v545_v44 = vrot.slane %v544_v42, 4  ;;  %v554_v62 = vor.u32 %v553_v10, %v549_v2  ;;  %v1674_v54 = vrot.slane %v1672_v45, 5  ;;  %v6294_v51 = vrot.slane %v1084_v34, 4  ;;  %v4669_v34 = vld [vmem:[%s5853_s15 + $0x30] sm:$0xe] }
  0x8b   : > { %v1669_v11 = vor.u32 %v1668_v41, %v1665_v40  ;;  %v1678_v21 = vrot.slane %v1676_v50, 4  ;;  %v1105_v37 = vshll.u32 %v6135_v57, 16  ;;  %v1684_v4 = vrot.slane %v1682_v33, 5  ;;  %v334_v42 = vld [vmem:[%s5853_s15 + $0x60] sm:$0xf] }
  0x8c   : > { %2538 = vrot.lane.b32.xlu1 %v4860_v31, %s5723_s17  ;;  %v550_v38 = vsel %vm5899_vm3, %v545_v44, %v549_v2  ;;  %v555_v58 = vrot.slane %v554_v62, 4  ;;  %v6310_v10 = vrot.slane %v1102_v12, 4  ;;  %v335_v2 = vld [vmem:[%s5853_s15 + $0x64] sm:$0xf]  ;;  %v1115_v41 = vshrl.u32 %v6146_v3, 16 }
  0x8d   : > { %v1670_v31 = vrot.slane %v1669_v11, 4  ;;  %v1679_v32 = vor.u32 %v1678_v21, %v1674_v54  ;;  %v358_v62 = vld [vmem:[%s5853_s15 + $0x68] sm:$0x1]  ;;  %v4834_v12 = vcombine.low %v6298_v27, %v6301_v48  ;;  %v4685_v11 = vrot.slane %v4669_v34, 9  ;;  %v4707_v45 = vld [vmem:[%s5853_s15 + $0x4c] sm:$0xf] }
  0x8e   : > { %v560_v40 = vsel %vm5899_vm3, %v555_v58, %v559_v53  ;;  %v4706_v33 = vld [vmem:[%s5853_s15 + $0x48] sm:$0xf]  ;;  %v1452_v21 = vrot.slane %v6003_v39, 5  ;;  %v1455_v24 = vrot.slane %v4653_v47, 5  ;;  %v565_v58 = vshll.u32 %v334_v42, 16 }
  0x8f   : > { %v4801_v50 = vcombine.low %v550_v38, %v560_v40  ;;  %v1675_v44 = vsel %vm5899_vm3, %v1670_v31, %v1674_v54  ;;  %v1680_v57 = vrot.slane %v1679_v32, 4  ;;  %v562_v38 = vshrl.u32 %v334_v42, 16 }
  0x90   : > { %v571_v54 = vshll.u32 %v335_v2, 16  ;;  %v1107_v31 = vrot.slane %v1105_v37, 5  ;;  %v1453_v40 = vsel %vm6171_vm6, %v4685_v11, %v1452_v21  ;;  %v1454_v60 = vrot.slane %v1452_v21, 4 }
  0x91   : > { %2276 = vrot.lane.b32.xlu0 %v4801_v50, %s5723_s17  ;;  %v1685_v53 = vsel %vm5899_vm3, %v1680_v57, %v1684_v4  ;;  %v564_v34 = vrot.slane %v562_v38, 4  ;;  %v567_v13 = vrot.slane %v565_v58, 5  ;;  %v575_v47 = vshrl.u32 %v335_v2, 16 }
  0x92   : > { %v4893_v32 = vcombine.low %v1675_v44, %v1685_v53  ;;  %v573_v20 = vrot.slane %v571_v54, 5  ;;  %v1456_v50 = vsel %vm6171_vm6, %v1454_v60, %v1455_v24  ;;  %v581_v4 = vshll.u32 %v358_v62, 16 }
  0x93   : > { %v1687_v57 = vshrl.u32 %v4706_v33, 16  ;;  %v1690_v42 = vshll.u32 %v4706_v33, 16  ;;  %v4861_v37 = vcombine.low %v1453_v40, %v1456_v50  ;;  %v568_v44 = vor.u32 %v567_v13, %v564_v34  ;;  %v4654_v50 = vld [vmem:[%s5853_s15 + $0x44] sm:$0x1] }
  0x94   : > { %2684 = vrot.lane.b32.xlu1 %v4893_v32, %s5723_s17  ;;  %v577_v11 = vrot.slane %v575_v47, 4  ;;  %v1696_v21 = vshll.u32 %v4707_v45, 16  ;;  %v583_v53 = vrot.slane %v581_v4, 5  ;;  %v1700_v2 = vshrl.u32 %v4707_v45, 16  ;;  %v4670_v4 = vld [vmem:[%s5853_s15 + $0x3c] sm:$0xe] }
  0x95   : > { %2422 = vrot.lane.b32.xlu0 %v4834_v12, %s5723_s17  ;;  %v1689_v38 = vrot.slane %v1687_v57, 4  ;;  %v1692_v58 = vrot.slane %v1690_v42, 5  ;;  %v569_v54 = vrot.slane %v568_v44, 4  ;;  %v1706_v60 = vshll.u32 %v4734_v15, 16  ;;  %v4636_v12 = vld [vmem:[%s5853_s15 + $0x78] sm:$0xf] }
  0x96   : > { %v578_v32 = vor.u32 %v577_v11, %v573_v20  ;;  %v1698_v8 = vrot.slane %v1696_v21, 5  ;;  %v1108_v24 = vor.u32 %v1107_v31, %v6310_v10  ;;  %v1702_v33 = vrot.slane %v1700_v2, 4  ;;  %v6344_v15 = vld [vmem:[%s5853_s15 + $0x7c] sm:$0xf]  ;;  %v336_v42 = vld [vmem:[%s5853_s15 + $0x6c] sm:$0xf] }
  0x97   : > { %v1693_v13 = vor.u32 %v1692_v58, %v1689_v38  ;;  %v6339_v40 = vrot.slane %v1115_v41, 4  ;;  %v574_v45 = vsel %vm5899_vm3, %v569_v54, %v573_v20  ;;  %v1708_v47 = vrot.slane %v1706_v60, 5  ;;  %v359_v21 = vld [vmem:[%s5853_s15 + $0x74] sm:$0x1] }
  0x98   : > { %2540 = vrot.lane.b32.xlu1 %v4861_v37, %s5723_s17  ;;  %v579_v34 = vrot.slane %v578_v32, 4  ;;  %v1703_v31 = vor.u32 %v1702_v33, %v1698_v8  ;;  %v337_v37 = vld [vmem:[%s5853_s15 + $0x70] sm:$0xf]  ;;  %v6352_v41 = vrot.slane %v1108_v24, 4  ;;  %v4708_v38 = vld [vmem:[%s5853_s15 + $0x54] sm:$0xf]  ;;  %v4835_v2 = vcombine.low %v4636_v12, %v6344_v15 }
  0x99   : > { %8262 = vst [vmem:[#allocation23_spill] sm:$0xff] %v6339_v40  ;;  %v1694_v10 = vrot.slane %v1693_v13, 4  ;;  %v4686_v54 = vrot.slane %v4670_v4, 9  ;;  %v1459_v32 = vrot.slane %v6076_v59, 5  ;;  %v1462_v60 = vrot.slane %v4654_v50, 5 }
  0x9a   : > { %v584_v57 = vsel %vm5899_vm3, %v579_v34, %v583_v53  ;;  %8263 = vst [vmem:[#allocation24_spill] sm:$0xff] %v6352_v41  ;;  %v1704_v11 = vrot.slane %v1703_v31, 4  ;;  %v586_v24 = vshrl.u32 %v336_v42, 16  ;;  %v1126_v13 = vshrl.u32 %v6211_v56, 16 }
  0x9b   : > { %v4802_v44 = vcombine.low %v574_v45, %v584_v57  ;;  %v1699_v20 = vsel %vm5899_vm3, %v1694_v10, %v1698_v8  ;;  %v589_v8 = vshll.u32 %v336_v42, 16  ;;  %v1460_v45 = vsel %vm6171_vm6, %v4686_v54, %v1459_v32  ;;  %v4709_v57 = vld [vmem:[%s5853_s15 + $0x58] sm:$0xf] }
  0x9c   : > { %v1709_v53 = vsel %vm5899_vm3, %v1704_v11, %v1708_v47  ;;  %v1461_v12 = vrot.slane %v1459_v32, 4  ;;  %v588_v34 = vrot.slane %v586_v24, 4  ;;  %v595_v31 = vshll.u32 %v337_v37, 16 }
  0x9d   : > { %2278 = vrot.lane.b32.xlu0 %v4802_v44, %s5723_s17  ;;  %v4894_v33 = vcombine.low %v1699_v20, %v1709_v53  ;;  %v591_v10 = vrot.slane %v589_v8, 5  ;;  %v599_v4 = vshrl.u32 %v337_v37, 16  ;;  %v605_v50 = vshll.u32 %v359_v21, 16  ;;  %v4735_v44 = vld [vmem:[%s5853_s15 + $0x5c] sm:$0x1] }
  0x9e   : > { %v1463_v47 = vsel %vm6171_vm6, %v1461_v12, %v1462_v60  ;;  %v1711_v42 = vshrl.u32 %v4708_v38, 16  ;;  %v1714_v11 = vshll.u32 %v4708_v38, 16  ;;  %v597_v54 = vrot.slane %v595_v31, 5 }
  0x9f   : > { %2686 = vrot.lane.b32.xlu1 %v4894_v33, %s5723_s17  ;;  %v4862_v20 = vcombine.low %v1460_v45, %v1463_v47  ;;  %v592_v53 = vor.u32 %v591_v10, %v588_v34  ;;  %v601_v32 = vrot.slane %v599_v4, 4  ;;  %v607_v24 = vrot.slane %v605_v50, 5  ;;  %v4638_v47 = vld [vmem:[%s5853_s15 + $0x84] sm:$0xf]  ;;  %v6380_v50 = vld [vmem:[%s5853_s15 + $0x88] sm:$0xf] }
  0xa0   : > { %v1713_v8 = vrot.slane %v1711_v42, 4  ;;  %v1716_v37 = vrot.slane %v1714_v11, 5  ;;  %v1720_v33 = vshll.u32 %v4709_v57, 16  ;;  %v1724_v21 = vshrl.u32 %v4709_v57, 16  ;;  %v4655_v57 = vld [vmem:[%s5853_s15 + $0x50] sm:$0x1] }
  0xa1   : > { %2424 = vrot.lane.b32.xlu0 %v4835_v2, %s5723_s17  ;;  %v593_v58 = vrot.slane %v592_v53, 4  ;;  %v602_v60 = vor.u32 %v601_v32, %v597_v54  ;;  %v1730_v12 = vshll.u32 %v4735_v44, 16  ;;  %v1129_v38 = vshll.u32 %v6211_v56, 16  ;;  %v4671_v42 = vld [vmem:[%s5853_s15 + $0x48] sm:$0xe] }
  0xa2   : > { %v1139_v2 = vshrl.u32 %v6218_v35, 16  ;;  %v1717_v45 = vor.u32 %v1716_v37, %v1713_v8  ;;  %v1722_v34 = vrot.slane %v1720_v33, 5  ;;  %v1726_v4 = vrot.slane %v1724_v21, 4  ;;  %v338_v11 = vld [vmem:[%s5853_s15 + $0x78] sm:$0xf] }
  0xa3   : > { %2542 = vrot.lane.b32.xlu1 %v4862_v20, %s5723_s17  ;;  %v598_v10 = vsel %vm5899_vm3, %v593_v58, %v597_v54  ;;  %v603_v31 = vrot.slane %v602_v60, 4  ;;  %v1128_v53 = vrot.slane %v1126_v13, 4  ;;  %v1732_v8 = vrot.slane %v1730_v12, 5  ;;  %v339_v33 = vld [vmem:[%s5853_s15 + $0x7c] sm:$0xf] }
  0xa4   : > { %v1718_v56 = vrot.slane %v1717_v45, 4  ;;  %v1727_v32 = vor.u32 %v1726_v4, %v1722_v34  ;;  %v1131_v58 = vrot.slane %v1129_v38, 5  ;;  %v6388_v54 = vrot.slane %v1139_v2, 4  ;;  %v360_v12 = vld [vmem:[%s5853_s15 + $0x80] sm:$0x1] }
  0xa5   : > { %v608_v20 = vsel %vm5899_vm3, %v603_v31, %v607_v24  ;;  %v4687_v44 = vrot.slane %v4671_v42, 9  ;;  %v1466_v45 = vrot.slane %v6146_v3, 5  ;;  %v4836_v13 = vcombine.low %v4638_v47, %v6380_v50  ;;  %v4710_v42 = vld [vmem:[%s5853_s15 + $0x60] sm:$0xf] }
  0xa6   : > { %8264 = vst [vmem:[#allocation25_spill] sm:$0xff] %v6388_v54  ;;  %v4803_v37 = vcombine.low %v598_v10, %v608_v20  ;;  %v1723_v60 = vsel %vm5899_vm3, %v1718_v56, %v1722_v34  ;;  %v1728_v21 = vrot.slane %v1727_v32, 4  ;;  %v1469_v24 = vrot.slane %v4655_v57, 5  ;;  %v4717_v54 = vld [vmem:[%s5853_s15 + $0x88] sm:$0xf] }
  0xa7   : > { %v610_v38 = vshrl.u32 %v338_v11, 16  ;;  %v613_v2 = vshll.u32 %v338_v11, 16  ;;  %v1467_v34 = vsel %vm6171_vm6, %v4687_v44, %v1466_v45  ;;  %v1468_v31 = vrot.slane %v1466_v45, 4  ;;  %v4736_v11 = vld [vmem:[%s5853_s15 + $0x68] sm:$0x1] }
  0xa8   : > { %2280 = vrot.lane.b32.xlu0 %v4803_v37, %s5723_s17  ;;  %v1733_v10 = vsel %vm5899_vm3, %v1728_v21, %v1732_v8  ;;  %v619_v4 = vshll.u32 %v339_v33, 16  ;;  %v4711_v37 = vld [vmem:[%s5853_s15 + $0x64] sm:$0xf]  ;;  %v623_v62 = vshrl.u32 %v339_v33, 16  ;;  %v629_v5 = vshll.u32 %v360_v12, 16 }
  0xa9   : > { %v4895_v56 = vcombine.low %v1723_v60, %v1733_v10  ;;  %v612_v20 = vrot.slane %v610_v38, 4  ;;  %v615_v32 = vrot.slane %v613_v2, 5  ;;  %v1470_v47 = vsel %vm6171_vm6, %v1468_v31, %v1469_v24 }
  0xaa   : > { %v621_v57 = vrot.slane %v619_v4, 5  ;;  %v4863_v8 = vcombine.low %v1467_v34, %v1470_v47  ;;  %v1735_v21 = vshrl.u32 %v4710_v42, 16  ;;  %v1738_v45 = vshll.u32 %v4710_v42, 16  ;;  %v6413_v42 = vld [vmem:[%s5853_s15 + $0x94] sm:$0xf] }
  0xab   : > { %2688 = vrot.lane.b32.xlu1 %v4895_v56, %s5723_s17  ;;  %v616_v44 = vor.u32 %v615_v32, %v612_v20  ;;  %v1132_v25 = vor.u32 %v1131_v58, %v1128_v53  ;;  %v625_v60 = vrot.slane %v623_v62, 4  ;;  %v1744_v38 = vshll.u32 %v4711_v37, 16  ;;  %v4640_v58 = vld [vmem:[%s5853_s15 + $0x90] sm:$0xf]  ;;  %v4672_v47 = vld [vmem:[%s5853_s15 + $0x54] sm:$0xe] }
  0xac   : > { %2426 = vrot.lane.b32.xlu0 %v4836_v13, %s5723_s17  ;;  %v1748_v2 = vshrl.u32 %v4711_v37, 16  ;;  %v1737_v24 = vrot.slane %v1735_v21, 4  ;;  %v1740_v31 = vrot.slane %v1738_v45, 5  ;;  %v1754_v33 = vshll.u32 %v4736_v11, 16  ;;  %v4656_v21 = vld [vmem:[%s5853_s15 + $0x5c] sm:$0x1] }
  0xad   : > { %v617_v10 = vrot.slane %v616_v44, 4  ;;  %v626_v12 = vor.u32 %v625_v60, %v621_v57  ;;  %v631_v4 = vrot.slane %v629_v5, 5  ;;  %v1746_v56 = vrot.slane %v1744_v38, 5  ;;  %v340_v45 = vld [vmem:[%s5853_s15 + $0x84] sm:$0xf] }
  0xae   : > { %v1750_v13 = vrot.slane %v1748_v2, 4  ;;  %v1150_v53 = vshrl.u32 %v6256_v61, 16  ;;  %v1741_v62 = vor.u32 %v1740_v31, %v1737_v24  ;;  %v1756_v37 = vrot.slane %v1754_v33, 5  ;;  %v341_v24 = vld [vmem:[%s5853_s15 + $0x88] sm:$0xf] }
  0xaf   : > { %2544 = vrot.lane.b32.xlu1 %v4863_v8, %s5723_s17  ;;  %v622_v20 = vsel %vm5899_vm3, %v617_v10, %v621_v57  ;;  %v627_v32 = vrot.slane %v626_v12, 4  ;;  %v6418_v11 = vrot.slane %v1132_v25, 4  ;;  %v1153_v8 = vshll.u32 %v6256_v61, 16  ;;  %v361_v33 = vld [vmem:[%s5853_s15 + $0x8c] sm:$0x1]  ;;  %v6432_v12 = vpop.permute.xlu0 %2406  ;;  %v6450_v43 = vpop.permute.xlu1 %2262 }
  0xb0   : > { %v1751_v5 = vor.u32 %v1750_v13, %v1746_v56  ;;  %v1742_v44 = vrot.slane %v1741_v62, 4  ;;  %v6427_v57 = vrot.slane %v1150_v53, 4  ;;  %v4688_v31 = vrot.slane %v4672_v47, 9 }
  0xb1   : > { %8265 = vst [vmem:[#allocation26_spill] sm:$0xff] %v6418_v11  ;;  %v632_v38 = vsel %vm5899_vm3, %v627_v32, %v631_v4  ;;  %v4837_v13 = vcombine.low %v4640_v58, %v6413_v42  ;;  %v1473_v4 = vrot.slane %v6218_v35, 5  ;;  %v1476_v62 = vrot.slane %v4656_v21, 5  ;;  %v4713_v58 = vld [vmem:[%s5853_s15 + $0x70] sm:$0xf] }
  0xb2   : > { %v1752_v2 = vrot.slane %v1751_v5, 4  ;;  %v4804_v10 = vcombine.low %v622_v20, %v632_v38  ;;  %v1747_v25 = vsel %vm5899_vm3, %v1742_v44, %v1746_v56  ;;  %v634_v20 = vshrl.u32 %v340_v45, 16  ;;  %v4712_v5 = vld [vmem:[%s5853_s15 + $0x6c] sm:$0xf] }
  0xb3   : > { %v637_v32 = vshll.u32 %v340_v45, 16  ;;  %v643_v56 = vshll.u32 %v341_v24, 16  ;;  %v6440_v47 = vrot.slane %v1153_v8, 5  ;;  %v1474_v44 = vsel %vm6171_vm6, %v4688_v31, %v1473_v4 }
  0xb4   : > { %v1757_v61 = vsel %vm5899_vm3, %v1752_v2, %v1756_v37  ;;  %2282 = vrot.lane.b32.xlu0 %v4804_v10, %s5723_s17  ;;  %v1475_v37 = vrot.slane %v1473_v4, 4  ;;  %v647_v38 = vshrl.u32 %v341_v24, 16  ;;  %v636_v21 = vrot.slane %v634_v20, 4  ;;  %v4657_v20 = vld [vmem:[%s5853_s15 + $0x68] sm:$0x1] }
  0xb5   : > { %v4896_v53 = vcombine.low %v1747_v25, %v1757_v61  ;;  %v639_v2 = vrot.slane %v637_v32, 5  ;;  %v645_v10 = vrot.slane %v643_v56, 5  ;;  %v653_v25 = vshll.u32 %v361_v33, 16  ;;  %v4737_v61 = vld [vmem:[%s5853_s15 + $0x74] sm:$0x1]  ;;  %v6454_v32 = vpop.permute.xlu0 %2430 }
  0xb6   : > { %v1477_v45 = vsel %vm6171_vm6, %v1475_v37, %v1476_v62  ;;  %v649_v60 = vrot.slane %v647_v38, 4  ;;  %v1759_v8 = vshrl.u32 %v4712_v5, 16  ;;  %v1762_v34 = vshll.u32 %v4712_v5, 16  ;;  %v4715_v5 = vld [vmem:[%s5853_s15 + $0x7c] sm:$0xf] }
  0xb7   : > { %2690 = vrot.lane.b32.xlu1 %v4896_v53, %s5723_s17  ;;  %v4864_v24 = vcombine.low %v1474_v44, %v1477_v45  ;;  %v640_v31 = vor.u32 %v639_v2, %v636_v21  ;;  %v655_v4 = vrot.slane %v653_v25, 5  ;;  %v1768_v53 = vshll.u32 %v4713_v58, 16  ;;  %v4714_v45 = vld [vmem:[%s5853_s15 + $0x78] sm:$0xf]  ;;  %v4738_v44 = vld [vmem:[%s5853_s15 + $0x80] sm:$0x1] }
  0xb8   : > { %2428 = vrot.lane.b32.xlu0 %v4837_v13, %s5723_s17  ;;  %v650_v33 = vor.u32 %v649_v60, %v645_v10  ;;  %v1761_v56 = vrot.slane %v1759_v8, 4  ;;  %v1764_v11 = vrot.slane %v1762_v34, 5  ;;  %v1772_v62 = vshrl.u32 %v4713_v58, 16 }
  0xb9   : > { %v641_v37 = vrot.slane %v640_v31, 4  ;;  %v1770_v38 = vrot.slane %v1768_v53, 5  ;;  %v1778_v13 = vshll.u32 %v4737_v61, 16  ;;  %v4689_v58 = vrot.slane %v4673_v16, 9 }
  0xba   : > { %v651_v21 = vrot.slane %v650_v33, 4  ;;  %v1765_v2 = vor.u32 %v1764_v11, %v1761_v56  ;;  %v1774_v25 = vrot.slane %v1772_v62, 4  ;;  %v1480_v8 = vrot.slane %v6259_v63, 5  ;;  %v6468_v33 = vpop.permute.xlu1 %2286  ;;  %v6472_v62 = vpop.permute.xlu0 %2408 }
  0xbb   : > { %2546 = vrot.lane.b32.xlu1 %v4864_v24, %s5723_s17  ;;  %v646_v34 = vsel %vm5899_vm3, %v641_v37, %v645_v10  ;;  %v1780_v60 = vrot.slane %v1778_v13, 5  ;;  %v1483_v53 = vrot.slane %v4657_v20, 5  ;;  %v1783_v16 = vshrl.u32 %v4714_v45, 16 }
  0xbc   : > { %v656_v24 = vsel %vm5899_vm3, %v651_v21, %v655_v4  ;;  %v1766_v61 = vrot.slane %v1765_v2, 4  ;;  %v1775_v31 = vor.u32 %v1774_v25, %v1770_v38  ;;  %v1481_v10 = vsel %vm6171_vm6, %v4689_v58, %v1480_v8  ;;  %v4658_v21 = vld [vmem:[%s5853_s15 + $0x74] sm:$0x1] }
  0xbd   : > { %v4805_v11 = vcombine.low %v646_v34, %v656_v24  ;;  %v1482_v56 = vrot.slane %v1480_v8, 4  ;;  %v1786_v13 = vshll.u32 %v4714_v45, 16  ;;  %v1792_v20 = vshll.u32 %v4715_v5, 16  ;;  %v4674_v8 = vld [vmem:[%s5853_s15 + $0x6c] sm:$0xe] }
  0xbe   : > { %v1771_v37 = vsel %vm5899_vm3, %v1766_v61, %v1770_v38  ;;  %v1776_v4 = vrot.slane %v1775_v31, 4  ;;  %v1785_v25 = vrot.slane %v1783_v16, 4  ;;  %v1796_v34 = vshrl.u32 %v4715_v5, 16  ;;  %v4716_v31 = vld [vmem:[%s5853_s15 + $0x84] sm:$0xf]  ;;  %v6490_v24 = vpop.permute.xlu1 %2432 }
  0xbf   : > { %2284 = vrot.lane.b32.xlu0 %v4805_v11, %s5723_s17  ;;  %v1484_v2 = vsel %vm6171_vm6, %v1482_v56, %v1483_v53  ;;  %v1802_v58 = vshll.u32 %v4738_v44, 16  ;;  %v1788_v61 = vrot.slane %v1786_v13, 5  ;;  %v1794_v45 = vrot.slane %v1792_v20, 5  ;;  %v4739_v53 = vld [vmem:[%s5853_s15 + $0x8c] sm:$0x1] }
  0xc0   : > { %v1781_v38 = vsel %vm5899_vm3, %v1776_v4, %v1780_v60  ;;  %v4865_v41 = vcombine.low %v1481_v10, %v1484_v2  ;;  %v1798_v40 = vrot.slane %v1796_v34, 4  ;;  %v4690_v56 = vrot.slane %v4674_v8, 9 }
  0xc1   : > { %v4897_v35 = vcombine.low %v1771_v37, %v1781_v38  ;;  %v1789_v5 = vor.u32 %v1788_v61, %v1785_v25  ;;  %v1804_v44 = vrot.slane %v1802_v58, 5  ;;  %v1487_v16 = vrot.slane %v6301_v48, 5  ;;  %v6493_v37 = vpop.permute.xlu0 %2264  ;;  %v4675_v58 = vld [vmem:[%s5853_s15 + $0x78] sm:$0xe]  ;;  %v6746_v48 = vld [vmem:[%s5853_s15 + $0xb0] sm:$0x1] }
  0xc2   : > { %v1799_v60 = vor.u32 %v1798_v40, %v1794_v45  ;;  %v1490_v4 = vrot.slane %v4658_v21, 5  ;;  %v1807_v13 = vshrl.u32 %v4716_v31, 16  ;;  %v1810_v20 = vshll.u32 %v4716_v31, 16 }
  0xc3   : > { %2692 = vrot.lane.b32.xlu1 %v4897_v35, %s5723_s17  ;;  %v1790_v10 = vrot.slane %v1789_v5, 4  ;;  %v1488_v2 = vsel %vm6171_vm6, %v4690_v56, %v1487_v16  ;;  %v1489_v25 = vrot.slane %v1487_v16, 4  ;;  %v1816_v34 = vshll.u32 %v4717_v54, 16  ;;  %v4659_v35 = vld [vmem:[%s5853_s15 + $0x80] sm:$0x1] }
  0xc4   : > { %v1800_v8 = vrot.slane %v1799_v60, 4  ;;  %v1809_v38 = vrot.slane %v1807_v13, 4  ;;  %v1812_v61 = vrot.slane %v1810_v20, 5  ;;  %v1820_v11 = vshrl.u32 %v4717_v54, 16  ;;  %v4719_v54 = vld [vmem:[%s5853_s15 + $0x94] sm:$0xf] }
  0xc5   : > { %v1795_v40 = vsel %vm5899_vm3, %v1790_v10, %v1794_v45  ;;  %v1491_v21 = vsel %vm6171_vm6, %v1489_v25, %v1490_v4  ;;  %v1818_v31 = vrot.slane %v1816_v34, 5  ;;  %v1826_v5 = vshll.u32 %v4739_v53, 16  ;;  %v6514_v53 = vpop.permute.xlu1 %2288 }
  0xc6   : > { %v1805_v56 = vsel %vm5899_vm3, %v1800_v8, %v1804_v44  ;;  %v4866_v16 = vcombine.low %v1488_v2, %v1491_v21  ;;  %v1813_v60 = vor.u32 %v1812_v61, %v1809_v38  ;;  %v1822_v13 = vrot.slane %v1820_v11, 4  ;;  %v6517_v2 = vpop.permute.xlu0 %2410 }
  0xc7   : > { %2548 = vrot.lane.b32.xlu1 %v4865_v41, %s5723_s17  ;;  %v1156_v20 = vor.u32 %v6440_v47, %v6427_v57  ;;  %v8266_v45 = vshrl.u32 %v6259_v63, 16  ;;  %v4898_v4 = vcombine.low %v1795_v40, %v1805_v56  ;;  %v1828_v25 = vrot.slane %v1826_v5, 5  ;;  %v4740_v57 = vld [vmem:[%s5853_s15 + $0x98] sm:$0x1] }
  0xc8   : > { %v1814_v41 = vrot.slane %v1813_v60, 4  ;;  %v1823_v34 = vor.u32 %v1822_v13, %v1818_v31  ;;  %v4691_v0 = vrot.slane %v4675_v58, 9  ;;  %v1494_v44 = vrot.slane %v6344_v15, 5  ;;  %v753_v60 = vld [vmem:[%s5853_s15] sm:$0xe] }
  0xc9   : > { %v6512_v10 = vrot.slane %v8266_v45, 4  ;;  %2694 = vrot.lane.b32.xlu0 %v4898_v4, %s5723_s17  ;;  %v1497_v11 = vrot.slane %v4659_v35, 5  ;;  %v1831_v47 = vshrl.u32 %v4718_v22, 16  ;;  %v1834_v8 = vshll.u32 %v4718_v22, 16  ;;  %v4676_v45 = vld [vmem:[%s5853_s15 + $0x84] sm:$0xe] }
  0xca   : > { %v1840_v38 = vshll.u32 %v4719_v54, 16  ;;  %v1819_v61 = vsel %vm5899_vm3, %v1814_v41, %v1818_v31  ;;  %v1824_v40 = vrot.slane %v1823_v34, 4  ;;  %v1495_v15 = vsel %vm6171_vm6, %v4691_v0, %v1494_v44 }
  0xcb   : > { %2550 = vrot.lane.b32.xlu1 %v4866_v16, %s5723_s17  ;;  %v1496_v58 = vrot.slane %v1494_v44, 4  ;;  %v1833_v21 = vrot.slane %v1831_v47, 4  ;;  %v1836_v5 = vrot.slane %v1834_v8, 5  ;;  %v1844_v35 = vshrl.u32 %v4719_v54, 16  ;;  %v4660_v44 = vld [vmem:[%s5853_s15 + $0x8c] sm:$0x1]  ;;  %v6535_v47 = vpop.permute.xlu1 %2434 }
  0xcc   : > { %v1842_v56 = vrot.slane %v1840_v38, 5  ;;  %v6527_v22 = vrot.slane %v1156_v20, 4  ;;  %v1829_v16 = vsel %vm5899_vm3, %v1824_v40, %v1828_v25  ;;  %v1850_v13 = vshll.u32 %v4740_v57, 16  ;;  %v5508_v38 = vld [vmem:[%s5853_s15 + $0x4] sm:$0xf]  ;;  %v6540_v40 = vpop.permute.xlu0 %2266 }
  0xcd   : > { %v1498_v31 = vsel %vm6171_vm6, %v1496_v58, %v1497_v11  ;;  %v4899_v0 = vcombine.low %v1819_v61, %v1829_v16  ;;  %v1837_v41 = vor.u32 %v1836_v5, %v1833_v21  ;;  %v1846_v34 = vrot.slane %v1844_v35, 4  ;;  %v765_v25 = vld [vmem:[%s5853_s15 + $0x90] sm:$0xe]  ;;  %v5509_v16 = vld [vmem:[%s5853_s15] sm:$0xf] }
  0xce   : > { %8267 = vst [vmem:[#allocation27_spill] sm:$0xff] %v6527_v22  ;;  %v4867_v4 = vcombine.low %v1495_v15, %v1498_v31  ;;  %v1174_v54 = vshrl.u32 %v6298_v27, 16  ;;  %v1852_v20 = vrot.slane %v1850_v13, 5  ;;  %v4602_v8 = vrot.slane %v753_v60, 9 }
  0xcf   : > { %v822_v22 = vrot.slane %v5508_v38, 5  ;;  %2696 = vrot.lane.b32.xlu0 %v4899_v0, %s5723_s17  ;;  %v1838_v11 = vrot.slane %v1837_v41, 4  ;;  %v1847_v57 = vor.u32 %v1846_v34, %v1842_v56  ;;  %vm2758_vm7 = vcmask 523264   ;;  %v4720_v34 = vld [vmem:[%s5853_s15 + $0x9c] sm:$0xf] }
  0xd0   : > { %2552 = vrot.lane.b32.xlu1 %v4867_v4, %s5723_s17  ;;  %v4692_v61 = vrot.slane %v4676_v45, 9  ;;  %v1501_v21 = vrot.slane %v6380_v50, 5  ;;  %v1504_v5 = vrot.slane %v4660_v44, 5  ;;  %v4778_v31 = vcombine.low %v5509_v16, %v5508_v38  ;;  %v5510_v4 = vld [vmem:[%s5853_s15 + $0x94] sm:$0xf] }
  0xd1   : > { %v823_v15 = vsel %vm6171_vm6, %v4602_v8, %v822_v22  ;;  %v824_v58 = vrot.slane %v822_v22, 4  ;;  %v1843_v35 = vsel %vm5899_vm3, %v1838_v11, %v1842_v56  ;;  %v1848_v60 = vrot.slane %v1847_v57, 4  ;;  %v6564_v11 = vpop.permute.xlu1 %2290  ;;  %v4741_v16 = vld [vmem:[%s5853_s15 + $0xa4] sm:$0x1] }
  0xd2   : > { %v4614_v13 = vrot.slane %v765_v25, 9  ;;  %v8268_v0 = vrot.slane %v5883_v9, 5  ;;  %v1502_v22 = vsel %vm6171_vm6, %v4692_v61, %v1501_v21  ;;  %v1503_v50 = vrot.slane %v1501_v21, 4  ;;  %v5511_v9 = vld [vmem:[%s5853_s15 + $0x98] sm:$0x1] }
  0xd3   : > { %v906_v41 = vrot.slane %v5510_v4, 5  ;;  %v1853_v56 = vsel %vm5899_vm3, %v1848_v60, %v1852_v20  ;;  %v2761_v8 = vsel %vm2758_vm7, %v4778_v31, %v6450_v43  ;;  %v909_v38 = vrot.slane %v5511_v9, 5  ;;  %v4721_v25 = vld [vmem:[%s5853_s15 + $0xa0] sm:$0xf]  ;;  %v6571_v20 = vpop.permute.xlu0 %2412  ;;  %v5512_v60 = vld [vmem:[%s5853_s15 + $0x90] sm:$0xf] }
  0xd4   : > { %v826_v45 = vsel %vm6171_vm6, %v824_v58, %v8268_v0  ;;  %v4900_v57 = vcombine.low %v1843_v35, %v1853_v56  ;;  %v1505_v61 = vsel %vm6171_vm6, %v1503_v50, %v1504_v5  ;;  %v4790_v31 = vcombine.low %v5512_v60, %v5510_v4  ;;  %v5477_v35 = vld [vmem:[%s8222_s1 + $0x108] sm:$0xff]   ;;  %v5460_v4 = vld [vmem:[%s8222_s1 + $0x80] sm:$0xff]  }
  0xd5   : > { %v4810_v44 = vcombine.low %v823_v15, %v826_v45  ;;  %v907_v58 = vsel %vm6171_vm6, %v4614_v13, %v906_v41  ;;  %v908_v21 = vrot.slane %v906_v41, 4  ;;  %v4868_v15 = vcombine.low %v1502_v22, %v1505_v61  ;;  %v754_v41 = vld [vmem:[%s5853_s15 + $0xc] sm:$0xe]  ;;  %v5513_v9 = vld [vmem:[%s8222_s1 + $0x100] sm:$0xff]   ;;  %v4677_v61 = vld [vmem:[%s5853_s15 + $0x90] sm:$0xe]  ;;  %v6602_v60 = vpop.permute.xlu1 %2436 }
  0xd6   : > { %v1855_v0 = vshrl.u32 %v4720_v34, 16  ;;  %2698 = vrot.lane.b32.xlu0 %v4900_v57, %s5723_s17  ;;  %v1858_v13 = vshll.u32 %v4720_v34, 16  ;;  %v1864_v45 = vshll.u32 %v4721_v25, 16  ;;  %v1868_v50 = vshrl.u32 %v4721_v25, 16  ;;  %v5461_v57 = vld [vmem:[%s8222_s1 + $0xc8] sm:$0xff]  }
  0xd7   : > { %v2825_v43 = vsel %vm2758_vm7, %v4810_v44, %v6432_v12  ;;  %v910_v5 = vsel %vm6171_vm6, %v908_v21, %v909_v38  ;;  %2554 = vrot.lane.b32.xlu1 %v4868_v15, %s5723_s17  ;;  %v1874_v44 = vshll.u32 %v4741_v16, 16  ;;  %v2809_v34 = vsel %vm2758_vm7, %v4790_v31, %v6468_v33  ;;  %v5514_v16 = vld [vmem:[%s5853_s15 + $0x10] sm:$0xf]  ;;  %v4661_v15 = vld [vmem:[%s5853_s15 + $0x98] sm:$0x1] }
  0xd8   : > { %3383 = vmatprep.mubr.bf16.mxu0 %v2825_v43  ;;  %v4822_v22 = vcombine.low %v907_v58, %v910_v5  ;;  %v1857_v56 = vrot.slane %v1855_v0, 4  ;;  %v1860_v38 = vrot.slane %v1858_v13, 5  ;;  %v1866_v25 = vrot.slane %v1864_v45, 5  ;;  %v5488_v31 = vld [vmem:[%s8222_s1 + $0x110] sm:$0xff]  }
  0xd9   : > { %3384 = vmatmul.mubr.bf16.vlgmr.msra.gmra.mrb[0].mxu0 %v2761_v8  ;;  %v1870_v8 = vrot.slane %v1868_v50, 4  ;;  %v4603_v21 = vrot.slane %v754_v41, 9  ;;  %v829_v43 = vrot.slane %v5514_v16, 5  ;;  %v1876_v13 = vrot.slane %v1874_v44, 5  ;;  %v5515_v45 = vld [vmem:[%s5853_s15 + $0x14] sm:$0x1] }
  0xda   : > { %5293 = vmatpush3.bf16.msra.mxu0 %v5513_v9  ;;  %v2873_v33 = vsel %vm2758_vm7, %v4822_v22, %v6454_v32  ;;  %v1861_v0 = vor.u32 %v1860_v38, %v1857_v56  ;;  %v832_v50 = vrot.slane %v5515_v45, 5  ;;  %v766_v9 = vld [vmem:[%s5853_s15 + $0x9c] sm:$0xe]  ;;  %v6609_v32 = vpop.permute.xlu0 %2268  ;;  %v4693_v58 = vrot.slane %v4677_v61, 9  ;;  %v5516_v44 = vld [vmem:[%s5853_s15 + $0xc] sm:$0xf] }
  0xdb   : > { %5294 = vmatprep.subr.bf16.mxu0 %v5477_v35  ;;  %3479 = vmatprep.mubr.bf16.mxu1 %v2873_v33  ;;  %v1871_v5 = vor.u32 %v1870_v8, %v1866_v25  ;;  %v830_v41 = vsel %vm6171_vm6, %v4603_v21, %v829_v43  ;;  %v831_v22 = vrot.slane %v829_v43, 4  ;;  %v1508_v12 = vrot.slane %v6413_v42, 5  ;;  %v5463_v45 = vld [vmem:[%s8222_s1 + $0x88] sm:$0xff]  }
  0xdc   : > { %3480 = vmatmul.mubr.bf16.vlgmr.msra.gmra.mrb[0].mxu1 %v2809_v34  ;;  %v1862_v33 = vrot.slane %v1861_v0, 4  ;;  %v1511_v38 = vrot.slane %v4661_v15, 5  ;;  %v4779_v8 = vcombine.low %v5516_v44, %v5514_v16  ;;  %v4615_v61 = vrot.slane %v766_v9, 9  ;;  %v4722_v21 = vld [vmem:[%s5853_s15 + $0xa8] sm:$0xf]  ;;  %v5466_v44 = vld [vmem:[%s8222_s1 + $0x90] sm:$0xff]  }
  0xdd   : > { %5161 = vmatpush3.bf16.msra.mxu1 %v5460_v4  ;;  %v1872_v56 = vrot.slane %v1871_v5, 4  ;;  %v833_v34 = vsel %vm6171_vm6, %v831_v22, %v832_v50  ;;  %v1509_v42 = vsel %vm6171_vm6, %v4693_v58, %v1508_v12  ;;  %v1510_v4 = vrot.slane %v1508_v12, 4  ;;  %v5517_v58 = vld [vmem:[%s5853_s15 + $0xa0] sm:$0xf]  ;;  %v5518_v50 = vld [vmem:[%s5853_s15 + $0xa4] sm:$0x1] }
  0xde   : > { %5295 = vmatpush3.bf16.msra.mxu0 %v5477_v35  ;;  %5162 = vmatprep.subr.bf16.mxu1 %v5461_v57  ;;  %v1867_v16 = vsel %vm5899_vm3, %v1862_v33, %v1866_v25  ;;  %v4811_v35 = vcombine.low %v830_v41, %v833_v34  ;;  %v2765_v15 = vsel %vm2758_vm7, %v4779_v8, %v6493_v37  ;;  %v4723_v57 = vld [vmem:[%s5853_s15 + $0xac] sm:$0xf]  ;;  %v913_v5 = vrot.slane %v5517_v58, 5  ;;  %v5464_v25 = vld [vmem:[%s8222_s1 + $0xd0] sm:$0xff]   ;;  %v5495_v37 = vld [vmem:[%s8222_s1 + $0x118] sm:$0xff]   ;;  %v6649_v34 = vpop.permute.xlu0 %2414 }
  0xdf   : > { %5296 = vmatprep.subr.bf16.mxu0 %v5488_v31  ;;  %v1877_v43 = vsel %vm5899_vm3, %v1872_v56, %v1876_v13  ;;  %v1512_v12 = vsel %vm6171_vm6, %v1510_v4, %v1511_v38  ;;  %v916_v9 = vrot.slane %v5518_v50, 5  ;;  %v4742_v22 = vld [vmem:[%s5853_s15 + $0xb0] sm:$0x1]  ;;  %v6638_v13 = vpop.permute.xlu1 %2292  ;;  %v5519_v56 = vld [vmem:[%s5853_s15 + $0x9c] sm:$0xf]  ;;  %v1879_v8 = vshrl.u32 %v4722_v21, 16 }
  0xe0   : > { %v4901_v0 = vcombine.low %v1867_v16, %v1877_v43  ;;  %v2829_v41 = vsel %vm2758_vm7, %v4811_v35, %v6472_v62  ;;  %v4869_v33 = vcombine.low %v1509_v42, %v1512_v12  ;;  %v4791_v38 = vcombine.low %v5519_v56, %v5517_v58  ;;  %v755_v16 = vld [vmem:[%s5853_s15 + $0x18] sm:$0xe]  ;;  %v6664_v12 = vld [vmem:[%s5853_s15 + $0x70] sm:$0xf]  ;;  %v4678_v50 = vld [vmem:[%s5853_s15 + $0x9c] sm:$0xe] }
  0xe1   : > { %5163 = vmatpush3.bf16.msra.mxu1 %v5463_v45  ;;  %3391 = vmatprep.mubr.bf16.mxu0 %v2829_v41  ;;  %v914_v4 = vsel %vm6171_vm6, %v4615_v61, %v913_v5  ;;  %v915_v62 = vrot.slane %v913_v5, 4  ;;  %v1882_v42 = vshll.u32 %v4722_v21, 16  ;;  %v1888_v45 = vshll.u32 %v4723_v57, 16  ;;  %v5467_v43 = vld [vmem:[%s8222_s1 + $0xd8] sm:$0xff]  }
  0xe2   : > { %5297 = vmatpush3.bf16.msra.mxu0 %v5488_v31  ;;  %2700 = vrot.lane.b32.xlu0 %v4901_v0, %s5723_s17  ;;  %v6660_v35 = vrot.slane %v1174_v54, 4  ;;  %v1881_v31 = vrot.slane %v1879_v8, 4  ;;  %v1892_v0 = vshrl.u32 %v4723_v57, 16  ;;  %v1898_v61 = vshll.u32 %v4742_v22, 16 }
  0xe3   : > { %2556 = vrot.lane.b32.xlu1 %v4869_v33, %s5723_s17  ;;  %3392 = vmatmul.mubr.bf16.gmra.mrb[4].mxu0 %v2765_v15  ;;  %v917_v58 = vsel %vm6171_vm6, %v915_v62, %v916_v9  ;;  %v1884_v5 = vrot.slane %v1882_v42, 5  ;;  %v1890_v54 = vrot.slane %v1888_v45, 5  ;;  %v2813_v15 = vsel %vm2758_vm7, %v4791_v38, %v6514_v53  ;;  %v6673_v33 = vld [vmem:[%s5853_s15 + $0xa4] sm:$0x1]  ;;  %v5522_v62 = vld [vmem:[%s5853_s15 + $0x20] sm:$0x1]  ;;  %v6680_v53 = vpop.permute.xlu1 %2678 }
  0xe4   : > { %5164 = vmatprep.subr.bf16.mxu1 %v5464_v25  ;;  %5298 = vmatprep.subr.bf16.mxu0 %v5495_v37  ;;  %v4823_v41 = vcombine.low %v914_v4, %v917_v58  ;;  %v1894_v57 = vrot.slane %v1892_v0, 4  ;;  %v4604_v22 = vrot.slane %v755_v16, 9  ;;  %8269 = vst [vmem:[#allocation28_spill] sm:$0xff] %v6673_v33  ;;  %v1900_v9 = vrot.slane %v1898_v61, 5  ;;  %v5521_v25 = vld [vmem:[%s5853_s15 + $0x1c] sm:$0xf] }
  0xe5   : > { %5165 = vmatpush3.bf16.msra.mxu1 %v5466_v44  ;;  %v1885_v56 = vor.u32 %v1884_v5, %v1881_v31  ;;  %v836_v8 = vrot.slane %v5521_v25, 5  ;;  %v839_v42 = vrot.slane %v5522_v62, 5  ;;  %v5469_v4 = vld [vmem:[%s8222_s1 + $0x98] sm:$0xff]   ;;  %v4694_v45 = vrot.slane %v4678_v50, 9  ;;  %v767_v31 = vld [vmem:[%s5853_s15 + $0xa8] sm:$0xe] }
  0xe6   : > { %5299 = vmatpush3.bf16.msra.mxu0 %v5495_v37  ;;  %5166 = vmatprep.subr.bf16.mxu1 %v5467_v43  ;;  %v2877_v38 = vsel %vm2758_vm7, %v4823_v41, %v6490_v24  ;;  %v1895_v44 = vor.u32 %v1894_v57, %v1890_v54  ;;  %v5523_v37 = vld [vmem:[%s5853_s15 + $0xa0] sm:$0xf]  ;;  %v6689_v43 = vpop.permute.xlu0 %2270  ;;  %v1518_v5 = vrot.slane %v6673_v33, 5  ;;  %v5524_v62 = vld [vmem:[%s5853_s15 + $0x18] sm:$0xf]  ;;  %vm3939_vm8 = vcmask 516096  }
  0xe7   : > { %v1515_v16 = vrot.slane %v5523_v37, 5  ;;  %v5470_v0 = vld [vmem:[%s8222_s1 + $0xe0] sm:$0xff]   ;;  %3487 = vmatprep.mubr.bf16.mxu1 %v2877_v38  ;;  %v1886_v61 = vrot.slane %v1885_v56, 4  ;;  %v837_v58 = vsel %vm6171_vm6, %v4604_v22, %v836_v8  ;;  %v838_v24 = vrot.slane %v836_v8, 4  ;;  %v5525_v8 = vld [vmem:[%s5853_s15 + $0xac] sm:$0xf] }
  0xe8   : > { %3488 = vmatmul.mubr.bf16.gmra.mrb[4].mxu1 %v2813_v15  ;;  %v1896_v50 = vrot.slane %v1895_v44, 4  ;;  %v4780_v37 = vcombine.low %v5524_v62, %v5521_v25  ;;  %v4616_v22 = vrot.slane %v767_v31, 9  ;;  %v920_v21 = vrot.slane %v5525_v8, 5  ;;  %v4724_v15 = vld [vmem:[%s5853_s15 + $0xb4] sm:$0xf] }
  0xe9   : > { %v1516_v41 = vsel %vm6171_vm6, %v4694_v45, %v1515_v16  ;;  %v1517_v57 = vrot.slane %v1515_v16, 4  ;;  %v1891_v56 = vsel %vm5899_vm3, %v1886_v61, %v1890_v54  ;;  %v840_v38 = vsel %vm6171_vm6, %v838_v24, %v839_v42  ;;  %5167 = vmatpush3.bf16.msra.mxu1 %v5469_v4  ;;  %v4725_v16 = vld [vmem:[%s5853_s15 + $0xb8] sm:$0xf]  ;;  %v4743_v42 = vld [vmem:[%s5853_s15 + $0xbc] sm:$0x1] }
  0xea   : > { %v1901_v44 = vsel %vm5899_vm3, %v1896_v50, %v1900_v9  ;;  %v4812_v45 = vcombine.low %v837_v58, %v840_v38  ;;  %v2769_v54 = vsel %vm2758_vm7, %v4780_v37, %v6540_v40  ;;  %5168 = vmatprep.subr.bf16.mxu1 %v5470_v0  ;;  %v921_v4 = vsel %vm6171_vm6, %v4616_v22, %v920_v21  ;;  %v5472_v9 = vld [vmem:[%s8222_s1 + $0xa0] sm:$0xff]   ;;  %v6716_v58 = vpop.permute.xlu1 %2534  ;;  %v5526_v40 = vld [vmem:[%s5853_s15 + $0xb0] sm:$0x1]  ;;  %v5527_v50 = vld [vmem:[%s5853_s15 + $0xa8] sm:$0xf]  ;;  %v6725_v62 = vpop.permute.xlu0 %2416 }
  0xeb   : > { %v1519_v25 = vsel %vm6171_vm6, %v1517_v57, %v1518_v5  ;;  %v4902_v31 = vcombine.low %v1891_v56, %v1901_v44  ;;  %v922_v24 = vrot.slane %v920_v21, 4  ;;  %v923_v0 = vrot.slane %v5526_v40, 5  ;;  %v5473_v21 = vld [vmem:[%s8222_s1 + $0xe8] sm:$0xff]   ;;  %v756_v22 = vld [vmem:[%s5853_s15 + $0x24] sm:$0xe] }
  0xec   : > { %v4870_v61 = vcombine.low %v1516_v41, %v1519_v25  ;;  %v2833_v5 = vsel %vm2758_vm7, %v4812_v45, %v6517_v2  ;;  %v4792_v57 = vcombine.low %v5527_v50, %v5525_v8  ;;  %v1903_v41 = vshrl.u32 %v4724_v15, 16  ;;  %v6734_v45 = vld [vmem:[%s5853_s15 + $0x38] sm:$0x1]  ;;  %v4679_v40 = vld [vmem:[%s5853_s15 + $0xa8] sm:$0xe] }
  0xed   : > { %2702 = vrot.lane.b32.xlu0 %v4902_v31, %s5723_s17  ;;  %3399 = vmatprep.mubr.bf16.mxu0 %v2833_v5  ;;  %v1906_v37 = vshll.u32 %v4724_v15, 16  ;;  %v1912_v56 = vshll.u32 %v4725_v16, 16  ;;  %v1916_v38 = vshrl.u32 %v4725_v16, 16  ;;  %v1922_v2 = vshll.u32 %v4743_v42, 16  ;;  %v5529_v25 = vld [vmem:[%s5853_s15 + $0x28] sm:$0xf] }
  0xee   : > { %v8270_v44 = vshll.u32 %v6298_v27, 16  ;;  %2558 = vrot.lane.b32.xlu1 %v4870_v61, %s5723_s17  ;;  %3400 = vmatmul.mubr.bf16.gmra.mrb[8].mxu0 %v2769_v54  ;;  %v924_v15 = vsel %vm6171_vm6, %v922_v24, %v923_v0  ;;  %v1905_v16 = vrot.slane %v1903_v41, 4  ;;  %v2817_v50 = vsel %vm2758_vm7, %v4792_v57, %v6564_v11  ;;  %v5530_v61 = vld [vmem:[%s5853_s15 + $0x2c] sm:$0x1]  ;;  %v768_v57 = vld [vmem:[%s5853_s15 + $0xb4] sm:$0xe] }
  0xef   : > { %v4824_v42 = vcombine.low %v921_v4, %v924_v15  ;;  %5169 = vmatpush3.bf16.msra.mxu1 %v5472_v9  ;;  %v1908_v31 = vrot.slane %v1906_v37, 5  ;;  %v1914_v27 = vrot.slane %v1912_v56, 5  ;;  %v1918_v5 = vrot.slane %v1916_v38, 4  ;;  %v5475_v4 = vld [vmem:[%s8222_s1 + $0xa8] sm:$0xff]   ;;  %v5476_v41 = vld [vmem:[%s8222_s1 + $0xf0] sm:$0xff]   ;;  %v6757_v37 = vpop.permute.xlu1 %2680  ;;  %v6762_v15 = vpop.permute.xlu0 %2272 }
  0xf0   : > { %v6731_v8 = vrot.slane %v8270_v44, 5  ;;  %v4605_v44 = vrot.slane %v756_v22, 9  ;;  %v843_v33 = vrot.slane %v5529_v25, 5  ;;  %v846_v54 = vrot.slane %v5530_v61, 5  ;;  %5170 = vmatprep.subr.bf16.mxu1 %v5473_v21  ;;  %v5531_v22 = vld [vmem:[%s5853_s15 + $0xac] sm:$0xf] }
  0xf1   : > { %v2881_v24 = vsel %vm2758_vm7, %v4824_v42, %v6535_v47  ;;  %v1909_v9 = vor.u32 %v1908_v31, %v1905_v16  ;;  %v1919_v0 = vor.u32 %v1918_v5, %v1914_v27  ;;  %v1924_v11 = vrot.slane %v1922_v2, 5  ;;  %v5532_v31 = vld [vmem:[%s5853_s15 + $0x24] sm:$0xf] }
  0xf2   : > { %3495 = vmatprep.mubr.bf16.mxu1 %v2881_v24  ;;  %v844_v21 = vsel %vm6171_vm6, %v4605_v44, %v843_v33  ;;  %v845_v56 = vrot.slane %v843_v33, 4  ;;  %v4695_v38 = vrot.slane %v4679_v40, 9  ;;  %v1522_v47 = vrot.slane %v5531_v22, 5  ;;  %v5534_v22 = vld [vmem:[%s5853_s15 + $0xbc] sm:$0x1] }
  0xf3   : > { %3496 = vmatmul.mubr.bf16.gmra.mrb[8].mxu1 %v2817_v50  ;;  %v1910_v2 = vrot.slane %v1909_v9, 4  ;;  %v1920_v16 = vrot.slane %v1919_v0, 4  ;;  %v1525_v42 = vrot.slane %v6746_v48, 5  ;;  %v4781_v5 = vcombine.low %v5532_v31, %v5529_v25  ;;  %v4726_v50 = vld [vmem:[%s5853_s15 + $0xc0] sm:$0xf]  ;;  %v6792_v31 = vpop.permute.xlu1 %2536 }
  0xf4   : > { %v847_v61 = vsel %vm6171_vm6, %v845_v56, %v846_v54  ;;  %v1523_v33 = vsel %vm6171_vm6, %v4695_v38, %v1522_v47  ;;  %v1524_v40 = vrot.slane %v1522_v47, 4  ;;  %v4617_v44 = vrot.slane %v768_v57, 9  ;;  %5171 = vmatpush3.bf16.msra.mxu1 %v5475_v4  ;;  %v4727_v0 = vld [vmem:[%s5853_s15 + $0xc4] sm:$0xf]  ;;  %v5533_v38 = vld [vmem:[%s5853_s15 + $0xb8] sm:$0xf] }
  0xf5   : > { %v1915_v24 = vsel %vm5899_vm3, %v1910_v2, %v1914_v27  ;;  %v1925_v9 = vsel %vm5899_vm3, %v1920_v16, %v1924_v11  ;;  %v4813_v25 = vcombine.low %v844_v21, %v847_v61  ;;  %v2773_v54 = vsel %vm2758_vm7, %v4781_v5, %v6609_v32  ;;  %5172 = vmatprep.subr.bf16.mxu1 %v5476_v41  ;;  %v5479_v27 = vld [vmem:[%s8222_s1 + $0xb0] sm:$0xff]   ;;  %v4744_v11 = vld [vmem:[%s5853_s15 + $0xc8] sm:$0x1] }
  0xf6   : > { %v4903_v56 = vcombine.low %v1915_v24, %v1925_v9  ;;  %v1526_v57 = vsel %vm6171_vm6, %v1524_v40, %v1525_v42  ;;  %v927_v4 = vrot.slane %v5533_v38, 5  ;;  %v930_v47 = vrot.slane %v5534_v22, 5  ;;  %v5535_v41 = vld [vmem:[%s5853_s15 + $0xb4] sm:$0xf]  ;;  %v5480_v42 = vld [vmem:[%s8222_s1 + $0xf8] sm:$0xff]   ;;  %v6798_v24 = vpop.permute.xlu0 %2418 }
  0xf7   : > { %v2837_v21 = vsel %vm2758_vm7, %v4813_v25, %v6571_v20  ;;  %v4871_v32 = vcombine.low %v1523_v33, %v1526_v57  ;;  %v4793_v2 = vcombine.low %v5535_v41, %v5533_v38  ;;  %v1927_v16 = vshrl.u32 %v4726_v50, 16  ;;  %v757_v33 = vld [vmem:[%s5853_s15 + $0x30] sm:$0xe]  ;;  %v4680_v22 = vld [vmem:[%s5853_s15 + $0xb4] sm:$0xe] }
  0xf8   : > { %2704 = vrot.lane.b32.xlu0 %v4903_v56, %s5723_s17  ;;  %3407 = vmatprep.mubr.bf16.mxu0 %v2837_v21  ;;  %v928_v5 = vsel %vm6171_vm6, %v4617_v44, %v927_v4  ;;  %v929_v61 = vrot.slane %v927_v4, 4  ;;  %v1930_v40 = vshll.u32 %v4726_v50, 16  ;;  %v1936_v20 = vshll.u32 %v4727_v0, 16 }
  0xf9   : > { %v8271_v9 = vshrl.u32 %v6664_v12, 16  ;;  %2560 = vrot.lane.b32.xlu1 %v4871_v32, %s5723_s17  ;;  %3408 = vmatmul.mubr.bf16.gmra.mrb[12].mxu0 %v2773_v54  ;;  %v1929_v56 = vrot.slane %v1927_v16, 4  ;;  %v1940_v57 = vshrl.u32 %v4727_v0, 16  ;;  %v1946_v38 = vshll.u32 %v4744_v11, 16  ;;  %v5482_v54 = vld [vmem:[%s8222_s1 + $0xb8] sm:$0xff]  }
  0xfa   : > { %v1180_v44 = vor.u32 %v6731_v8, %v6660_v35  ;;  %v931_v50 = vsel %vm6171_vm6, %v929_v61, %v930_v47  ;;  %5173 = vmatpush3.bf16.msra.mxu1 %v5479_v27  ;;  %v1932_v4 = vrot.slane %v1930_v40, 5  ;;  %v1938_v12 = vrot.slane %v1936_v20, 5  ;;  %v6816_v35 = vld [vmem:[%s5853_s15 + $0xbc] sm:$0x1]  ;;  %v5536_v27 = vld [vmem:[%s5853_s15 + $0x34] sm:$0xf] }
  0xfb   : > { %v6802_v25 = vrot.slane %v8271_v9, 4  ;;  %v4825_v21 = vcombine.low %v928_v5, %v931_v50  ;;  %v2821_v0 = vsel %vm2758_vm7, %v4793_v2, %v6638_v13  ;;  %v1942_v11 = vrot.slane %v1940_v57, 4  ;;  %5174 = vmatprep.subr.bf16.mxu1 %v5480_v42  ;;  %v5537_v16 = vld [vmem:[%s5853_s15 + $0x38] sm:$0x1]  ;;  %v6823_v13 = vpop.permute.xlu1 %2682 }
  0xfc   : > { %v4606_v32 = vrot.slane %v757_v33, 9  ;;  %v1933_v8 = vor.u32 %v1932_v4, %v1929_v56  ;;  %v1948_v47 = vrot.slane %v1946_v38, 5  ;;  %v850_v41 = vrot.slane %v5536_v27, 5  ;;  %v5538_v9 = vld [vmem:[%s5853_s15 + $0xb8] sm:$0xf] }
  0xfd   : > { %v853_v61 = vrot.slane %v5537_v16, 5  ;;  %v2885_v40 = vsel %vm2758_vm7, %v4825_v21, %v6602_v60  ;;  %v1943_v20 = vor.u32 %v1942_v11, %v1938_v12  ;;  %v4696_v5 = vrot.slane %v4680_v22, 9  ;;  %v6828_v60 = vpop.permute.xlu0 %2274  ;;  %v5539_v22 = vld [vmem:[%s5853_s15 + $0x30] sm:$0xf]  ;;  %v4728_v16 = vld [vmem:[%s5853_s15 + $0xcc] sm:$0xf] }
  0xfe   : > { %v1529_v50 = vrot.slane %v5538_v9, 5  ;;  %3503 = vmatprep.mubr.bf16.mxu1 %v2885_v40  ;;  %v1934_v2 = vrot.slane %v1933_v8, 4  ;;  %v851_v42 = vsel %vm6171_vm6, %v4606_v32, %v850_v41  ;;  %v852_v33 = vrot.slane %v850_v41, 4  ;;  %5175 = vmatpush3.bf16.msra.mxu1 %v5482_v54  ;;  %v5540_v54 = vld [vmem:[%s5853_s15 + $0x18] sm:$0xf] }
  0xff   : > { %v1532_v56 = vrot.slane %v6816_v35, 5  ;;  %3504 = vmatmul.mubr.bf16.gmra.mrb[12].mxu1 %v2821_v0  ;;  %v1944_v57 = vrot.slane %v1943_v20, 4  ;;  %v4782_v21 = vcombine.low %v5539_v22, %v5536_v27  ;;  %v6839_v8 = vld [vmem:[%s5853_s15 + $0x1c] sm:$0xf]  ;;  %v994_v41 = vsel %vm5899_vm3, %v5967_v7, %v5928_v14  ;;  %v4729_v20 = vld [vmem:[%s5853_s15 + $0xd0] sm:$0xf] }
 0x100   : > { %v1530_v38 = vsel %vm6171_vm6, %v4696_v5, %v1529_v50  ;;  %v1531_v4 = vrot.slane %v1529_v50, 4  ;;  %v1939_v11 = vsel %vm5899_vm3, %v1934_v2, %v1938_v12  ;;  %v854_v32 = vsel %vm6171_vm6, %v852_v33, %v853_v61  ;;  %v4745_v5 = vld [vmem:[%s5853_s15 + $0xd4] sm:$0x1]  ;;  %v758_v22 = vld [vmem:[%s5853_s15 + $0x3c] sm:$0xe] }
 0x101   : > { %v4874_v0 = vcombine.low %v5540_v54, %v6839_v8  ;;  %v1949_v27 = vsel %vm5899_vm3, %v1944_v57, %v1948_v47  ;;  %v4814_v40 = vcombine.low %v851_v42, %v854_v32  ;;  %v2777_v61 = vsel %vm2758_vm7, %v4782_v21, %v6689_v43  ;;  %v4681_v32 = vld [vmem:[%s5853_s15 + $0xc0] sm:$0xe]  ;;  %v6877_v54 = vld [vmem:[%s5853_s15 + $0x78] sm:$0xf] }
 0x102   : > { %v1533_v12 = vsel %vm6171_vm6, %v1531_v4, %v1532_v56  ;;  %v4904_v9 = vcombine.low %v1939_v11, %v1949_v27  ;;  %v8272_v7 = vor.u32 %v5930_v1, %v5928_v14  ;;  %v8273_v42 = vshll.u32 %v6154_v36, 16 }
 0x103   : > { %v4872_v50 = vcombine.low %v1530_v38, %v1533_v12  ;;  %v2953_v2 = vsel %vm2758_vm7, %v4874_v0, %v6680_v53  ;;  %v2841_v47 = vsel %vm2758_vm7, %v4814_v40, %v6649_v34  ;;  %v1951_v43 = vshrl.u32 %v4728_v16, 16  ;;  %v6865_v38 = vpop.permute.xlu1 %2538  ;;  %v6870_v34 = vpop.permute.xlu0 %2420  ;;  %v6881_v12 = vld [vmem:[%s5853_s15 + $0xc8] sm:$0x1] }
 0x104   : > { %v999_v33 = vrot.slane %v8272_v7, 4  ;;  %3544 = vmatprep.mubr.bf16.mxu1 %v2953_v2  ;;  %v1003_v56 = vrot.slane %v8273_v42, 5  ;;  %v1954_v57 = vshll.u32 %v4728_v16, 16  ;;  %v6867_v4 = vrot.slane %v1180_v44, 4  ;;  %2706 = vrot.lane.b32.xlu0 %v4904_v9, %s5723_s17 }
 0x105   : > { %3415 = vmatprep.mubr.bf16.mxu0 %v2841_v47  ;;  %v1960_v14 = vshll.u32 %v4729_v20, 16  ;;  %v1964_v1 = vshrl.u32 %v4729_v20, 16  ;;  %v1970_v53 = vshll.u32 %v4745_v5, 16  ;;  %2562 = vrot.lane.b32.xlu1 %v4872_v50, %s5723_s17  ;;  %v1953_v21 = vrot.slane %v1951_v43, 4  ;;  %v5543_v5 = vld [vmem:[%s5853_s15 + $0x40] sm:$0xf] }
 0x106   : > { %3416 = vmatmul.mubr.bf16.gmra.mrb[16].mxu0 %v2777_v61  ;;  %v1004_v36 = vsel %vm5899_vm3, %v999_v33, %v1003_v56  ;;  %v1956_v44 = vrot.slane %v1954_v57, 5  ;;  %v4607_v11 = vrot.slane %v758_v22, 9  ;;  %v1198_v0 = vshrl.u32 %v6877_v54, 16  ;;  %v5544_v50 = vld [vmem:[%s5853_s15 + $0x44] sm:$0x1] }
 0x107   : > { %v4842_v16 = vcombine.low %v994_v41, %v1004_v36  ;;  %v1962_v27 = vrot.slane %v1960_v14, 5  ;;  %v1966_v40 = vrot.slane %v1964_v1, 4  ;;  %v1972_v61 = vrot.slane %v1970_v53, 5  ;;  %v6888_v47 = vld [vmem:[%s5853_s15 + $0xc4] sm:$0xf]  ;;  %v6894_v14 = vpop.permute.xlu1 %2684 }
 0x108   : > { %v1957_v20 = vor.u32 %v1956_v44, %v1953_v21  ;;  %v857_v9 = vrot.slane %v5543_v5, 5  ;;  %v860_v2 = vrot.slane %v5544_v50, 5  ;;  %v4697_v22 = vrot.slane %v4681_v32, 9  ;;  %v5546_v36 = vld [vmem:[%s5853_s15 + $0x3c] sm:$0xf]  ;;  %v6899_v44 = vpop.permute.xlu0 %2276 }
 0x109   : > { %v2889_v7 = vsel %vm2758_vm7, %v4842_v16, %v6716_v58  ;;  %v1967_v33 = vor.u32 %v1966_v40, %v1962_v27  ;;  %v1536_v41 = vrot.slane %v6888_v47, 5  ;;  %v1539_v57 = vrot.slane %v6881_v12, 5  ;;  %v5547_v16 = vld [vmem:[%s5853_s15 + $0x24] sm:$0xf]  ;;  %v5548_v40 = vld [vmem:[%s5853_s15 + $0x28] sm:$0xf] }
 0x10a   : > { %3545 = vmatmul.mubr.bf16.vlgmr.msra.gmra.mrb[16].mxu1 %v2889_v7  ;;  %v1958_v42 = vrot.slane %v1957_v20, 4  ;;  %v858_v56 = vsel %vm6171_vm6, %v4607_v11, %v857_v9  ;;  %v859_v43 = vrot.slane %v857_v9, 4  ;;  %v4783_v21 = vcombine.low %v5546_v36, %v5543_v5  ;;  %v759_v7 = vld [vmem:[%s5853_s15 + $0x48] sm:$0xe] }
 0x10b   : > { %v1968_v58 = vrot.slane %v1967_v33, 4  ;;  %v1537_v1 = vsel %vm6171_vm6, %v4697_v22, %v1536_v41  ;;  %v1538_v53 = vrot.slane %v1536_v41, 4  ;;  %v4875_v20 = vcombine.low %v5547_v16, %v5548_v40 }
 0x10c   : > { %v1963_v32 = vsel %vm5899_vm3, %v1958_v42, %v1962_v27  ;;  %v861_v11 = vsel %vm6171_vm6, %v859_v43, %v860_v2  ;;  %v8274_v9 = vshll.u32 %v5891_v17, 16  ;;  %v1201_v33 = vshll.u32 %v6877_v54, 16  ;;  %v760_v43 = vld [vmem:[%s5853_s15 + $0x54] sm:$0xe] }
 0x10d   : > { %v1973_v5 = vsel %vm5899_vm3, %v1968_v58, %v1972_v61  ;;  %v4815_v22 = vcombine.low %v858_v56, %v861_v11  ;;  %v1540_v27 = vsel %vm6171_vm6, %v1538_v53, %v1539_v57  ;;  %v2781_v42 = vsel %vm2758_vm7, %v4783_v21, %v6762_v15  ;;  %v5549_v15 = vld [vmem:[%s5853_s15 + $0x4c] sm:$0xf]  ;;  %v6932_v11 = vld [vmem:[%s5853_s15 + $0x34] sm:$0xf] }
 0x10e   : > { %v1017_v50 = vrot.slane %v8274_v9, 5  ;;  %v4905_v41 = vcombine.low %v1963_v32, %v1973_v5  ;;  %v4873_v2 = vcombine.low %v1537_v1, %v1540_v27  ;;  %v2957_v17 = vsel %vm2758_vm7, %v4875_v20, %v6757_v37  ;;  %v5550_v37 = vld [vmem:[%s5853_s15 + $0x50] sm:$0x1]  ;;  %v6943_v9 = vpop.permute.xlu0 %2422 }
 0x10f   : > { %v2845_v61 = vsel %vm2758_vm7, %v4815_v22, %v6725_v62  ;;  %3552 = vmatprep.mubr.bf16.mxu1 %v2957_v17  ;;  %v8275_v57 = vshll.u32 %v6221_v55, 16  ;;  %v4608_v53 = vrot.slane %v759_v7, 9  ;;  %v6925_v1 = vrot.slane %v1198_v0, 4  ;;  %v5551_v32 = vld [vmem:[%s5853_s15 + $0x30] sm:$0xf] }
 0x110   : > { %v1022_v56 = vor.u32 %v6052_v46, %v1017_v50  ;;  %2708 = vrot.lane.b32.xlu0 %v4905_v41, %s5723_s17  ;;  %3423 = vmatprep.mubr.bf16.mxu0 %v2845_v61  ;;  %v864_v36 = vrot.slane %v5549_v15, 5  ;;  %v867_v21 = vrot.slane %v5550_v37, 5  ;;  %v4876_v62 = vcombine.low %v5551_v32, %v6932_v11  ;;  %v6935_v46 = vpop.permute.xlu1 %2540  ;;  %v5553_v22 = vld [vmem:[%s5853_s15 + $0x48] sm:$0xf] }
 0x111   : > { %v1027_v58 = vrot.slane %v8275_v57, 5  ;;  %2564 = vrot.lane.b32.xlu1 %v4873_v2, %s5723_s17  ;;  %3424 = vmatmul.mubr.bf16.gmra.mrb[20].mxu0 %v2781_v42  ;;  %v1018_v55 = vsel %vm5899_vm3, %v6062_v52, %v1017_v50  ;;  %v8276_v16 = vshll.u32 %v5943_v26, 16  ;;  %v4609_v20 = vrot.slane %v760_v43, 9  ;;  %v5554_v42 = vld [vmem:[%s5853_s15 + $0x58] sm:$0xf] }
 0x112   : > { %v1023_v0 = vrot.slane %v1022_v56, 4  ;;  %v865_v7 = vsel %vm6171_vm6, %v4608_v53, %v864_v36  ;;  %v866_v5 = vrot.slane %v864_v36, 4  ;;  %v4784_v27 = vcombine.low %v5553_v22, %v5549_v15  ;;  %v5555_v56 = vld [vmem:[%s5853_s15 + $0x5c] sm:$0x1]  ;;  %v5556_v36 = vld [vmem:[%s5853_s15 + $0x44] sm:$0x1] }
 0x113   : > { %v1041_v40 = vrot.slane %v8276_v16, 5  ;;  %v8277_v41 = vshll.u32 %v6268_v19, 16  ;;  %v2961_v26 = vsel %vm2758_vm7, %v4876_v62, %v6823_v13  ;;  %v871_v17 = vrot.slane %v5554_v42, 5 }
 0x114   : > { %v1028_v52 = vsel %vm5899_vm3, %v1023_v0, %v1027_v58  ;;  %v868_v61 = vsel %vm6171_vm6, %v866_v5, %v867_v21  ;;  %v874_v57 = vrot.slane %v5555_v56, 5  ;;  %v1097_v37 = vshll.u32 %v5556_v36, 16  ;;  %v5558_v5 = vld [vmem:[%s5853_s15 + $0x3c] sm:$0xf] }
 0x115   : > { %v1051_v2 = vrot.slane %v8277_v41, 5  ;;  %v1046_v50 = vor.u32 %v6151_v6, %v1041_v40  ;;  %v4843_v43 = vcombine.low %v1018_v55, %v1028_v52  ;;  %v1042_v19 = vsel %vm5899_vm3, %v6160_v18, %v1041_v40  ;;  %v761_v6 = vld [vmem:[%s5853_s15 + $0x60] sm:$0xe]  ;;  %v6972_v55 = vpop.permute.xlu1 %2686  ;;  %v5557_v40 = vld [vmem:[%s5853_s15 + $0x54] sm:$0xf] }
 0x116   : > { %v4816_v53 = vcombine.low %v865_v7, %v868_v61  ;;  %v872_v13 = vsel %vm6171_vm6, %v4609_v20, %v871_v17  ;;  %v873_v15 = vrot.slane %v871_v17, 4  ;;  %v2785_v18 = vsel %vm2758_vm7, %v4784_v27, %v6828_v60  ;;  %v6981_v60 = vpop.permute.xlu0 %2278 }
 0x117   : > { %v1047_v58 = vrot.slane %v1046_v50, 4  ;;  %v2893_v21 = vsel %vm2758_vm7, %v4843_v43, %v6792_v31  ;;  %v8278_v32 = vshll.u32 %v6003_v39, 16  ;;  %v4785_v20 = vcombine.low %v5557_v40, %v5554_v42  ;;  %v6992_v50 = vld [vmem:[%s5853_s15 + $0x64] sm:$0xf]  ;;  %v762_v43 = vld [vmem:[%s5853_s15 + $0x6c] sm:$0xe] }
 0x118   : > { %3553 = vmatmul.mubr.bf16.gmra.mrb[20].mxu1 %v2893_v21  ;;  %v2849_v0 = vsel %vm2758_vm7, %v4816_v53, %v6798_v24  ;;  %v875_v31 = vsel %vm6171_vm6, %v873_v15, %v874_v57  ;;  %v6985_v24 = vld [vmem:[%s5853_s15 + $0x40] sm:$0xf]  ;;  %v4610_v27 = vrot.slane %v761_v6, 9  ;;  %v878_v42 = vrot.slane %v6992_v50, 5 }
 0x119   : > { %v1065_v62 = vrot.slane %v8278_v32, 5  ;;  %v1052_v16 = vsel %vm5899_vm3, %v1047_v58, %v1051_v2  ;;  %3431 = vmatprep.mubr.bf16.mxu0 %v2849_v0  ;;  %3560 = vmatprep.mubr.bf16.mxu1 %v2961_v26  ;;  %v4817_v7 = vcombine.low %v872_v13, %v875_v31  ;;  %v4877_v22 = vcombine.low %v5558_v5, %v6985_v24  ;;  %v5561_v26 = vld [vmem:[%s5853_s15 + $0x68] sm:$0x1]  ;;  %v7017_v15 = vpop.permute.xlu1 %2542  ;;  %v7025_v0 = vld [vmem:[%s5853_s15 + $0x70] sm:$0xf] }
 0x11a   : > { %v4844_v39 = vcombine.low %v1042_v19, %v1052_v16  ;;  %3432 = vmatmul.mubr.bf16.gmra.mrb[24].mxu0 %v2785_v18  ;;  %v8279_v2 = vshll.u32 %v6734_v45, 16  ;;  %v881_v17 = vrot.slane %v5561_v26, 5  ;;  %v6999_v61 = vrot.slane %v1201_v33, 5  ;;  %v5562_v19 = vld [vmem:[%s5853_s15 + $0x50] sm:$0x1]  ;;  %v2425_v21 = vpop.permute.xlu0 %2424 }
 0x11b   : > { %v1070_v41 = vor.u32 %v6224_v23, %v1065_v62  ;;  %v1121_v56 = vshll.u32 %v5562_v19, 16  ;;  %v2853_v57 = vsel %vm2758_vm7, %v4817_v7, %v6870_v34  ;;  %v1066_v23 = vsel %vm5899_vm3, %v6253_v49, %v1065_v62  ;;  %v7030_v31 = vld [vmem:[%s5853_s15 + $0x7c] sm:$0xf]  ;;  %v763_v26 = vld [vmem:[%s5853_s15 + $0x78] sm:$0xe] }
 0x11c   : > { %v1075_v52 = vrot.slane %v8279_v2, 5  ;;  %3439 = vmatprep.mubr.bf16.mxu0 %v2853_v57  ;;  %v879_v53 = vsel %vm6171_vm6, %v4610_v27, %v878_v42  ;;  %v880_v58 = vrot.slane %v878_v42, 4  ;;  %v8280_v54 = vshll.u32 %v6076_v59, 16  ;;  %v5569_v57 = vld [vmem:[%s5853_s15 + $0x5c] sm:$0x1] }
 0x11d   : > { %v1071_v45 = vrot.slane %v1070_v41, 4  ;;  %v2897_v13 = vsel %vm2758_vm7, %v4844_v39, %v6865_v38  ;;  %v2789_v34 = vsel %vm2758_vm7, %v4785_v20, %v6899_v44  ;;  %v2965_v49 = vsel %vm2758_vm7, %v4877_v22, %v6894_v14  ;;  %v5564_v14 = vld [vmem:[%s5853_s15 + $0x74] sm:$0x1] }
 0x11e   : > { %v1089_v33 = vrot.slane %v8280_v54, 5  ;;  %v4611_v6 = vrot.slane %v762_v43, 9  ;;  %v882_v59 = vsel %vm6171_vm6, %v880_v58, %v881_v17  ;;  %v1099_v38 = vrot.slane %v1097_v37, 5  ;;  %v7055_v43 = vpop.permute.xlu1 %2688  ;;  %v7064_v54 = vld [vmem:[%s5853_s15 + $0x7c] sm:$0xf] }
 0x11f   : > { %v1076_v36 = vsel %vm5899_vm3, %v1071_v45, %v1075_v52  ;;  %v4818_v62 = vcombine.low %v879_v53, %v882_v59  ;;  %v885_v44 = vrot.slane %v7025_v0, 5  ;;  %v888_v16 = vrot.slane %v5564_v14, 5  ;;  %v7049_v52 = vld [vmem:[%s5853_s15 + $0x4c] sm:$0xf]  ;;  %v2281_v53 = vpop.permute.xlu0 %2280  ;;  %v5572_v14 = vld [vmem:[%s5853_s15 + $0x84] sm:$0xf] }
 0x120   : > { %v1094_v18 = vor.u32 %v6271_v30, %v1089_v33  ;;  %v4845_v32 = vcombine.low %v1066_v23, %v1076_v36  ;;  %v1207_v40 = vshll.u32 %v7030_v31, 16  ;;  %3561 = vmatmul.mubr.bf16.gmra.mrb[24].mxu1 %v2897_v13  ;;  %v1090_v30 = vsel %vm5899_vm3, %v6294_v51, %v1089_v33  ;;  %v5566_v51 = vld [vmem:[%s5853_s15 + $0x60] sm:$0xf]  ;;  %v8283_v13 = vld [vmem:[#allocation24_spill] sm:$0xff] }
 0x121   : > { %v8281_v20 = vshll.u32 %v6146_v3, 16  ;;  %v1211_v7 = vshrl.u32 %v7030_v31, 16  ;;  %3568 = vmatprep.mubr.bf16.mxu1 %v2965_v49  ;;  %v2857_v5 = vsel %vm2758_vm7, %v4818_v62, %v6943_v9  ;;  %v886_v22 = vsel %vm6171_vm6, %v4611_v6, %v885_v44  ;;  %v5567_v3 = vld [vmem:[%s5853_s15 + $0x48] sm:$0xf]  ;;  %v5571_v36 = vld [vmem:[%s5853_s15 + $0x80] sm:$0x1] }
 0x122   : > { %v1095_v37 = vrot.slane %v1094_v18, 4  ;;  %v887_v27 = vrot.slane %v885_v44, 4  ;;  %v1204_v41 = vor.u32 %v6999_v61, %v6925_v1  ;;  %3440 = vmatmul.mubr.bf16.gmra.mrb[28].mxu0 %v2789_v34  ;;  %v4786_v2 = vcombine.low %v5566_v51, %v6992_v50  ;;  %v8282_v61 = vld [vmem:[#allocation23_spill] sm:$0xff] }
 0x123   : > { %v1113_v39 = vrot.slane %v8281_v20, 5  ;;  %v4878_v42 = vcombine.low %v5567_v3, %v7049_v52  ;;  %3447 = vmatprep.mubr.bf16.mxu0 %v2857_v5  ;;  %v1123_v19 = vrot.slane %v1121_v56, 5  ;;  %v1145_v23 = vshll.u32 %v5569_v57, 16 }
 0x124   : > { %v1100_v9 = vsel %vm5899_vm3, %v1095_v37, %v1099_v38  ;;  %v889_v1 = vsel %vm6171_vm6, %v887_v27, %v888_v16  ;;  %v2901_v45 = vsel %vm2758_vm7, %v4845_v32, %v6935_v46  ;;  %v892_v33 = vrot.slane %v7064_v54, 5  ;;  %v8284_v38 = vld [vmem:[#allocation21_spill] sm:$0xff] }
 0x125   : > { %v4846_v17 = vcombine.low %v1090_v30, %v1100_v9  ;;  %v1118_v50 = vor.u32 %v8282_v61, %v1113_v39  ;;  %v4819_v58 = vcombine.low %v886_v22, %v889_v1  ;;  %v1114_v34 = vsel %vm5899_vm3, %v8283_v13, %v1113_v39  ;;  %v8286_v39 = vld [vmem:[#allocation25_spill] sm:$0xff]  ;;  %v5573_v22 = vld [vmem:[%s5853_s15 + $0x68] sm:$0x1]  ;;  %v5575_v9 = vld [vmem:[%s5853_s15 + $0x54] sm:$0xf]  ;;  %v2427_v61 = vpop.permute.xlu0 %2426 }
 0x126   : > { %v4612_v6 = vrot.slane %v763_v26, 9  ;;  %v895_v56 = vrot.slane %v5571_v36, 5  ;;  %v7071_v59 = vrot.slane %v1211_v7, 4  ;;  %v2969_v46 = vsel %vm2758_vm7, %v4878_v42, %v6972_v55  ;;  %v7102_v26 = vld [vmem:[%s5853_s15 + $0x58] sm:$0xf] }
 0x127   : > { %v1119_v49 = vrot.slane %v1118_v50, 4  ;;  %v894_v18 = vrot.slane %v892_v33, 4  ;;  %v8285_v32 = vshll.u32 %v8284_v38, 16  ;;  %v7077_v44 = vrot.slane %v1204_v41, 4  ;;  %v7089_v41 = vpop.permute.xlu1 %2544  ;;  %v8287_v50 = vld [vmem:[#allocation26_spill] sm:$0xff] }
 0x128   : > { %v1222_v16 = vshrl.u32 %v5572_v14, 16  ;;  %v2793_v30 = vsel %vm2758_vm7, %v4786_v2, %v6981_v60  ;;  %3569 = vmatmul.mubr.bf16.gmra.mrb[28].mxu1 %v2901_v45  ;;  %v2861_v55 = vsel %vm2758_vm7, %v4819_v58, %v2425_v21  ;;  %v1147_v5 = vrot.slane %v1145_v23, 5  ;;  %v764_v2 = vld [vmem:[%s5853_s15 + $0x84] sm:$0xe]  ;;  %v7097_v21 = vld [vmem:[%s5853_s15 + $0x88] sm:$0xf] }
 0x129   : > { %v1137_v62 = vrot.slane %v8285_v32, 5  ;;  %v1124_v37 = vsel %vm5899_vm3, %v1119_v49, %v1123_v19  ;;  %v1169_v27 = vshll.u32 %v5573_v22, 16  ;;  %3576 = vmatprep.mubr.bf16.mxu1 %v2969_v46  ;;  %v893_v60 = vsel %vm6171_vm6, %v4612_v6, %v892_v33  ;;  %v5577_v58 = vld [vmem:[%s5853_s15 + $0x6c] sm:$0xf] }
 0x12a   : > { %v7085_v20 = vcombine.low %v1114_v34, %v1124_v37  ;;  %v896_v51 = vsel %vm6171_vm6, %v894_v18, %v895_v56  ;;  %v899_v3 = vrot.slane %v7097_v21, 5  ;;  %v1225_v42 = vshll.u32 %v5572_v14, 16  ;;  %3448 = vmatmul.mubr.bf16.gmra.mrb[32].mxu0 %v2793_v30  ;;  %v5578_v56 = vld [vmem:[%s5853_s15 + $0x8c] sm:$0x1] }
 0x12b   : > { %v1142_v7 = vor.u32 %v8286_v39, %v1137_v62  ;;  %v4879_v1 = vcombine.low %v5575_v9, %v7102_v26  ;;  %v1138_v19 = vsel %vm5899_vm3, %v8287_v50, %v1137_v62  ;;  %v7108_v23 = vrot.slane %v1222_v16, 4  ;;  %3455 = vmatprep.mubr.bf16.mxu0 %v2861_v55  ;;  %v7123_v62 = vld [vmem:[%s5853_s15 + $0x88] sm:$0xf]  ;;  %v2691_v37 = vpop.permute.xlu1 %2690  ;;  %v7139_v9 = vld [vmem:[%s5853_s15 + $0x64] sm:$0xf] }
 0x12c   : > { %v2905_v45 = vsel %vm2758_vm7, %v4846_v17, %v7017_v15  ;;  %v4787_v33 = vcombine.low %v5577_v58, %v7025_v0  ;;  %v8288_v13 = vshll.u32 %v6259_v63, 16  ;;  %v4820_v49 = vcombine.low %v893_v60, %v896_v51  ;;  %v5580_v0 = vld [vmem:[%s5853_s15 + $0x74] sm:$0x1]  ;;  %v8289_v55 = vld [vmem:[#allocation27_spill] sm:$0xff] }
 0x12d   : > { %v1143_v57 = vrot.slane %v1142_v7, 4  ;;  %v4613_v36 = vrot.slane %v764_v2, 9  ;;  %v902_v46 = vrot.slane %v5578_v56, 5  ;;  %v901_v38 = vrot.slane %v899_v3, 4  ;;  %v8290_v7 = vld [vmem:[#allocation22_spill] sm:$0xff]  ;;  %v2283_v2 = vpop.permute.xlu0 %2282 }
 0x12e   : > { %v1161_v34 = vrot.slane %v8288_v13, 5  ;;  %v1171_v17 = vrot.slane %v1169_v27, 5  ;;  %v1227_v32 = vrot.slane %v1225_v42, 5  ;;  %v1235_v63 = vshrl.u32 %v7123_v62, 16  ;;  %v5581_v27 = vld [vmem:[%s5853_s15 + $0x90] sm:$0xf] }
 0x12f   : > { %v1148_v6 = vsel %vm5899_vm3, %v1143_v57, %v1147_v5  ;;  %v1193_v14 = vshll.u32 %v5580_v0, 16  ;;  %v2973_v16 = vsel %vm2758_vm7, %v4879_v1, %v7055_v43  ;;  %v2797_v30 = vsel %vm2758_vm7, %v4787_v33, %v2281_v53  ;;  %v5582_v43 = vld [vmem:[%s5853_s15 + $0x60] sm:$0xf] }
 0x130   : > { %v7119_v18 = vcombine.low %v1138_v19, %v1148_v6  ;;  %v1166_v15 = vor.u32 %v6512_v10, %v1161_v34  ;;  %v1162_v10 = vsel %vm5899_vm3, %v8289_v55, %v1161_v34  ;;  %v8291_v5 = vshll.u32 %v8290_v7, 16  ;;  %3577 = vmatmul.mubr.bf16.gmra.mrb[32].mxu1 %v2905_v45  ;;  %v5584_v57 = vld [vmem:[%s5853_s15 + $0x80] sm:$0x1]  ;;  %v5588_v7 = vld [vmem:[%s5853_s15 + $0x94] sm:$0xf] }
 0x131   : > { %v1246_v60 = vshrl.u32 %v5581_v27, 16  ;;  %v1249_v51 = vshll.u32 %v5581_v27, 16  ;;  %v2865_v42 = vsel %vm2758_vm7, %v4820_v49, %v2427_v61  ;;  %v4880_v53 = vcombine.low %v5582_v43, %v7139_v9  ;;  %3584 = vmatprep.mubr.bf16.mxu1 %v2973_v16  ;;  %v5585_v49 = vld [vmem:[%s5853_s15 + $0x78] sm:$0xf]  ;;  %v8292_v27 = vld [vmem:[#allocation19_spill] sm:$0xff] }
 0x132   : > { %v1167_v39 = vrot.slane %v1166_v15, 4  ;;  %v1185_v22 = vrot.slane %v8291_v5, 5  ;;  %v900_v1 = vsel %vm6171_vm6, %v4613_v36, %v899_v3  ;;  %v903_v50 = vsel %vm6171_vm6, %v901_v38, %v902_v46  ;;  %3456 = vmatmul.mubr.bf16.gmra.mrb[36].mxu0 %v2797_v30  ;;  %v4746_v46 = vld [vmem:[%s5853_s15 + $0x18] sm:$0xe]  ;;  %v5586_v30 = vld [vmem:[%s5853_s15 + $0x8c] sm:$0x1] }
 0x133   : > { %v1217_v45 = vshll.u32 %v5584_v57, 16  ;;  %v1195_v13 = vrot.slane %v1193_v14, 5  ;;  %v1231_v3 = vshll.u32 %v7123_v62, 16  ;;  %v7156_v34 = vrot.slane %v1235_v63, 4  ;;  %3463 = vmatprep.mubr.bf16.mxu0 %v2865_v42  ;;  %v5589_v42 = vld [vmem:[%s5853_s15 + $0x6c] sm:$0xf] }
 0x134   : > { %v1172_v19 = vsel %vm5899_vm3, %v1167_v39, %v1171_v17  ;;  %v1186_v61 = vsel %vm5899_vm3, %v6867_v4, %v1185_v22  ;;  %v1190_v33 = vor.u32 %v6802_v25, %v1185_v22  ;;  %v4788_v6 = vcombine.low %v5585_v49, %v7064_v54  ;;  %v2547_v54 = vpop.permute.xlu1 %2546  ;;  %v7186_v43 = vld [vmem:[%s5853_s15 + $0x70] sm:$0xf] }
 0x135   : > { %v7152_v58 = vcombine.low %v1162_v10, %v1172_v19  ;;  %v2040_v36 = vrot.slane %v6839_v8, 5  ;;  %v1228_v4 = vor.u32 %v1227_v32, %v7108_v23  ;;  %v4821_v56 = vcombine.low %v900_v1, %v903_v50  ;;  %v2429_v8 = vpop.permute.xlu0 %2428  ;;  %v5591_v19 = vld [vmem:[%s5853_s15 + $0x84] sm:$0xf] }
 0x136   : > { %v1191_v38 = vrot.slane %v1190_v33, 4  ;;  %v1209_v15 = vrot.slane %v1207_v40, 5  ;;  %v1248_v25 = vrot.slane %v1246_v60, 4  ;;  %v1251_v17 = vrot.slane %v1249_v51, 5 }
 0x137   : > { %v2909_v62 = vsel %vm2758_vm7, %v7085_v20, %v7089_v41  ;;  %v2977_v63 = vsel %vm2758_vm7, %v4880_v53, %v2691_v37  ;;  %v1219_v32 = vrot.slane %v1217_v45, 5  ;;  %v2801_v0 = vsel %vm2758_vm7, %v4788_v6, %v2283_v2  ;;  %v8294_v45 = vld [vmem:[#allocation15_spill] sm:$0xff] }
 0x138   : > { %v1196_v23 = vsel %vm5899_vm3, %v1191_v38, %v1195_v13  ;;  %v1210_v31 = vsel %vm5899_vm3, %v7077_v44, %v1209_v15  ;;  %v1214_v40 = vor.u32 %v7071_v59, %v1209_v15  ;;  %v4762_v14 = vrot.slane %v4746_v46, 9  ;;  %3585 = vmatmul.mubr.bf16.gmra.mrb[36].mxu1 %v2909_v62  ;;  %v5587_v44 = vld [vmem:[%s5853_s15 + $0x2c] sm:$0x1]  ;;  %v2693_v50 = vpop.permute.xlu1 %2692 }
 0x139   : > { %v2042_v20 = vrot.slane %v2040_v36, 4  ;;  %v7176_v41 = vcombine.low %v1186_v61, %v1196_v23  ;;  %v1229_v16 = vrot.slane %v1228_v4, 4  ;;  %v1241_v37 = vshll.u32 %v5586_v30, 16  ;;  %3592 = vmatprep.mubr.bf16.mxu1 %v2977_v63  ;;  %v2285_v6 = vpop.permute.xlu0 %2284  ;;  %v4748_v4 = vld [vmem:[%s5853_s15 + $0x30] sm:$0xe] }
 0x13a   : > { %v2869_v55 = vsel %vm2758_vm7, %v4821_v56, %v2429_v8  ;;  %v1215_v10 = vrot.slane %v1214_v40, 4  ;;  %v2050_v39 = vrot.slane %v5587_v44, 5  ;;  %v1252_v59 = vor.u32 %v1251_v17, %v1248_v25  ;;  %3464 = vmatmul.mubr.bf16.gmra.mrb[40].mxu0 %v2801_v0  ;;  %v5592_v8 = vld [vmem:[%s5853_s15 + $0x98] sm:$0x1]  ;;  %v7224_v44 = vld [vmem:[%s5853_s15 + $0x7c] sm:$0xf] }
 0x13b   : > { %v1259_v5 = vshrl.u32 %v5588_v7, 16  ;;  %v1233_v22 = vrot.slane %v1231_v3, 5  ;;  %v8293_v60 = vrot.slane %v8292_v27, 5  ;;  %v1255_v2 = vshll.u32 %v5588_v7, 16  ;;  %3471 = vmatprep.mubr.bf16.mxu0 %v2869_v55  ;;  %v4747_v3 = vld [vmem:[%s5853_s15 + $0x24] sm:$0xe] }
 0x13c   : > { %v4881_v53 = vcombine.low %v5589_v42, %v7186_v43  ;;  %v1220_v1 = vsel %vm5899_vm3, %v1215_v10, %v1219_v32  ;;  %v4789_v61 = vcombine.low %v5591_v19, %v7097_v21  ;;  %v2041_v57 = vsel %vm6171_vm6, %v4762_v14, %v2040_v36  ;;  %v8296_v36 = vld [vmem:[#allocation14_spill] sm:$0xff]  ;;  %v5594_v10 = vld [vmem:[%s5853_s15 + $0x78] sm:$0xf] }
 0x13d   : > { %v2049_v51 = vrot.slane %v8293_v60, 4  ;;  %v8295_v33 = vrot.slane %v8294_v45, 5  ;;  %v7200_v49 = vcombine.low %v1210_v31, %v1220_v1  ;;  %v2054_v56 = vrot.slane %v6932_v11, 5  ;;  %v5596_v1 = vld [vmem:[%s5853_s15 + $0xc0] sm:$0xf] }
 0x13e   : > { %v1234_v46 = vsel %vm5899_vm3, %v1229_v16, %v1233_v22  ;;  %v1238_v21 = vor.u32 %v7156_v34, %v1233_v22  ;;  %v1243_v38 = vrot.slane %v1241_v37, 5  ;;  %v8297_v15 = vshrl.u32 %v8296_v36, 16  ;;  %v8298_v37 = vld [vmem:[#allocation28_spill] sm:$0xff] }
 0x13f   : > { %v2044_v13 = vsel %vm6171_vm6, %v2042_v20, %v8295_v33  ;;  %v1253_v17 = vrot.slane %v1252_v59, 4  ;;  %v1261_v62 = vrot.slane %v1259_v5, 4  ;;  %v2913_v63 = vsel %vm2758_vm7, %v7119_v18, %v2547_v54  ;;  %v5593_v20 = vld [vmem:[%s5853_s15 + $0x38] sm:$0x1]  ;;  %v2549_v5 = vpop.permute.xlu1 %2548  ;;  %v4750_v33 = vld [vmem:[%s5853_s15 + $0x48] sm:$0xe] }
 0x140   : > { %v7209_v25 = vrot.slane %v8297_v15, 4  ;;  %v1265_v23 = vshll.u32 %v5592_v8, 16  ;;  %v2981_v11 = vsel %vm2758_vm7, %v4881_v53, %v2693_v50  ;;  %v4763_v31 = vrot.slane %v4747_v3, 9  ;;  %3593 = vmatmul.mubr.bf16.gmra.mrb[40].mxu1 %v2913_v63  ;;  %v8302_v63 = vld [vmem:[#allocation12_spill] sm:$0xff] }
 0x141   : > { %v1239_v40 = vrot.slane %v1238_v21, 4  ;;  %v2051_v34 = vsel %vm6171_vm6, %v2049_v51, %v2050_v39  ;;  %v2805_v32 = vsel %vm2758_vm7, %v4789_v61, %v2285_v6  ;;  %v4906_v0 = vcombine.low %v2041_v57, %v2044_v13  ;;  %3600 = vmatprep.mubr.bf16.mxu1 %v2981_v11  ;;  %v4749_v51 = vld [vmem:[%s5853_s15 + $0x3c] sm:$0xe]  ;;  %v2695_v57 = vpop.permute.xlu0 %2694  ;;  %v8300_v6 = vld [vmem:[#allocation10_spill] sm:$0xff]  ;;  %v5598_v11 = vld [vmem:[%s5853_s15 + $0x50] sm:$0x1] }
 0x142   : > { %v4764_v14 = vrot.slane %v4748_v4, 9  ;;  %v2057_v16 = vrot.slane %v5593_v20, 5  ;;  %v2056_v18 = vrot.slane %v2054_v56, 4  ;;  %v1257_v30 = vrot.slane %v1255_v2, 5  ;;  %3472 = vmatmul.mubr.bf16.gmra.mrb[44].mxu0 %v2805_v32 }
 0x143   : > { %v1244_v54 = vsel %vm5899_vm3, %v1239_v40, %v1243_v38  ;;  %v1289_v55 = vshll.u32 %v8298_v37, 16  ;;  %v4882_v39 = vcombine.low %v5594_v10, %v7224_v44  ;;  %v2061_v59 = vrot.slane %v6985_v24, 5  ;;  %v5597_v24 = vld [vmem:[%s5853_s15 + $0x44] sm:$0x1]  ;;  %5300 = vmatprep.mubr.msk.bf16.mxu0 %vm2758_vm7, %v4906_v0  ;;  %v8303_v0 = vld [vmem:[#allocation13_spill] sm:$0xff]  ;;  %v8307_v10 = vld [vmem:[#allocation11_spill] sm:$0xff] }
 0x144   : > { %v7228_v7 = vcombine.low %v1234_v46, %v1244_v54  ;;  %v8299_v22 = vmov %v8293_v60  ;;  %v1258_v2 = vsel %vm5899_vm3, %v1253_v17, %v1257_v30  ;;  %v1262_v42 = vor.u32 %v1261_v62, %v1257_v30 }
 0x145   : > { %v2048_v60 = vsel %vm6171_vm6, %v4763_v31, %v8299_v22  ;;  %v1267_v53 = vrot.slane %v1265_v23, 5  ;;  %v1342_v50 = vshrl.u32 %v5596_v1, 16  ;;  %v1345_v19 = vshll.u32 %v5596_v1, 16 }
 0x146   : > { %v2064_v61 = vrot.slane %v5597_v24, 5  ;;  %v2055_v27 = vsel %vm6171_vm6, %v4764_v14, %v2054_v56  ;;  %v2058_v45 = vsel %vm6171_vm6, %v2056_v18, %v2057_v16  ;;  %v2068_v13 = vrot.slane %v7049_v52, 5  ;;  %v8304_v16 = vld [vmem:[#allocation20_spill] sm:$0xff]  ;;  %v8305_v18 = vld [vmem:[#allocation18_spill] sm:$0xff] }
 0x147   : > { %v1263_v3 = vrot.slane %v1262_v42, 4  ;;  %v8301_v4 = vshll.u32 %v8300_v6, 16  ;;  %v2917_v21 = vsel %vm2758_vm7, %v7152_v58, %v2549_v5  ;;  %v4907_v38 = vcombine.low %v2048_v60, %v2051_v34  ;;  %v2551_v5 = vpop.permute.xlu1 %2550 }
 0x148   : > { %v4765_v15 = vrot.slane %v4749_v51, 9  ;;  %v2063_v17 = vrot.slane %v2061_v59, 4  ;;  %v2985_v62 = vsel %vm2758_vm7, %v4882_v39, %v2695_v57  ;;  %v1291_v23 = vrot.slane %v1289_v55, 5  ;;  %3601 = vmatmul.mubr.bf16.gmra.mrb[44].mxu1 %v2917_v21  ;;  %v5599_v51 = vld [vmem:[%s5853_s15 + $0x84] sm:$0xf] }
 0x149   : > { %v1281_v46 = vrot.slane %v8301_v4, 5  ;;  %v1268_v56 = vsel %vm5899_vm3, %v1263_v3, %v1267_v53  ;;  %v2071_v52 = vrot.slane %v5598_v11, 5  ;;  %v4908_v31 = vcombine.low %v2055_v27, %v2058_v45  ;;  %3608 = vmatprep.mubr.bf16.mxu1 %v2985_v62  ;;  %v8309_v45 = vld [vmem:[#allocation16_spill] sm:$0xff]  ;;  %v5601_v62 = vld [vmem:[%s5853_s15 + $0x5c] sm:$0x1] }
 0x14a   : > { %v4766_v40 = vrot.slane %v4750_v33, 9  ;;  %v7255_v32 = vcombine.low %v1258_v2, %v1268_v56  ;;  %v1313_v58 = vshll.u32 %v6746_v48, 16  ;;  %v2070_v34 = vrot.slane %v2068_v13, 4  ;;  %5301 = vmatmul.mubr.msk.bf16.vlgmr.msra.gmra.mrb[48].mxu0 %vm2758_vm7, %v4907_v38  ;;  %v7279_v2 = vld [vmem:[%s5853_s15 + $0x88] sm:$0xf] }
 0x14b   : > { %v1286_v8 = vor.u32 %v8302_v63, %v1281_v46  ;;  %v1282_v14 = vsel %vm5899_vm3, %v8303_v0, %v1281_v46  ;;  %v8306_v54 = vor.u32 %v8304_v16, %v8305_v18  ;;  %v7266_v37 = vrot.slane %v1342_v50, 4  ;;  %5304 = vmatprep.mubr.msk.bf16.mxu0 %vm2758_vm7, %v4908_v31  ;;  %v2697_v50 = vpop.permute.xlu0 %2696  ;;  %v5603_v18 = vld [vmem:[%s5853_s15 + $0x90] sm:$0xf] }
 0x14c   : > { %v7268_v55 = vrot.slane %v1345_v19, 5  ;;  %v8308_v48 = vshll.u32 %v8307_v10, 16  ;;  %v2062_v22 = vsel %vm6171_vm6, %v4765_v15, %v2061_v59  ;;  %v2065_v60 = vsel %vm6171_vm6, %v2063_v17, %v2064_v61  ;;  %v4751_v19 = vld [vmem:[%s5853_s15 + $0x54] sm:$0xe]  ;;  %v8310_v15 = vld [vmem:[#allocation17_spill] sm:$0xff] }
 0x14d   : > { %v1287_v20 = vrot.slane %v1286_v8, 4  ;;  %v7264_v30 = vrot.slane %v8306_v54, 4  ;;  %v4883_v42 = vcombine.low %v5599_v51, %v7279_v2  ;;  %v1351_v1 = vshll.u32 %v6888_v47, 16  ;;  %v7322_v54 = vld [vmem:[%s5853_s15 + $0x94] sm:$0xf] }
 0x14e   : > { %v1305_v39 = vrot.slane %v8308_v48, 5  ;;  %v2069_v59 = vsel %vm6171_vm6, %v4766_v40, %v2068_v13  ;;  %v2075_v24 = vrot.slane %v7102_v26, 5  ;;  %v2072_v57 = vsel %vm6171_vm6, %v2070_v34, %v2071_v52  ;;  %v4752_v26 = vld [vmem:[%s5853_s15 + $0x60] sm:$0xe] }
 0x14f   : > { %v1292_v53 = vsel %vm5899_vm3, %v1287_v20, %v1291_v23  ;;  %v2082_v27 = vrot.slane %v7139_v9, 5  ;;  %v1315_v3 = vrot.slane %v1313_v58, 5  ;;  %v1355_v6 = vshrl.u32 %v6888_v47, 16  ;;  %v5602_v23 = vld [vmem:[%s5853_s15 + $0x68] sm:$0x1]  ;;  %v2553_v20 = vpop.permute.xlu1 %2552 }
 0x150   : > { %v7290_v61 = vcombine.low %v1282_v14, %v1292_v53  ;;  %v1310_v33 = vor.u32 %v8309_v45, %v1305_v39  ;;  %v1337_v4 = vshll.u32 %v6816_v35, 16  ;;  %v2921_v13 = vsel %vm2758_vm7, %v7176_v41, %v2551_v5  ;;  %v5605_v53 = vld [vmem:[%s5853_s15 + $0x74] sm:$0x1] }
 0x151   : > { %v4909_v46 = vcombine.low %v2062_v22, %v2065_v60  ;;  %v2989_v21 = vsel %vm2758_vm7, %v4883_v42, %v2697_v50  ;;  %v4767_v38 = vrot.slane %v4751_v19, 9  ;;  %v1306_v9 = vsel %vm5899_vm3, %v8310_v15, %v1305_v39  ;;  %3609 = vmatmul.mubr.bf16.gmra.mrb[48].mxu1 %v2921_v13 }
 0x152   : > { %v1311_v17 = vrot.slane %v1310_v33, 4  ;;  %v2078_v56 = vrot.slane %v5601_v62, 5  ;;  %v4910_v63 = vcombine.low %v2069_v59, %v2072_v57  ;;  %v2077_v8 = vrot.slane %v2075_v24, 4  ;;  %3616 = vmatprep.mubr.bf16.mxu1 %v2989_v21  ;;  %v4754_v59 = vld [vmem:[%s5853_s15 + $0x78] sm:$0xe] }
 0x153   : > { %v8311_v47 = vshll.u32 %v8296_v36, 16  ;;  %v2085_v41 = vrot.slane %v5602_v23, 5  ;;  %v4768_v11 = vrot.slane %v4752_v26, 9  ;;  %v2084_v52 = vrot.slane %v2082_v27, 4  ;;  %5305 = vmatmul.mubr.msk.bf16.gmra.mrb[52].mxu0 %vm2758_vm7, %v4909_v46  ;;  %v2555_v26 = vpop.permute.xlu1 %2554  ;;  %v5607_v21 = vld [vmem:[%s5853_s15 + $0x9c] sm:$0xf] }
 0x154   : > { %v1316_v31 = vsel %vm5899_vm3, %v1311_v17, %v1315_v3  ;;  %v1348_v40 = vor.u32 %v7268_v55, %v7266_v37  ;;  %v1339_v34 = vrot.slane %v1337_v4, 5  ;;  %v1357_v0 = vrot.slane %v1355_v6, 4  ;;  %5308 = vmatprep.mubr.msk.bf16.mxu0 %vm2758_vm7, %v4910_v63  ;;  %v2699_v55 = vpop.permute.xlu0 %2698  ;;  %v5606_v3 = vld [vmem:[%s5853_s15 + $0x80] sm:$0x1] }
 0x155   : > { %v1329_v35 = vrot.slane %v8311_v47, 5  ;;  %v7313_v58 = vcombine.low %v1306_v9, %v1316_v31  ;;  %v1361_v14 = vshll.u32 %v6881_v12, 16  ;;  %v2076_v16 = vsel %vm6171_vm6, %v4767_v38, %v2075_v24  ;;  %v4753_v12 = vld [vmem:[%s5853_s15 + $0x6c] sm:$0xe]  ;;  %v7353_v38 = vld [vmem:[%s5853_s15 + $0xa0] sm:$0xf] }
 0x156   : > { %v4884_v37 = vcombine.low %v5603_v18, %v7322_v54  ;;  %v2089_v10 = vrot.slane %v7186_v43, 5  ;;  %v2083_v5 = vsel %vm6171_vm6, %v4768_v11, %v2082_v27  ;;  %v2086_v22 = vsel %vm6171_vm6, %v2084_v52, %v2085_v41  ;;  %v4756_v52 = vld [vmem:[%s5853_s15 + $0x90] sm:$0xe]  ;;  %v5609_v31 = vld [vmem:[%s5853_s15 + $0x8c] sm:$0x1] }
 0x157   : > { %v1334_v36 = vor.u32 %v7209_v25, %v1329_v35  ;;  %v2079_v25 = vsel %vm6171_vm6, %v2077_v8, %v2078_v56  ;;  %v1330_v48 = vsel %vm5899_vm3, %v7264_v30, %v1329_v35  ;;  %v2096_v60 = vrot.slane %v7224_v44, 5  ;;  %v4755_v35 = vld [vmem:[%s5853_s15 + $0x84] sm:$0xe] }
 0x158   : > { %v1353_v51 = vrot.slane %v1351_v1, 5  ;;  %v1349_v42 = vrot.slane %v1348_v40, 4  ;;  %v2092_v50 = vrot.slane %v5605_v53, 5  ;;  %v2925_v43 = vsel %vm2758_vm7, %v7200_v49, %v2553_v20  ;;  %v2701_v62 = vpop.permute.xlu0 %2700 }
 0x159   : > { %v1335_v39 = vrot.slane %v1334_v36, 4  ;;  %v4911_v19 = vcombine.low %v2076_v16, %v2079_v25  ;;  %v2993_v24 = vsel %vm2758_vm7, %v4884_v37, %v2699_v55  ;;  %v4769_v57 = vrot.slane %v4753_v12, 9  ;;  %3617 = vmatmul.mubr.bf16.gmra.mrb[52].mxu1 %v2925_v43  ;;  %v5612_v37 = vld [vmem:[%s5853_s15 + $0xac] sm:$0xf]  ;;  %v5613_v43 = vld [vmem:[%s5853_s15 + $0xa4] sm:$0x1] }
 0x15a   : > { %v4912_v44 = vcombine.low %v2083_v5, %v2086_v22  ;;  %v2091_v1 = vrot.slane %v2089_v10, 4  ;;  %v1358_v45 = vor.u32 %v1357_v0, %v1353_v51  ;;  %v1363_v33 = vrot.slane %v1361_v14, 5  ;;  %3624 = vmatprep.mubr.bf16.mxu1 %v2993_v24  ;;  %v5610_v14 = vld [vmem:[%s5853_s15 + $0x98] sm:$0x1]  ;;  %v4757_v22 = vld [vmem:[%s5853_s15 + $0x9c] sm:$0xe] }
 0x15b   : > { %v1340_v30 = vsel %vm5899_vm3, %v1335_v39, %v1339_v34  ;;  %v2099_v6 = vrot.slane %v5606_v3, 5  ;;  %v4770_v49 = vrot.slane %v4754_v59, 9  ;;  %v2098_v4 = vrot.slane %v2096_v60, 4  ;;  %5309 = vmatmul.mubr.msk.bf16.gmra.mrb[56].mxu0 %vm2758_vm7, %v4911_v19  ;;  %v5616_v3 = vld [vmem:[%s5853_s15 + $0xb8] sm:$0xf] }
 0x15c   : > { %v7345_v27 = vcombine.low %v1330_v48, %v1340_v30  ;;  %v1354_v13 = vsel %vm5899_vm3, %v1349_v42, %v1353_v51  ;;  %v1359_v46 = vrot.slane %v1358_v45, 4  ;;  %v4885_v15 = vcombine.low %v5607_v21, %v7353_v38  ;;  %5312 = vmatprep.mubr.msk.bf16.mxu0 %vm2758_vm7, %v4912_v44  ;;  %v4758_v42 = vld [vmem:[%s5853_s15 + $0xa8] sm:$0xe] }
 0x15d   : > { %v2090_v9 = vsel %vm6171_vm6, %v4769_v57, %v2089_v10  ;;  %v2093_v17 = vsel %vm6171_vm6, %v2091_v1, %v2092_v50  ;;  %v2103_v56 = vrot.slane %v7279_v2, 5  ;;  %v2097_v8 = vsel %vm6171_vm6, %v4770_v49, %v2096_v60  ;;  %v5614_v57 = vld [vmem:[%s5853_s15 + $0xb0] sm:$0x1] }
 0x15e   : > { %v1364_v63 = vsel %vm5899_vm3, %v1359_v46, %v1363_v33  ;;  %v2100_v47 = vsel %vm6171_vm6, %v2098_v4, %v2099_v6  ;;  %v2110_v23 = vrot.slane %v7322_v54, 5  ;;  %v2929_v11 = vsel %vm2758_vm7, %v7228_v7, %v2555_v26  ;;  %v2557_v7 = vpop.permute.xlu1 %2556  ;;  %v5611_v54 = vld [vmem:[%s5853_s15 + $0xa8] sm:$0xf]  ;;  %v5615_v33 = vld [vmem:[%s5853_s15 + $0xb4] sm:$0xf] }
 0x15f   : > { %v7370_v41 = vcombine.low %v1354_v13, %v1364_v63  ;;  %v4913_v2 = vcombine.low %v2090_v9, %v2093_v17  ;;  %v2997_v29 = vsel %vm2758_vm7, %v4885_v15, %v2701_v62  ;;  %v2106_v40 = vrot.slane %v5609_v31, 5  ;;  %v2703_v10 = vpop.permute.xlu0 %2702  ;;  %v5617_v15 = vld [vmem:[%s5853_s15 + $0xc4] sm:$0xf]  ;;  %v4760_v62 = vld [vmem:[%s5853_s15 + $0xc0] sm:$0xe] }
 0x160   : > { %v4914_v36 = vcombine.low %v2097_v8, %v2100_v47  ;;  %v4771_v34 = vrot.slane %v4755_v35, 9  ;;  %v2105_v0 = vrot.slane %v2103_v56, 4  ;;  %v2113_v20 = vrot.slane %v5610_v14, 5  ;;  %v5618_v8 = vld [vmem:[%s5853_s15 + $0xbc] sm:$0x1] }
 0x161   : > { %3625 = vmatmul.mubr.bf16.gmra.mrb[56].mxu1 %v2929_v11  ;;  %v4772_v16 = vrot.slane %v4756_v52, 9  ;;  %v2112_v18 = vrot.slane %v2110_v23, 4  ;;  %v4886_v25 = vcombine.low %v5611_v54, %v5612_v37  ;;  %v2117_v48 = vrot.slane %v7353_v38, 5  ;;  %v4759_v38 = vld [vmem:[%s5853_s15 + $0xb4] sm:$0xe] }
 0x162   : > { %3632 = vmatprep.mubr.bf16.mxu1 %v2997_v29  ;;  %v2104_v55 = vsel %vm6171_vm6, %v4771_v34, %v2103_v56  ;;  %v2107_v12 = vsel %vm6171_vm6, %v2105_v0, %v2106_v40  ;;  %v2124_v60 = vrot.slane %v5612_v37, 5  ;;  %v2933_v51 = vsel %vm2758_vm7, %v7255_v32, %v2557_v7  ;;  %v2559_v32 = vpop.permute.xlu1 %2558  ;;  %v5619_v52 = vld [vmem:[%s5853_s15 + $0xc8] sm:$0x1]  ;;  %v5620_v34 = vld [vmem:[%s5853_s15 + $0xd0] sm:$0xf] }
 0x163   : > { %5313 = vmatmul.mubr.msk.bf16.gmra.mrb[60].mxu0 %vm2758_vm7, %v4913_v2  ;;  %v2111_v39 = vsel %vm6171_vm6, %v4772_v16, %v2110_v23  ;;  %v2114_v5 = vsel %vm6171_vm6, %v2112_v18, %v2113_v20  ;;  %v4915_v53 = vcombine.low %v2104_v55, %v2107_v12  ;;  %v3001_v50 = vsel %vm2758_vm7, %v4886_v25, %v2703_v10  ;;  %v4761_v16 = vld [vmem:[%s5853_s15 + $0xcc] sm:$0xe]  ;;  %v5621_v7 = vld [vmem:[%s5853_s15 + $0xc0] sm:$0xf]  ;;  %v5622_v25 = vld [vmem:[%s5853_s15 + $0xd4] sm:$0x1] }
 0x164   : > { %5316 = vmatprep.mubr.msk.bf16.mxu0 %vm2758_vm7, %v4914_v36  ;;  %v2120_v59 = vrot.slane %v5613_v43, 5  ;;  %v4916_v30 = vcombine.low %v2111_v39, %v2114_v5  ;;  %v4773_v19 = vrot.slane %v4757_v22, 9  ;;  %v2119_v24 = vrot.slane %v2117_v48, 4 }
 0x165   : > { %v2127_v44 = vrot.slane %v5614_v57, 5  ;;  %v4774_v1 = vrot.slane %v4758_v42, 9  ;;  %v2126_v45 = vrot.slane %v2124_v60, 4  ;;  %v4887_v6 = vcombine.low %v5615_v33, %v5616_v3 }
 0x166   : > { %v2118_v49 = vsel %vm6171_vm6, %v4773_v19, %v2117_v48  ;;  %v2121_v4 = vsel %vm6171_vm6, %v2119_v24, %v2120_v59  ;;  %v2131_v13 = vrot.slane %v5616_v3, 5  ;;  %v2138_v9 = vrot.slane %v5617_v15, 5 }
 0x167   : > { %v2125_v26 = vsel %vm6171_vm6, %v4774_v1, %v2124_v60  ;;  %v2128_v21 = vsel %vm6171_vm6, %v2126_v45, %v2127_v44  ;;  %v2937_v17 = vsel %vm2758_vm7, %v7290_v61, %v2559_v32  ;;  %v4917_v56 = vcombine.low %v2118_v49, %v2121_v4 }
 0x168   : > { %v2134_v47 = vrot.slane %v5618_v8, 5  ;;  %v4918_v35 = vcombine.low %v2125_v26, %v2128_v21  ;;  %v4775_v23 = vrot.slane %v4759_v38, 9  ;;  %v2133_v11 = vrot.slane %v2131_v13, 4 }
 0x169   : > { %3633 = vmatmul.mubr.bf16.gmra.mrb[60].mxu1 %v2933_v51  ;;  %v2141_v2 = vrot.slane %v5619_v52, 5  ;;  %v4776_v29 = vrot.slane %v4760_v62, 9  ;;  %v2140_v31 = vrot.slane %v2138_v9, 4  ;;  %v2145_v0 = vrot.slane %v5620_v34, 5 }
 0x16a   : > { %3640 = vmatprep.mubr.bf16.mxu1 %v3001_v50  ;;  %v2705_v46 = vpop.permute.xlu0 %2704  ;;  %v2132_v40 = vsel %vm6171_vm6, %v4775_v23, %v2131_v13  ;;  %v2135_v36 = vsel %vm6171_vm6, %v2133_v11, %v2134_v47  ;;  %v4888_v54 = vcombine.low %v5621_v7, %v5617_v15  ;;  %v2148_v55 = vrot.slane %v5622_v25, 5 }
 0x16b   : > { %5317 = vmatmul.mubr.msk.bf16.gmra.mrb[64].mxu0 %vm2758_vm7, %v4915_v53  ;;  %v3005_v63 = vsel %vm2758_vm7, %v4887_v6, %v2705_v46  ;;  %v2561_v61 = vpop.permute.xlu1 %2560  ;;  %v2139_v14 = vsel %vm6171_vm6, %v4776_v29, %v2138_v9  ;;  %v2142_v20 = vsel %vm6171_vm6, %v2140_v31, %v2141_v2  ;;  %v4919_v37 = vcombine.low %v2132_v40, %v2135_v36  ;;  %v5623_v53 = vld [vmem:[%s5853_s15 + $0xcc] sm:$0xf]  ;;  %s4974_s15 = sshll.u32 %s5704_s26, 8 }
 0x16c   : > { %5320 = vmatprep.mubr.msk.bf16.mxu0 %vm2758_vm7, %v4916_v30  ;;  %v2941_v18 = vsel %vm2758_vm7, %v7313_v58, %v2561_v61  ;;  %v4920_v12 = vcombine.low %v2139_v14, %v2142_v20  ;;  %v4777_v10 = vrot.slane %v4761_v16, 9  ;;  %v2147_v48 = vrot.slane %v2145_v0, 4  ;;  %s7554_s17 = scalar_lea.vmem [#allocation2], %s4974_s15 }
 0x16d   : > { %v4889_v50 = vcombine.low %v5623_v53, %v5620_v34 }
 0x16e   : > { %v2146_v58 = vsel %vm6171_vm6, %v4777_v10, %v2145_v0  ;;  %v2149_v60 = vsel %vm6171_vm6, %v2147_v48, %v2148_v55 }
 0x16f   : > { %v4921_v42 = vcombine.low %v2146_v58, %v2149_v60 }
 0x171   : > { %3641 = vmatmul.mubr.bf16.gmra.mrb[64].mxu1 %v2937_v17 }
 0x172   : > { %3648 = vmatprep.mubr.bf16.mxu1 %v3005_v63 }
 0x173   : > { %5321 = vmatmul.mubr.msk.bf16.gmra.mrb[68].mxu0 %vm2758_vm7, %v4917_v56 }
 0x174   : > { %5324 = vmatprep.mubr.msk.bf16.mxu0 %vm2758_vm7, %v4918_v35 }
 0x176   : > { %v2707_v39 = vpop.permute.xlu0 %2706 }
 0x177   : > { %v3009_v5 = vsel %vm2758_vm7, %v4888_v54, %v2707_v39  ;;  %v2563_v22 = vpop.permute.xlu1 %2562 }
 0x178   : > { %v2945_v51 = vsel %vm2758_vm7, %v7345_v27, %v2563_v22 }
 0x179   : > { %3649 = vmatmul.mubr.bf16.gmra.mrb[68].mxu1 %v2941_v18 }
 0x17a   : > { %3656 = vmatprep.mubr.bf16.mxu1 %v3009_v5 }
 0x17b   : > { %5325 = vmatmul.mubr.msk.bf16.gmra.mrb[72].mxu0 %vm2758_vm7, %v4919_v37 }
 0x17c   : > { %5328 = vmatprep.mubr.msk.bf16.mxu0 %vm2758_vm7, %v4920_v12 }
 0x181   : > { %3657 = vmatmul.mubr.bf16.gmra.mrb[72].mxu1 %v2945_v51 }
 0x182   : > { %v2709_v43 = vpop.permute.xlu0 %2708 }
 0x183   : > { %5329 = vmatmul.mubr.msk.bf16.gmra.mrb[76].mxu0 %vm2758_vm7, %v4921_v42  ;;  %v2565_v59 = vpop.permute.xlu1 %2564  ;;  %v3013_v30 = vsel %vm2758_vm7, %v4889_v50, %v2709_v43 }
 0x184   : > { %3664 = vmatprep.mubr.bf16.mxu1 %v3013_v30  ;;  %v2949_v19 = vsel %vm2758_vm7, %v7370_v41, %v2565_v59 }
 0x189   : > { %3665 = vmatmul.mubr.bf16.gmra.mrb[76].mxu1 %v2949_v19 }
 0x1ac   : > { %v5064_v28 = vpop.f32.mrb[0].mxu0 }
 0x1ad   : > { %v5065_v24 = vpop.f32.mrb[1].mxu0 }
 0x1ae   : > { %v5066_v57 = vadd.f32 %v5065_v24, %v5064_v28  ;;  %v5067_v44 = vpop.f32.mrb[2].mxu0 }
 0x1af   : > { %v5068_v27 = vpop.f32.mrb[3].mxu0  ;;  %v5136_v45 = vpop.f32.mrb[0].mxu1 }
 0x1b0   : > { %v5069_v1 = vadd.f32 %v5068_v27, %v5067_v44  ;;  %v5137_v32 = vpop.f32.mrb[1].mxu1 }
 0x1b1   : > { %v7448_v33 = vadd.f32 %v5137_v32, %v5136_v45  ;;  %v5139_v3 = vpop.f32.mrb[2].mxu1 }
 0x1b2   : > { %v5140_v6 = vpop.f32.mrb[3].mxu1 }
 0x1b3   : > { %v7450_v49 = vadd.f32 %v5140_v6, %v5139_v3 }
 0x1b6   : > { %v5070_v4 = vpop.f32.mrb[4].mxu0 }
 0x1b7   : > { %v5071_v13 = vpop.f32.mrb[5].mxu0 }
 0x1b8   : > { %v7452_v46 = vadd.f32 %v5071_v13, %v5070_v4  ;;  %v5073_v41 = vpop.f32.mrb[6].mxu0 }
 0x1b9   : > { %v5074_v26 = vpop.f32.mrb[7].mxu0 }
 0x1ba   : > { %v7454_v21 = vadd.f32 %v5074_v26, %v5073_v41 }
 0x1bb   : > { %v5142_v38 = vpop.f32.mrb[4].mxu1 }
 0x1bc   : > { %v5143_v15 = vpop.f32.mrb[5].mxu1 }
 0x1bd   : > { %v7456_v9 = vadd.f32 %v5143_v15, %v5142_v38  ;;  %v5145_v17 = vpop.f32.mrb[6].mxu1 }
 0x1be   : > { %v5146_v62 = vpop.f32.mrb[7].mxu1 }
 0x1bf   : > { %v7458_v56 = vadd.f32 %v5146_v62, %v5145_v17 }
 0x1c1   : > { %v5076_v63 = vpop.f32.mrb[8].mxu0 }
 0x1c2   : > { %v5077_v8 = vpop.f32.mrb[9].mxu0 }
 0x1c3   : > { %v7460_v47 = vadd.f32 %v5077_v8, %v5076_v63  ;;  %v5079_v35 = vpop.f32.mrb[10].mxu0 }
 0x1c4   : > { %v5080_v23 = vpop.f32.mrb[11].mxu0 }
 0x1c5   : > { %v7462_v11 = vadd.f32 %v5080_v23, %v5079_v35 }
 0x1c6   : > { %v5148_v52 = vpop.f32.mrb[8].mxu1 }
 0x1c7   : > { %v5149_v2 = vpop.f32.mrb[9].mxu1 }
 0x1c8   : > { %v7464_v29 = vadd.f32 %v5149_v2, %v5148_v52  ;;  %v5151_v31 = vpop.f32.mrb[10].mxu1 }
 0x1c9   : > { %v5152_v61 = vpop.f32.mrb[11].mxu1 }
 0x1ca   : > { %v7466_v40 = vadd.f32 %v5152_v61, %v5151_v31 }
 0x1cc   : > { %v5082_v36 = vpop.f32.mrb[12].mxu0 }
 0x1cd   : > { %v5083_v34 = vpop.f32.mrb[13].mxu0 }
 0x1ce   : > { %v7468_v0 = vadd.f32 %v5083_v34, %v5082_v36  ;;  %v5085_v14 = vpop.f32.mrb[14].mxu0 }
 0x1cf   : > { %v5086_v20 = vpop.f32.mrb[15].mxu0 }
 0x1d0   : > { %v7470_v16 = vadd.f32 %v5086_v20, %v5085_v14 }
 0x1d2   : > { %v5154_v18 = vpop.f32.mrb[12].mxu1 }
 0x1d3   : > { %v5155_v7 = vpop.f32.mrb[13].mxu1 }
 0x1d4   : > { %v7472_v54 = vadd.f32 %v5155_v7, %v5154_v18  ;;  %v5157_v37 = vpop.f32.mrb[14].mxu1 }
 0x1d5   : > { %v5158_v25 = vpop.f32.mrb[15].mxu1 }
 0x1d6   : > { %v7474_v55 = vadd.f32 %v5158_v25, %v5157_v37 }
 0x1d9   : > { %v5088_v12 = vpop.f32.mrb[16].mxu0 }
 0x1da   : > { %v5089_v10 = vpop.f32.mrb[17].mxu0 }
 0x1db   : > { %v7476_v48 = vadd.f32 %v5089_v10, %v5088_v12  ;;  %v5091_v39 = vpop.f32.mrb[18].mxu0 }
 0x1dc   : > { %v5092_v5 = vpop.f32.mrb[19].mxu0 }
 0x1dd   : > { %v7478_v22 = vadd.f32 %v5092_v5, %v5091_v39  ;;  %v5176_v58 = vpop.f32.mrb[16].mxu1 }
 0x1de   : > { %v5177_v60 = vpop.f32.mrb[17].mxu1 }
 0x1df   : > { %v5178_v51 = vadd.f32 %v5177_v60, %v5176_v58  ;;  %v5179_v42 = vpop.f32.mrb[18].mxu1 }
 0x1e0   : > { %v5180_v53 = vpop.f32.mrb[19].mxu1 }
 0x1e1   : > { %v5181_v50 = vadd.f32 %v5180_v53, %v5179_v42  ;;  %v7480_v43 = vadd.f32 %v5178_v51, %v5066_v57 }
 0x1e3   : > { %v7482_v59 = vadd.f32 %v5181_v50, %v5069_v1 }
 0x1e4   : > { %v5094_v30 = vpop.f32.mrb[20].mxu0 }
 0x1e5   : > { %v5095_v19 = vpop.f32.mrb[21].mxu0 }
 0x1e6   : > { %v7484_v28 = vadd.f32 %v5095_v19, %v5094_v30  ;;  %v5097_v24 = vpop.f32.mrb[22].mxu0 }
 0x1e7   : > { %v5098_v44 = vpop.f32.mrb[23].mxu0 }
 0x1e8   : > { %v7486_v27 = vadd.f32 %v5098_v44, %v5097_v24 }
 0x1eb   : > { %v5182_v45 = vpop.f32.mrb[20].mxu1 }
 0x1ec   : > { %v5183_v32 = vpop.f32.mrb[21].mxu1 }
 0x1ed   : > { %v5184_v3 = vadd.f32 %v5183_v32, %v5182_v45  ;;  %v5185_v6 = vpop.f32.mrb[22].mxu1  ;;  %v5100_v4 = vpop.f32.mrb[24].mxu0 }
 0x1ee   : > { %v5186_v13 = vpop.f32.mrb[23].mxu1  ;;  %v5101_v41 = vpop.f32.mrb[25].mxu0 }
 0x1ef   : > { %v5187_v26 = vadd.f32 %v5186_v13, %v5185_v6  ;;  %v7488_v57 = vadd.f32 %v5101_v41, %v5100_v4  ;;  %v5103_v1 = vpop.f32.mrb[26].mxu0  ;;  %v7491_v38 = vadd.f32 %v5184_v3, %v7452_v46 }
 0x1f0   : > { %v5104_v15 = vpop.f32.mrb[27].mxu0 }
 0x1f1   : > { %v7493_v17 = vadd.f32 %v5104_v15, %v5103_v1  ;;  %v7496_v62 = vadd.f32 %v5187_v26, %v7454_v21 }
 0x1f3   : > { %v5188_v63 = vpop.f32.mrb[24].mxu1 }
 0x1f4   : > { %v5189_v8 = vpop.f32.mrb[25].mxu1 }
 0x1f5   : > { %v5190_v35 = vadd.f32 %v5189_v8, %v5188_v63  ;;  %v5191_v23 = vpop.f32.mrb[26].mxu1  ;;  %v5106_v52 = vpop.f32.mrb[28].mxu0 }
 0x1f6   : > { %v5192_v2 = vpop.f32.mrb[27].mxu1  ;;  %v5107_v31 = vpop.f32.mrb[29].mxu0 }
 0x1f7   : > { %v5193_v61 = vadd.f32 %v5192_v2, %v5191_v23  ;;  %v7498_v36 = vadd.f32 %v5107_v31, %v5106_v52  ;;  %v5109_v34 = vpop.f32.mrb[30].mxu0  ;;  %v7501_v46 = vadd.f32 %v5190_v35, %v7460_v47 }
 0x1f8   : > { %v5110_v14 = vpop.f32.mrb[31].mxu0 }
 0x1f9   : > { %v7503_v20 = vadd.f32 %v5110_v14, %v5109_v34  ;;  %v7506_v21 = vadd.f32 %v5193_v61, %v7462_v11 }
 0x1fb   : > { %v5194_v18 = vpop.f32.mrb[28].mxu1 }
 0x1fc   : > { %v5195_v7 = vpop.f32.mrb[29].mxu1 }
 0x1fd   : > { %v5196_v37 = vadd.f32 %v5195_v7, %v5194_v18  ;;  %v5197_v25 = vpop.f32.mrb[30].mxu1  ;;  %v5112_v12 = vpop.f32.mrb[32].mxu0 }
 0x1fe   : > { %v5198_v10 = vpop.f32.mrb[31].mxu1  ;;  %v5113_v39 = vpop.f32.mrb[33].mxu0 }
 0x1ff   : > { %v5199_v5 = vadd.f32 %v5198_v10, %v5197_v25  ;;  %v7508_v58 = vadd.f32 %v5113_v39, %v5112_v12  ;;  %v5115_v60 = vpop.f32.mrb[34].mxu0  ;;  %v7511_v47 = vadd.f32 %v5196_v37, %v7468_v0 }
 0x200   : > { %v5116_v51 = vpop.f32.mrb[35].mxu0 }
 0x201   : > { %v7513_v42 = vadd.f32 %v5116_v51, %v5115_v60  ;;  %v7516_v11 = vadd.f32 %v5199_v5, %v7470_v16 }
 0x203   : > { %v5200_v53 = vpop.f32.mrb[32].mxu1 }
 0x204   : > { %v5201_v50 = vpop.f32.mrb[33].mxu1 }
 0x205   : > { %v5202_v30 = vadd.f32 %v5201_v50, %v5200_v53  ;;  %v5203_v19 = vpop.f32.mrb[34].mxu1  ;;  %v5118_v24 = vpop.f32.mrb[36].mxu0 }
 0x206   : > { %v5204_v44 = vpop.f32.mrb[35].mxu1  ;;  %v5119_v45 = vpop.f32.mrb[37].mxu0 }
 0x207   : > { %v5205_v32 = vadd.f32 %v5204_v44, %v5203_v19  ;;  %v7518_v3 = vadd.f32 %v5119_v45, %v5118_v24  ;;  %v5121_v6 = vpop.f32.mrb[38].mxu0  ;;  %v7521_v0 = vadd.f32 %v5202_v30, %v7476_v48 }
 0x208   : > { %v5122_v4 = vpop.f32.mrb[39].mxu0 }
 0x209   : > { %v7523_v13 = vadd.f32 %v5122_v4, %v5121_v6  ;;  %v7526_v16 = vadd.f32 %v5205_v32, %v7478_v22 }
 0x20b   : > { %v5206_v41 = vpop.f32.mrb[36].mxu1 }
 0x20c   : > { %v5207_v26 = vpop.f32.mrb[37].mxu1 }
 0x20d   : > { %v5208_v1 = vadd.f32 %v5207_v26, %v5206_v41  ;;  %v5209_v15 = vpop.f32.mrb[38].mxu1  ;;  %v5124_v63 = vpop.f32.mrb[40].mxu0 }
 0x20e   : > { %v5210_v8 = vpop.f32.mrb[39].mxu1  ;;  %v5125_v35 = vpop.f32.mrb[41].mxu0 }
 0x20f   : > { %v5211_v23 = vadd.f32 %v5210_v8, %v5209_v15  ;;  %v7528_v52 = vadd.f32 %v5125_v35, %v5124_v63  ;;  %v5127_v2 = vpop.f32.mrb[42].mxu0  ;;  %v7531_v48 = vadd.f32 %v5208_v1, %v7484_v28 }
 0x210   : > { %v5128_v31 = vpop.f32.mrb[43].mxu0 }
 0x211   : > { %v7533_v61 = vadd.f32 %v5128_v31, %v5127_v2  ;;  %v7536_v22 = vadd.f32 %v5211_v23, %v7486_v27 }
 0x213   : > { %v5212_v34 = vpop.f32.mrb[40].mxu1 }
 0x214   : > { %v5213_v14 = vpop.f32.mrb[41].mxu1 }
 0x215   : > { %v5214_v18 = vadd.f32 %v5213_v14, %v5212_v34  ;;  %v5215_v7 = vpop.f32.mrb[42].mxu1  ;;  %v5130_v37 = vpop.f32.mrb[44].mxu0 }
 0x216   : > { %v5216_v25 = vpop.f32.mrb[43].mxu1  ;;  %v5131_v12 = vpop.f32.mrb[45].mxu0 }
 0x217   : > { %v5217_v10 = vadd.f32 %v5216_v25, %v5215_v7  ;;  %v7538_v39 = vadd.f32 %v5131_v12, %v5130_v37  ;;  %v5133_v5 = vpop.f32.mrb[46].mxu0  ;;  %v7541_v28 = vadd.f32 %v5214_v18, %v7488_v57 }
 0x218   : > { %v5134_v60 = vpop.f32.mrb[47].mxu0 }
 0x219   : > { %v7543_v51 = vadd.f32 %v5134_v60, %v5133_v5  ;;  %v7546_v27 = vadd.f32 %v5217_v10, %v7493_v17 }
 0x21b   : > { %v5218_v53 = vpop.f32.mrb[44].mxu1 }
 0x21c   : > { %v5219_v50 = vpop.f32.mrb[45].mxu1 }
 0x21d   : > { %v5220_v30 = vadd.f32 %v5219_v50, %v5218_v53  ;;  %v5221_v19 = vpop.f32.mrb[46].mxu1  ;;  %v5302_v24 = vpop.f32.mrb[48].mxu0 }
 0x21e   : > { %v5222_v44 = vpop.f32.mrb[47].mxu1  ;;  %v3716_v45 = vadd.f32 %v5302_v24, %v7491_v38  ;;  %v3707_v32 = vpop.f32.mrb[49].mxu0 }
 0x21f   : > { %v5223_v6 = vadd.f32 %v5222_v44, %v5221_v19  ;;  %v3708_v57 = vadd.f32 %v3707_v32, %v7480_v43  ;;  %v5303_v4 = vpop.f32.mrb[50].mxu0  ;;  %v7552_v41 = vadd.f32 %v5220_v30, %v7498_v36 }
 0x220   : > { %3838 = vst.msk [vmem:[%s7554_s17 + $0x10] sm:$0xff] %vm2758_vm7, %v3716_v45  ;;  %v3719_v17 = vadd.f32 %v5303_v4, %v7496_v62  ;;  %v3710_v26 = vpop.f32.mrb[51].mxu0  ;;  %v3944_v36 = vmul.f32 %v3716_v45, %v3716_v45  ;;  %v3872_v31 = vsel %vm2758_vm7, %v3716_v45, 0.0 }
 0x221   : > { %3836 = vst.msk [vmem:[%s7554_s17] sm:$0xff] %vm2758_vm7, %v3708_v57  ;;  %v3942_v38 = vmul.f32 %v3708_v57, %v3708_v57  ;;  %v3711_v43 = vadd.f32 %v3710_v26, %v7482_v59  ;;  %v7563_v1 = vadd.f32 %v5223_v6, %v7503_v20  ;;  %v3869_v15 = vsel %vm2758_vm7, %v3708_v57, 0.0 }
 0x222   : > { %3839 = vst.msk [vmem:[%s7554_s17 + $0x18] sm:$0xff] %vm2758_vm7, %v3719_v17  ;;  %v3945_v35 = vmul.f32 %v3719_v17, %v3719_v17  ;;  %v3977_v7 = vsel %vm2758_vm7, %v3944_v36, 0.0  ;;  %v3874_v60 = vsel %vm2758_vm7, %v3719_v17, 0.0 }
 0x223   : > { %3837 = vst.msk [vmem:[%s7554_s17 + $0x8] sm:$0xff] %vm2758_vm7, %v3711_v43  ;;  %v3870_v63 = vsel %vm2758_vm7, %v3711_v43, 0.0  ;;  %v3943_v8 = vmul.f32 %v3711_v43, %v3711_v43  ;;  %v3974_v59 = vsel %vm2758_vm7, %v3942_v38, 0.0 }
 0x224   : > { %v5224_v62 = vpop.f32.mrb[48].mxu1  ;;  %v3871_v23 = vadd.f32 %v3870_v63, %v3869_v15  ;;  %v3979_v24 = vsel %vm2758_vm7, %v3945_v35, 0.0 }
 0x225   : > { %v5225_v2 = vpop.f32.mrb[49].mxu1  ;;  %v3975_v20 = vsel %vm2758_vm7, %v3943_v8, 0.0 }
 0x226   : > { %v5226_v34 = vadd.f32 %v5225_v2, %v5224_v62  ;;  %v5227_v14 = vpop.f32.mrb[50].mxu1  ;;  %v5306_v18 = vpop.f32.mrb[52].mxu0  ;;  %v3873_v37 = vadd.f32 %v3872_v31, %v3871_v23  ;;  %v3976_v25 = vadd.f32 %v3975_v20, %v3974_v59 }
 0x227   : > { %v5228_v12 = vpop.f32.mrb[51].mxu1  ;;  %v3732_v10 = vadd.f32 %v5306_v18, %v7511_v47  ;;  %v3723_v5 = vpop.f32.mrb[53].mxu0 }
 0x228   : > { %v5229_v53 = vadd.f32 %v5228_v12, %v5227_v14  ;;  %v3724_v50 = vadd.f32 %v3723_v5, %v7501_v46  ;;  %v5307_v30 = vpop.f32.mrb[54].mxu0  ;;  %v7579_v19 = vadd.f32 %v5226_v34, %v7508_v58  ;;  %v3978_v44 = vadd.f32 %v3977_v7, %v3976_v25 }
 0x229   : > { %3842 = vst.msk [vmem:[%s7554_s17 + $0x30] sm:$0xff] %vm2758_vm7, %v3732_v10  ;;  %v3875_v45 = vadd.f32 %v3874_v60, %v3873_v37  ;;  %v3726_v32 = vpop.f32.mrb[55].mxu0  ;;  %v3735_v46 = vadd.f32 %v5307_v30, %v7516_v11  ;;  %v3948_v36 = vmul.f32 %v3732_v10, %v3732_v10 }
 0x22a   : > { %3840 = vst.msk [vmem:[%s7554_s17 + $0x20] sm:$0xff] %vm2758_vm7, %v3724_v50  ;;  %v3876_v47 = vsel %vm2758_vm7, %v3724_v50, 0.0  ;;  %v3946_v6 = vmul.f32 %v3724_v50, %v3724_v50  ;;  %v3727_v57 = vadd.f32 %v3726_v32, %v7506_v21  ;;  %v3980_v58 = vadd.f32 %v3979_v24, %v3978_v44 }
 0x22b   : > { %v3877_v4 = vadd.f32 %v3876_v47, %v3875_v45  ;;  %v7590_v17 = vadd.f32 %v5229_v53, %v7513_v42  ;;  %3843 = vst.msk [vmem:[%s7554_s17 + $0x38] sm:$0xff] %vm2758_vm7, %v3735_v46  ;;  %v3880_v21 = vsel %vm2758_vm7, %v3732_v10, 0.0  ;;  %v3882_v62 = vsel %vm2758_vm7, %v3735_v46, 0.0 }
 0x22c   : > { %v3981_v26 = vsel %vm2758_vm7, %v3946_v6, 0.0  ;;  %3841 = vst.msk [vmem:[%s7554_s17 + $0x28] sm:$0xff] %vm2758_vm7, %v3727_v57  ;;  %v3878_v38 = vsel %vm2758_vm7, %v3727_v57, 0.0  ;;  %v5230_v43 = vpop.f32.mrb[52].mxu1  ;;  %v3947_v11 = vmul.f32 %v3727_v57, %v3727_v57  ;;  %v3949_v2 = vmul.f32 %v3735_v46, %v3735_v46 }
 0x22d   : > { %v3982_v15 = vadd.f32 %v3981_v26, %v3980_v58  ;;  %v3879_v63 = vadd.f32 %v3878_v38, %v3877_v4  ;;  %v5231_v8 = vpop.f32.mrb[53].mxu1  ;;  %v3985_v10 = vsel %vm2758_vm7, %v3948_v36, 0.0 }
 0x22e   : > { %v5232_v42 = vadd.f32 %v5231_v8, %v5230_v43  ;;  %v5233_v35 = vpop.f32.mrb[54].mxu1  ;;  %v5310_v23 = vpop.f32.mrb[56].mxu0  ;;  %v3983_v59 = vsel %vm2758_vm7, %v3947_v11, 0.0 }
 0x22f   : > { %v3881_v31 = vadd.f32 %v3880_v21, %v3879_v63  ;;  %v5234_v20 = vpop.f32.mrb[55].mxu1  ;;  %v3748_v34 = vadd.f32 %v5310_v23, %v7531_v48  ;;  %v3739_v14 = vpop.f32.mrb[57].mxu0  ;;  %v3984_v18 = vadd.f32 %v3983_v59, %v3982_v15 }
 0x230   : > { %v5235_v7 = vadd.f32 %v5234_v20, %v5233_v35  ;;  %v3740_v37 = vadd.f32 %v3739_v14, %v7521_v0  ;;  %v5311_v25 = vpop.f32.mrb[58].mxu0  ;;  %v7604_v12 = vadd.f32 %v5232_v42, %v7518_v3  ;;  %v3987_v3 = vsel %vm2758_vm7, %v3949_v2, 0.0 }
 0x231   : > { %3846 = vst.msk [vmem:[%s7554_s17 + $0x50] sm:$0xff] %vm2758_vm7, %v3748_v34  ;;  %v3883_v5 = vadd.f32 %v3882_v62, %v3881_v31  ;;  %v3751_v60 = vadd.f32 %v5311_v25, %v7536_v22  ;;  %v3742_v53 = vpop.f32.mrb[59].mxu0  ;;  %v3986_v48 = vadd.f32 %v3985_v10, %v3984_v18  ;;  %v3952_v6 = vmul.f32 %v3748_v34, %v3748_v34 }
 0x232   : > { %3844 = vst.msk [vmem:[%s7554_s17 + $0x40] sm:$0xff] %vm2758_vm7, %v3740_v37  ;;  %v3884_v50 = vsel %vm2758_vm7, %v3740_v37, 0.0  ;;  %v3950_v30 = vmul.f32 %v3740_v37, %v3740_v37  ;;  %v3743_v0 = vadd.f32 %v3742_v53, %v7526_v16  ;;  %v3622_v4 = vadd.f32 %v5235_v7, %v7523_v13 }
 0x233   : > { %v3885_v24 = vadd.f32 %v3884_v50, %v3883_v5  ;;  %3847 = vst.msk [vmem:[%s7554_s17 + $0x58] sm:$0xff] %vm2758_vm7, %v3751_v60  ;;  %v3988_v44 = vadd.f32 %v3987_v3, %v3986_v48  ;;  %v3888_v16 = vsel %vm2758_vm7, %v3748_v34, 0.0  ;;  %v3890_v15 = vsel %vm2758_vm7, %v3751_v60, 0.0 }
 0x234   : > { %v3989_v45 = vsel %vm2758_vm7, %v3950_v30, 0.0  ;;  %3845 = vst.msk [vmem:[%s7554_s17 + $0x48] sm:$0xff] %vm2758_vm7, %v3743_v0  ;;  %v3886_v22 = vsel %vm2758_vm7, %v3743_v0, 0.0  ;;  %v3951_v32 = vmul.f32 %v3743_v0, %v3743_v0  ;;  %v5236_v47 = vpop.f32.mrb[56].mxu1  ;;  %v3953_v63 = vmul.f32 %v3751_v60, %v3751_v60 }
 0x235   : > { %v3887_v46 = vadd.f32 %v3886_v22, %v3885_v24  ;;  %v5237_v57 = vpop.f32.mrb[57].mxu1  ;;  %v3990_v58 = vadd.f32 %v3989_v45, %v3988_v44  ;;  %v3993_v31 = vsel %vm2758_vm7, %v3952_v6, 0.0 }
 0x236   : > { %v3991_v26 = vsel %vm2758_vm7, %v3951_v32, 0.0  ;;  %v5238_v38 = vadd.f32 %v5237_v57, %v5236_v47  ;;  %v5239_v43 = vpop.f32.mrb[58].mxu1  ;;  %v5314_v36 = vpop.f32.mrb[60].mxu0 }
 0x237   : > { %v3889_v11 = vadd.f32 %v3888_v16, %v3887_v46  ;;  %v5240_v8 = vpop.f32.mrb[59].mxu1  ;;  %v3764_v21 = vadd.f32 %v5314_v36, %v7552_v41  ;;  %v3755_v62 = vpop.f32.mrb[61].mxu0  ;;  %v3992_v42 = vadd.f32 %v3991_v26, %v3990_v58 }
 0x238   : > { %v5241_v13 = vadd.f32 %v5240_v8, %v5239_v43  ;;  %v3756_v35 = vadd.f32 %v3755_v62, %v7541_v28  ;;  %v5315_v23 = vpop.f32.mrb[62].mxu0  ;;  %v7628_v2 = vadd.f32 %v5238_v38, %v7528_v52  ;;  %v3995_v52 = vsel %vm2758_vm7, %v3953_v63, 0.0 }
 0x239   : > { %3850 = vst.msk [vmem:[%s7554_s17 + $0x70] sm:$0xff] %vm2758_vm7, %v3764_v21  ;;  %v3891_v59 = vadd.f32 %v3890_v15, %v3889_v11  ;;  %v3767_v20 = vadd.f32 %v5315_v23, %v7563_v1  ;;  %v3758_v34 = vpop.f32.mrb[63].mxu0  ;;  %v3994_v41 = vadd.f32 %v3993_v31, %v3992_v42  ;;  %v3956_v60 = vmul.f32 %v3764_v21, %v3764_v21 }
 0x23a   : > { %3848 = vst.msk [vmem:[%s7554_s17 + $0x60] sm:$0xff] %vm2758_vm7, %v3756_v35  ;;  %v3892_v14 = vsel %vm2758_vm7, %v3756_v35, 0.0  ;;  %v3954_v18 = vmul.f32 %v3756_v35, %v3756_v35  ;;  %v3759_v28 = vadd.f32 %v3758_v34, %v7546_v27  ;;  %v7646_v50 = vadd.f32 %v5241_v13, %v7533_v61 }
 0x23b   : > { %v3893_v7 = vadd.f32 %v3892_v14, %v3891_v59  ;;  %3851 = vst.msk [vmem:[%s7554_s17 + $0x78] sm:$0xff] %vm2758_vm7, %v3767_v20  ;;  %v3996_v37 = vadd.f32 %v3995_v52, %v3994_v41  ;;  %v3896_v27 = vsel %vm2758_vm7, %v3764_v21, 0.0  ;;  %v3898_v45 = vsel %vm2758_vm7, %v3767_v20, 0.0 }
 0x23c   : > { %v3997_v25 = vsel %vm2758_vm7, %v3954_v18, 0.0  ;;  %3849 = vst.msk [vmem:[%s7554_s17 + $0x68] sm:$0xff] %vm2758_vm7, %v3759_v28  ;;  %v3894_v1 = vsel %vm2758_vm7, %v3759_v28, 0.0  ;;  %v3955_v10 = vmul.f32 %v3759_v28, %v3759_v28  ;;  %v5242_v5 = vpop.f32.mrb[60].mxu1  ;;  %v3957_v22 = vmul.f32 %v3767_v20, %v3767_v20 }
 0x23d   : > { %v3895_v53 = vadd.f32 %v3894_v1, %v3893_v7  ;;  %v5243_v48 = vpop.f32.mrb[61].mxu1  ;;  %v3998_v30 = vadd.f32 %v3997_v25, %v3996_v37  ;;  %v4001_v38 = vsel %vm2758_vm7, %v3956_v60, 0.0 }
 0x23e   : > { %v3999_v0 = vsel %vm2758_vm7, %v3955_v10, 0.0  ;;  %v5244_v3 = vadd.f32 %v5243_v48, %v5242_v5  ;;  %v5245_v24 = vpop.f32.mrb[62].mxu1  ;;  %v5318_v44 = vpop.f32.mrb[64].mxu0 }
 0x23f   : > { %v3897_v32 = vadd.f32 %v3896_v27, %v3895_v53  ;;  %v5246_v47 = vpop.f32.mrb[63].mxu1  ;;  %v3780_v6 = vadd.f32 %v5318_v44, %v7604_v12  ;;  %v3771_v46 = vpop.f32.mrb[65].mxu0  ;;  %v4000_v61 = vadd.f32 %v3999_v0, %v3998_v30 }
 0x240   : > { %v5247_v57 = vadd.f32 %v5246_v47, %v5245_v24  ;;  %v3772_v16 = vadd.f32 %v3771_v46, %v7579_v19  ;;  %v5319_v58 = vpop.f32.mrb[66].mxu0  ;;  %v3635_v26 = vadd.f32 %v5244_v3, %v7538_v39  ;;  %v4003_v19 = vsel %vm2758_vm7, %v3957_v22, 0.0 }
 0x241   : > { %3854 = vst.msk [vmem:[%s7554_s17 + $0x90] sm:$0xff] %vm2758_vm7, %v3780_v6  ;;  %v3899_v43 = vadd.f32 %v3898_v45, %v3897_v32  ;;  %v3783_v36 = vadd.f32 %v5319_v58, %v3622_v4  ;;  %v3774_v15 = vpop.f32.mrb[67].mxu0  ;;  %v4002_v63 = vadd.f32 %v4001_v38, %v4000_v61  ;;  %v3960_v35 = vmul.f32 %v3780_v6, %v3780_v6 }
 0x242   : > { %3852 = vst.msk [vmem:[%s7554_s17 + $0x80] sm:$0xff] %vm2758_vm7, %v3772_v16  ;;  %v3900_v12 = vsel %vm2758_vm7, %v3772_v16, 0.0  ;;  %v3958_v11 = vmul.f32 %v3772_v16, %v3772_v16  ;;  %v3775_v8 = vadd.f32 %v3774_v15, %v7590_v17  ;;  %v3638_v59 = vadd.f32 %v5247_v57, %v7543_v51 }
 0x243   : > { %v3901_v21 = vadd.f32 %v3900_v12, %v3899_v43  ;;  %3855 = vst.msk [vmem:[%s7554_s17 + $0x98] sm:$0xff] %vm2758_vm7, %v3783_v36  ;;  %v4004_v39 = vadd.f32 %v4003_v19, %v4002_v63  ;;  %v3904_v17 = vsel %vm2758_vm7, %v3780_v6, 0.0  ;;  %v3906_v28 = vsel %vm2758_vm7, %v3783_v36, 0.0 }
 0x244   : > { %v4005_v62 = vsel %vm2758_vm7, %v3958_v11, 0.0  ;;  %3853 = vst.msk [vmem:[%s7554_s17 + $0x88] sm:$0xff] %vm2758_vm7, %v3775_v8  ;;  %v3902_v4 = vsel %vm2758_vm7, %v3775_v8, 0.0  ;;  %v3959_v42 = vmul.f32 %v3775_v8, %v3775_v8  ;;  %v5248_v13 = vpop.f32.mrb[64].mxu1  ;;  %v3961_v52 = vmul.f32 %v3783_v36, %v3783_v36 }
 0x245   : > { %v3903_v23 = vadd.f32 %v3902_v4, %v3901_v21  ;;  %v5249_v31 = vpop.f32.mrb[65].mxu1  ;;  %v4006_v20 = vadd.f32 %v4005_v62, %v4004_v39  ;;  %v4009_v48 = vsel %vm2758_vm7, %v3960_v35, 0.0 }
 0x246   : > { %v4007_v34 = vsel %vm2758_vm7, %v3959_v42, 0.0  ;;  %v5250_v41 = vadd.f32 %v5249_v31, %v5248_v13  ;;  %v5251_v14 = vpop.f32.mrb[66].mxu1  ;;  %v5322_v18 = vpop.f32.mrb[68].mxu0 }
 0x247   : > { %v3905_v7 = vadd.f32 %v3904_v17, %v3903_v23  ;;  %v5252_v37 = vpop.f32.mrb[67].mxu1  ;;  %v3796_v25 = vadd.f32 %v5322_v18, %v3635_v26  ;;  %v3787_v1 = vpop.f32.mrb[69].mxu0  ;;  %v4008_v10 = vadd.f32 %v4007_v34, %v4006_v20 }
 0x248   : > { %v5253_v5 = vadd.f32 %v5252_v37, %v5251_v14  ;;  %v3788_v51 = vadd.f32 %v3787_v1, %v7628_v2  ;;  %v5323_v60 = vpop.f32.mrb[70].mxu0  ;;  %v3643_v53 = vadd.f32 %v5250_v41, %v7448_v33  ;;  %v4011_v2 = vsel %vm2758_vm7, %v3961_v52, 0.0 }
 0x249   : > { %3858 = vst.msk [vmem:[%s7554_s17 + $0xb0] sm:$0xff] %vm2758_vm7, %v3796_v25  ;;  %v3907_v27 = vadd.f32 %v3906_v28, %v3905_v7  ;;  %v3799_v30 = vadd.f32 %v5323_v60, %v3638_v59  ;;  %v3790_v0 = vpop.f32.mrb[71].mxu0  ;;  %v4010_v3 = vadd.f32 %v4009_v48, %v4008_v10  ;;  %v3964_v61 = vmul.f32 %v3796_v25, %v3796_v25 }
 0x24a   : > { %3856 = vst.msk [vmem:[%s7554_s17 + $0xa0] sm:$0xff] %vm2758_vm7, %v3788_v51  ;;  %v3908_v24 = vsel %vm2758_vm7, %v3788_v51, 0.0  ;;  %v3962_v44 = vmul.f32 %v3788_v51, %v3788_v51  ;;  %v3791_v45 = vadd.f32 %v3790_v0, %v7646_v50  ;;  %v3646_v58 = vadd.f32 %v5253_v5, %v7450_v49 }
 0x24b   : > { %v3909_v22 = vadd.f32 %v3908_v24, %v3907_v27  ;;  %3859 = vst.msk [vmem:[%s7554_s17 + $0xb8] sm:$0xff] %vm2758_vm7, %v3799_v30  ;;  %v4012_v33 = vadd.f32 %v4011_v2, %v4010_v3  ;;  %v3912_v50 = vsel %vm2758_vm7, %v3796_v25, 0.0  ;;  %v3914_v63 = vsel %vm2758_vm7, %v3799_v30, 0.0 }
 0x24c   : > { %v4013_v32 = vsel %vm2758_vm7, %v3962_v44, 0.0  ;;  %3857 = vst.msk [vmem:[%s7554_s17 + $0xa8] sm:$0xff] %vm2758_vm7, %v3791_v45  ;;  %v3910_v47 = vsel %vm2758_vm7, %v3791_v45, 0.0  ;;  %v3963_v6 = vmul.f32 %v3791_v45, %v3791_v45  ;;  %v5254_v46 = vpop.f32.mrb[68].mxu1  ;;  %v3965_v12 = vmul.f32 %v3799_v30, %v3799_v30 }
 0x24d   : > { %v3911_v57 = vadd.f32 %v3910_v47, %v3909_v22  ;;  %v5255_v16 = vpop.f32.mrb[69].mxu1  ;;  %v4014_v26 = vadd.f32 %v4013_v32, %v4012_v33  ;;  %v4017_v42 = vsel %vm2758_vm7, %v3964_v61, 0.0 }
 0x24e   : > { %v4015_v38 = vsel %vm2758_vm7, %v3963_v6, 0.0  ;;  %v5256_v43 = vadd.f32 %v5255_v16, %v5254_v46  ;;  %v5257_v36 = vpop.f32.mrb[70].mxu1  ;;  %v5326_v15 = vpop.f32.mrb[72].mxu0  ;;  %v4019_v20 = vsel %vm2758_vm7, %v3965_v12, 0.0 }
 0x24f   : > { %v3913_v11 = vadd.f32 %v3912_v50, %v3911_v57  ;;  %v5258_v8 = vpop.f32.mrb[71].mxu1  ;;  %v3803_v19 = vpop.f32.mrb[73].mxu0  ;;  %v4016_v21 = vadd.f32 %v4015_v38, %v4014_v26 }
 0x250   : > { %v5259_v39 = vadd.f32 %v5258_v8, %v5257_v36  ;;  %v3651_v49 = vadd.f32 %v5256_v43, %v7456_v9  ;;  %v3804_v62 = vadd.f32 %v3803_v19, %v3643_v53  ;;  %v5327_v4 = vpop.f32.mrb[74].mxu0 }
 0x251   : > { %v3915_v13 = vadd.f32 %v3914_v63, %v3913_v11  ;;  %v3806_v35 = vpop.f32.mrb[75].mxu0  ;;  %v4018_v23 = vadd.f32 %v4017_v42, %v4016_v21 }
 0x252   : > { %v3812_v31 = vadd.f32 %v5326_v15, %v3651_v49  ;;  %3860 = vst.msk [vmem:[%s7554_s17 + $0xc0] sm:$0xff] %vm2758_vm7, %v3804_v62  ;;  %v3916_v59 = vsel %vm2758_vm7, %v3804_v62, 0.0  ;;  %v3966_v17 = vmul.f32 %v3804_v62, %v3804_v62  ;;  %v3654_v41 = vadd.f32 %v5259_v39, %v7458_v56 }
 0x253   : > { %v3917_v34 = vadd.f32 %v3916_v59, %v3915_v13  ;;  %v3807_v9 = vadd.f32 %v3806_v35, %v3646_v58  ;;  %v4020_v14 = vadd.f32 %v4019_v20, %v4018_v23 }
 0x254   : > { %3862 = vst.msk [vmem:[%s7554_s17 + $0xd0] sm:$0xff] %vm2758_vm7, %v3812_v31  ;;  %v4021_v18 = vsel %vm2758_vm7, %v3966_v17, 0.0  ;;  %v5260_v28 = vpop.f32.mrb[72].mxu1  ;;  %v3968_v52 = vmul.f32 %v3812_v31, %v3812_v31  ;;  %v3815_v7 = vadd.f32 %v5327_v4, %v3654_v41  ;;  %v3920_v53 = vsel %vm2758_vm7, %v3812_v31, 0.0 }
 0x255   : > { %3861 = vst.msk [vmem:[%s7554_s17 + $0xc8] sm:$0xff] %vm2758_vm7, %v3807_v9  ;;  %v3918_v37 = vsel %vm2758_vm7, %v3807_v9, 0.0  ;;  %v3967_v25 = vmul.f32 %v3807_v9, %v3807_v9  ;;  %v5261_v1 = vpop.f32.mrb[73].mxu1  ;;  %v4022_v10 = vadd.f32 %v4021_v18, %v4020_v14 }
 0x256   : > { %v3919_v5 = vadd.f32 %v3918_v37, %v3917_v34  ;;  %v5262_v51 = vadd.f32 %v5261_v1, %v5260_v28  ;;  %v5263_v56 = vpop.f32.mrb[74].mxu1  ;;  %v5330_v60 = vpop.f32.mrb[76].mxu0  ;;  %3863 = vst.msk [vmem:[%s7554_s17 + $0xd8] sm:$0xff] %vm2758_vm7, %v3815_v7  ;;  %v3969_v48 = vmul.f32 %v3815_v7, %v3815_v7  ;;  %v4025_v22 = vsel %vm2758_vm7, %v3968_v52, 0.0 }
 0x257   : > { %v4023_v27 = vsel %vm2758_vm7, %v3967_v25, 0.0  ;;  %v5264_v30 = vpop.f32.mrb[75].mxu1  ;;  %v3819_v0 = vpop.f32.mrb[77].mxu0  ;;  %v3922_v33 = vsel %vm2758_vm7, %v3815_v7, 0.0 }
 0x258   : > { %v3921_v3 = vadd.f32 %v3920_v53, %v3919_v5  ;;  %v4024_v24 = vadd.f32 %v4023_v27, %v4022_v10  ;;  %v5265_v44 = vadd.f32 %v5264_v30, %v5263_v56  ;;  %v3659_v45 = vadd.f32 %v5262_v51, %v7464_v29  ;;  %v5331_v2 = vpop.f32.mrb[78].mxu0  ;;  %v3868_v10 = vld [vmem:[#allocation3] sm:$0x1]  ;;  %v3941_v56 = vld [vmem:[#allocation4] sm:$0x1] }
 0x259   : > { %v3822_v32 = vpop.f32.mrb[79].mxu0  ;;  %v4027_v57 = vsel %vm2758_vm7, %v3969_v48, 0.0 }
 0x25a   : > { %v4026_v47 = vadd.f32 %v4025_v22, %v4024_v24  ;;  %v3820_v6 = vadd.f32 %v3819_v0, %v3659_v45  ;;  %v3923_v46 = vadd.f32 %v3922_v33, %v3921_v3  ;;  %v3662_v61 = vadd.f32 %v5265_v44, %v7466_v40 }
 0x25c   : > { %3864 = vst.msk [vmem:[%s7554_s17 + $0xe0] sm:$0xff] %vm2758_vm7, %v3820_v6  ;;  %v3924_v16 = vsel %vm2758_vm7, %v3820_v6, 0.0  ;;  %v3970_v58 = vmul.f32 %v3820_v6, %v3820_v6  ;;  %v4028_v29 = vadd.f32 %v4027_v57, %v4026_v47  ;;  %v3823_v50 = vadd.f32 %v3822_v32, %v3662_v61  ;;  %v5266_v26 = vpop.f32.mrb[76].mxu1 }
 0x25d   : > { %v3925_v38 = vadd.f32 %v3924_v16, %v3923_v46  ;;  %v5267_v43 = vpop.f32.mrb[77].mxu1 }
 0x25e   : > { %v4029_v36 = vsel %vm2758_vm7, %v3970_v58, 0.0  ;;  %3865 = vst.msk [vmem:[%s7554_s17 + $0xe8] sm:$0xff] %vm2758_vm7, %v3823_v50  ;;  %v3926_v15 = vsel %vm2758_vm7, %v3823_v50, 0.0  ;;  %v3971_v40 = vmul.f32 %v3823_v50, %v3823_v50  ;;  %v5268_v63 = vadd.f32 %v5267_v43, %v5266_v26  ;;  %v5269_v12 = vpop.f32.mrb[78].mxu1 }
 0x25f   : > { %v4030_v11 = vadd.f32 %v4029_v36, %v4028_v29  ;;  %v3927_v8 = vadd.f32 %v3926_v15, %v3925_v38  ;;  %v5270_v19 = vpop.f32.mrb[79].mxu1 }
 0x260   : > { %v4031_v21 = vsel %vm2758_vm7, %v3971_v40, 0.0  ;;  %v3667_v39 = vadd.f32 %v5268_v63, %v7472_v54  ;;  %v5271_v49 = vadd.f32 %v5270_v19, %v5269_v12 }
 0x261   : > { %v4032_v62 = vadd.f32 %v4031_v21, %v4030_v11 }
 0x262   : > { %v3828_v4 = vadd.f32 %v5330_v60, %v3667_v39  ;;  %v3670_v42 = vadd.f32 %v5271_v49, %v7474_v55 }
 0x264   : > { %3866 = vst.msk [vmem:[%s7554_s17 + $0xf0] sm:$0xff] %vm2758_vm7, %v3828_v4  ;;  %v3928_v13 = vsel %vm2758_vm7, %v3828_v4, 0.0  ;;  %v3972_v35 = vmul.f32 %v3828_v4, %v3828_v4  ;;  %v3831_v23 = vadd.f32 %v5331_v2, %v3670_v42 }
 0x265   : > { %v3929_v31 = vadd.f32 %v3928_v13, %v3927_v8 }
 0x266   : > { %v4033_v59 = vsel %vm2758_vm7, %v3972_v35, 0.0  ;;  %3867 = vst.msk [vmem:[%s7554_s17 + $0xf8] sm:$0xff] %vm2758_vm7, %v3831_v23  ;;  %v3930_v17 = vsel %vm2758_vm7, %v3831_v23, 0.0  ;;  %v3973_v20 = vmul.f32 %v3831_v23, %v3831_v23 }
 0x267   : > { %v4034_v54 = vadd.f32 %v4033_v59, %v4032_v62  ;;  %v3931_v34 = vadd.f32 %v3930_v17, %v3929_v31 }
 0x268   : > { %v4035_v41 = vsel %vm2758_vm7, %v3973_v20, 0.0 }
 0x269   : > { %v3932_v9 = vrot.slane %v3931_v34, 4  ;;  %v4036_v55 = vadd.f32 %v4035_v41, %v4034_v54 }
 0x26b   : > { %v3933_v14 = vadd.f32 %v3932_v9, %v3931_v34  ;;  %v4037_v18 = vrot.slane %v4036_v55, 4 }
 0x26d   : > { %v3934_v28 = vrot.slane %v3933_v14, 2  ;;  %v4038_v52 = vadd.f32 %v4037_v18, %v4036_v55 }
 0x26f   : > { %v3935_v7 = vadd.f32 %v3934_v28, %v3933_v14  ;;  %v4039_v37 = vrot.slane %v4038_v52, 2 }
 0x271   : > { %v3936_v25 = vrot.slane %v3935_v7, 1  ;;  %v4040_v1 = vadd.f32 %v4039_v37, %v4038_v52 }
 0x273   : > { %v3937_v5 = vadd.f32 %v3936_v25, %v3935_v7  ;;  %v4041_v51 = vrot.slane %v4040_v1, 1 }
 0x275   : > { %v3938_v60 = vadd.f32 %v3937_v5, %v3868_v10  ;;  %v4042_v53 = vadd.f32 %v4041_v51, %v4040_v1 }
 0x277   : > { %3940 = vst.msk [vmem:[#allocation3] sm:$0x1] %vm3939_vm8, %v3938_v60  ;;  %v4043_v48 = vadd.f32 %v4042_v53, %v3941_v56 }
 0x279   : > { %4044 = vst.msk [vmem:[#allocation4] sm:$0x1] %vm3939_vm8, %v4043_v48 }
 0x27a PF: > { %p4975_p4 = scmp.ne.s32.totalorder %s5708_s27, 1 }
 0x27b   : > { %v4097_v2 = vlaneseq (!%p4975_p4)  ;;  %s4976_s4 = sshll.u32 (!%p4975_p4), %s5704_s26, 8  ;;  %s4172_s7 = sld [smem:[#allocation5]] (!%p4975_p4)  ;;  %v4089_v33 = vld [vmem:[%s8223_s2] sm:$0x1] (!%p4975_p4)  ;;  %vm4270_vm9 = vcmask (!%p4975_p4), 523264  }
 0x27c   : > { %4048 = sbr.rel (%p4975_p4) target bundleno = 722 (0x2d2), region = 52  ;;  %s7737_s27 = scalar_lea.vmem (!%p4975_p4), [#allocation2], %s4976_s4  ;;  %v4093_v61 = vld [vmem:[%s8224_s3] sm:$0x1] (!%p4975_p4) }
 0x27d   : > { %v4098_v22 = vshrl.u32 (!%p4975_p4), %v4097_v2, 7  ;;  %v4051_v6 = vld [vmem:[%s7737_s27] sm:$0xff] (!%p4975_p4)  ;;  %v4052_v57 = vld [vmem:[%s7737_s27 + $0x8] sm:$0xff] (!%p4975_p4)  ;;  %v4053_v16 = vld [vmem:[%s7737_s27 + $0x10] sm:$0xff] (!%p4975_p4) }
 0x27e   : > { %v4083_v27 = vld [vmem:[#allocation3] sm:$0x1] (!%p4975_p4)  ;;  %v4054_v58 = vld [vmem:[%s7737_s27 + $0x18] sm:$0xff] (!%p4975_p4)  ;;  %v4056_v38 = vld [vmem:[%s7737_s27 + $0x28] sm:$0xff] (!%p4975_p4) }
 0x27f   : > { %v4084_v0 = vmul.f32 (!%p4975_p4), 0.001953125, %v4083_v27  ;;  %v4099_v32 = vsub.s32 (!%p4975_p4), 0, %v4098_v22  ;;  %v4055_v29 = vld [vmem:[%s7737_s27 + $0x20] sm:$0xff] (!%p4975_p4)  ;;  %v4057_v43 = vld [vmem:[%s7737_s27 + $0x30] sm:$0xff] (!%p4975_p4)  ;;  %v4058_v36 = vld [vmem:[%s7737_s27 + $0x38] sm:$0xff] (!%p4975_p4) }
 0x280   : > { %v4085_v30 = vld [vmem:[#allocation4] sm:$0x1] (!%p4975_p4)  ;;  %v4060_v63 = vld [vmem:[%s7737_s27 + $0x48] sm:$0xff] (!%p4975_p4)  ;;  %v4061_v12 = vld [vmem:[%s7737_s27 + $0x50] sm:$0xff] (!%p4975_p4) }
 0x281   : > { %v4086_v3 = vmul.f32 (!%p4975_p4), 0.001953125, %v4085_v30  ;;  %v4087_v24 = vmul.f32 (!%p4975_p4), %v4084_v0, %v4084_v0  ;;  %v7752_v15 = vstv (!%p4975_p4), %s4172_s7  ;;  %v4059_v40 = vld [vmem:[%s7737_s27 + $0x40] sm:$0xff] (!%p4975_p4)  ;;  %v4062_v39 = vld [vmem:[%s7737_s27 + $0x58] sm:$0xff] (!%p4975_p4)  ;;  %v4064_v62 = vld [vmem:[%s7737_s27 + $0x68] sm:$0xff] (!%p4975_p4) }
 0x282   : > { %v4063_v49 = vld [vmem:[%s7737_s27 + $0x60] sm:$0xff] (!%p4975_p4) }
 0x283   : > { %v4088_v44 = vsub.f32 %v4086_v3, %v4087_v24 }
 0x285   : > { %v4090_v45 = vadd.f32 1e-05, %v4088_v44 }
 0x287   : > { %5624 = vrsqrt.f32 %v4090_v45 }
 0x291   : > { %v5625_v47 = vpop.eup %5624 }
 0x292   : > { %v4092_v46 = vmul.f32 %v5625_v47, %v4089_v33 }
 0x294   : > { %v4094_v50 = vmul.f32 %v4092_v46, %v4084_v0  ;;  %v7747_v26 = vrot.slane %v4092_v46, %v4099_v32  ;;  %v4065_v46 = vld [vmem:[%s7737_s27 + $0x70] sm:$0xff] }
 0x296   : > { %v4095_v11 = vsub.f32 %v4093_v61, %v4094_v50  ;;  %v4102_v8 = vmul.f32 %v7747_v26, %v4051_v6  ;;  %v4103_v19 = vmul.f32 %v7747_v26, %v4052_v57  ;;  %v4104_v21 = vmul.f32 %v7747_v26, %v4053_v16  ;;  %v4066_v16 = vld [vmem:[%s7737_s27 + $0x78] sm:$0xff] }
 0x297   : > { %v4105_v4 = vmul.f32 %v7747_v26, %v4054_v58  ;;  %v4106_v42 = vmul.f32 %v7747_v26, %v4055_v29  ;;  %v4107_v13 = vmul.f32 %v7747_v26, %v4056_v38  ;;  %v4108_v35 = vmul.f32 %v7747_v26, %v4057_v43  ;;  %v4067_v58 = vld [vmem:[%s7737_s27 + $0x80] sm:$0xff]  ;;  %v4068_v43 = vld [vmem:[%s7737_s27 + $0x88] sm:$0xff] }
 0x298   : > { %v7767_v23 = vrot.slane %v4095_v11, %v4099_v32  ;;  %v4109_v31 = vmul.f32 %v7747_v26, %v4058_v36  ;;  %v4110_v59 = vmul.f32 %v7747_v26, %v4059_v40  ;;  %v4111_v17 = vmul.f32 %v7747_v26, %v4060_v63  ;;  %v4069_v11 = vld [vmem:[%s7737_s27 + $0x90] sm:$0xff] }
 0x299   : > { %v4112_v20 = vmul.f32 %v7747_v26, %v4061_v12  ;;  %v4113_v54 = vmul.f32 %v7747_v26, %v4062_v39  ;;  %v4114_v34 = vmul.f32 %v7747_v26, %v4063_v49  ;;  %v7776_v41 = vmul.f32 %v7747_v26, %v4064_v62 }
 0x29a   : > { %v4140_v9 = vadd.f32 %v7767_v23, %v4102_v8  ;;  %v4141_v55 = vadd.f32 %v7767_v23, %v4103_v19  ;;  %v4142_v14 = vadd.f32 %v7767_v23, %v4104_v21  ;;  %v4143_v18 = vadd.f32 %v7767_v23, %v4105_v4  ;;  %v4070_v8 = vld [vmem:[%s7737_s27 + $0x98] sm:$0xff] }
 0x29b   : > { %v4144_v28 = vadd.f32 %v7767_v23, %v4106_v42  ;;  %v4145_v52 = vadd.f32 %v7767_v23, %v4107_v13  ;;  %v4146_v7 = vadd.f32 %v7767_v23, %v4108_v35  ;;  %v4147_v37 = vadd.f32 %v7767_v23, %v4109_v31 }
 0x29c   : > { %vm4173_vm10 = vcmp.ge.f32.partialorder %v4140_v9, 0.0  ;;  %v4206_v25 = vmul.f32 %v7752_v15, %v4140_v9  ;;  %vm4174_vm11 = vcmp.ge.f32.partialorder %v4141_v55, 0.0  ;;  %v4207_v1 = vmul.f32 %v7752_v15, %v4141_v55 }
 0x29d   : > { %vm4175_vm12 = vcmp.ge.f32.partialorder %v4142_v14, 0.0  ;;  %v4208_v10 = vmul.f32 %v7752_v15, %v4142_v14  ;;  %vm4176_vm13 = vcmp.ge.f32.partialorder %v4143_v18, 0.0  ;;  %v4209_v5 = vmul.f32 %v7752_v15, %v4143_v18 }
 0x29e   : > { %v7790_v51 = vsel %vm4173_vm10, %v4140_v9, %v4206_v25  ;;  %v7792_v56 = vsel %vm4174_vm11, %v4141_v55, %v4207_v1  ;;  %vm4177_vm14 = vcmp.ge.f32.partialorder %v4144_v28, 0.0  ;;  %v4210_v60 = vmul.f32 %v7752_v15, %v4144_v28  ;;  %v4072_v55 = vld [vmem:[%s7737_s27 + $0xa8] sm:$0xff] }
 0x29f   : > { %4271 = vst.msk [vmem:[%s5860_s20] sm:$0xff] %vm4270_vm9, %v7790_v51  ;;  %4272 = vst.msk [vmem:[%s5860_s20 + $0x8] sm:$0xff] %vm4270_vm9, %v7792_v56  ;;  %v7801_v53 = vsel %vm4175_vm12, %v4142_v14, %v4208_v10  ;;  %v7803_v48 = vsel %vm4176_vm13, %v4143_v18, %v4209_v5  ;;  %vm4178_vm15 = vcmp.ge.f32.partialorder %v4145_v52, 0.0  ;;  %v4211_v27 = vmul.f32 %v7752_v15, %v4145_v52  ;;  %v4074_v10 = vld [vmem:[%s7737_s27 + $0xb8] sm:$0xff]  ;;  %v4075_v5 = vld [vmem:[%s7737_s27 + $0xc0] sm:$0xff] }
 0x2a0   : > { %4273 = vst.msk [vmem:[%s5860_s20 + $0x10] sm:$0xff] %vm4270_vm9, %v7801_v53  ;;  %4274 = vst.msk [vmem:[%s5860_s20 + $0x18] sm:$0xff] %vm4270_vm9, %v7803_v48  ;;  %v7812_v30 = vsel %vm4177_vm14, %v4144_v28, %v4210_v60  ;;  %vm4179_vm0 = vcmp.ge.f32.partialorder %v4146_v7, 0.0  ;;  %v4212_v0 = vmul.f32 %v7752_v15, %v4146_v7  ;;  %vm4180_vm1 = vcmp.ge.f32.partialorder %v4147_v37, 0.0 }
 0x2a1   : > { %4275 = vst.msk [vmem:[%s5860_s20 + $0x20] sm:$0xff] %vm4270_vm9, %v7812_v30  ;;  %v7818_v3 = vsel %vm4178_vm15, %v4145_v52, %v4211_v27  ;;  %v4213_v24 = vmul.f32 %v7752_v15, %v4147_v37  ;;  %v4148_v44 = vadd.f32 %v7767_v23, %v4110_v59  ;;  %v4149_v45 = vadd.f32 %v7767_v23, %v4111_v17  ;;  %v4073_v52 = vld [vmem:[%s7737_s27 + $0xb0] sm:$0xff] }
 0x2a2   : > { %4276 = vst.msk [vmem:[%s5860_s20 + $0x28] sm:$0xff] %vm4270_vm9, %v7818_v3  ;;  %v7826_v2 = vsel %vm4179_vm0, %v4146_v7, %v4212_v0  ;;  %v4150_v22 = vadd.f32 %v7767_v23, %v4112_v20  ;;  %v4151_v33 = vadd.f32 %v7767_v23, %v4113_v54  ;;  %v4152_v32 = vadd.f32 %v7767_v23, %v4114_v34  ;;  %v4071_v34 = vld [vmem:[%s7737_s27 + $0xa0] sm:$0xff] }
 0x2a3   : > { %4277 = vst.msk [vmem:[%s5860_s20 + $0x30] sm:$0xff] %vm4270_vm9, %v7826_v2  ;;  %v7834_v47 = vsel %vm4180_vm1, %v4147_v37, %v4213_v24  ;;  %vm4181_vm2 = vcmp.ge.f32.partialorder %v4148_v44, 0.0  ;;  %v4214_v6 = vmul.f32 %v7752_v15, %v4148_v44  ;;  %vm4182_vm3 = vcmp.ge.f32.partialorder %v4149_v45, 0.0 }
 0x2a4   : > { %4278 = vst.msk [vmem:[%s5860_s20 + $0x38] sm:$0xff] %vm4270_vm9, %v7834_v47  ;;  %v4215_v61 = vmul.f32 %v7752_v15, %v4149_v45  ;;  %vm4183_vm4 = vcmp.ge.f32.partialorder %v4150_v22, 0.0  ;;  %v4216_v57 = vmul.f32 %v7752_v15, %v4150_v22  ;;  %vm4184_vm5 = vcmp.ge.f32.partialorder %v4151_v33, 0.0 }
 0x2a5   : > { %v7845_v29 = vsel %vm4181_vm2, %v4148_v44, %v4214_v6  ;;  %v4217_v50 = vmul.f32 %v7752_v15, %v4151_v33  ;;  %vm4185_vm6 = vcmp.ge.f32.partialorder %v4152_v32, 0.0  ;;  %v4218_v38 = vmul.f32 %v7752_v15, %v4152_v32 }
 0x2a6   : > { %4279 = vst.msk [vmem:[%s5860_s20 + $0x40] sm:$0xff] %vm4270_vm9, %v7845_v29  ;;  %v7853_v36 = vsel %vm4182_vm3, %v4149_v45, %v4215_v61  ;;  %v7855_v40 = vsel %vm4183_vm4, %v4150_v22, %v4216_v57  ;;  %v4153_v63 = vadd.f32 %v7767_v23, %v7776_v41  ;;  %v4116_v12 = vmul.f32 %v7747_v26, %v4065_v46  ;;  %v4076_v46 = vld [vmem:[%s7737_s27 + $0xc8] sm:$0xff] }
 0x2a7   : > { %4280 = vst.msk [vmem:[%s5860_s20 + $0x48] sm:$0xff] %vm4270_vm9, %v7853_v36  ;;  %4281 = vst.msk [vmem:[%s5860_s20 + $0x50] sm:$0xff] %vm4270_vm9, %v7855_v40  ;;  %v7869_v19 = vsel %vm4184_vm5, %v4151_v33, %v4217_v50  ;;  %v7871_v21 = vsel %vm4185_vm6, %v4152_v32, %v4218_v38  ;;  %v4117_v39 = vmul.f32 %v7747_v26, %v4066_v16  ;;  %vm4431_vm2 = vcmask 519168  }
 0x2a8   : > { %v4118_v49 = vmul.f32 %v7747_v26, %v4067_v58  ;;  %4282 = vst.msk [vmem:[%s5860_s20 + $0x58] sm:$0xff] %vm4270_vm9, %v7869_v19  ;;  %4283 = vst.msk [vmem:[%s5860_s20 + $0x60] sm:$0xff] %vm4270_vm9, %v7871_v21  ;;  %vm4186_vm7 = vcmp.ge.f32.partialorder %v4153_v63, 0.0  ;;  %v4219_v62 = vmul.f32 %v7752_v15, %v4153_v63  ;;  %v4154_v4 = vadd.f32 %v7767_v23, %v4116_v12 }
 0x2a9   : > { %v4119_v42 = vmul.f32 %v7747_v26, %v4068_v43  ;;  %v4155_v13 = vadd.f32 %v7767_v23, %v4117_v39  ;;  %v4120_v31 = vmul.f32 %v7747_v26, %v4069_v11  ;;  %v4121_v59 = vmul.f32 %v7747_v26, %v4070_v8  ;;  %v4077_v43 = vld [vmem:[%s7737_s27 + $0xd0] sm:$0xff]  ;;  %v4078_v8 = vld [vmem:[%s7737_s27 + $0xd8] sm:$0xff]  ;;  %v4079_v39 = vld [vmem:[%s7737_s27 + $0xe0] sm:$0xff] }
 0x2aa   : > { %v4156_v35 = vadd.f32 %v7767_v23, %v4118_v49  ;;  %v7888_v17 = vsel %vm4186_vm7, %v4153_v63, %v4219_v62  ;;  %vm4187_vm8 = vcmp.ge.f32.partialorder %v4154_v4, 0.0  ;;  %v4220_v20 = vmul.f32 %v7752_v15, %v4154_v4  ;;  %v4080_v49 = vld [vmem:[%s7737_s27 + $0xe8] sm:$0xff] }
 0x2ab   : > { %v4157_v54 = vadd.f32 %v7767_v23, %v4119_v42  ;;  %4284 = vst.msk [vmem:[%s5860_s20 + $0x68] sm:$0xff] %vm4270_vm9, %v7888_v17  ;;  %vm4188_vm10 = vcmp.ge.f32.partialorder %v4155_v13, 0.0  ;;  %v4221_v41 = vmul.f32 %v7752_v15, %v4155_v13  ;;  %v4158_v28 = vadd.f32 %v7767_v23, %v4120_v31 }
 0x2ac   : > { %vm4189_vm11 = vcmp.ge.f32.partialorder %v4156_v35, 0.0  ;;  %v4222_v9 = vmul.f32 %v7752_v15, %v4156_v35  ;;  %v7899_v14 = vsel %vm4187_vm8, %v4154_v4, %v4220_v20  ;;  %v4159_v25 = vadd.f32 %v7767_v23, %v4121_v59  ;;  %v4081_v59 = vld [vmem:[%s7737_s27 + $0xf0] sm:$0xff] }
 0x2ad   : > { %vm4190_vm12 = vcmp.ge.f32.partialorder %v4157_v54, 0.0  ;;  %v4223_v18 = vmul.f32 %v7752_v15, %v4157_v54  ;;  %4285 = vst.msk [vmem:[%s5860_s20 + $0x70] sm:$0xff] %vm4270_vm9, %v7899_v14  ;;  %v7907_v7 = vsel %vm4188_vm10, %v4155_v13, %v4221_v41  ;;  %v4122_v1 = vmul.f32 %v7747_v26, %v4071_v34 }
 0x2ae   : > { %v7909_v37 = vsel %vm4189_vm11, %v4156_v35, %v4222_v9  ;;  %4286 = vst.msk [vmem:[%s5860_s20 + $0x78] sm:$0xff] %vm4270_vm9, %v7907_v7  ;;  %vm4191_vm13 = vcmp.ge.f32.partialorder %v4158_v28, 0.0  ;;  %v4224_v27 = vmul.f32 %v7752_v15, %v4158_v28  ;;  %v4123_v0 = vmul.f32 %v7747_v26, %v4072_v55  ;;  %v4082_v9 = vld [vmem:[%s7737_s27 + $0xf8] sm:$0xff] }
 0x2af   : > { %4287 = vst.msk [vmem:[%s5860_s20 + $0x80] sm:$0xff] %vm4270_vm9, %v7909_v37  ;;  %v7921_v60 = vsel %vm4190_vm12, %v4157_v54, %v4223_v18  ;;  %vm4192_vm14 = vcmp.ge.f32.partialorder %v4159_v25, 0.0  ;;  %v4225_v24 = vmul.f32 %v7752_v15, %v4159_v25  ;;  %v4160_v44 = vadd.f32 %v7767_v23, %v4122_v1 }
 0x2b0   : > { %4288 = vst.msk [vmem:[%s5860_s20 + $0x88] sm:$0xff] %vm4270_vm9, %v7921_v60  ;;  %v4124_v45 = vmul.f32 %v7747_v26, %v4073_v52  ;;  %v7931_v22 = vsel %vm4191_vm13, %v4158_v28, %v4224_v27  ;;  %v4161_v33 = vadd.f32 %v7767_v23, %v4123_v0  ;;  %v4125_v32 = vmul.f32 %v7747_v26, %v4074_v10 }
 0x2b1   : > { %v4126_v6 = vmul.f32 %v7747_v26, %v4075_v5  ;;  %4289 = vst.msk [vmem:[%s5860_s20 + $0x90] sm:$0xff] %vm4270_vm9, %v7931_v22  ;;  %v7940_v61 = vsel %vm4192_vm14, %v4159_v25, %v4225_v24  ;;  %vm4193_vm15 = vcmp.ge.f32.partialorder %v4160_v44, 0.0  ;;  %v4226_v57 = vmul.f32 %v7752_v15, %v4160_v44 }
 0x2b2   : > { %v4162_v16 = vadd.f32 %v7767_v23, %v4124_v45  ;;  %4290 = vst.msk [vmem:[%s5860_s20 + $0x98] sm:$0xff] %vm4270_vm9, %v7940_v61  ;;  %vm4194_vm0 = vcmp.ge.f32.partialorder %v4161_v33, 0.0  ;;  %v4227_v58 = vmul.f32 %v7752_v15, %v4161_v33  ;;  %v4163_v50 = vadd.f32 %v7767_v23, %v4125_v32 }
 0x2b3   : > { %v4164_v38 = vadd.f32 %v7767_v23, %v4126_v6  ;;  %v7951_v63 = vsel %vm4193_vm15, %v4160_v44, %v4226_v57  ;;  %v4127_v11 = vmul.f32 %v7747_v26, %v4076_v46  ;;  %v4128_v31 = vmul.f32 %v7747_v26, %v4077_v43 }
 0x2b4   : > { %vm4195_vm1 = vcmp.ge.f32.partialorder %v4162_v16, 0.0  ;;  %v4228_v12 = vmul.f32 %v7752_v15, %v4162_v16  ;;  %4291 = vst.msk [vmem:[%s5860_s20 + $0xa0] sm:$0xff] %vm4270_vm9, %v7951_v63  ;;  %v7961_v62 = vsel %vm4194_vm0, %v4161_v33, %v4227_v58  ;;  %vm4196_vm3 = vcmp.ge.f32.partialorder %v4163_v50, 0.0 }
 0x2b5   : > { %v4229_v4 = vmul.f32 %v7752_v15, %v4163_v50  ;;  %vm4197_vm4 = vcmp.ge.f32.partialorder %v4164_v38, 0.0  ;;  %4292 = vst.msk [vmem:[%s5860_s20 + $0xa8] sm:$0xff] %vm4270_vm9, %v7961_v62  ;;  %v4230_v13 = vmul.f32 %v7752_v15, %v4164_v38  ;;  %v4165_v35 = vadd.f32 %v7767_v23, %v4127_v11 }
 0x2b6   : > { %v7967_v42 = vsel %vm4195_vm1, %v4162_v16, %v4228_v12  ;;  %v4129_v54 = vmul.f32 %v7747_v26, %v4078_v8  ;;  %v4130_v34 = vmul.f32 %v7747_v26, %v4079_v39  ;;  %v4131_v41 = vmul.f32 %v7747_v26, %v4080_v49 }
 0x2b7   : > { %4293 = vst.msk [vmem:[%s5860_s20 + $0xb0] sm:$0xff] %vm4270_vm9, %v7967_v42  ;;  %v7976_v20 = vsel %vm4196_vm3, %v4163_v50, %v4229_v4  ;;  %v7985_v55 = vsel %vm4197_vm4, %v4164_v38, %v4230_v13  ;;  %vm4198_vm5 = vcmp.ge.f32.partialorder %v4165_v35, 0.0  ;;  %v4231_v18 = vmul.f32 %v7752_v15, %v4165_v35 }
 0x2b8   : > { %4294 = vst.msk [vmem:[%s5860_s20 + $0xb8] sm:$0xff] %vm4270_vm9, %v7976_v20  ;;  %v4166_v28 = vadd.f32 %v7767_v23, %v4128_v31  ;;  %4295 = vst.msk [vmem:[%s5860_s20 + $0xc0] sm:$0xff] %vm4270_vm9, %v7985_v55  ;;  %v4167_v52 = vadd.f32 %v7767_v23, %v4129_v54  ;;  %v4168_v25 = vadd.f32 %v7767_v23, %v4130_v34 }
 0x2b9   : > { %v4169_v1 = vadd.f32 %v7767_v23, %v4131_v41  ;;  %v4132_v10 = vmul.f32 %v7747_v26, %v4081_v59  ;;  %v7996_v5 = vsel %vm4198_vm5, %v4165_v35, %v4231_v18  ;;  %v4133_v0 = vmul.f32 %v7747_v26, %v4082_v9 }
 0x2ba   : > { %vm4199_vm6 = vcmp.ge.f32.partialorder %v4166_v28, 0.0  ;;  %v4232_v27 = vmul.f32 %v7752_v15, %v4166_v28  ;;  %4296 = vst.msk [vmem:[%s5860_s20 + $0xc8] sm:$0xff] %vm4270_vm9, %v7996_v5  ;;  %vm4200_vm7 = vcmp.ge.f32.partialorder %v4167_v52, 0.0  ;;  %v4233_v24 = vmul.f32 %v7752_v15, %v4167_v52 }
 0x2bb   : > { %vm4201_vm8 = vcmp.ge.f32.partialorder %v4168_v25, 0.0  ;;  %v4234_v44 = vmul.f32 %v7752_v15, %v4168_v25  ;;  %vm4202_vm10 = vcmp.ge.f32.partialorder %v4169_v1, 0.0  ;;  %v4235_v33 = vmul.f32 %v7752_v15, %v4169_v1 }
 0x2bc   : > { %v8005_v45 = vsel %vm4199_vm6, %v4166_v28, %v4232_v27  ;;  %v4170_v32 = vadd.f32 %v7767_v23, %v4132_v10  ;;  %v8012_v26 = vsel %vm4200_vm7, %v4167_v52, %v4233_v24  ;;  %v4171_v46 = vadd.f32 %v7767_v23, %v4133_v0 }
 0x2bd   : > { %4297 = vst.msk [vmem:[%s5860_s20 + $0xd0] sm:$0xff] %vm4270_vm9, %v8005_v45  ;;  %v8014_v6 = vsel %vm4201_vm8, %v4168_v25, %v4234_v44  ;;  %v5015_v57 = vpack.c.bf16 %v7790_v51, %v7790_v51  ;;  %4298 = vst.msk [vmem:[%s5860_s20 + $0xd8] sm:$0xff] %vm4270_vm9, %v8012_v26  ;;  %v8025_v16 = vsel %vm4202_vm10, %v4169_v1, %v4235_v33 }
 0x2be   : > { %4299 = vst.msk [vmem:[%s5860_s20 + $0xe0] sm:$0xff] %vm4270_vm9, %v8014_v6  ;;  %vm4203_vm11 = vcmp.ge.f32.partialorder %v4170_v32, 0.0  ;;  %v4236_v58 = vmul.f32 %v7752_v15, %v4170_v32  ;;  %v5016_v23 = vpack.c.bf16 %v7792_v56, %v7792_v56  ;;  %4300 = vst.msk [vmem:[%s5860_s20 + $0xe8] sm:$0xff] %vm4270_vm9, %v8025_v16  ;;  %vm4204_vm12 = vcmp.ge.f32.partialorder %v4171_v46, 0.0 }
 0x2bf   : > { %v4237_v51 = vmul.f32 %v7752_v15, %v4171_v46  ;;  %4432 = vst.msk [vmem:[%s5858_s9] sm:$0xf] %vm4431_vm2, %v5015_v57  ;;  %v5017_v50 = vpack.c.bf16 %v7801_v53, %v7801_v53  ;;  %v5018_v38 = vpack.c.bf16 %v7803_v48, %v7803_v48  ;;  %v5019_v56 = vpack.c.bf16 %v7812_v30, %v7812_v30 }
 0x2c0   : > { %v4268_v43 = vsel %vm4203_vm11, %v4170_v32, %v4236_v58  ;;  %4433 = vst.msk [vmem:[%s5858_s9 + $0x4] sm:$0xf] %vm4431_vm2, %v5016_v23  ;;  %v5020_v15 = vpack.c.bf16 %v7818_v3, %v7818_v3  ;;  %v5021_v12 = vpack.c.bf16 %v7826_v2, %v7826_v2  ;;  %v5022_v48 = vpack.c.bf16 %v7834_v47, %v7834_v47 }
 0x2c1   : > { %4301 = vst.msk [vmem:[%s5860_s20 + $0xf0] sm:$0xff] %vm4270_vm9, %v4268_v43  ;;  %v4269_v53 = vsel %vm4204_vm12, %v4171_v46, %v4237_v51  ;;  %v5023_v30 = vpack.c.bf16 %v7845_v29, %v7845_v29  ;;  %v5024_v3 = vpack.c.bf16 %v7853_v36, %v7853_v36  ;;  %v5025_v2 = vpack.c.bf16 %v7855_v40, %v7855_v40 }
 0x2c2   : > { %4434 = vst.msk [vmem:[%s5858_s9 + $0x8] sm:$0xf] %vm4431_vm2, %v5017_v50  ;;  %4435 = vst.msk [vmem:[%s5858_s9 + $0xc] sm:$0xf] %vm4431_vm2, %v5018_v38  ;;  %v5026_v47 = vpack.c.bf16 %v7869_v19, %v7869_v19  ;;  %v5027_v29 = vpack.c.bf16 %v7871_v21, %v7871_v21  ;;  %v5028_v36 = vpack.c.bf16 %v7888_v17, %v7888_v17 }
 0x2c3   : > { %4302 = vst.msk [vmem:[%s5860_s20 + $0xf8] sm:$0xff] %vm4270_vm9, %v4269_v53  ;;  %v5029_v40 = vpack.c.bf16 %v7899_v14, %v7899_v14  ;;  %v5030_v19 = vpack.c.bf16 %v7907_v7, %v7907_v7  ;;  %v5031_v21 = vpack.c.bf16 %v7909_v37, %v7909_v37  ;;  %v5032_v17 = vpack.c.bf16 %v7921_v60, %v7921_v60 }
 0x2c4   : > { %4436 = vst.msk [vmem:[%s5858_s9 + $0x10] sm:$0xf] %vm4431_vm2, %v5019_v56  ;;  %4437 = vst.msk [vmem:[%s5858_s9 + $0x14] sm:$0xf] %vm4431_vm2, %v5020_v15  ;;  %v5033_v14 = vpack.c.bf16 %v7931_v22, %v7931_v22  ;;  %v5034_v7 = vpack.c.bf16 %v7940_v61, %v7940_v61  ;;  %v5035_v37 = vpack.c.bf16 %v7951_v63, %v7951_v63 }
 0x2c5   : > { %4438 = vst.msk [vmem:[%s5858_s9 + $0x18] sm:$0xf] %vm4431_vm2, %v5021_v12  ;;  %4439 = vst.msk [vmem:[%s5858_s9 + $0x1c] sm:$0xf] %vm4431_vm2, %v5022_v48  ;;  %v5036_v60 = vpack.c.bf16 %v7961_v62, %v7961_v62  ;;  %v5037_v22 = vpack.c.bf16 %v7967_v42, %v7967_v42  ;;  %v5038_v61 = vpack.c.bf16 %v7976_v20, %v7976_v20 }
 0x2c6   : > { %4440 = vst.msk [vmem:[%s5858_s9 + $0x20] sm:$0xf] %vm4431_vm2, %v5023_v30  ;;  %4441 = vst.msk [vmem:[%s5858_s9 + $0x24] sm:$0xf] %vm4431_vm2, %v5024_v3  ;;  %v5039_v63 = vpack.c.bf16 %v7985_v55, %v7985_v55  ;;  %v5040_v11 = vpack.c.bf16 %v7996_v5, %v7996_v5  ;;  %v5041_v8 = vpack.c.bf16 %v8005_v45, %v8005_v45 }
 0x2c7   : > { %4442 = vst.msk [vmem:[%s5858_s9 + $0x28] sm:$0xf] %vm4431_vm2, %v5025_v2  ;;  %4443 = vst.msk [vmem:[%s5858_s9 + $0x2c] sm:$0xf] %vm4431_vm2, %v5026_v47  ;;  %v5042_v39 = vpack.c.bf16 %v8012_v26, %v8012_v26  ;;  %v5043_v49 = vpack.c.bf16 %v8014_v6, %v8014_v6  ;;  %v5044_v62 = vpack.c.bf16 %v8025_v16, %v8025_v16 }
 0x2c8   : > { %4444 = vst.msk [vmem:[%s5858_s9 + $0x30] sm:$0xf] %vm4431_vm2, %v5027_v29  ;;  %4445 = vst.msk [vmem:[%s5858_s9 + $0x34] sm:$0xf] %vm4431_vm2, %v5028_v36  ;;  %v5045_v4 = vpack.c.bf16 %v4268_v43, %v4268_v43  ;;  %v5046_v42 = vpack.c.bf16 %v4269_v53, %v4269_v53 }
 0x2c9   : > { %4446 = vst.msk [vmem:[%s5858_s9 + $0x38] sm:$0xf] %vm4431_vm2, %v5029_v40  ;;  %4447 = vst.msk [vmem:[%s5858_s9 + $0x3c] sm:$0xf] %vm4431_vm2, %v5030_v19 }
 0x2ca   : > { %4448 = vst.msk [vmem:[%s5858_s9 + $0x40] sm:$0xf] %vm4431_vm2, %v5031_v21  ;;  %4449 = vst.msk [vmem:[%s5858_s9 + $0x44] sm:$0xf] %vm4431_vm2, %v5032_v17 }
 0x2cb   : > { %4450 = vst.msk [vmem:[%s5858_s9 + $0x48] sm:$0xf] %vm4431_vm2, %v5033_v14  ;;  %4451 = vst.msk [vmem:[%s5858_s9 + $0x4c] sm:$0xf] %vm4431_vm2, %v5034_v7 }
 0x2cc   : > { %4452 = vst.msk [vmem:[%s5858_s9 + $0x50] sm:$0xf] %vm4431_vm2, %v5035_v37  ;;  %4453 = vst.msk [vmem:[%s5858_s9 + $0x54] sm:$0xf] %vm4431_vm2, %v5036_v60 }
 0x2cd   : > { %4454 = vst.msk [vmem:[%s5858_s9 + $0x58] sm:$0xf] %vm4431_vm2, %v5037_v22  ;;  %4455 = vst.msk [vmem:[%s5858_s9 + $0x5c] sm:$0xf] %vm4431_vm2, %v5038_v61 }
 0x2ce   : > { %4456 = vst.msk [vmem:[%s5858_s9 + $0x60] sm:$0xf] %vm4431_vm2, %v5039_v63  ;;  %4457 = vst.msk [vmem:[%s5858_s9 + $0x64] sm:$0xf] %vm4431_vm2, %v5040_v11 }
 0x2cf   : > { %4458 = vst.msk [vmem:[%s5858_s9 + $0x68] sm:$0xf] %vm4431_vm2, %v5041_v8  ;;  %4459 = vst.msk [vmem:[%s5858_s9 + $0x6c] sm:$0xf] %vm4431_vm2, %v5042_v39 }
 0x2d0   : > { %4460 = vst.msk [vmem:[%s5858_s9 + $0x70] sm:$0xf] %vm4431_vm2, %v5043_v49  ;;  %4461 = vst.msk [vmem:[%s5858_s9 + $0x74] sm:$0xf] %vm4431_vm2, %v5044_v62 }
 0x2d1   : > { %4462 = vst.msk [vmem:[%s5858_s9 + $0x78] sm:$0xf] %vm4431_vm2, %v5045_v4  ;;  %4463 = vst.msk [vmem:[%s5858_s9 + $0x7c] sm:$0xf] %vm4431_vm2, %v5046_v42 }
 0x2d2 PF: > { %s5047_s18 = sshll.u32 %s5843_s21, 12  ;;  %s4485_s17 = sshll.u32 %s5860_s20, 4  ;;  %s8165_s17 = int_to_ptr.vmem [resolvable:$true] %s4485_s17 }
 0x2d3   : > { %s8162_s15 = scalar_lea.hbm %s8226_s5, %s5047_s18  ;;  %s8312_s4 = sand.u32 1, %s5696_s24  }
 0x2d4   : > { %s8169_s7 = scalar_lea.sflag [#allocation7], %s8312_s4  ;;  %s5626_s9 = scalar_lea.vmem %s8165_s17, 4096 }
 0x2d5   : > { %p5627_p5 = scmp.ne.s32.totalorder %s8165_s17, %s5626_s9  ;;  %s5724_s21 = smov [#allocation6]  }
 0x2d6   : > { %s5630_s10 = sshll.u32 %s5724_s21, 4  ;;  %s5631_s10 = int_to_ptr.vmem [resolvable:$false] %s5630_s10 }
 0x2d7   : > { %p5628_p7 = pnand %p5627_p5, %p5818_p6  ;;  %s5632_s13 = scalar_lea.vmem %s5631_s10, 8192 }
 0x2d8   : > { %p5633_p10 = scmp.lt.s32.totalorder %s8165_s17, %s5631_s10  ;;  %p5634_p11 = scmp.lt.s32.totalorder %s5632_s13, %s5626_s9 }
 0x2d9   : > { %p5629_p9 = pneg %p5628_p7 }
 0x2da   : > { %p5635_p12 = por %p5634_p11, %p5633_p10 }
 0x2dc   : > { %p5636_p13 = pnand %p5635_p12, %p5629_p9 }
 0x2de   : > { %5639 = shalt.err (!%p5636_p13)
}
 0x2df   : > { %s5640_s20 = scalar_lea.hbm %s8162_s15, 4096  ;;  %s5644_s14 = scalar_lea.hbm %s8226_s5, 8192 }
 0x2e0   : > { %p5641_p0 = scmp.ne.s32.totalorder %s8162_s15, %s5640_s20  ;;  %p5645_p3 = scmp.lt.u32.totalorder %s8162_s15, %s8226_s5 }
 0x2e1   : > { %p5646_p4 = scmp.lt.u32.totalorder %s5644_s14, %s5640_s20  ;;  %p5648_p7 = scmp.lt.u32.totalorder %s5640_s20, %s8162_s15 }
 0x2e2   : > { %p5642_p1 = pnand %p5641_p0, %p5818_p6 }
 0x2e3   : > { %p5647_p5 = por %p5646_p4, %p5645_p3 }
 0x2e4   : > { %p5643_p2 = pneg %p5642_p1 }
 0x2e5   : > { %p5649_p9 = por %p5648_p7, %p5647_p5 }
 0x2e7   : > { %p5650_p10 = pnand %p5649_p9, %p5643_p2 }
 0x2e9   : > { %5653 = shalt.err (!%p5650_p10)
}
 0x2ea   : > { %s5725_s22 = smov 128   ;;  %s5726_s4 = smov 8  }
 0x2eb   : > { %5349 = dma.vmem_to_hbm [thread:$0]  (%p5818_p6), %s8165_s17, 4096, %s8162_s15, %s8169_s7, %s5725_s22, %s5725_s22, %s5726_s4  }
 0x2ec PF: > { %p5355_p11 = scmp.ge.s32.totalorder %s5720_s30, 2  ;;  %s4504_s9 = sand.u32 1, %s5692_s23  }
 0x2ed   : > { %s4505_s21 = scalar_lea.sflag [#allocation7], %s4504_s9 }
 0x2ee   : > { %p5352_p12 = pnand %p5355_p11, %p5825_p8 }
 0x2f0   : > { %5687 = dma.done.wait (!%p5352_p12), %s4505_s21, 4096  }
 0x2f1   : > { %5689 = vsyncadd (!%p5352_p12), %s4505_s21, 4294963200  ;;  %s21_s30 = sadd.s32 1, %s5720_s30   ;;  %s8313_s11 = sld [smem:[#allocation9_spill]] }
 0x2f2   : > { %p18_p13 = scmp.ge.s32.totalorder %s21_s30, 6   ;;  %s8314_s23 = smov %s5696_s24 }
 0x2f3   : > { %s8315_s24 = smov %s5700_s25  ;;  %s8316_s25 = smov %s5834_s16 }
 0x2f4   : > { %s8317_s26 = smov %s5712_s28  ;;  %s8318_s27 = smov %s5716_s29 }
 0x2f5   : > { %s8319_s28 = smov %s8322_s8  ;;  %20 = sbr.rel (!%p18_p13) target bundleno = 7 (0x7), region = 103 }
 0x2f7   : > { %s8320_s29 = smov %s8313_s11 }
 0x2fc   :  { %4519 = vsyncpa [#allocation7], 1 }
 0x2fd   :  { %4521 = vsyncpa [#allocation7 + $0x1], 1 }

</bundles_post_ra>
